<compile_context>
chip_gen: v7x
topology: tpu7x:2x2x1
jax: 0.10.0
libtpu: 0.0.40
codegen_flags: <defaults>
</compile_context>

<pallas_src>
import jax
import jax.numpy as jnp
from jax.experimental import pallas as pl
from jax.experimental.pallas import tpu as pltpu

# Static network dimensions (MNIST).
K = 5             # conv kernel size
C1 = 32           # conv1 out channels
C2 = 64           # conv2 out channels
H0 = 28           # input spatial size
H1 = H0 - K + 1   # 24 (conv1 out)
P1 = H1 // 2      # 12 (pool1 out)
H2 = P1 - K + 1   # 8  (conv2 out)
P2 = H2 // 2      # 4  (pool2 out)
FC1 = 1024
NCLS = 10
NPAD = 128        # classes padded to a full lane group
NEG = -1e9


# ---------------------------------------------------------------------------
# Fused Pallas kernel: one grid step = B_TILE images.
# Activation layout everywhere: [spatial_row, batch, (spatial_col, channel)].
# ---------------------------------------------------------------------------
def _mnist_fused_kernel(x_ref, w1_ref, b1_ref, w2_ref, b2_ref,
                        w3_ref, b3_ref, w4_ref, b4_ref, out_ref):
    f32, bf16 = jnp.float32, jnp.bfloat16
    B = x_ref.shape[1]                                   # B_TILE (multiple of 8)

    x = x_ref[...]                                       # [28, B, 28] f32

    # ---- conv1 (1->32, k=5) as ONE GEMM: lane-concat 5 row-shifted slices,
    #      then [24B, 140] x [140, 768] (768 = 24 cols x 32 chans on lanes).
    x5 = jnp.concatenate([x[di:di + H1] for di in range(K)], axis=-1)   # [24,B,140]
    x5 = x5.reshape(H1 * B, K * H0)                                     # [24B,140]
    h1 = jnp.dot(x5, w1_ref[...], preferred_element_type=f32) + b1_ref[...]  # [24B,768]

    # ---- maxpool 2x2 (1): row pairs via leading-dim split (free), col pairs
    #      via static 32-lane slices + lane concat.
    h1 = h1.reshape(P1, 2, B, H1 * C1)
    h1 = jnp.maximum(h1[:, 0], h1[:, 1])                                # [12,B,768]
    ev = jnp.concatenate([h1[:, :, (2 * j) * C1:(2 * j + 1) * C1]
                          for j in range(P1)], axis=-1)
    od = jnp.concatenate([h1[:, :, (2 * j + 1) * C1:(2 * j + 2) * C1]
                          for j in range(P1)], axis=-1)
    p1 = jnp.maximum(ev, od)                                            # [12,B,384]

    # ---- conv2 (32->64, k=5) as ONE GEMM: [8B, 1920] x [1920, 512]
    #      (bf16 operands, f32 accumulation; 512 = 8 cols x 64 chans).
    x52 = jnp.concatenate([p1[di:di + H2] for di in range(K)], axis=-1)  # [8,B,1920]
    x52 = x52.reshape(H2 * B, K * P1 * C1).astype(bf16)
    h2 = jnp.dot(x52, w2_ref[...], preferred_element_type=f32) + b2_ref[...]  # [8B,512]

    # ---- maxpool 2x2 (2)
    h2 = h2.reshape(P2, 2, B, H2 * C2)
    h2 = jnp.maximum(h2[:, 0], h2[:, 1])                                # [4,B,512]
    ev2 = jnp.concatenate([h2[:, :, (2 * j) * C2:(2 * j + 1) * C2]
                           for j in range(P2)], axis=-1)
    od2 = jnp.concatenate([h2[:, :, (2 * j + 1) * C2:(2 * j + 2) * C2]
                           for j in range(P2)], axis=-1)
    p2 = jnp.maximum(ev2, od2).astype(bf16)                             # [4,B,256]

    # ---- fc1 + relu: K=1024 contraction split into 4 chunks of 256 (one per
    #      pooled row h); torch (C,H,W) flatten order is baked into w3.
    acc = jnp.dot(p2[0], w3_ref[0], preferred_element_type=f32)
    for h in range(1, P2):
        acc = acc + jnp.dot(p2[h], w3_ref[h], preferred_element_type=f32)
    y = jnp.maximum(acc + b3_ref[...], 0.0)                             # [B,1024]

    # TODO(synk): training-mode dropout (p=0.5 mask + 2x scaling via
    # pltpu.prng_*) not implemented; inference mode is an identity.

    # ---- fc2 + softmax over the 128-padded class lanes (pad bias = -1e9 so
    #      padded lanes contribute exp(...) == 0).
    logits = jnp.dot(y.astype(bf16), w4_ref[...],
                     preferred_element_type=f32) + b4_ref[...]          # [B,128]
    m = jnp.max(logits, axis=-1, keepdims=True)
    e = jnp.exp(logits - m)
    s = jnp.sum(e, axis=-1, keepdims=True)
    out_ref[...] = (e * pl.reciprocal(s, approx=True)).astype(out_ref.dtype)


# ---------------------------------------------------------------------------
# Wrapper
# ---------------------------------------------------------------------------
def _round_up(n, m):
    return ((n + m - 1) // m) * m


def mnist_forward(x_nchw, prep, *, b_tile=64):
    """Fused forward pass. `prep` comes from prepare_params() (done once).

    b_tile: images per grid step.  64 is safe on v5e/v6e/v7x with the 48 MiB
    VMEM limit below; on v6e (128 MiB VMEM, 256x256 MXU) 128-256 with a higher
    vmem_limit_bytes gives better MXU utilization.
    """
    B = x_nchw.shape[0]
    x = x_nchw.reshape(B, H0, H0).astype(jnp.float32)    # drop the size-1 channel
    x = jnp.transpose(x, (1, 0, 2))                      # [28, B, 28] (H, batch, W)

    bt = min(_round_up(b_tile, 8), _round_up(B, 8))      # batch tile, multiple of 8
    b_pad = _round_up(B, bt)
    if b_pad != B:
        x = jnp.pad(x, ((0, 0), (0, b_pad - B), (0, 0)))
    grid = (b_pad // bt,)

    def full(shape):  # whole-array, constant-index block -> VMEM-resident weight
        zeros = (0,) * len(shape)
        return pl.BlockSpec(shape, lambda b, _z=zeros: _z)

    out = pl.pallas_call(
        _mnist_fused_kernel,
        out_shape=jax.ShapeDtypeStruct((b_pad, NPAD), jnp.float32),
        grid_spec=pltpu.PrefetchScalarGridSpec(
            num_scalar_prefetch=0,
            grid=grid,
            in_specs=[
                pl.BlockSpec((H0, bt, H0), lambda b: (0, b, 0)),  # images
                full((K * H0, H1 * C1)),        # conv1 row-window weight [140, 768] f32
                full((1, H1 * C1)),             # conv1 bias (tiled over cols)
                full((K * P1 * C1, H2 * C2)),   # conv2 row-window weight [1920, 512] bf16
                full((1, H2 * C2)),             # conv2 bias (tiled over cols)
                full((P2, P2 * C2, FC1)),       # fc1 weight [4, 256, 1024] bf16
                full((1, FC1)),                 # fc1 bias
                full((FC1, NPAD)),              # fc2 weight [1024, 128] bf16 (padded)
                full((1, NPAD)),                # fc2 bias (padded with -1e9)
            ],
            out_specs=pl.BlockSpec((bt, NPAD), lambda b: (b, 0)),
        ),
        compiler_params=pltpu.CompilerParams(
            dimension_semantics=("parallel",),
            vmem_limit_bytes=48 * 1024 * 1024,
        ),
    )(x, prep["w1"], prep["b1"], prep["w2"], prep["b2"],
      prep["w3"], prep["b3"], prep["w4"], prep["b4"])
    return out[:B, :NCLS]


# ---------------------------------------------------------------------------
# Parameters (PyTorch layout) and one-time offline preparation
# ---------------------------------------------------------------------------
def init_params(key):
    ks = jax.random.split(key, 8)
    s = 0.05
    return {
        "conv1_w": s * jax.random.normal(ks[0], (C1, 1, K, K), jnp.float32),
        "conv1_b": s * jax.random.normal(ks[1], (C1,), jnp.float32),
        "conv2_w": s * jax.random.normal(ks[2], (C2, C1, K, K), jnp.float32),
        "conv2_b": s * jax.random.normal(ks[3], (C2,), jnp.float32),
        "fc1_w": s * jax.random.normal(ks[4], (FC1, FC1), jnp.float32),
        "fc1_b": s * jax.random.normal(ks[5], (FC1,), jnp.float32),
        "fc2_w": s * jax.random.normal(ks[6], (NCLS, FC1), jnp.float32),
        "fc2_b": s * jax.random.normal(ks[7], (NCLS,), jnp.float32),
    }


def prepare_params(params):
    """One-time conversion of PyTorch-layout params into kernel layouts.

    conv weights become structured 'row-window' matrices so each conv is a
    single GEMM over 5 row-shifted slices:
      w1big[di*28 + p, j*32 + c]              = conv1_w[c, 0, di, p - j]   (0<=p-j<5)
      w2big[di*384 + jj*32 + ci, oj*64 + co]  = conv2_w[co, ci, di, jj-oj] (0<=jj-oj<5)
    fc1 weight is permuted so torch's NCHW flatten order is baked in, and fc2
    weight/bias are padded to 128 output lanes (bias pad = -1e9).
    """
    f32, bf16 = jnp.float32, jnp.bfloat16

    w1 = jnp.transpose(params["conv1_w"][:, 0], (1, 2, 0)).astype(f32)  # [di,dj,c]
    w1big = jnp.zeros((K, H0, H1, C1), f32)
    for j in range(H1):
        w1big = w1big.at[:, j:j + K, j, :].set(w1)
    w1big = w1big.reshape(K * H0, H1 * C1)                               # [140, 768]

    w2 = jnp.transpose(params["conv2_w"], (2, 3, 1, 0)).astype(f32)      # [di,dj,ci,co]
    w2big = jnp.zeros((K, P1, C1, H2, C2), f32)
    for oj in range(H2):
        w2big = w2big.at[:, oj:oj + K, :, oj, :].set(w2)
    w2big = w2big.reshape(K * P1 * C1, H2 * C2)                          # [1920, 512]

    w3 = params["fc1_w"].reshape(FC1, C2, P2, P2)                        # [n, c, h, w]
    w3 = jnp.transpose(w3, (2, 3, 1, 0)).reshape(P2, P2 * C2, FC1)       # [h,(w,c),n]

    w4 = jnp.transpose(params["fc2_w"], (1, 0))                          # [1024, 10]
    w4 = jnp.pad(w4, ((0, 0), (0, NPAD - NCLS)))
    b4 = jnp.pad(params["fc2_b"], (0, NPAD - NCLS), constant_values=NEG)

    return {
        "w1": w1big.astype(f32),
        "b1": jnp.tile(params["conv1_b"], H1).reshape(1, H1 * C1).astype(f32),
        "w2": w2big.astype(bf16),
        "b2": jnp.tile(params["conv2_b"], H2).reshape(1, H2 * C2).astype(f32),
        "w3": w3.astype(bf16),
        "b3": params["fc1_b"].reshape(1, FC1).astype(f32),
        "w4": w4.astype(bf16),
        "b4": b4.reshape(1, NPAD).astype(f32),
    }


def mnist_reference(x_nchw, params):
    """Pure-JAX (XLA) reference matching the PyTorch module semantics."""
    x = jnp.transpose(x_nchw, (0, 2, 3, 1)).astype(jnp.float32)

    def conv(x, w, b):  # w: [co, ci, kh, kw] (torch layout)
        y = jax.lax.conv_general_dilated(
            x, jnp.transpose(w, (2, 3, 1, 0)), (1, 1), "VALID",
            dimension_numbers=("NHWC", "HWIO", "NHWC"))
        return y + b

    def pool(x):
        B, H, W, C = x.shape
        return jnp.max(x.reshape(B, H // 2, 2, W // 2, 2, C), axis=(2, 4))

    y = pool(conv(x, params["conv1_w"], params["conv1_b"]))
    y = pool(conv(y, params["conv2_w"], params["conv2_b"]))
    B = y.shape[0]
    y = jnp.transpose(y, (0, 3, 1, 2)).reshape(B, FC1)   # torch (C,H,W) flatten
    y = jnp.maximum(y @ params["fc1_w"].T + params["fc1_b"], 0.0)
    y = y @ params["fc2_w"].T + params["fc2_b"]
    return jax.nn.softmax(y, axis=1)


if __name__ == "__main__":
    key = jax.random.PRNGKey(0)
    kx, kp = jax.random.split(key)
    BATCH = 8
    x = jax.random.normal(kx, (BATCH, 1, H0, H0), jnp.float32)
    params = init_params(kp)
    prep = prepare_params(params)          # one-time, outside the hot path

    fwd = jax.jit(mnist_forward)
    out = jax.block_until_ready(fwd(x, prep))

    assert out.shape == (BATCH, NCLS)
    row_sums = jnp.sum(out, axis=1)
    assert bool(jnp.all(jnp.abs(row_sums - 1.0) < 1e-2))

    # Loose tolerance: conv2/fc1/fc2 use bf16 matmul operands (f32 accumulate)
    # and the softmax denominator uses the approximate EUP reciprocal.
    ref = mnist_reference(x, params)
    err = float(jnp.max(jnp.abs(out - ref)))
    assert err < 3e-2, err

    print("KERNEL_OK")
</pallas_src>

<mosaic_0001>
module attributes {stable_mosaic.version = 11 : i64} {
  func.func @_mnist_fused_kernel(%arg0: i32, %arg1: memref<28x8x28xf32, #tpu.memory_space<vmem>>, %arg2: memref<140x768xf32, #tpu.memory_space<vmem>>, %arg3: memref<1x768xf32, #tpu.memory_space<vmem>>, %arg4: memref<1920x512xbf16, #tpu.memory_space<vmem>>, %arg5: memref<1x512xf32, #tpu.memory_space<vmem>>, %arg6: memref<4x256x1024xbf16, #tpu.memory_space<vmem>>, %arg7: memref<1x1024xf32, #tpu.memory_space<vmem>>, %arg8: memref<1024x128xbf16, #tpu.memory_space<vmem>>, %arg9: memref<1x128xf32, #tpu.memory_space<vmem>>, %arg10: memref<8x128xf32, #tpu.memory_space<vmem>>) attributes {dimension_semantics = [#tpu.dimension_semantics<parallel>], iteration_bounds = array<i64: 1>, scalar_prefetch = 0 : i64, scratch_operands = 0 : i64, tpu.core_type = #tpu.core_type<tc>, window_params = [{transform_indices = @transform_0, window_bounds = array<i64: 28, 8, 28>}, {pipeline_mode = #tpu.pipeline_mode<synchronous>, transform_indices = @transform_1, window_bounds = array<i64: 140, 768>}, {pipeline_mode = #tpu.pipeline_mode<synchronous>, transform_indices = @transform_2, window_bounds = array<i64: 1, 768>}, {pipeline_mode = #tpu.pipeline_mode<synchronous>, transform_indices = @transform_3, window_bounds = array<i64: 1920, 512>}, {pipeline_mode = #tpu.pipeline_mode<synchronous>, transform_indices = @transform_4, window_bounds = array<i64: 1, 512>}, {pipeline_mode = #tpu.pipeline_mode<synchronous>, transform_indices = @transform_5, window_bounds = array<i64: 4, 256, 1024>}, {pipeline_mode = #tpu.pipeline_mode<synchronous>, transform_indices = @transform_6, window_bounds = array<i64: 1, 1024>}, {pipeline_mode = #tpu.pipeline_mode<synchronous>, transform_indices = @transform_7, window_bounds = array<i64: 1024, 128>}, {pipeline_mode = #tpu.pipeline_mode<synchronous>, transform_indices = @transform_8, window_bounds = array<i64: 1, 128>}, {transform_indices = @transform_9, window_bounds = array<i64: 8, 128>}]} {
    %c0 = arith.constant 0 : index
    %c0_0 = arith.constant 0 : index
    %c0_1 = arith.constant 0 : index
    %0 = vector.load %arg1[%c0, %c0_0, %c0_1] : memref<28x8x28xf32, #tpu.memory_space<vmem>>, vector<28x8x28xf32>
    %1 = vector.extract_strided_slice %0 {offsets = [0, 0, 0], sizes = [24, 8, 28], strides = [1, 1, 1]} : vector<28x8x28xf32> to vector<24x8x28xf32>
    %2 = vector.extract_strided_slice %0 {offsets = [1, 0, 0], sizes = [24, 8, 28], strides = [1, 1, 1]} : vector<28x8x28xf32> to vector<24x8x28xf32>
    %3 = vector.extract_strided_slice %0 {offsets = [2, 0, 0], sizes = [24, 8, 28], strides = [1, 1, 1]} : vector<28x8x28xf32> to vector<24x8x28xf32>
    %4 = vector.extract_strided_slice %0 {offsets = [3, 0, 0], sizes = [24, 8, 28], strides = [1, 1, 1]} : vector<28x8x28xf32> to vector<24x8x28xf32>
    %5 = vector.extract_strided_slice %0 {offsets = [4, 0, 0], sizes = [24, 8, 28], strides = [1, 1, 1]} : vector<28x8x28xf32> to vector<24x8x28xf32>
    %6 = tpu.concatenate %1, %2, %3, %4, %5 in 2 : vector<24x8x28xf32>, vector<24x8x28xf32>, vector<24x8x28xf32>, vector<24x8x28xf32>, vector<24x8x28xf32> -> vector<24x8x140xf32>
    %7 = vector.shape_cast %6 : vector<24x8x140xf32> to vector<192x140xf32>
    %c0_2 = arith.constant 0 : index
    %c0_3 = arith.constant 0 : index
    %8 = vector.load %arg2[%c0_2, %c0_3] : memref<140x768xf32, #tpu.memory_space<vmem>>, vector<140x768xf32>
    %cst = arith.constant dense<0.000000e+00> : vector<192x768xf32>
    %9 = tpu.matmul %7, %8, %cst {dimension_numbers = #tpu.dot_dimension_numbers<[1], [0], [0], [1], [0, 0, 1, 1], [], []>} : vector<192x140xf32>, vector<140x768xf32>, vector<192x768xf32> -> vector<192x768xf32>
    %c0_4 = arith.constant 0 : index
    %c0_5 = arith.constant 0 : index
    %10 = vector.load %arg3[%c0_4, %c0_5] : memref<1x768xf32, #tpu.memory_space<vmem>>, vector<1x768xf32>
    %11 = vector.broadcast %10 : vector<1x768xf32> to vector<192x768xf32>
    %12 = arith.addf %9, %11 : vector<192x768xf32>
    %13 = vector.shape_cast %12 : vector<192x768xf32> to vector<12x2x8x768xf32>
    %14 = vector.extract_strided_slice %13 {offsets = [0, 0, 0, 0], sizes = [12, 1, 8, 768], strides = [1, 1, 1, 1]} : vector<12x2x8x768xf32> to vector<12x1x8x768xf32>
    %15 = vector.shape_cast %14 : vector<12x1x8x768xf32> to vector<12x8x768xf32>
    %16 = vector.extract_strided_slice %13 {offsets = [0, 1, 0, 0], sizes = [12, 1, 8, 768], strides = [1, 1, 1, 1]} : vector<12x2x8x768xf32> to vector<12x1x8x768xf32>
    %17 = vector.shape_cast %16 : vector<12x1x8x768xf32> to vector<12x8x768xf32>
    %18 = arith.maximumf %15, %17 : vector<12x8x768xf32>
    %19 = vector.extract_strided_slice %18 {offsets = [0, 0, 0], sizes = [12, 8, 32], strides = [1, 1, 1]} : vector<12x8x768xf32> to vector<12x8x32xf32>
    %20 = vector.extract_strided_slice %18 {offsets = [0, 0, 64], sizes = [12, 8, 32], strides = [1, 1, 1]} : vector<12x8x768xf32> to vector<12x8x32xf32>
    %21 = vector.extract_strided_slice %18 {offsets = [0, 0, 128], sizes = [12, 8, 32], strides = [1, 1, 1]} : vector<12x8x768xf32> to vector<12x8x32xf32>
    %22 = vector.extract_strided_slice %18 {offsets = [0, 0, 192], sizes = [12, 8, 32], strides = [1, 1, 1]} : vector<12x8x768xf32> to vector<12x8x32xf32>
    %23 = vector.extract_strided_slice %18 {offsets = [0, 0, 256], sizes = [12, 8, 32], strides = [1, 1, 1]} : vector<12x8x768xf32> to vector<12x8x32xf32>
    %24 = vector.extract_strided_slice %18 {offsets = [0, 0, 320], sizes = [12, 8, 32], strides = [1, 1, 1]} : vector<12x8x768xf32> to vector<12x8x32xf32>
    %25 = vector.extract_strided_slice %18 {offsets = [0, 0, 384], sizes = [12, 8, 32], strides = [1, 1, 1]} : vector<12x8x768xf32> to vector<12x8x32xf32>
    %26 = vector.extract_strided_slice %18 {offsets = [0, 0, 448], sizes = [12, 8, 32], strides = [1, 1, 1]} : vector<12x8x768xf32> to vector<12x8x32xf32>
    %27 = vector.extract_strided_slice %18 {offsets = [0, 0, 512], sizes = [12, 8, 32], strides = [1, 1, 1]} : vector<12x8x768xf32> to vector<12x8x32xf32>
    %28 = vector.extract_strided_slice %18 {offsets = [0, 0, 576], sizes = [12, 8, 32], strides = [1, 1, 1]} : vector<12x8x768xf32> to vector<12x8x32xf32>
    %29 = vector.extract_strided_slice %18 {offsets = [0, 0, 640], sizes = [12, 8, 32], strides = [1, 1, 1]} : vector<12x8x768xf32> to vector<12x8x32xf32>
    %30 = vector.extract_strided_slice %18 {offsets = [0, 0, 704], sizes = [12, 8, 32], strides = [1, 1, 1]} : vector<12x8x768xf32> to vector<12x8x32xf32>
    %31 = tpu.concatenate %19, %20, %21, %22, %23, %24, %25, %26, %27, %28, %29, %30 in 2 : vector<12x8x32xf32>, vector<12x8x32xf32>, vector<12x8x32xf32>, vector<12x8x32xf32>, vector<12x8x32xf32>, vector<12x8x32xf32>, vector<12x8x32xf32>, vector<12x8x32xf32>, vector<12x8x32xf32>, vector<12x8x32xf32>, vector<12x8x32xf32>, vector<12x8x32xf32> -> vector<12x8x384xf32>
    %32 = vector.extract_strided_slice %18 {offsets = [0, 0, 32], sizes = [12, 8, 32], strides = [1, 1, 1]} : vector<12x8x768xf32> to vector<12x8x32xf32>
    %33 = vector.extract_strided_slice %18 {offsets = [0, 0, 96], sizes = [12, 8, 32], strides = [1, 1, 1]} : vector<12x8x768xf32> to vector<12x8x32xf32>
    %34 = vector.extract_strided_slice %18 {offsets = [0, 0, 160], sizes = [12, 8, 32], strides = [1, 1, 1]} : vector<12x8x768xf32> to vector<12x8x32xf32>
    %35 = vector.extract_strided_slice %18 {offsets = [0, 0, 224], sizes = [12, 8, 32], strides = [1, 1, 1]} : vector<12x8x768xf32> to vector<12x8x32xf32>
    %36 = vector.extract_strided_slice %18 {offsets = [0, 0, 288], sizes = [12, 8, 32], strides = [1, 1, 1]} : vector<12x8x768xf32> to vector<12x8x32xf32>
    %37 = vector.extract_strided_slice %18 {offsets = [0, 0, 352], sizes = [12, 8, 32], strides = [1, 1, 1]} : vector<12x8x768xf32> to vector<12x8x32xf32>
    %38 = vector.extract_strided_slice %18 {offsets = [0, 0, 416], sizes = [12, 8, 32], strides = [1, 1, 1]} : vector<12x8x768xf32> to vector<12x8x32xf32>
    %39 = vector.extract_strided_slice %18 {offsets = [0, 0, 480], sizes = [12, 8, 32], strides = [1, 1, 1]} : vector<12x8x768xf32> to vector<12x8x32xf32>
    %40 = vector.extract_strided_slice %18 {offsets = [0, 0, 544], sizes = [12, 8, 32], strides = [1, 1, 1]} : vector<12x8x768xf32> to vector<12x8x32xf32>
    %41 = vector.extract_strided_slice %18 {offsets = [0, 0, 608], sizes = [12, 8, 32], strides = [1, 1, 1]} : vector<12x8x768xf32> to vector<12x8x32xf32>
    %42 = vector.extract_strided_slice %18 {offsets = [0, 0, 672], sizes = [12, 8, 32], strides = [1, 1, 1]} : vector<12x8x768xf32> to vector<12x8x32xf32>
    %43 = vector.extract_strided_slice %18 {offsets = [0, 0, 736], sizes = [12, 8, 32], strides = [1, 1, 1]} : vector<12x8x768xf32> to vector<12x8x32xf32>
    %44 = tpu.concatenate %32, %33, %34, %35, %36, %37, %38, %39, %40, %41, %42, %43 in 2 : vector<12x8x32xf32>, vector<12x8x32xf32>, vector<12x8x32xf32>, vector<12x8x32xf32>, vector<12x8x32xf32>, vector<12x8x32xf32>, vector<12x8x32xf32>, vector<12x8x32xf32>, vector<12x8x32xf32>, vector<12x8x32xf32>, vector<12x8x32xf32>, vector<12x8x32xf32> -> vector<12x8x384xf32>
    %45 = arith.maximumf %31, %44 : vector<12x8x384xf32>
    %46 = vector.extract_strided_slice %45 {offsets = [0, 0, 0], sizes = [8, 8, 384], strides = [1, 1, 1]} : vector<12x8x384xf32> to vector<8x8x384xf32>
    %47 = vector.extract_strided_slice %45 {offsets = [1, 0, 0], sizes = [8, 8, 384], strides = [1, 1, 1]} : vector<12x8x384xf32> to vector<8x8x384xf32>
    %48 = vector.extract_strided_slice %45 {offsets = [2, 0, 0], sizes = [8, 8, 384], strides = [1, 1, 1]} : vector<12x8x384xf32> to vector<8x8x384xf32>
    %49 = vector.extract_strided_slice %45 {offsets = [3, 0, 0], sizes = [8, 8, 384], strides = [1, 1, 1]} : vector<12x8x384xf32> to vector<8x8x384xf32>
    %50 = vector.extract_strided_slice %45 {offsets = [4, 0, 0], sizes = [8, 8, 384], strides = [1, 1, 1]} : vector<12x8x384xf32> to vector<8x8x384xf32>
    %51 = tpu.concatenate %46, %47, %48, %49, %50 in 2 : vector<8x8x384xf32>, vector<8x8x384xf32>, vector<8x8x384xf32>, vector<8x8x384xf32>, vector<8x8x384xf32> -> vector<8x8x1920xf32>
    %52 = vector.shape_cast %51 : vector<8x8x1920xf32> to vector<64x1920xf32>
    %53 = arith.truncf %52 : vector<64x1920xf32> to vector<64x1920xbf16>
    %c0_6 = arith.constant 0 : index
    %c0_7 = arith.constant 0 : index
    %54 = vector.load %arg4[%c0_6, %c0_7] : memref<1920x512xbf16, #tpu.memory_space<vmem>>, vector<1920x512xbf16>
    %cst_8 = arith.constant dense<0.000000e+00> : vector<64x512xf32>
    %55 = tpu.matmul %53, %54, %cst_8 {dimension_numbers = #tpu.dot_dimension_numbers<[1], [0], [0], [1], [0, 0, 1, 1], [], []>} : vector<64x1920xbf16>, vector<1920x512xbf16>, vector<64x512xf32> -> vector<64x512xf32>
    %c0_9 = arith.constant 0 : index
    %c0_10 = arith.constant 0 : index
    %56 = vector.load %arg5[%c0_9, %c0_10] : memref<1x512xf32, #tpu.memory_space<vmem>>, vector<1x512xf32>
    %57 = vector.broadcast %56 : vector<1x512xf32> to vector<64x512xf32>
    %58 = arith.addf %55, %57 : vector<64x512xf32>
    %59 = vector.shape_cast %58 : vector<64x512xf32> to vector<4x2x8x512xf32>
    %60 = vector.extract_strided_slice %59 {offsets = [0, 0, 0, 0], sizes = [4, 1, 8, 512], strides = [1, 1, 1, 1]} : vector<4x2x8x512xf32> to vector<4x1x8x512xf32>
    %61 = vector.shape_cast %60 : vector<4x1x8x512xf32> to vector<4x8x512xf32>
    %62 = vector.extract_strided_slice %59 {offsets = [0, 1, 0, 0], sizes = [4, 1, 8, 512], strides = [1, 1, 1, 1]} : vector<4x2x8x512xf32> to vector<4x1x8x512xf32>
    %63 = vector.shape_cast %62 : vector<4x1x8x512xf32> to vector<4x8x512xf32>
    %64 = arith.maximumf %61, %63 : vector<4x8x512xf32>
    %65 = vector.extract_strided_slice %64 {offsets = [0, 0, 0], sizes = [4, 8, 64], strides = [1, 1, 1]} : vector<4x8x512xf32> to vector<4x8x64xf32>
    %66 = vector.extract_strided_slice %64 {offsets = [0, 0, 128], sizes = [4, 8, 64], strides = [1, 1, 1]} : vector<4x8x512xf32> to vector<4x8x64xf32>
    %67 = vector.extract_strided_slice %64 {offsets = [0, 0, 256], sizes = [4, 8, 64], strides = [1, 1, 1]} : vector<4x8x512xf32> to vector<4x8x64xf32>
    %68 = vector.extract_strided_slice %64 {offsets = [0, 0, 384], sizes = [4, 8, 64], strides = [1, 1, 1]} : vector<4x8x512xf32> to vector<4x8x64xf32>
    %69 = tpu.concatenate %65, %66, %67, %68 in 2 : vector<4x8x64xf32>, vector<4x8x64xf32>, vector<4x8x64xf32>, vector<4x8x64xf32> -> vector<4x8x256xf32>
    %70 = vector.extract_strided_slice %64 {offsets = [0, 0, 64], sizes = [4, 8, 64], strides = [1, 1, 1]} : vector<4x8x512xf32> to vector<4x8x64xf32>
    %71 = vector.extract_strided_slice %64 {offsets = [0, 0, 192], sizes = [4, 8, 64], strides = [1, 1, 1]} : vector<4x8x512xf32> to vector<4x8x64xf32>
    %72 = vector.extract_strided_slice %64 {offsets = [0, 0, 320], sizes = [4, 8, 64], strides = [1, 1, 1]} : vector<4x8x512xf32> to vector<4x8x64xf32>
    %73 = vector.extract_strided_slice %64 {offsets = [0, 0, 448], sizes = [4, 8, 64], strides = [1, 1, 1]} : vector<4x8x512xf32> to vector<4x8x64xf32>
    %74 = tpu.concatenate %70, %71, %72, %73 in 2 : vector<4x8x64xf32>, vector<4x8x64xf32>, vector<4x8x64xf32>, vector<4x8x64xf32> -> vector<4x8x256xf32>
    %75 = arith.maximumf %69, %74 : vector<4x8x256xf32>
    %76 = arith.truncf %75 : vector<4x8x256xf32> to vector<4x8x256xbf16>
    %77 = vector.extract_strided_slice %76 {offsets = [0, 0, 0], sizes = [1, 8, 256], strides = [1, 1, 1]} : vector<4x8x256xbf16> to vector<1x8x256xbf16>
    %78 = vector.shape_cast %77 : vector<1x8x256xbf16> to vector<8x256xbf16>
    %c0_11 = arith.constant 0 : index
    %c0_12 = arith.constant 0 : index
    %c0_13 = arith.constant 0 : index
    %79 = vector.load %arg6[%c0_11, %c0_12, %c0_13] : memref<4x256x1024xbf16, #tpu.memory_space<vmem>>, vector<1x256x1024xbf16>
    %80 = vector.shape_cast %79 : vector<1x256x1024xbf16> to vector<256x1024xbf16>
    %cst_14 = arith.constant dense<0.000000e+00> : vector<8x1024xf32>
    %81 = tpu.matmul %78, %80, %cst_14 {dimension_numbers = #tpu.dot_dimension_numbers<[1], [0], [0], [1], [0, 0, 1, 1], [], []>} : vector<8x256xbf16>, vector<256x1024xbf16>, vector<8x1024xf32> -> vector<8x1024xf32>
    %82 = vector.extract_strided_slice %76 {offsets = [1, 0, 0], sizes = [1, 8, 256], strides = [1, 1, 1]} : vector<4x8x256xbf16> to vector<1x8x256xbf16>
    %83 = vector.shape_cast %82 : vector<1x8x256xbf16> to vector<8x256xbf16>
    %c1 = arith.constant 1 : index
    %c0_15 = arith.constant 0 : index
    %c0_16 = arith.constant 0 : index
    %84 = vector.load %arg6[%c1, %c0_15, %c0_16] : memref<4x256x1024xbf16, #tpu.memory_space<vmem>>, vector<1x256x1024xbf16>
    %85 = vector.shape_cast %84 : vector<1x256x1024xbf16> to vector<256x1024xbf16>
    %cst_17 = arith.constant dense<0.000000e+00> : vector<8x1024xf32>
    %86 = tpu.matmul %83, %85, %cst_17 {dimension_numbers = #tpu.dot_dimension_numbers<[1], [0], [0], [1], [0, 0, 1, 1], [], []>} : vector<8x256xbf16>, vector<256x1024xbf16>, vector<8x1024xf32> -> vector<8x1024xf32>
    %87 = arith.addf %81, %86 : vector<8x1024xf32>
    %88 = vector.extract_strided_slice %76 {offsets = [2, 0, 0], sizes = [1, 8, 256], strides = [1, 1, 1]} : vector<4x8x256xbf16> to vector<1x8x256xbf16>
    %89 = vector.shape_cast %88 : vector<1x8x256xbf16> to vector<8x256xbf16>
    %c2 = arith.constant 2 : index
    %c0_18 = arith.constant 0 : index
    %c0_19 = arith.constant 0 : index
    %90 = vector.load %arg6[%c2, %c0_18, %c0_19] : memref<4x256x1024xbf16, #tpu.memory_space<vmem>>, vector<1x256x1024xbf16>
    %91 = vector.shape_cast %90 : vector<1x256x1024xbf16> to vector<256x1024xbf16>
    %cst_20 = arith.constant dense<0.000000e+00> : vector<8x1024xf32>
    %92 = tpu.matmul %89, %91, %cst_20 {dimension_numbers = #tpu.dot_dimension_numbers<[1], [0], [0], [1], [0, 0, 1, 1], [], []>} : vector<8x256xbf16>, vector<256x1024xbf16>, vector<8x1024xf32> -> vector<8x1024xf32>
    %93 = arith.addf %87, %92 : vector<8x1024xf32>
    %94 = vector.extract_strided_slice %76 {offsets = [3, 0, 0], sizes = [1, 8, 256], strides = [1, 1, 1]} : vector<4x8x256xbf16> to vector<1x8x256xbf16>
    %95 = vector.shape_cast %94 : vector<1x8x256xbf16> to vector<8x256xbf16>
    %c3 = arith.constant 3 : index
    %c0_21 = arith.constant 0 : index
    %c0_22 = arith.constant 0 : index
    %96 = vector.load %arg6[%c3, %c0_21, %c0_22] : memref<4x256x1024xbf16, #tpu.memory_space<vmem>>, vector<1x256x1024xbf16>
    %97 = vector.shape_cast %96 : vector<1x256x1024xbf16> to vector<256x1024xbf16>
    %cst_23 = arith.constant dense<0.000000e+00> : vector<8x1024xf32>
    %98 = tpu.matmul %95, %97, %cst_23 {dimension_numbers = #tpu.dot_dimension_numbers<[1], [0], [0], [1], [0, 0, 1, 1], [], []>} : vector<8x256xbf16>, vector<256x1024xbf16>, vector<8x1024xf32> -> vector<8x1024xf32>
    %99 = arith.addf %93, %98 : vector<8x1024xf32>
    %c0_24 = arith.constant 0 : index
    %c0_25 = arith.constant 0 : index
    %100 = vector.load %arg7[%c0_24, %c0_25] : memref<1x1024xf32, #tpu.memory_space<vmem>>, vector<1x1024xf32>
    %101 = vector.broadcast %100 : vector<1x1024xf32> to vector<8x1024xf32>
    %102 = arith.addf %99, %101 : vector<8x1024xf32>
    %cst_26 = arith.constant 0.000000e+00 : f32
    %103 = vector.broadcast %cst_26 : f32 to vector<8x1024xf32>
    %104 = arith.maximumf %102, %103 : vector<8x1024xf32>
    %105 = arith.truncf %104 : vector<8x1024xf32> to vector<8x1024xbf16>
    %c0_27 = arith.constant 0 : index
    %c0_28 = arith.constant 0 : index
    %106 = vector.load %arg8[%c0_27, %c0_28] : memref<1024x128xbf16, #tpu.memory_space<vmem>>, vector<1024x128xbf16>
    %cst_29 = arith.constant dense<0.000000e+00> : vector<8x128xf32>
    %107 = tpu.matmul %105, %106, %cst_29 {dimension_numbers = #tpu.dot_dimension_numbers<[1], [0], [0], [1], [0, 0, 1, 1], [], []>} : vector<8x1024xbf16>, vector<1024x128xbf16>, vector<8x128xf32> -> vector<8x128xf32>
    %c0_30 = arith.constant 0 : index
    %c0_31 = arith.constant 0 : index
    %108 = vector.load %arg9[%c0_30, %c0_31] : memref<1x128xf32, #tpu.memory_space<vmem>>, vector<1x128xf32>
    %109 = vector.broadcast %108 : vector<1x128xf32> to vector<8x128xf32>
    %110 = arith.addf %107, %109 : vector<8x128xf32>
    %cst_32 = arith.constant dense<0xFF800000> : vector<8xf32>
    %111 = vector.multi_reduction <maximumf>, %110, %cst_32 [1] : vector<8x128xf32> to vector<8xf32>
    %112 = vector.shape_cast %111 : vector<8xf32> to vector<8x1xf32>
    %113 = vector.broadcast %112 : vector<8x1xf32> to vector<8x128xf32>
    %114 = arith.subf %110, %113 : vector<8x128xf32>
    %115 = math.exp %114 : vector<8x128xf32>
    %cst_33 = arith.constant dense<0.000000e+00> : vector<8xf32>
    %116 = vector.multi_reduction <add>, %115, %cst_33 [1] : vector<8x128xf32> to vector<8xf32>
    %117 = vector.shape_cast %116 : vector<8xf32> to vector<8x1xf32>
    %118 = tpu.reciprocal %117 {approx = true} : vector<8x1xf32> -> vector<8x1xf32>
    %119 = vector.broadcast %118 : vector<8x1xf32> to vector<8x128xf32>
    %120 = arith.mulf %115, %119 : vector<8x128xf32>
    %c0_34 = arith.constant 0 : index
    %c0_35 = arith.constant 0 : index
    %121 = vector.load %arg10[%c0_34, %c0_35] : memref<8x128xf32, #tpu.memory_space<vmem>>, vector<8x128xf32>
    tpu.vector_store %arg10[%c0_34, %c0_35], %120 {strides = array<i32>} : memref<8x128xf32, #tpu.memory_space<vmem>>, vector<8x128xf32>,
    return
  }
  func.func @transform_0(%arg0: i32) -> (i32, i32, i32) {
    %c0_i32 = arith.constant 0 : i32
    %c0_i32_0 = arith.constant 0 : i32
    %c0_i32_1 = arith.constant 0 : i32
    return %c0_i32, %arg0, %c0_i32_0 : i32, i32, i32
  }
  func.func @transform_1(%arg0: i32) -> (i32, i32) {
    %c0_i32 = arith.constant 0 : i32
    %c0_i32_0 = arith.constant 0 : i32
    %c0_i32_1 = arith.constant 0 : i32
    return %c0_i32, %c0_i32_0 : i32, i32
  }
  func.func @transform_2(%arg0: i32) -> (i32, i32) {
    %c0_i32 = arith.constant 0 : i32
    %c0_i32_0 = arith.constant 0 : i32
    %c0_i32_1 = arith.constant 0 : i32
    return %c0_i32, %c0_i32_0 : i32, i32
  }
  func.func @transform_3(%arg0: i32) -> (i32, i32) {
    %c0_i32 = arith.constant 0 : i32
    %c0_i32_0 = arith.constant 0 : i32
    %c0_i32_1 = arith.constant 0 : i32
    return %c0_i32, %c0_i32_0 : i32, i32
  }
  func.func @transform_4(%arg0: i32) -> (i32, i32) {
    %c0_i32 = arith.constant 0 : i32
    %c0_i32_0 = arith.constant 0 : i32
    %c0_i32_1 = arith.constant 0 : i32
    return %c0_i32, %c0_i32_0 : i32, i32
  }
  func.func @transform_5(%arg0: i32) -> (i32, i32, i32) {
    %c0_i32 = arith.constant 0 : i32
    %c0_i32_0 = arith.constant 0 : i32
    %c0_i32_1 = arith.constant 0 : i32
    %c0_i32_2 = arith.constant 0 : i32
    return %c0_i32, %c0_i32_0, %c0_i32_1 : i32, i32, i32
  }
  func.func @transform_6(%arg0: i32) -> (i32, i32) {
    %c0_i32 = arith.constant 0 : i32
    %c0_i32_0 = arith.constant 0 : i32
    %c0_i32_1 = arith.constant 0 : i32
    return %c0_i32, %c0_i32_0 : i32, i32
  }
  func.func @transform_7(%arg0: i32) -> (i32, i32) {
    %c0_i32 = arith.constant 0 : i32
    %c0_i32_0 = arith.constant 0 : i32
    %c0_i32_1 = arith.constant 0 : i32
    return %c0_i32, %c0_i32_0 : i32, i32
  }
  func.func @transform_8(%arg0: i32) -> (i32, i32) {
    %c0_i32 = arith.constant 0 : i32
    %c0_i32_0 = arith.constant 0 : i32
    %c0_i32_1 = arith.constant 0 : i32
    return %c0_i32, %c0_i32_0 : i32, i32
  }
  func.func @transform_9(%arg0: i32) -> (i32, i32) {
    %c0_i32 = arith.constant 0 : i32
    %c0_i32_0 = arith.constant 0 : i32
    return %arg0, %c0_i32 : i32, i32
  }
}

</mosaic_0001>

<bundles_post_ra>
// kernel: mnist_forward.1
= control target key start
LH: loop header
LB: loop body
LE: loop exit
PB: predicated region body
PF: predicated region fallthrough
CT: control target
= control target key end

     0   :  { %14 = vsyncpa [#allocation3], 0  ;;  %s16452_s0 = inlined_call_operand.vmem [shape: f32[28,8,28], index: 0, kind: input, shape index: {}]   ;;  %s16453_s1 = inlined_call_operand.hbm [shape: f32[140,768], index: 1, kind: input, shape index: {}]   ;;  %s16454_s2 = inlined_call_operand.hbm [shape: f32[1,768], index: 2, kind: input, shape index: {}]   ;;  %s16455_s3 = inlined_call_operand.hbm [shape: bf16[1920,512], index: 3, kind: input, shape index: {}]   ;;  %s16456_s4 = inlined_call_operand.hbm [shape: f32[1,512], index: 4, kind: input, shape index: {}]   ;;  %s16457_s5 = inlined_call_operand.hbm [shape: bf16[4,256,1024], index: 5, kind: input, shape index: {}]   ;;  %s16458_s6 = inlined_call_operand.hbm [shape: f32[1,1024], index: 6, kind: input, shape index: {}]   ;;  %s16459_s7 = inlined_call_operand.hbm [shape: bf16[1024,128], index: 7, kind: input, shape index: {}]   ;;  %s16460_s8 = inlined_call_operand.hbm [shape: f32[1,128], index: 8, kind: input, shape index: {}]   ;;  %s16461_s9 = inlined_call_operand.hbm [shape: f32[8,128], index: 9, kind: output, shape index: {}]  }
   0x1   :  { %15 = vsyncpa [#allocation6], 0 }
   0x2   :  { %16 = vsyncpa [#allocation9], 0 }
   0x3   :  { %17 = vsyncpa [#allocation12], 0 }
   0x4   :  { %18 = vsyncpa [#allocation15], 0 }
   0x5   :  { %19 = vsyncpa [#allocation4], 0  ;;  %s14178_s30 = smov [#allocation5]   ;;  %s14179_s11 = smov [#allocation8]  }
   0x6   :  { %s40_s10 = sshll.u32 %s14178_s30, 4  ;;  %s62_s12 = sshll.u32 %s14179_s11, 4  ;;  %s41_s10 = int_to_ptr.vmem [resolvable:$true] %s40_s10  ;;  %s63_s12 = int_to_ptr.vmem [resolvable:$true] %s62_s12 }
   0x7   :  { %s13968_s15 = scalar_lea.hbm %s16454_s2, 96 }
   0x8   :  { %p13969_p0 = scmp.ne.s32.totalorder %s16454_s2, %s13968_s15  ;;  %p13972_p1 = scmp.lt.u32.totalorder %s13968_s15, %s16454_s2 }
   0xa   :  { %p13974_p2 = pnand %p13972_p1, %p13969_p0 }
   0xc   :  { %13977 = shalt.err (!%p13974_p2)
}
   0xd   :  { %s13978_s20 = scalar_lea.vmem %s41_s10, 96  ;;  %p13983_p4 = scmp.lt.s32.totalorder %s41_s10, %s41_s10 }
   0xe   :  { %p13979_p3 = scmp.ne.s32.totalorder %s41_s10, %s13978_s20  ;;  %p13984_p5 = scmp.lt.s32.totalorder %s13978_s20, %s13978_s20 }
  0x10   :  { %p13985_p6 = por %p13984_p5, %p13983_p4 }
  0x12   :  { %p13986_p7 = pnand %p13985_p6, %p13979_p3 }
  0x14   :  { %13989 = shalt.err (!%p13986_p7)
}
  0x15   :  { %43 = dma.hbm_to_vmem [thread:$0]  %s16454_s2, 96, %s41_s10, [#allocation6]  }
  0x16   :  { %s13990_s25 = scalar_lea.hbm %s16456_s4, 64 }
  0x17   :  { %p13991_p8 = scmp.ne.s32.totalorder %s16456_s4, %s13990_s25  ;;  %p13994_p9 = scmp.lt.u32.totalorder %s13990_s25, %s16456_s4 }
  0x19   :  { %p13996_p10 = pnand %p13994_p9, %p13991_p8 }
  0x1b   :  { %13999 = shalt.err (!%p13996_p10)
}
  0x1c   :  { %s14000_s30 = scalar_lea.vmem %s63_s12, 64  ;;  %p14005_p12 = scmp.lt.s32.totalorder %s63_s12, %s63_s12 }
  0x1d   :  { %p14001_p11 = scmp.ne.s32.totalorder %s63_s12, %s14000_s30  ;;  %p14006_p13 = scmp.lt.s32.totalorder %s14000_s30, %s14000_s30 }
  0x1f   :  { %p14007_p0 = por %p14006_p13, %p14005_p12 }
  0x21   :  { %p14008_p1 = pnand %p14007_p0, %p14001_p11 }
  0x23   :  { %14011 = shalt.err (!%p14008_p1)
}
  0x24   :  { %65 = dma.hbm_to_vmem [thread:$0]  %s16456_s4, 64, %s63_s12, [#allocation9]  }
  0x25   :  { %s14180_s11 = smov [#allocation11]   ;;  %s14181_s14 = smov [#allocation2]  }
  0x26   :  { %s84_s13 = sshll.u32 %s14180_s11, 4  ;;  %s27_s15 = sshll.u32 %s14181_s14, 4  ;;  %s85_s13 = int_to_ptr.vmem [resolvable:$true] %s84_s13  ;;  %s14276_s15 = int_to_ptr.vmem [resolvable:$true] %s27_s15 }
  0x27   :  { %s14012_s18 = scalar_lea.hbm %s16458_s6, 128 }
  0x28   :  { %p14013_p2 = scmp.ne.s32.totalorder %s16458_s6, %s14012_s18  ;;  %p14016_p3 = scmp.lt.u32.totalorder %s14012_s18, %s16458_s6 }
  0x2a   :  { %p14018_p4 = pnand %p14016_p3, %p14013_p2 }
  0x2c   :  { %14021 = shalt.err (!%p14018_p4)
}
  0x2d   :  { %s14022_s4 = scalar_lea.vmem %s85_s13, 128  ;;  %p14027_p6 = scmp.lt.s32.totalorder %s85_s13, %s85_s13 }
  0x2e   :  { %p14023_p5 = scmp.ne.s32.totalorder %s85_s13, %s14022_s4  ;;  %p14028_p7 = scmp.lt.s32.totalorder %s14022_s4, %s14022_s4 }
  0x30   :  { %p14029_p8 = por %p14028_p7, %p14027_p6 }
  0x32   :  { %p14030_p9 = pnand %p14029_p8, %p14023_p5 }
  0x34   :  { %14033 = shalt.err (!%p14030_p9)
}
  0x35   :  { %87 = dma.hbm_to_vmem [thread:$0]  %s16458_s6, 128, %s85_s13, [#allocation12]  }
  0x36   :  { %s14034_s26 = scalar_lea.hbm %s16453_s1, 13824 }
  0x37   :  { %p14035_p10 = scmp.ne.s32.totalorder %s16453_s1, %s14034_s26  ;;  %p14038_p11 = scmp.lt.u32.totalorder %s14034_s26, %s16453_s1 }
  0x39   :  { %p14040_p12 = pnand %p14038_p11, %p14035_p10 }
  0x3b   :  { %14043 = shalt.err (!%p14040_p12)
}
  0x3c   :  { %s14044_s2 = scalar_lea.vmem %s14276_s15, 13824  ;;  %p14049_p0 = scmp.lt.s32.totalorder %s14276_s15, %s14276_s15 }
  0x3d   :  { %p14045_p13 = scmp.ne.s32.totalorder %s14276_s15, %s14044_s2  ;;  %p14050_p1 = scmp.lt.s32.totalorder %s14044_s2, %s14044_s2 }
  0x3f   :  { %p14051_p2 = por %p14050_p1, %p14049_p0 }
  0x41   :  { %p14052_p3 = pnand %p14051_p2, %p14045_p13 }
  0x43   :  { %14055 = shalt.err (!%p14052_p3)
}
  0x44   :  { %s14182_s6 = smov 768   ;;  %s14183_s10 = smov 48  }
  0x45   :  { %33 = dma.hbm_to_vmem [thread:$0]  %s16453_s1, 13824, %s14276_s15, [#allocation3], %s14182_s6, %s14182_s6, %s14183_s10  }
  0x46   :  { %s14184_s14 = smov [#allocation7]   ;;  %s14056_s19 = scalar_lea.hbm %s16455_s3, 61440 }
  0x47   :  { %s49_s16 = sshll.u32 %s14184_s14, 4  ;;  %p14057_p4 = scmp.ne.s32.totalorder %s16455_s3, %s14056_s19  ;;  %s50_s16 = int_to_ptr.vmem [resolvable:$true] %s49_s16 }
  0x48   :  { %p14060_p5 = scmp.lt.u32.totalorder %s14056_s19, %s16455_s3 }
  0x4a   :  { %p14062_p6 = pnand %p14060_p5, %p14057_p4 }
  0x4c   :  { %14065 = shalt.err (!%p14062_p6)
}
  0x4d   :  { %s14066_s12 = scalar_lea.vmem %s50_s16, 61440  ;;  %p14071_p8 = scmp.lt.s32.totalorder %s50_s16, %s50_s16 }
  0x4e   :  { %p14067_p7 = scmp.ne.s32.totalorder %s50_s16, %s14066_s12  ;;  %p14072_p9 = scmp.lt.s32.totalorder %s14066_s12, %s14066_s12 }
  0x50   :  { %p14073_p10 = por %p14072_p9, %p14071_p8 }
  0x52   :  { %p14074_p11 = pnand %p14073_p10, %p14067_p7 }
  0x54   :  { %14077 = shalt.err (!%p14074_p11)
}
  0x55   :  { %s14185_s1 = smov 256   ;;  %s14186_s15 = smov 16  }
  0x56   :  { %55 = dma.hbm_to_vmem [thread:$0]  %s16455_s3, 61440, %s50_s16, [#allocation6], %s14185_s1, %s14185_s1, %s14186_s15  }
  0x57   :  { %s14187_s25 = smov [#allocation10]   ;;  %s14078_s29 = scalar_lea.hbm %s16457_s5, 65536 }
  0x58   :  { %s71_s26 = sshll.u32 %s14187_s25, 4  ;;  %p14079_p12 = scmp.ne.s32.totalorder %s16457_s5, %s14078_s29  ;;  %s72_s26 = int_to_ptr.vmem [resolvable:$true] %s71_s26 }
  0x59   :  { %p14082_p13 = scmp.lt.u32.totalorder %s14078_s29, %s16457_s5 }
  0x5b   :  { %p14084_p0 = pnand %p14082_p13, %p14079_p12 }
  0x5d   :  { %14087 = shalt.err (!%p14084_p0)
}
  0x5e   :  { %s14088_s11 = scalar_lea.vmem %s72_s26, 65536  ;;  %p14093_p2 = scmp.lt.s32.totalorder %s72_s26, %s72_s26 }
  0x5f   :  { %p14089_p1 = scmp.ne.s32.totalorder %s72_s26, %s14088_s11  ;;  %p14094_p3 = scmp.lt.s32.totalorder %s14088_s11, %s14088_s11 }
  0x61   :  { %p14095_p4 = por %p14094_p3, %p14093_p2 }
  0x63   :  { %p14096_p5 = pnand %p14095_p4, %p14089_p1 }
  0x65   :  { %14099 = shalt.err (!%p14096_p5)
}
  0x66   :  { %s14188_s3 = smov 512   ;;  %s14189_s13 = smov 32  }
  0x67   :  { %77 = dma.hbm_to_vmem [thread:$0]  %s16457_s5, 65536, %s72_s26, [#allocation9], %s14188_s3, %s14188_s3, %s14189_s13  }
  0x68   :  { %s14190_s17 = smov [#allocation13]   ;;  %s14100_s21 = scalar_lea.hbm %s16459_s7, 8192 }
  0x69   :  { %s93_s18 = sshll.u32 %s14190_s17, 4  ;;  %p14101_p6 = scmp.ne.s32.totalorder %s16459_s7, %s14100_s21  ;;  %s94_s18 = int_to_ptr.vmem [resolvable:$true] %s93_s18 }
  0x6a   :  { %p14104_p7 = scmp.lt.u32.totalorder %s14100_s21, %s16459_s7 }
  0x6c   :  { %p14106_p8 = pnand %p14104_p7, %p14101_p6 }
  0x6e   :  { %14109 = shalt.err (!%p14106_p8)
}
  0x6f   :  { %s14110_s15 = scalar_lea.vmem %s94_s18, 8192  ;;  %p14115_p10 = scmp.lt.s32.totalorder %s94_s18, %s94_s18 }
  0x70   :  { %p14111_p9 = scmp.ne.s32.totalorder %s94_s18, %s14110_s15  ;;  %p14116_p11 = scmp.lt.s32.totalorder %s14110_s15, %s14110_s15 }
  0x72   :  { %p14117_p12 = por %p14116_p11, %p14115_p10 }
  0x74   :  { %p14118_p13 = pnand %p14117_p12, %p14111_p9 }
  0x76   :  { %14121 = shalt.err (!%p14118_p13)
}
  0x77   :  { %s14191_s5 = smov 64   ;;  %s14192_s23 = smov 4  }
  0x78   :  { %99 = dma.hbm_to_vmem [thread:$0]  %s16459_s7, 8192, %s94_s18, [#allocation12], %s14191_s5, %s14191_s5, %s14192_s23  }
  0x79   :  { %s14193_s26 = smov [#allocation14]   ;;  %s14122_s30 = scalar_lea.hbm %s16460_s8, 16 }
  0x7a   :  { %s106_s27 = sshll.u32 %s14193_s26, 4  ;;  %p14123_p0 = scmp.ne.s32.totalorder %s16460_s8, %s14122_s30  ;;  %s107_s27 = int_to_ptr.vmem [resolvable:$true] %s106_s27 }
  0x7b   :  { %p14126_p1 = scmp.lt.u32.totalorder %s14122_s30, %s16460_s8 }
  0x7d   :  { %p14128_p2 = pnand %p14126_p1, %p14123_p0 }
  0x7f   :  { %14131 = shalt.err (!%p14128_p2)
}
  0x80   :  { %s14132_s3 = scalar_lea.vmem %s107_s27, 16  ;;  %s14136_s7 = scalar_lea.vmem %s107_s27, 32 }
  0x81   :  { %p14133_p3 = scmp.ne.s32.totalorder %s107_s27, %s14132_s3  ;;  %p14137_p4 = scmp.lt.s32.totalorder %s107_s27, %s107_s27 }
  0x82   :  { %p14138_p5 = scmp.lt.s32.totalorder %s14136_s7, %s14132_s3 }
  0x84   :  { %p14139_p6 = por %p14138_p5, %p14137_p4 }
  0x86   :  { %p14140_p7 = pnand %p14139_p6, %p14133_p3 }
  0x88   :  { %14143 = shalt.err (!%p14140_p7)
}
  0x89   :  { %109 = dma.hbm_to_vmem [thread:$0]  %s16460_s8, 16, %s107_s27, [#allocation15]  }
  0x8a   :  { %14166 = dma.done.wait [#allocation3], 13824  }
  0x8b   :  { %14167 = vsyncadd [#allocation3], 4294953472 }
  0x8c   :  { %14168 = dma.done.wait [#allocation6], 61536  }
  0x8d   :  { %14169 = vsyncadd [#allocation6], 4294905760 }
  0x8e   :  { %14170 = dma.done.wait [#allocation9], 65600  }
  0x8f   :  { %14171 = vsyncadd [#allocation9], 4294901696 }
  0x90   :  { %14172 = dma.done.wait [#allocation12], 8320  }
  0x91   :  { %14173 = vsyncadd [#allocation12], 4294958976 }
  0x92   :  { %14174 = dma.done.wait [#allocation15], 16  }
  0x93   :  { %14175 = vsyncadd [#allocation15], 4294967280  ;;  %v138_v0 = vld [vmem:[%s16452_s0 + $0x18] sm:$0xff]  ;;  %v14364_v1 = vld [vmem:[%s16452_s0 + $0x20] sm:$0xff]  ;;  %s14194_s12 = smov 84   ;;  %s14195_s1 = smov 28  }
  0x94   :  { %v136_v2 = vld [vmem:[%s16452_s0 + $0x8] sm:$0xff]  ;;  %v12607_v3 = vpack.i.bf16 %v14364_v1, %v138_v0  ;;  %v137_v4 = vld [vmem:[%s16452_s0 + $0x10] sm:$0xff]  ;;  %s14196_s15 = smov 112   ;;  %v585_v9 = vld [vmem:[#allocation2 + $0x38] sm:$0xff]  ;;  %s14197_s25 = smov 56   ;;  %vm767_vm0 = vcmask 1043456  }
  0x95   :  { %v12597_v5 = vpack.i.bf16 %v137_v4, %v136_v2  ;;  %v12602_v6 = vpack.i.bf16 %v138_v0, %v137_v4  ;;  %v579_v7 = vld [vmem:[#allocation2 + $0x8] sm:$0xff]  ;;  %v581_v10 = vld [vmem:[#allocation2 + $0x18] sm:$0xff]  ;;  %v14384_v12 = vld [vmem:[%s16452_s0 + $0x30] sm:$0xff]  ;;  %vm14198_vm1 = vmmov 1   ;;  %vm718_vm3 = vcmask 97280  }
  0x96   :  { %12608 = vrot.lane.b32.xlu1 %v12607_v3, %s14194_s12  ;;  %v140_v8 = vld [vmem:[%s16452_s0 + $0x28] sm:$0xff]  ;;  %v12203_v13 = vpack.c.bf16 %v585_v9, %v579_v7  ;;  %v578_v15 = vld [vmem:[#allocation2] sm:$0xff]  ;;  %v584_v16 = vld [vmem:[#allocation2 + $0x30] sm:$0xff]  ;;  %vm478_vm4 = vcmask 228352   ;;  %vm503_vm5 = vcmask 457728   ;;  %vm528_vm6 = vcmask 687104  }
  0x97   :  { %12598 = vrot.lane.b32.xlu0 %v12597_v5, %s14195_s1  ;;  %v587_v11 = vld [vmem:[#allocation2 + $0x48] sm:$0xff]  ;;  %v12205_v17 = vpack.c.bf16 %v584_v16, %v578_v15  ;;  %v580_v18 = vld [vmem:[#allocation2 + $0x10] sm:$0xff]  ;;  %v586_v19 = vld [vmem:[#allocation2 + $0x40] sm:$0xff]  ;;  %v14388_v25 = vpack.i.bf16 %v14384_v12, %v140_v8  ;;  %v12617_v30 = vpack.i.bf16 %v140_v8, %v14364_v1  ;;  %vm553_vm7 = vcmask 916480  }
  0x98   :  { %v12241_v14 = vpack.c.bf16 %v587_v11, %v581_v10  ;;  %v591_v20 = vld [vmem:[#allocation2 + $0x68] sm:$0xff]  ;;  %12204 = vmatprep.subr.bf16.mxu0 %v12203_v13  ;;  %v12243_v21 = vpack.c.bf16 %v586_v19, %v580_v18  ;;  %v597_v22 = vld [vmem:[#allocation2 + $0x98] sm:$0xff]  ;;  %v590_v28 = vld [vmem:[#allocation2 + $0x60] sm:$0xff]  ;;  %vm1881_vm8 = vcmask 261120   ;;  %vm1894_vm9 = vcmask 523264  }
  0x99   :  { %v593_v23 = vld [vmem:[#allocation2 + $0x78] sm:$0xff]  ;;  %v599_v24 = vld [vmem:[#allocation2 + $0xa8] sm:$0xff]  ;;  %12206 = vmatpush1.bf16.msra.mxu0 %v12205_v17  ;;  %v12207_v26 = vpack.c.bf16 %v597_v22, %v591_v20  ;;  %v596_v29 = vld [vmem:[#allocation2 + $0x90] sm:$0xff]  ;;  %vm1907_vm10 = vcmask 785408  }
  0x9a   :  { %406 = vrot.lane.b32.xlu1 %v14364_v1, %s14196_s15  ;;  %12242 = vmatprep.subr.bf16.mxu1 %v12241_v14  ;;  %v12245_v27 = vpack.c.bf16 %v599_v24, %v593_v23  ;;  %v12209_v31 = vpack.c.bf16 %v596_v29, %v590_v28  ;;  %v592_v32 = vld [vmem:[#allocation2 + $0x70] sm:$0xff]  ;;  %v598_v33 = vld [vmem:[#allocation2 + $0xa0] sm:$0xff]  ;;  %v603_v34 = vld [vmem:[#allocation2 + $0xc8] sm:$0xff] }
  0x9b   :  { %12603 = vrot.lane.b32.xlu0 %v12602_v6, %s14197_s25  ;;  %12244 = vmatpush1.bf16.msra.mxu1 %v12243_v21  ;;  %v12247_v35 = vpack.c.bf16 %v598_v33, %v592_v32  ;;  %v609_v36 = vld [vmem:[#allocation2 + $0xf8] sm:$0xff]  ;;  %v611_v38 = vld [vmem:[#allocation2 + $0x108] sm:$0xff]  ;;  %v602_v42 = vld [vmem:[#allocation2 + $0xc0] sm:$0xff] }
  0x9c   :  { %12208 = vmatprep.subr.bf16.mxu0 %v12207_v26  ;;  %12246 = vmatprep.subr.bf16.mxu1 %v12245_v27  ;;  %v605_v37 = vld [vmem:[#allocation2 + $0xd8] sm:$0xff]  ;;  %v12211_v40 = vpack.c.bf16 %v609_v36, %v603_v34  ;;  %v608_v43 = vld [vmem:[#allocation2 + $0xf0] sm:$0xff]  ;;  %v610_v46 = vld [vmem:[#allocation2 + $0x100] sm:$0xff] }
  0x9d   :  { %v142_v39 = vld [vmem:[%s16452_s0 + $0x38] sm:$0xff]  ;;  %v12249_v41 = vpack.c.bf16 %v611_v38, %v605_v37  ;;  %12210 = vmatpush1.bf16.msra.mxu0 %v12209_v31  ;;  %v12213_v44 = vpack.c.bf16 %v608_v43, %v602_v42  ;;  %v604_v45 = vld [vmem:[#allocation2 + $0xd0] sm:$0xff]  ;;  %v615_v47 = vld [vmem:[#allocation2 + $0x128] sm:$0xff] }
  0x9e   :  { %12613 = vrot.lane.b32.xlu1 %v12607_v3, %s14195_s1  ;;  %v12251_v48 = vpack.c.bf16 %v610_v46, %v604_v45  ;;  %v621_v49 = vld [vmem:[#allocation2 + $0x158] sm:$0xff]  ;;  %v623_v51 = vld [vmem:[#allocation2 + $0x168] sm:$0xff]  ;;  %12212 = vmatprep.subr.bf16.mxu0 %v12211_v40  ;;  %v614_v54 = vld [vmem:[#allocation2 + $0x120] sm:$0xff]  ;;  %v12632_v60 = vpack.i.bf16 %v142_v39, %v14384_v12 }
  0x9f   :  { %408 = vrot.lane.b32.xlu0 %v140_v8, %s14196_s15  ;;  %12248 = vmatpush1.bf16.msra.mxu1 %v12247_v35  ;;  %v617_v50 = vld [vmem:[#allocation2 + $0x138] sm:$0xff]  ;;  %v12215_v52 = vpack.c.bf16 %v621_v49, %v615_v47  ;;  %v620_v55 = vld [vmem:[#allocation2 + $0x150] sm:$0xff]  ;;  %v622_v57 = vld [vmem:[#allocation2 + $0x160] sm:$0xff] }
  0xa0   :  { %12250 = vmatprep.subr.bf16.mxu1 %v12249_v41  ;;  %v12253_v53 = vpack.c.bf16 %v623_v51, %v617_v50  ;;  %v616_v56 = vld [vmem:[#allocation2 + $0x130] sm:$0xff]  ;;  %v627_v58 = vld [vmem:[#allocation2 + $0x188] sm:$0xff]  ;;  %v633_v59 = vld [vmem:[#allocation2 + $0x1b8] sm:$0xff]  ;;  %v12217_v61 = vpack.c.bf16 %v620_v55, %v614_v54 }
  0xa1   :  { %12214 = vmatpush1.bf16.msra.mxu0 %v12213_v44  ;;  %v629_v62 = vld [vmem:[#allocation2 + $0x198] sm:$0xff]  ;;  %v635_v63 = vld [vmem:[#allocation2 + $0x1c8] sm:$0xff]  ;;  %v14405_v0 = vld [vmem:[%s16452_s0 + $0x40] sm:$0xff]  ;;  %v12255_v1 = vpack.c.bf16 %v622_v57, %v616_v56  ;;  %v12219_v4 = vpack.c.bf16 %v633_v59, %v627_v58 }
  0xa2   :  { %12623 = vrot.lane.b32.xlu1 %v14388_v25, %s14194_s12  ;;  %v626_v2 = vld [vmem:[#allocation2 + $0x180] sm:$0xff]  ;;  %v632_v3 = vld [vmem:[#allocation2 + $0x1b0] sm:$0xff]  ;;  %12216 = vmatprep.subr.bf16.mxu0 %v12215_v52  ;;  %v12257_v5 = vpack.c.bf16 %v635_v63, %v629_v62  ;;  %v639_v8 = vld [vmem:[#allocation2 + $0x1e8] sm:$0xff]  ;;  %v12637_v13 = vpack.i.bf16 %v14405_v0, %v142_v39 }
  0xa3   :  { %12618 = vrot.lane.b32.xlu0 %v12617_v30, %s14197_s25  ;;  %12252 = vmatpush1.bf16.msra.mxu1 %v12251_v48  ;;  %v628_v6 = vld [vmem:[#allocation2 + $0x190] sm:$0xff]  ;;  %v634_v7 = vld [vmem:[#allocation2 + $0x1c0] sm:$0xff]  ;;  %v645_v9 = vld [vmem:[#allocation2 + $0x218] sm:$0xff] }
  0xa4   :  { %12254 = vmatprep.subr.bf16.mxu1 %v12253_v53  ;;  %v641_v10 = vld [vmem:[#allocation2 + $0x1f8] sm:$0xff]  ;;  %v647_v11 = vld [vmem:[#allocation2 + $0x228] sm:$0xff]  ;;  %v12259_v14 = vpack.c.bf16 %v634_v7, %v628_v6  ;;  %v638_v15 = vld [vmem:[#allocation2 + $0x1e0] sm:$0xff]  ;;  %v12223_v17 = vpack.c.bf16 %v645_v9, %v639_v8 }
  0xa5   :  { %12218 = vmatpush1.bf16.msra.mxu0 %v12217_v61  ;;  %v644_v16 = vld [vmem:[#allocation2 + $0x210] sm:$0xff]  ;;  %v12261_v18 = vpack.c.bf16 %v647_v11, %v641_v10  ;;  %v646_v20 = vld [vmem:[#allocation2 + $0x220] sm:$0xff]  ;;  %v651_v21 = vld [vmem:[#allocation2 + $0x248] sm:$0xff] }
  0xa6   :  { %412 = vrot.lane.b32.xlu1 %v142_v39, %s14196_s15  ;;  %12220 = vmatprep.subr.bf16.mxu0 %v12219_v4  ;;  %v640_v19 = vld [vmem:[#allocation2 + $0x1f0] sm:$0xff]  ;;  %v657_v22 = vld [vmem:[#allocation2 + $0x278] sm:$0xff]  ;;  %v659_v24 = vld [vmem:[#allocation2 + $0x288] sm:$0xff]  ;;  %v12225_v26 = vpack.c.bf16 %v644_v16, %v638_v15 }
  0xa7   :  { %410 = vrot.lane.b32.xlu0 %v14384_v12, %s14196_s15  ;;  %v12221_v12 = vpack.c.bf16 %v632_v3, %v626_v2  ;;  %12256 = vmatpush1.bf16.msra.mxu1 %v12255_v1  ;;  %v653_v23 = vld [vmem:[#allocation2 + $0x258] sm:$0xff]  ;;  %v14420_v27 = vld [vmem:[%s16452_s0 + $0x50] sm:$0xff]  ;;  %v12263_v28 = vpack.c.bf16 %v646_v20, %v640_v19  ;;  %v650_v29 = vld [vmem:[#allocation2 + $0x240] sm:$0xff]  ;;  %v12227_v31 = vpack.c.bf16 %v657_v22, %v651_v21 }
  0xa8   :  { %12258 = vmatprep.subr.bf16.mxu1 %v12257_v5  ;;  %v656_v30 = vld [vmem:[#allocation2 + $0x270] sm:$0xff]  ;;  %v12265_v32 = vpack.c.bf16 %v659_v24, %v653_v23  ;;  %v658_v34 = vld [vmem:[#allocation2 + $0x280] sm:$0xff]  ;;  %v663_v35 = vld [vmem:[#allocation2 + $0x2a8] sm:$0xff] }
  0xa9   :  { %12222 = vmatpush1.bf16.msra.mxu0 %v12221_v12  ;;  %v652_v33 = vld [vmem:[#allocation2 + $0x250] sm:$0xff]  ;;  %v669_v36 = vld [vmem:[#allocation2 + $0x2d8] sm:$0xff]  ;;  %v671_v38 = vld [vmem:[#allocation2 + $0x2e8] sm:$0xff]  ;;  %v12229_v40 = vpack.c.bf16 %v656_v30, %v650_v29 }
  0xaa   :  { %12633 = vrot.lane.b32.xlu1 %v12632_v60, %s14197_s25  ;;  %12224 = vmatprep.subr.bf16.mxu0 %v12223_v17  ;;  %v665_v37 = vld [vmem:[#allocation2 + $0x2b8] sm:$0xff]  ;;  %vm14425_vm2 = vmpackc.low %vm767_vm0, %vm14198_vm1  ;;  %v12267_v43 = vpack.c.bf16 %v658_v34, %v652_v33  ;;  %v662_v44 = vld [vmem:[#allocation2 + $0x2a0] sm:$0xff]  ;;  %v12231_v47 = vpack.c.bf16 %v669_v36, %v663_v35 }
  0xab   :  { %12628 = vrot.lane.b32.xlu0 %v14388_v25, %s14195_s1  ;;  %v144_v25 = vld [vmem:[%s16452_s0 + $0x48] sm:$0xff]  ;;  %12260 = vmatpush1.bf16.msra.mxu1 %v12259_v14  ;;  %v668_v45 = vld [vmem:[#allocation2 + $0x2d0] sm:$0xff]  ;;  %v12269_v48 = vpack.c.bf16 %v671_v38, %v665_v37  ;;  %v670_v49 = vld [vmem:[#allocation2 + $0x2e0] sm:$0xff] }
  0xac   :  { %12262 = vmatprep.subr.bf16.mxu1 %v12261_v18  ;;  %v12652_v39 = vpack.i.bf16 %v14420_v27, %v144_v25  ;;  %v12647_v42 = vpack.i.bf16 %v144_v25, %v14405_v0  ;;  %v664_v46 = vld [vmem:[#allocation2 + $0x2b0] sm:$0xff]  ;;  %v675_v50 = vld [vmem:[#allocation2 + $0x308] sm:$0xff]  ;;  %v681_v51 = vld [vmem:[#allocation2 + $0x338] sm:$0xf]  ;;  %v12233_v56 = vpack.c.bf16 %v668_v45, %v662_v44 }
  0xad   :  { %12226 = vmatpush1.bf16.msra.mxu0 %v12225_v26  ;;  %v146_v52 = vld [vmem:[%s16452_s0 + $0x58] sm:$0xff]  ;;  %v683_v54 = vld [vmem:[#allocation2 + $0x348] sm:$0xf]  ;;  %v674_v55 = vld [vmem:[#allocation2 + $0x300] sm:$0xff]  ;;  %v12271_v60 = vpack.c.bf16 %v670_v49, %v664_v46  ;;  %v12235_v63 = vpack.c.bf16 %v681_v51, %v675_v50 }
  0xae   :  { %414 = vrot.lane.b32.xlu1 %v14405_v0, %s14196_s15  ;;  %12228 = vmatprep.subr.bf16.mxu0 %v12227_v31  ;;  %v677_v53 = vld [vmem:[#allocation2 + $0x318] sm:$0xff]  ;;  %v680_v57 = vld [vmem:[#allocation2 + $0x330] sm:$0xf]  ;;  %v682_v59 = vld [vmem:[#allocation2 + $0x340] sm:$0xf]  ;;  %v12662_v1 = vpack.i.bf16 %v146_v52, %v14420_v27 }
  0xaf   :  { %12638 = vrot.lane.b32.xlu0 %v12637_v13, %s14194_s12  ;;  %12264 = vmatpush1.bf16.msra.mxu1 %v12263_v28  ;;  %v676_v58 = vld [vmem:[#allocation2 + $0x310] sm:$0xff]  ;;  %v583_v61 = vld [vmem:[#allocation2 + $0x28] sm:$0xff]  ;;  %v589_v62 = vld [vmem:[#allocation2 + $0x58] sm:$0xff]  ;;  %v12273_v0 = vpack.c.bf16 %v683_v54, %v677_v53  ;;  %v12238_v3 = vpack.c.bf16 %v680_v57, %v674_v55 }
  0xb0   :  { %12266 = vmatprep.subr.bf16.mxu1 %v12265_v32  ;;  %v147_v2 = vld [vmem:[%s16452_s0 + $0x60] sm:$0xff]  ;;  %v12276_v4 = vpack.c.bf16 %v682_v59, %v676_v58  ;;  %v12279_v5 = vpack.c.bf16 %v589_v62, %v583_v61  ;;  %v149_v7 = vld [vmem:[%s16452_s0 + $0x70] sm:$0xff]  ;;  %v148_v8 = vld [vmem:[%s16452_s0 + $0x68] sm:$0xff] }
  0xb1   :  { %12230 = vmatpush1.bf16.msra.mxu0 %v12229_v40  ;;  %v12667_v6 = vpack.i.bf16 %v147_v2, %v146_v52  ;;  %v12682_v9 = vpack.i.bf16 %v149_v7, %v148_v8  ;;  %v12677_v10 = vpack.i.bf16 %v148_v8, %v147_v2  ;;  %v150_v11 = vld [vmem:[%s16452_s0 + $0x78] sm:$0xff]  ;;  %v153_v15 = vld [vmem:[%s16452_s0 + $0x90] sm:$0xff]  ;;  %v152_v16 = vld [vmem:[%s16452_s0 + $0x88] sm:$0xff] }
  0xb2   :  { %12643 = vrot.lane.b32.xlu1 %v12637_v13, %s14195_s1  ;;  %12232 = vmatprep.subr.bf16.mxu0 %v12231_v47  ;;  %v12692_v12 = vpack.i.bf16 %v150_v11, %v149_v7  ;;  %v151_v13 = vld [vmem:[%s16452_s0 + $0x80] sm:$0xff]  ;;  %v12712_v17 = vpack.i.bf16 %v153_v15, %v152_v16  ;;  %v154_v19 = vld [vmem:[%s16452_s0 + $0x98] sm:$0xff]  ;;  %v157_v23 = vld [vmem:[%s16452_s0 + $0xb0] sm:$0xff] }
  0xb3   :  { %416 = vrot.lane.b32.xlu0 %v144_v25, %s14196_s15  ;;  %12268 = vmatpush1.bf16.msra.mxu1 %v12267_v43  ;;  %v12697_v14 = vpack.i.bf16 %v151_v13, %v150_v11  ;;  %v12707_v18 = vpack.i.bf16 %v152_v16, %v151_v13  ;;  %v12722_v20 = vpack.i.bf16 %v154_v19, %v153_v15  ;;  %v155_v21 = vld [vmem:[%s16452_s0 + $0xa0] sm:$0xff]  ;;  %v156_v24 = vld [vmem:[%s16452_s0 + $0xa8] sm:$0xff]  ;;  %v161_v32 = vld [vmem:[%s16452_s0 + $0xd0] sm:$0xff] }
  0xb4   :  { %12270 = vmatprep.subr.bf16.mxu1 %v12269_v48  ;;  %v12727_v22 = vpack.i.bf16 %v155_v21, %v154_v19  ;;  %v12742_v25 = vpack.i.bf16 %v157_v23, %v156_v24  ;;  %v12737_v26 = vpack.i.bf16 %v156_v24, %v155_v21  ;;  %v159_v29 = vld [vmem:[%s16452_s0 + $0xc0] sm:$0xff]  ;;  %v160_v31 = vld [vmem:[%s16452_s0 + $0xc8] sm:$0xff]  ;;  %v162_v35 = vld [vmem:[%s16452_s0 + $0xd8] sm:$0xff] }
  0xb5   :  { %12234 = vmatpush1.bf16.msra.mxu0 %v12233_v56  ;;  %v135_v36 = vld [vmem:[%s16452_s0] sm:$0xff]  ;;  %v595_v44 = vld [vmem:[#allocation2 + $0x88] sm:$0xff]  ;;  %v601_v45 = vld [vmem:[#allocation2 + $0xb8] sm:$0xff] }
  0xb6   :  { %12653 = vrot.lane.b32.xlu1 %v12652_v39, %s14194_s12  ;;  %12237 = vmatprep.subr.msk.bf16.mxu0 %vm14425_vm2, %v12235_v63  ;;  %v582_v40 = vld [vmem:[#allocation2 + $0x20] sm:$0xff]  ;;  %v13945_v49 = vld [vmem:[%s16452_s0 + $0x8] sm:$0xff]  ;;  %v600_v56 = vld [vmem:[#allocation2 + $0xb0] sm:$0xff]  ;;  %v12283_v62 = vpack.c.bf16 %v601_v45, %v595_v44 }
  0xb7   :  { %12648 = vrot.lane.b32.xlu0 %v12647_v42, %s14197_s25  ;;  %12272 = vmatpush1.bf16.msra.mxu1 %v12271_v60  ;;  %v588_v42 = vld [vmem:[#allocation2 + $0x50] sm:$0xff]  ;;  %v594_v55 = vld [vmem:[#allocation2 + $0x80] sm:$0xff] }
  0xb8   :  { %12275 = vmatprep.subr.msk.bf16.mxu1 %vm14425_vm2, %v12273_v0  ;;  %v12281_v60 = vpack.c.bf16 %v588_v42, %v582_v40  ;;  %v630_v44 = vld [vmem:[#allocation2 + $0x1a0] sm:$0xff]  ;;  %v636_v45 = vld [vmem:[#allocation2 + $0x1d0] sm:$0xff] }
  0xb9   :  { %12240 = vmatpush1.bf16.msk.msra.mxu0 %vm14425_vm2, %v12238_v3  ;;  %v607_v3 = vld [vmem:[#allocation2 + $0xe8] sm:$0xff]  ;;  %v13955_v41 = vld [vmem:[%s16452_s0 + $0x50] sm:$0xff] }
  0xba   :  { %420 = vrot.lane.b32.xlu1 %v146_v52, %s14196_s15  ;;  %12280 = vmatprep.subr.bf16.mxu0 %v12279_v5 }
  0xbb   :  { %418 = vrot.lane.b32.xlu0 %v14420_v27, %s14196_s15  ;;  %12278 = vmatpush1.bf16.msk.msra.mxu1 %vm14425_vm2, %v12276_v4  ;;  %v158_v27 = vld [vmem:[%s16452_s0 + $0xb8] sm:$0xff] }
  0xbc   :  { %v12752_v28 = vpack.i.bf16 %v158_v27, %v157_v23  ;;  %v12757_v30 = vpack.i.bf16 %v159_v29, %v158_v27  ;;  %v613_v4 = vld [vmem:[#allocation2 + $0x118] sm:$0xff] }
  0xbe   :  { %12663 = vrot.lane.b32.xlu1 %v12662_v1, %s14197_s25 }
  0xbf   :  { %12658 = vrot.lane.b32.xlu0 %v12652_v39, %s14195_s1 }
  0xc2   :  { %422 = vrot.lane.b32.xlu1 %v147_v2, %s14196_s15 }
  0xc3   :  { %12668 = vrot.lane.b32.xlu0 %v12667_v6, %s14194_s12 }
  0xc6   :  { %12673 = vrot.lane.b32.xlu1 %v12667_v6, %s14195_s1 }
  0xc7   :  { %424 = vrot.lane.b32.xlu0 %v148_v8, %s14196_s15  ;;  %v606_v8 = vld [vmem:[#allocation2 + $0xe0] sm:$0xff] }
  0xca   :  { %12683 = vrot.lane.b32.xlu1 %v12682_v9, %s14194_s12 }
  0xcb   :  { %12678 = vrot.lane.b32.xlu0 %v12677_v10, %s14197_s25 }
  0xce   :  { %428 = vrot.lane.b32.xlu1 %v150_v11, %s14196_s15 }
  0xcf   :  { %426 = vrot.lane.b32.xlu0 %v149_v7, %s14196_s15  ;;  %v12285_v7 = vpack.c.bf16 %v600_v56, %v594_v55 }
  0xd2   :  { %12693 = vrot.lane.b32.xlu1 %v12692_v12, %s14197_s25 }
  0xd3   :  { %12688 = vrot.lane.b32.xlu0 %v12682_v9, %s14195_s1  ;;  %v612_v9 = vld [vmem:[#allocation2 + $0x110] sm:$0xff] }
  0xd6   :  { %430 = vrot.lane.b32.xlu1 %v151_v13, %s14196_s15  ;;  %v13946_v13 = vld [vmem:[%s16452_s0 + $0x18] sm:$0xff] }
  0xd7   :  { %12698 = vrot.lane.b32.xlu0 %v12697_v14, %s14194_s12 }
  0xda   :  { %12703 = vrot.lane.b32.xlu1 %v12697_v14, %s14195_s1 }
  0xdb   :  { %432 = vrot.lane.b32.xlu0 %v152_v16, %s14196_s15 }
  0xde   :  { %12713 = vrot.lane.b32.xlu1 %v12712_v17, %s14194_s12 }
  0xdf   :  { %12708 = vrot.lane.b32.xlu0 %v12707_v18, %s14197_s25  ;;  %v619_v18 = vld [vmem:[#allocation2 + $0x148] sm:$0xff] }
  0xe2   :  { %436 = vrot.lane.b32.xlu1 %v154_v19, %s14196_s15  ;;  %v625_v19 = vld [vmem:[#allocation2 + $0x178] sm:$0xff] }
  0xe3   :  { %434 = vrot.lane.b32.xlu0 %v153_v15, %s14196_s15  ;;  %v13947_v15 = vld [vmem:[%s16452_s0 + $0x10] sm:$0xff] }
  0xe6   :  { %12723 = vrot.lane.b32.xlu1 %v12722_v20, %s14197_s25 }
  0xe7   :  { %12718 = vrot.lane.b32.xlu0 %v12712_v17, %s14195_s1 }
  0xea   :  { %438 = vrot.lane.b32.xlu1 %v155_v21, %s14196_s15 }
  0xeb   :  { %12728 = vrot.lane.b32.xlu0 %v12727_v22, %s14194_s12 }
  0xee   :  { %12733 = vrot.lane.b32.xlu1 %v12727_v22, %s14195_s1 }
  0xef   :  { %440 = vrot.lane.b32.xlu0 %v156_v24, %s14196_s15 }
  0xf2   :  { %12743 = vrot.lane.b32.xlu1 %v12742_v25, %s14194_s12 }
  0xf3   :  { %12738 = vrot.lane.b32.xlu0 %v12737_v26, %s14197_s25  ;;  %v618_v26 = vld [vmem:[#allocation2 + $0x140] sm:$0xff] }
  0xf6   :  { %444 = vrot.lane.b32.xlu1 %v158_v27, %s14196_s15  ;;  %v624_v27 = vld [vmem:[#allocation2 + $0x170] sm:$0xff] }
  0xf7   :  { %442 = vrot.lane.b32.xlu0 %v157_v23, %s14196_s15  ;;  %v12293_v40 = vpack.c.bf16 %v624_v27, %v618_v26  ;;  %v13951_v27 = vld [vmem:[%s16452_s0 + $0x30] sm:$0xff] }
  0xfa   :  { %12753 = vrot.lane.b32.xlu1 %v12752_v28, %s14197_s25 }
  0xfb   :  { %12748 = vrot.lane.b32.xlu0 %v12742_v25, %s14195_s1  ;;  %v12287_v25 = vpack.c.bf16 %v613_v4, %v607_v3 }
  0xfe   :  { %446 = vrot.lane.b32.xlu1 %v159_v29, %s14196_s15 }
  0xff   :  { %12758 = vrot.lane.b32.xlu0 %v12757_v30, %s14194_s12 }
 0x102   :  { %12763 = vrot.lane.b32.xlu1 %v12757_v30, %s14195_s1  ;;  %v631_v30 = vld [vmem:[#allocation2 + $0x1a8] sm:$0xff] }
 0x103   :  { %448 = vrot.lane.b32.xlu0 %v160_v31, %s14196_s15 }
 0x106   :  { %377 = vrot.lane.b32.xlu1 %v160_v31, %s14194_s12 }
 0x107   :  { %304 = vrot.lane.b32.xlu0 %v159_v29, %s14197_s25  ;;  %v12289_v29 = vpack.c.bf16 %v612_v9, %v606_v8 }
 0x108   :  { %v12609_v33 = vpop.permute.xlu1 %12608 }
 0x109   :  { %v12599_v34 = vpop.permute.xlu0 %12598  ;;  %v12610_v48 = vunpack.i.l.bf16 %v12609_v33  ;;  %v12611_v57 = vunpack.i.h.bf16 %v12609_v33 }
 0x10a   :  { %306 = vrot.lane.b32.xlu1 %v160_v31, %s14197_s25  ;;  %v12601_v37 = vunpack.i.h.bf16 %v12599_v34  ;;  %v12600_v38 = vunpack.i.l.bf16 %v12599_v34  ;;  %v637_v31 = vld [vmem:[#allocation2 + $0x1d8] sm:$0xff]  ;;  %v12291_v34 = vpack.c.bf16 %v625_v19, %v619_v18  ;;  %v667_v19 = vld [vmem:[#allocation2 + $0x2c8] sm:$0xff] }
 0x10b   :  { %450 = vrot.lane.b32.xlu0 %v161_v32, %s14196_s15 }
 0x10c   :  { %v14539_v39 = vpop.permute.xlu1 %406  ;;  %v480_v50 = vsel %vm478_vm4, %v13945_v49, %v12601_v37  ;;  %v479_v51 = vsel %vm478_vm4, %v135_v36, %v12600_v38  ;;  %v643_v49 = vld [vmem:[#allocation2 + $0x208] sm:$0xff] }
 0x10d   :  { %v12604_v43 = vpop.permute.xlu0 %12603  ;;  %10982 = vmatprep.mubr.msk.f32.mxu0 %vm718_vm3, %v14539_v39  ;;  %11008 = vmatprep.mubr.msk.f32.mxu1 %vm718_vm3, %v14539_v39 }
 0x10e   :  { %v12606_v46 = vunpack.i.h.bf16 %v12604_v43  ;;  %v12605_v47 = vunpack.i.l.bf16 %v12604_v43  ;;  %452 = vrot.lane.b32.xlu1 %v162_v35, %s14196_s15  ;;  %v12295_v43 = vpack.c.bf16 %v637_v31, %v631_v30 }
 0x10f   :  { %379 = vrot.lane.b32.xlu0 %v161_v32, %s14194_s12 }
 0x110   :  { %v12614_v52 = vpop.permute.xlu1 %12613  ;;  %v504_v53 = vsel %vm503_vm5, %v479_v51, %v12605_v47  ;;  %v505_v54 = vsel %vm503_vm5, %v480_v50, %v12606_v46  ;;  %v13948_v46 = vld [vmem:[%s16452_s0 + $0x20] sm:$0xff]  ;;  %v649_v50 = vld [vmem:[#allocation2 + $0x238] sm:$0xff] }
 0x111   :  { %v14554_v58 = vpop.permute.xlu0 %408  ;;  %v529_v59 = vsel %vm528_vm6, %v504_v53, %v12610_v48  ;;  %v12616_v63 = vunpack.i.h.bf16 %v12614_v52  ;;  %v12615_v0 = vunpack.i.l.bf16 %v12614_v52  ;;  %v530_v1 = vsel %vm528_vm6, %v505_v54, %v12611_v57  ;;  %v13949_v53 = vld [vmem:[%s16452_s0 + $0x28] sm:$0xff] }
 0x112   :  { %v14559_v61 = vsel %vm553_vm7, %v529_v59, %v14539_v39  ;;  %v14570_v12 = vsel %vm553_vm7, %v530_v1, %v14554_v58  ;;  %v642_v59 = vld [vmem:[#allocation2 + $0x200] sm:$0xff]  ;;  %v655_v1 = vld [vmem:[#allocation2 + $0x268] sm:$0xff] }
 0x113   :  { %851 = vmatmul.mubr.f32.vlgmr.msra.gmra.mrb[0].mxu0 %v14559_v61  ;;  %1060 = vmatmul.mubr.f32.vlgmr.msra.gmra.mrb[0].mxu1 %v14559_v61  ;;  %v482_v14 = vsel %vm478_vm4, %v13946_v13, %v12616_v63  ;;  %v481_v16 = vsel %vm478_vm4, %v13947_v15, %v12615_v0  ;;  %v12297_v0 = vpack.c.bf16 %v636_v45, %v630_v44  ;;  %v654_v13 = vld [vmem:[#allocation2 + $0x260] sm:$0xff]  ;;  %v679_v44 = vld [vmem:[#allocation2 + $0x328] sm:$0xff]  ;;  %v685_v45 = vld [vmem:[#allocation2 + $0x358] sm:$0xf] }
 0x114   :  { %10983 = vmatprep.mubr.msk.f32.mxu0 %vm718_vm3, %v14554_v58  ;;  %11009 = vmatprep.mubr.msk.f32.mxu1 %vm718_vm3, %v14554_v58  ;;  %v12624_v2 = vpop.permute.xlu1 %12623 }
 0x115   :  { %v12625_v5 = vunpack.i.l.bf16 %v12624_v2  ;;  %v12619_v6 = vpop.permute.xlu0 %12618  ;;  %12282 = vmatpush1.bf16.msra.mxu0 %v12281_v60  ;;  %v12626_v17 = vunpack.i.h.bf16 %v12624_v2  ;;  %v648_v60 = vld [vmem:[#allocation2 + $0x230] sm:$0xff]  ;;  %v661_v2 = vld [vmem:[#allocation2 + $0x298] sm:$0xff] }
 0x116   :  { %v12621_v10 = vunpack.i.h.bf16 %v12619_v6  ;;  %v12620_v11 = vunpack.i.l.bf16 %v12619_v6  ;;  %12284 = vmatprep.subr.bf16.mxu0 %v12283_v62  ;;  %v12299_v6 = vpack.c.bf16 %v649_v50, %v643_v49  ;;  %v12303_v18 = vpack.c.bf16 %v661_v2, %v655_v1  ;;  %v13953_v1 = vld [vmem:[%s16452_s0 + $0x48] sm:$0xff] }
 0x117   :  { %857 = vmatmul.mubr.f32.gmra.mrb[2].mxu0 %v14570_v12  ;;  %1066 = vmatmul.mubr.f32.gmra.mrb[2].mxu1 %v14570_v12 }
 0x118   :  { %v14582_v20 = vpop.permute.xlu1 %412  ;;  %v506_v21 = vsel %vm503_vm5, %v481_v16, %v12620_v11  ;;  %v507_v22 = vsel %vm503_vm5, %v482_v14, %v12621_v10  ;;  %v12301_v11 = vpack.c.bf16 %v648_v60, %v642_v59  ;;  %v660_v14 = vld [vmem:[#allocation2 + $0x290] sm:$0xff]  ;;  %v13952_v59 = vld [vmem:[%s16452_s0 + $0x40] sm:$0xff] }
 0x119   :  { %v14586_v23 = vpop.permute.xlu0 %410  ;;  %v531_v24 = vsel %vm528_vm6, %v506_v21, %v12625_v5  ;;  %12286 = vmatpush1.bf16.msra.mxu0 %v12285_v7  ;;  %v532_v32 = vsel %vm528_vm6, %v507_v22, %v12626_v17  ;;  %v673_v21 = vld [vmem:[#allocation2 + $0x2f8] sm:$0xff] }
 0x11a   :  { %10984 = vmatprep.mubr.msk.f32.mxu0 %vm718_vm3, %v14586_v23  ;;  %11010 = vmatprep.mubr.msk.f32.mxu1 %vm718_vm3, %v14586_v23  ;;  %v14595_v28 = vsel %vm553_vm7, %v531_v24, %v14586_v23  ;;  %v14606_v38 = vsel %vm553_vm7, %v532_v32, %v14582_v20 }
 0x11b   :  { %863 = vmatmul.mubr.f32.gmra.mrb[4].mxu0 %v14595_v28  ;;  %1072 = vmatmul.mubr.f32.gmra.mrb[4].mxu1 %v14595_v28 }
 0x11c   :  { %10985 = vmatprep.mubr.msk.f32.mxu0 %vm718_vm3, %v14582_v20  ;;  %11011 = vmatprep.mubr.msk.f32.mxu1 %vm718_vm3, %v14582_v20  ;;  %v12634_v33 = vpop.permute.xlu1 %12633 }
 0x11d   :  { %v12629_v35 = vpop.permute.xlu0 %12628  ;;  %12288 = vmatprep.subr.bf16.mxu0 %v12287_v25  ;;  %v12635_v42 = vunpack.i.l.bf16 %v12634_v33  ;;  %v12636_v51 = vunpack.i.h.bf16 %v12634_v33  ;;  %v13950_v25 = vld [vmem:[%s16452_s0 + $0x38] sm:$0xff] }
 0x11e   :  { %v12631_v36 = vunpack.i.h.bf16 %v12629_v35  ;;  %v12630_v37 = vunpack.i.l.bf16 %v12629_v35  ;;  %12290 = vmatpush1.bf16.msra.mxu0 %v12289_v29 }
 0x11f   :  { %869 = vmatmul.mubr.f32.gmra.mrb[6].mxu0 %v14606_v38  ;;  %1078 = vmatmul.mubr.f32.gmra.mrb[6].mxu1 %v14606_v38 }
 0x120   :  { %v483_v47 = vsel %vm478_vm4, %v13948_v46, %v12630_v37  ;;  %v14614_v48 = vpop.permute.xlu1 %414  ;;  %12292 = vmatprep.subr.bf16.mxu0 %v12291_v34  ;;  %v484_v54 = vsel %vm478_vm4, %v13949_v53, %v12631_v36  ;;  %v12305_v36 = vpack.c.bf16 %v660_v14, %v654_v13  ;;  %v666_v37 = vld [vmem:[#allocation2 + $0x2c0] sm:$0xff] }
 0x121   :  { %v12639_v52 = vpop.permute.xlu0 %12638  ;;  %10986 = vmatprep.mubr.msk.f32.mxu0 %vm718_vm3, %v14614_v48  ;;  %11012 = vmatprep.mubr.msk.f32.mxu1 %vm718_vm3, %v14614_v48  ;;  %v508_v57 = vsel %vm503_vm5, %v483_v47, %v12635_v42  ;;  %v509_v5 = vsel %vm503_vm5, %v484_v54, %v12636_v51 }
 0x122   :  { %v12641_v55 = vunpack.i.h.bf16 %v12639_v52  ;;  %v12640_v56 = vunpack.i.l.bf16 %v12639_v52  ;;  %12294 = vmatpush1.bf16.msra.mxu0 %v12293_v40  ;;  %v672_v40 = vld [vmem:[#allocation2 + $0x2f0] sm:$0xff] }
 0x123   :  { %12296 = vmatprep.subr.bf16.mxu0 %v12295_v43  ;;  %v12307_v43 = vpack.c.bf16 %v673_v21, %v667_v19  ;;  %v12309_v53 = vpack.c.bf16 %v672_v40, %v666_v37 }
 0x124   :  { %v12644_v62 = vpop.permute.xlu1 %12643  ;;  %v533_v63 = vsel %vm528_vm6, %v508_v57, %v12640_v56  ;;  %v534_v7 = vsel %vm528_vm6, %v509_v5, %v12641_v55  ;;  %v12311_v55 = vpack.c.bf16 %v685_v45, %v679_v44  ;;  %v678_v56 = vld [vmem:[#allocation2 + $0x320] sm:$0xff]  ;;  %v684_v57 = vld [vmem:[#allocation2 + $0x350] sm:$0xf] }
 0x125   :  { %v14626_v3 = vpop.permute.xlu0 %416  ;;  %v14630_v4 = vsel %vm553_vm7, %v533_v63, %v14614_v48  ;;  %v12646_v8 = vunpack.i.h.bf16 %v12644_v62  ;;  %v12645_v9 = vunpack.i.l.bf16 %v12644_v62 }
 0x126   :  { %875 = vmatmul.mubr.f32.gmra.mrb[8].mxu0 %v14630_v4  ;;  %1084 = vmatmul.mubr.f32.gmra.mrb[8].mxu1 %v14630_v4  ;;  %v14642_v17 = vsel %vm553_vm7, %v534_v7, %v14626_v3 }
 0x127   :  { %10987 = vmatprep.mubr.msk.f32.mxu0 %vm718_vm3, %v14626_v3  ;;  %11013 = vmatprep.mubr.msk.f32.mxu1 %vm718_vm3, %v14626_v3  ;;  %v486_v26 = vsel %vm478_vm4, %v13950_v25, %v12646_v8  ;;  %v485_v29 = vsel %vm478_vm4, %v13951_v27, %v12645_v9  ;;  %v13954_v27 = vld [vmem:[%s16452_s0 + $0x58] sm:$0xff] }
 0x128   :  { %v12654_v10 = vpop.permute.xlu1 %12653  ;;  %12298 = vmatpush1.bf16.msra.mxu0 %v12297_v0 }
 0x129   :  { %v12655_v15 = vunpack.i.l.bf16 %v12654_v10  ;;  %v12649_v16 = vpop.permute.xlu0 %12648  ;;  %12300 = vmatprep.subr.bf16.mxu0 %v12299_v6  ;;  %v12656_v30 = vunpack.i.h.bf16 %v12654_v10  ;;  %v12314_v10 = vpack.c.bf16 %v684_v57, %v678_v56 }
 0x12a   :  { %v12651_v22 = vunpack.i.h.bf16 %v12649_v16  ;;  %v12650_v24 = vunpack.i.l.bf16 %v12649_v16  ;;  %881 = vmatmul.mubr.f32.gmra.mrb[10].mxu0 %v14642_v17  ;;  %1090 = vmatmul.mubr.f32.gmra.mrb[10].mxu1 %v14642_v17 }
 0x12c   :  { %v14654_v31 = vpop.permute.xlu1 %420  ;;  %v510_v32 = vsel %vm503_vm5, %v485_v29, %v12650_v24  ;;  %v511_v33 = vsel %vm503_vm5, %v486_v26, %v12651_v22  ;;  %12302 = vmatpush1.bf16.msra.mxu0 %v12301_v11 }
 0x12d   :  { %v14658_v34 = vpop.permute.xlu0 %418  ;;  %v535_v35 = vsel %vm528_vm6, %v510_v32, %v12655_v15  ;;  %12304 = vmatprep.subr.bf16.mxu0 %v12303_v18  ;;  %v536_v46 = vsel %vm528_vm6, %v511_v33, %v12656_v30 }
 0x12e   :  { %10988 = vmatprep.mubr.msk.f32.mxu0 %vm718_vm3, %v14658_v34  ;;  %11014 = vmatprep.mubr.msk.f32.mxu1 %vm718_vm3, %v14658_v34  ;;  %v14667_v42 = vsel %vm553_vm7, %v535_v35, %v14658_v34  ;;  %v14678_v52 = vsel %vm553_vm7, %v536_v46, %v14654_v31 }
 0x12f   :  { %887 = vmatmul.mubr.f32.gmra.mrb[12].mxu0 %v14667_v42  ;;  %1096 = vmatmul.mubr.f32.gmra.mrb[12].mxu1 %v14667_v42 }
 0x130   :  { %10989 = vmatprep.mubr.msk.f32.mxu0 %vm718_vm3, %v14654_v31  ;;  %11015 = vmatprep.mubr.msk.f32.mxu1 %vm718_vm3, %v14654_v31  ;;  %v12664_v47 = vpop.permute.xlu1 %12663 }
 0x131   :  { %v12659_v49 = vpop.permute.xlu0 %12658  ;;  %12306 = vmatpush1.bf16.msra.mxu0 %v12305_v36  ;;  %v12665_v54 = vunpack.i.l.bf16 %v12664_v47  ;;  %v12666_v63 = vunpack.i.h.bf16 %v12664_v47 }
 0x132   :  { %v12661_v50 = vunpack.i.h.bf16 %v12659_v49  ;;  %v12660_v51 = vunpack.i.l.bf16 %v12659_v49  ;;  %12308 = vmatprep.subr.bf16.mxu0 %v12307_v43 }
 0x133   :  { %893 = vmatmul.mubr.f32.gmra.mrb[14].mxu0 %v14678_v52  ;;  %1102 = vmatmul.mubr.f32.gmra.mrb[14].mxu1 %v14678_v52 }
 0x134   :  { %v487_v60 = vsel %vm478_vm4, %v13952_v59, %v12660_v51  ;;  %v14686_v62 = vpop.permute.xlu1 %422  ;;  %v488_v2 = vsel %vm478_vm4, %v13953_v1, %v12661_v50  ;;  %v13957_v59 = vld [vmem:[%s16452_s0 + $0x68] sm:$0xff] }
 0x135   :  { %v12669_v0 = vpop.permute.xlu0 %12668  ;;  %10990 = vmatprep.mubr.msk.f32.mxu0 %vm718_vm3, %v14686_v62  ;;  %11016 = vmatprep.mubr.msk.f32.mxu1 %vm718_vm3, %v14686_v62  ;;  %v512_v7 = vsel %vm503_vm5, %v487_v60, %v12665_v54  ;;  %v513_v14 = vsel %vm503_vm5, %v488_v2, %v12666_v63 }
 0x136   :  { %v12671_v5 = vunpack.i.h.bf16 %v12669_v0  ;;  %v12670_v6 = vunpack.i.l.bf16 %v12669_v0  ;;  %12310 = vmatpush1.bf16.msra.mxu0 %v12309_v53  ;;  %v13956_v53 = vld [vmem:[%s16452_s0 + $0x60] sm:$0xff] }
 0x137   :  { %12313 = vmatprep.subr.msk.bf16.mxu0 %vm14425_vm2, %v12311_v55 }
 0x138   :  { %v12674_v8 = vpop.permute.xlu1 %12673  ;;  %v537_v9 = vsel %vm528_vm6, %v512_v7, %v12670_v6  ;;  %v538_v15 = vsel %vm528_vm6, %v513_v14, %v12671_v5 }
 0x139   :  { %v14700_v11 = vpop.permute.xlu0 %424  ;;  %v14704_v13 = vsel %vm553_vm7, %v537_v9, %v14686_v62  ;;  %v12676_v16 = vunpack.i.h.bf16 %v12674_v8  ;;  %v12675_v18 = vunpack.i.l.bf16 %v12674_v8 }
 0x13a   :  { %899 = vmatmul.mubr.f32.gmra.mrb[16].mxu0 %v14704_v13  ;;  %1108 = vmatmul.mubr.f32.gmra.mrb[16].mxu1 %v14704_v13  ;;  %v14718_v24 = vsel %vm553_vm7, %v538_v15, %v14700_v11 }
 0x13b   :  { %10991 = vmatprep.mubr.msk.f32.mxu0 %vm718_vm3, %v14700_v11  ;;  %11017 = vmatprep.mubr.msk.f32.mxu1 %vm718_vm3, %v14700_v11  ;;  %v490_v29 = vsel %vm478_vm4, %v13954_v27, %v12676_v16  ;;  %v489_v30 = vsel %vm478_vm4, %v13955_v41, %v12675_v18  ;;  %v13959_v27 = vld [vmem:[%s16452_s0 + $0x70] sm:$0xff] }
 0x13c   :  { %v12684_v19 = vpop.permute.xlu1 %12683  ;;  %12316 = vmatpush1.bf16.msk.msra.mxu0 %vm14425_vm2, %v12314_v10 }
 0x13d   :  { %v12685_v21 = vunpack.i.l.bf16 %v12684_v19  ;;  %v12679_v22 = vpop.permute.xlu0 %12678  ;;  %v12686_v32 = vunpack.i.h.bf16 %v12684_v19 }
 0x13e   :  { %v12681_v25 = vunpack.i.h.bf16 %v12679_v22  ;;  %v12680_v26 = vunpack.i.l.bf16 %v12679_v22  ;;  %905 = vmatmul.mubr.f32.gmra.mrb[18].mxu0 %v14718_v24  ;;  %1114 = vmatmul.mubr.f32.gmra.mrb[18].mxu1 %v14718_v24 }
 0x140   :  { %v14730_v33 = vpop.permute.xlu1 %428  ;;  %v514_v35 = vsel %vm503_vm5, %v489_v30, %v12680_v26  ;;  %v515_v36 = vsel %vm503_vm5, %v490_v29, %v12681_v25  ;;  %v13958_v25 = vld [vmem:[%s16452_s0 + $0x78] sm:$0xff] }
 0x141   :  { %v14734_v37 = vpop.permute.xlu0 %426  ;;  %v539_v40 = vsel %vm528_vm6, %v514_v35, %v12685_v21  ;;  %v540_v44 = vsel %vm528_vm6, %v515_v36, %v12686_v32 }
 0x142   :  { %10992 = vmatprep.mubr.msk.f32.mxu0 %vm718_vm3, %v14734_v37  ;;  %11018 = vmatprep.mubr.msk.f32.mxu1 %vm718_vm3, %v14734_v37  ;;  %v14743_v43 = vsel %vm553_vm7, %v539_v40, %v14734_v37  ;;  %v14754_v50 = vsel %vm553_vm7, %v540_v44, %v14730_v33 }
 0x143   :  { %911 = vmatmul.mubr.f32.gmra.mrb[20].mxu0 %v14743_v43  ;;  %1120 = vmatmul.mubr.f32.gmra.mrb[20].mxu1 %v14743_v43 }
 0x144   :  { %10993 = vmatprep.mubr.msk.f32.mxu0 %vm718_vm3, %v14730_v33  ;;  %11019 = vmatprep.mubr.msk.f32.mxu1 %vm718_vm3, %v14730_v33  ;;  %v12694_v45 = vpop.permute.xlu1 %12693 }
 0x145   :  { %v12689_v46 = vpop.permute.xlu0 %12688  ;;  %v12695_v51 = vunpack.i.l.bf16 %v12694_v45  ;;  %v12696_v56 = vunpack.i.h.bf16 %v12694_v45 }
 0x146   :  { %v12691_v47 = vunpack.i.h.bf16 %v12689_v46  ;;  %v12690_v49 = vunpack.i.l.bf16 %v12689_v46 }
 0x147   :  { %917 = vmatmul.mubr.f32.gmra.mrb[22].mxu0 %v14754_v50  ;;  %1126 = vmatmul.mubr.f32.gmra.mrb[22].mxu1 %v14754_v50 }
 0x148   :  { %v491_v54 = vsel %vm478_vm4, %v13956_v53, %v12690_v49  ;;  %v14762_v55 = vpop.permute.xlu1 %430  ;;  %v492_v60 = vsel %vm478_vm4, %v13957_v59, %v12691_v47 }
 0x149   :  { %v12699_v57 = vpop.permute.xlu0 %12698  ;;  %10994 = vmatprep.mubr.msk.f32.mxu0 %vm718_vm3, %v14762_v55  ;;  %11020 = vmatprep.mubr.msk.f32.mxu1 %vm718_vm3, %v14762_v55  ;;  %v516_v1 = vsel %vm503_vm5, %v491_v54, %v12695_v51  ;;  %v517_v8 = vsel %vm503_vm5, %v492_v60, %v12696_v56  ;;  %v13960_v56 = vld [vmem:[%s16452_s0 + $0x80] sm:$0xff] }
 0x14a   :  { %v12701_v63 = vunpack.i.h.bf16 %v12699_v57  ;;  %v12700_v0 = vunpack.i.l.bf16 %v12699_v57 }
 0x14c   :  { %v12704_v2 = vpop.permute.xlu1 %12703  ;;  %v541_v5 = vsel %vm528_vm6, %v516_v1, %v12700_v0  ;;  %v542_v9 = vsel %vm528_vm6, %v517_v8, %v12701_v63  ;;  %v13961_v0 = vld [vmem:[%s16452_s0 + $0x88] sm:$0xff] }
 0x14d   :  { %v14774_v6 = vpop.permute.xlu0 %432  ;;  %v14778_v7 = vsel %vm553_vm7, %v541_v5, %v14762_v55  ;;  %v12706_v10 = vunpack.i.h.bf16 %v12704_v2  ;;  %v12705_v14 = vunpack.i.l.bf16 %v12704_v2 }
 0x14e   :  { %923 = vmatmul.mubr.f32.gmra.mrb[24].mxu0 %v14778_v7  ;;  %1132 = vmatmul.mubr.f32.gmra.mrb[24].mxu1 %v14778_v7  ;;  %v14790_v19 = vsel %vm553_vm7, %v542_v9, %v14774_v6 }
 0x14f   :  { %10995 = vmatprep.mubr.msk.f32.mxu0 %vm718_vm3, %v14774_v6  ;;  %11021 = vmatprep.mubr.msk.f32.mxu1 %vm718_vm3, %v14774_v6  ;;  %v494_v26 = vsel %vm478_vm4, %v13958_v25, %v12706_v10  ;;  %v493_v29 = vsel %vm478_vm4, %v13959_v27, %v12705_v14 }
 0x150   :  { %v12714_v15 = vpop.permute.xlu1 %12713 }
 0x151   :  { %v12715_v16 = vunpack.i.l.bf16 %v12714_v15  ;;  %v12709_v18 = vpop.permute.xlu0 %12708  ;;  %v12716_v41 = vunpack.i.h.bf16 %v12714_v15 }
 0x152   :  { %v12711_v21 = vunpack.i.h.bf16 %v12709_v18  ;;  %v12710_v22 = vunpack.i.l.bf16 %v12709_v18  ;;  %929 = vmatmul.mubr.f32.gmra.mrb[26].mxu0 %v14790_v19  ;;  %1138 = vmatmul.mubr.f32.gmra.mrb[26].mxu1 %v14790_v19 }
 0x154   :  { %v14802_v30 = vpop.permute.xlu1 %436  ;;  %v518_v32 = vsel %vm503_vm5, %v493_v29, %v12710_v22  ;;  %v519_v35 = vsel %vm503_vm5, %v494_v26, %v12711_v21 }
 0x155   :  { %v14806_v36 = vpop.permute.xlu0 %434  ;;  %v543_v40 = vsel %vm528_vm6, %v518_v32, %v12715_v16  ;;  %v544_v45 = vsel %vm528_vm6, %v519_v35, %v12716_v41  ;;  %v13962_v35 = vld [vmem:[%s16452_s0 + $0x98] sm:$0xff] }
 0x156   :  { %10996 = vmatprep.mubr.msk.f32.mxu0 %vm718_vm3, %v14806_v36  ;;  %11022 = vmatprep.mubr.msk.f32.mxu1 %vm718_vm3, %v14806_v36  ;;  %v14815_v44 = vsel %vm553_vm7, %v543_v40, %v14806_v36  ;;  %v14826_v53 = vsel %vm553_vm7, %v544_v45, %v14802_v30  ;;  %v13963_v45 = vld [vmem:[%s16452_s0 + $0x90] sm:$0xff] }
 0x157   :  { %935 = vmatmul.mubr.f32.gmra.mrb[28].mxu0 %v14815_v44  ;;  %1144 = vmatmul.mubr.f32.gmra.mrb[28].mxu1 %v14815_v44 }
 0x158   :  { %10997 = vmatprep.mubr.msk.f32.mxu0 %vm718_vm3, %v14802_v30  ;;  %11023 = vmatprep.mubr.msk.f32.mxu1 %vm718_vm3, %v14802_v30  ;;  %v12724_v46 = vpop.permute.xlu1 %12723 }
 0x159   :  { %v12719_v47 = vpop.permute.xlu0 %12718  ;;  %v12725_v54 = vunpack.i.l.bf16 %v12724_v46  ;;  %v12726_v60 = vunpack.i.h.bf16 %v12724_v46 }
 0x15a   :  { %v12721_v49 = vunpack.i.h.bf16 %v12719_v47  ;;  %v12720_v51 = vunpack.i.l.bf16 %v12719_v47 }
 0x15b   :  { %941 = vmatmul.mubr.f32.gmra.mrb[30].mxu0 %v14826_v53  ;;  %1150 = vmatmul.mubr.f32.gmra.mrb[30].mxu1 %v14826_v53 }
 0x15c   :  { %v495_v57 = vsel %vm478_vm4, %v13960_v56, %v12720_v51  ;;  %v14834_v59 = vpop.permute.xlu1 %438  ;;  %v496_v1 = vsel %vm478_vm4, %v13961_v0, %v12721_v49 }
 0x15d   :  { %v12729_v63 = vpop.permute.xlu0 %12728  ;;  %10998 = vmatprep.mubr.msk.f32.mxu0 %vm718_vm3, %v14834_v59  ;;  %11024 = vmatprep.mubr.msk.f32.mxu1 %vm718_vm3, %v14834_v59  ;;  %v520_v8 = vsel %vm503_vm5, %v495_v57, %v12725_v54  ;;  %v521_v16 = vsel %vm503_vm5, %v496_v1, %v12726_v60 }
 0x15e   :  { %v12731_v2 = vunpack.i.h.bf16 %v12729_v63  ;;  %v12730_v5 = vunpack.i.l.bf16 %v12729_v63 }
 0x160   :  { %v12734_v9 = vpop.permute.xlu1 %12733  ;;  %v545_v10 = vsel %vm528_vm6, %v520_v8, %v12730_v5  ;;  %v546_v18 = vsel %vm528_vm6, %v521_v16, %v12731_v2 }
 0x161   :  { %v14846_v14 = vpop.permute.xlu0 %440  ;;  %v14850_v15 = vsel %vm553_vm7, %v545_v10, %v14834_v59  ;;  %v12736_v21 = vunpack.i.h.bf16 %v12734_v9  ;;  %v12735_v22 = vunpack.i.l.bf16 %v12734_v9  ;;  %v13964_v10 = vld [vmem:[%s16452_s0 + $0xa0] sm:$0xff] }
 0x162   :  { %947 = vmatmul.mubr.f32.gmra.mrb[32].mxu0 %v14850_v15  ;;  %1156 = vmatmul.mubr.f32.gmra.mrb[32].mxu1 %v14850_v15  ;;  %v14862_v29 = vsel %vm553_vm7, %v546_v18, %v14846_v14 }
 0x163   :  { %10999 = vmatprep.mubr.msk.f32.mxu0 %vm718_vm3, %v14846_v14  ;;  %11025 = vmatprep.mubr.msk.f32.mxu1 %vm718_vm3, %v14846_v14  ;;  %v498_v40 = vsel %vm478_vm4, %v13962_v35, %v12736_v21  ;;  %v497_v46 = vsel %vm478_vm4, %v13963_v45, %v12735_v22 }
 0x164   :  { %v12744_v25 = vpop.permute.xlu1 %12743 }
 0x165   :  { %v12745_v26 = vunpack.i.l.bf16 %v12744_v25  ;;  %v12739_v27 = vpop.permute.xlu0 %12738  ;;  %v12746_v47 = vunpack.i.h.bf16 %v12744_v25  ;;  %v13965_v25 = vld [vmem:[%s16452_s0 + $0xa8] sm:$0xff] }
 0x166   :  { %v12741_v41 = vunpack.i.h.bf16 %v12739_v27  ;;  %v12740_v32 = vunpack.i.l.bf16 %v12739_v27  ;;  %953 = vmatmul.mubr.f32.gmra.mrb[34].mxu0 %v14862_v29  ;;  %1162 = vmatmul.mubr.f32.gmra.mrb[34].mxu1 %v14862_v29 }
 0x168   :  { %v14874_v49 = vpop.permute.xlu1 %444  ;;  %v522_v51 = vsel %vm503_vm5, %v497_v46, %v12740_v32  ;;  %v523_v54 = vsel %vm503_vm5, %v498_v40, %v12741_v41 }
 0x169   :  { %v14878_v56 = vpop.permute.xlu0 %442  ;;  %v547_v57 = vsel %vm528_vm6, %v522_v51, %v12745_v26  ;;  %v548_v63 = vsel %vm528_vm6, %v523_v54, %v12746_v47 }
 0x16a   :  { %11000 = vmatprep.mubr.msk.f32.mxu0 %vm718_vm3, %v14878_v56  ;;  %11026 = vmatprep.mubr.msk.f32.mxu1 %vm718_vm3, %v14878_v56  ;;  %v14887_v60 = vsel %vm553_vm7, %v547_v57, %v14878_v56  ;;  %v14898_v8 = vsel %vm553_vm7, %v548_v63, %v14874_v49  ;;  %v13966_v57 = vld [vmem:[%s16452_s0 + $0xb0] sm:$0xff] }
 0x16b   :  { %959 = vmatmul.mubr.f32.gmra.mrb[36].mxu0 %v14887_v60  ;;  %1168 = vmatmul.mubr.f32.gmra.mrb[36].mxu1 %v14887_v60 }
 0x16c   :  { %11001 = vmatprep.mubr.msk.f32.mxu0 %vm718_vm3, %v14874_v49  ;;  %11027 = vmatprep.mubr.msk.f32.mxu1 %vm718_vm3, %v14874_v49  ;;  %v12754_v0 = vpop.permute.xlu1 %12753 }
 0x16d   :  { %v12749_v1 = vpop.permute.xlu0 %12748  ;;  %v12755_v9 = vunpack.i.l.bf16 %v12754_v0  ;;  %v12756_v21 = vunpack.i.h.bf16 %v12754_v0 }
 0x16e   :  { %v12751_v2 = vunpack.i.h.bf16 %v12749_v1  ;;  %v12750_v5 = vunpack.i.l.bf16 %v12749_v1 }
 0x16f   :  { %965 = vmatmul.mubr.f32.gmra.mrb[38].mxu0 %v14898_v8  ;;  %1174 = vmatmul.mubr.f32.gmra.mrb[38].mxu1 %v14898_v8 }
 0x170   :  { %v499_v16 = vsel %vm478_vm4, %v13964_v10, %v12750_v5  ;;  %v14906_v18 = vpop.permute.xlu1 %446  ;;  %v500_v26 = vsel %vm478_vm4, %v13965_v25, %v12751_v2  ;;  %v13967_v25 = vld [vmem:[%s16452_s0 + $0xb8] sm:$0xff]  ;;  %s14199_s0 = smov 96  }
 0x171   :  { %v12759_v22 = vpop.permute.xlu0 %12758  ;;  %11002 = vmatprep.mubr.msk.f32.mxu0 %vm718_vm3, %v14906_v18  ;;  %11028 = vmatprep.mubr.msk.f32.mxu1 %vm718_vm3, %v14906_v18  ;;  %v524_v32 = vsel %vm503_vm5, %v499_v16, %v12755_v9  ;;  %v525_v51 = vsel %vm503_vm5, %v500_v26, %v12756_v21 }
 0x172   :  { %v12761_v27 = vunpack.i.h.bf16 %v12759_v22  ;;  %v12760_v41 = vunpack.i.l.bf16 %v12759_v22 }
 0x174   :  { %v12764_v35 = vpop.permute.xlu1 %12763  ;;  %v549_v40 = vsel %vm528_vm6, %v524_v32, %v12760_v41  ;;  %v550_v54 = vsel %vm528_vm6, %v525_v51, %v12761_v27  ;;  %v15054_v51 = vld [vmem:[#allocation5] sm:$0x3f] }
 0x175   :  { %v12765_v45 = vunpack.i.l.bf16 %v12764_v35  ;;  %v14918_v46 = vpop.permute.xlu0 %448  ;;  %v14922_v47 = vsel %vm553_vm7, %v549_v40, %v14906_v18  ;;  %v12766_v9 = vunpack.i.h.bf16 %v12764_v35 }
 0x176   :  { %971 = vmatmul.mubr.f32.gmra.mrb[40].mxu0 %v14922_v47  ;;  %1180 = vmatmul.mubr.f32.gmra.mrb[40].mxu1 %v14922_v47  ;;  %v14938_v2 = vsel %vm553_vm7, %v550_v54, %v14918_v46 }
 0x177   :  { %11003 = vmatprep.mubr.msk.f32.mxu0 %vm718_vm3, %v14918_v46  ;;  %11029 = vmatprep.mubr.msk.f32.mxu1 %vm718_vm3, %v14918_v46  ;;  %v501_v63 = vsel %vm478_vm4, %v13966_v57, %v12765_v45  ;;  %v502_v26 = vsel %vm478_vm4, %v13967_v25, %v12766_v9 }
 0x178   :  { %v378_v0 = vpop.permute.xlu1 %377 }
 0x179   :  { %v305_v1 = vpop.permute.xlu0 %304 }
 0x17a   :  { %v526_v5 = vsel %vm503_vm5, %v501_v63, %v305_v1  ;;  %977 = vmatmul.mubr.f32.gmra.mrb[42].mxu0 %v14938_v2  ;;  %1186 = vmatmul.mubr.f32.gmra.mrb[42].mxu1 %v14938_v2  ;;  %v13219_v1 = vld [vmem:[#allocation7 + $0x144] ss:$16 sps:$4 sm:$0xff]  }
 0x17b   :  { %v551_v21 = vsel %vm528_vm6, %v526_v5, %v378_v0 }
 0x17c   :  { %v307_v10 = vpop.permute.xlu1 %306 }
 0x17d   :  { %v14943_v16 = vpop.permute.xlu0 %450  ;;  %v527_v41 = vsel %vm503_vm5, %v502_v26, %v307_v10 }
 0x17e   :  { %11004 = vmatprep.mubr.msk.f32.mxu0 %vm718_vm3, %v14943_v16  ;;  %11030 = vmatprep.mubr.msk.f32.mxu1 %vm718_vm3, %v14943_v16  ;;  %v14952_v22 = vsel %vm553_vm7, %v551_v21, %v14943_v16  ;;  %v13217_v21 = vld [vmem:[#allocation7 + $0x140] ss:$16 sps:$4 sm:$0xff]  }
 0x17f   :  { %983 = vmatmul.mubr.f32.gmra.mrb[44].mxu0 %v14952_v22  ;;  %1192 = vmatmul.mubr.f32.gmra.mrb[44].mxu1 %v14952_v22 }
 0x180   :  { %v14960_v27 = vpop.permute.xlu1 %452 }
 0x181   :  { %v380_v32 = vpop.permute.xlu0 %379  ;;  %11005 = vmatprep.mubr.msk.f32.mxu0 %vm718_vm3, %v14960_v27  ;;  %11031 = vmatprep.mubr.msk.f32.mxu1 %vm718_vm3, %v14960_v27 }
 0x182   :  { %v552_v35 = vsel %vm528_vm6, %v527_v41, %v380_v32 }
 0x183   :  { %v14970_v40 = vsel %vm553_vm7, %v552_v35, %v14960_v27 }
 0x184   :  { %989 = vmatmul.mubr.f32.gmra.mrb[46].mxu0 %v14970_v40  ;;  %1198 = vmatmul.mubr.f32.gmra.mrb[46].mxu1 %v14970_v40 }
 0x185   :  { %11034 = vmatprep.mubr.msk.f32.mxu0 %vm718_vm3, %v14539_v39  ;;  %v13159_v39 = vld [vmem:[#allocation7 + $0x4] ss:$16 sps:$4 sm:$0xff]  }
 0x186   :  { %5179 = vmatprep.subr.bf16.mxu1 %v13159_v39 }
 0x188   :  { %1269 = vmatmul.mubr.f32.vlgmr.msra.gmra.mrb[48].mxu0 %v14559_v61  ;;  %v13157_v61 = vld [vmem:[#allocation7] ss:$16 sps:$4 sm:$0xff]  }
 0x189   :  { %11035 = vmatprep.mubr.msk.f32.mxu0 %vm718_vm3, %v14554_v58  ;;  %v13162_v58 = vld [vmem:[#allocation7 + $0xc] ss:$16 sps:$4 sm:$0xff]   ;;  %5180 = vmatpush1.bf16.msra.mxu1 %v13157_v61 }
 0x18a   :  { %5763 = vmatprep.subr.bf16.mxu0 %v13162_v58 }
 0x18c   :  { %1275 = vmatmul.mubr.f32.gmra.mrb[50].mxu0 %v14570_v12  ;;  %v13160_v12 = vld [vmem:[#allocation7 + $0x8] ss:$16 sps:$4 sm:$0xff]  }
 0x18d   :  { %11036 = vmatprep.mubr.msk.f32.mxu0 %vm718_vm3, %v14586_v23  ;;  %5764 = vmatpush1.bf16.msra.mxu0 %v13160_v12  ;;  %v13168_v23 = vld [vmem:[#allocation7 + $0x2c] ss:$16 sps:$4 sm:$0xff]  }
 0x18e   :  { %5765 = vmatprep.subr.bf16.mxu0 %v13168_v23 }
 0x190   :  { %1281 = vmatmul.mubr.f32.gmra.mrb[52].mxu0 %v14595_v28  ;;  %v13163_v28 = vld [vmem:[#allocation7 + $0x20] ss:$16 sps:$4 sm:$0xff]  }
 0x191   :  { %11037 = vmatprep.mubr.msk.f32.mxu0 %vm718_vm3, %v14582_v20  ;;  %v13165_v20 = vld [vmem:[#allocation7 + $0x24] ss:$16 sps:$4 sm:$0xff]  }
 0x192   :  { %5181 = vmatprep.subr.bf16.mxu1 %v13165_v20 }
 0x193   :  { %5182 = vmatpush1.bf16.msra.mxu1 %v13163_v28 }
 0x194   :  { %1287 = vmatmul.mubr.f32.gmra.mrb[54].mxu0 %v14606_v38  ;;  %v13166_v38 = vld [vmem:[#allocation7 + $0x28] ss:$16 sps:$4 sm:$0xff]  }
 0x195   :  { %11038 = vmatprep.mubr.msk.f32.mxu0 %vm718_vm3, %v14614_v48  ;;  %5766 = vmatpush1.bf16.msra.mxu0 %v13166_v38  ;;  %v13171_v48 = vld [vmem:[#allocation7 + $0x44] ss:$16 sps:$4 sm:$0xff]  }
 0x196   :  { %5183 = vmatprep.subr.bf16.mxu1 %v13171_v48  ;;  %v13225_v38 = vld [vmem:[#allocation7 + $0x164] ss:$16 sps:$4 sm:$0xff]   ;;  %v13228_v48 = vld [vmem:[#allocation7 + $0x16c] ss:$16 sps:$4 sm:$0xff]  }
 0x198   :  { %1293 = vmatmul.mubr.f32.gmra.mrb[56].mxu0 %v14630_v4  ;;  %v13169_v4 = vld [vmem:[#allocation7 + $0x40] ss:$16 sps:$4 sm:$0xff]  }
 0x199   :  { %11039 = vmatprep.mubr.msk.f32.mxu0 %vm718_vm3, %v14626_v3  ;;  %v13174_v3 = vld [vmem:[#allocation7 + $0x4c] ss:$16 sps:$4 sm:$0xff]   ;;  %5184 = vmatpush1.bf16.msra.mxu1 %v13169_v4 }
 0x19a   :  { %5767 = vmatprep.subr.bf16.mxu0 %v13174_v3 }
 0x19c   :  { %1299 = vmatmul.mubr.f32.gmra.mrb[58].mxu0 %v14642_v17  ;;  %v13172_v17 = vld [vmem:[#allocation7 + $0x48] ss:$16 sps:$4 sm:$0xff]  }
 0x19d   :  { %11040 = vmatprep.mubr.msk.f32.mxu0 %vm718_vm3, %v14658_v34  ;;  %5768 = vmatpush1.bf16.msra.mxu0 %v13172_v17  ;;  %v13180_v34 = vld [vmem:[#allocation7 + $0x6c] ss:$16 sps:$4 sm:$0xff]   ;;  %v13223_v17 = vld [vmem:[#allocation7 + $0x160] ss:$16 sps:$4 sm:$0xff]  }
 0x19e   :  { %5769 = vmatprep.subr.bf16.mxu0 %v13180_v34 }
 0x1a0   :  { %1305 = vmatmul.mubr.f32.gmra.mrb[60].mxu0 %v14667_v42  ;;  %v13175_v42 = vld [vmem:[#allocation7 + $0x60] ss:$16 sps:$4 sm:$0xff]  }
 0x1a1   :  { %11041 = vmatprep.mubr.msk.f32.mxu0 %vm718_vm3, %v14654_v31  ;;  %v13177_v31 = vld [vmem:[#allocation7 + $0x64] ss:$16 sps:$4 sm:$0xff]  }
 0x1a2   :  { %5185 = vmatprep.subr.bf16.mxu1 %v13177_v31  ;;  %v13226_v31 = vld [vmem:[#allocation7 + $0x168] ss:$16 sps:$4 sm:$0xff]  }
 0x1a3   :  { %5186 = vmatpush1.bf16.msra.mxu1 %v13175_v42 }
 0x1a4   :  { %1311 = vmatmul.mubr.f32.gmra.mrb[62].mxu0 %v14678_v52  ;;  %v13178_v52 = vld [vmem:[#allocation7 + $0x68] ss:$16 sps:$4 sm:$0xff]  }
 0x1a5   :  { %11042 = vmatprep.mubr.msk.f32.mxu0 %vm718_vm3, %v14686_v62  ;;  %5770 = vmatpush1.bf16.msra.mxu0 %v13178_v52  ;;  %v13183_v62 = vld [vmem:[#allocation7 + $0x84] ss:$16 sps:$4 sm:$0xff]  }
 0x1a6   :  { %5187 = vmatprep.subr.bf16.mxu1 %v13183_v62 }
 0x1a8   :  { %1317 = vmatmul.mubr.f32.gmra.mrb[64].mxu0 %v14704_v13  ;;  %v13181_v13 = vld [vmem:[#allocation7 + $0x80] ss:$16 sps:$4 sm:$0xff]  }
 0x1a9   :  { %11043 = vmatprep.mubr.msk.f32.mxu0 %vm718_vm3, %v14700_v11  ;;  %v13186_v11 = vld [vmem:[#allocation7 + $0x8c] ss:$16 sps:$4 sm:$0xff]   ;;  %5188 = vmatpush1.bf16.msra.mxu1 %v13181_v13 }
 0x1aa   :  { %5771 = vmatprep.subr.bf16.mxu0 %v13186_v11 }
 0x1ac   :  { %1323 = vmatmul.mubr.f32.gmra.mrb[66].mxu0 %v14718_v24  ;;  %v13184_v24 = vld [vmem:[#allocation7 + $0x88] ss:$16 sps:$4 sm:$0xff]  }
 0x1ad   :  { %11044 = vmatprep.mubr.msk.f32.mxu0 %vm718_vm3, %v14734_v37  ;;  %5772 = vmatpush1.bf16.msra.mxu0 %v13184_v24  ;;  %v13192_v37 = vld [vmem:[#allocation7 + $0xac] ss:$16 sps:$4 sm:$0xff]   ;;  %v13231_v24 = vld [vmem:[#allocation7 + $0x184] ss:$16 sps:$4 sm:$0xff]  }
 0x1ae   :  { %5773 = vmatprep.subr.bf16.mxu0 %v13192_v37  ;;  %v13229_v37 = vld [vmem:[#allocation7 + $0x180] ss:$16 sps:$4 sm:$0xff]  }
 0x1b0   :  { %1329 = vmatmul.mubr.f32.gmra.mrb[68].mxu0 %v14743_v43  ;;  %v13187_v43 = vld [vmem:[#allocation7 + $0xa0] ss:$16 sps:$4 sm:$0xff]  }
 0x1b1   :  { %11045 = vmatprep.mubr.msk.f32.mxu0 %vm718_vm3, %v14730_v33  ;;  %v13189_v33 = vld [vmem:[#allocation7 + $0xa4] ss:$16 sps:$4 sm:$0xff]  }
 0x1b2   :  { %5189 = vmatprep.subr.bf16.mxu1 %v13189_v33  ;;  %v13234_v33 = vld [vmem:[#allocation7 + $0x18c] ss:$16 sps:$4 sm:$0xff]  }
 0x1b3   :  { %5190 = vmatpush1.bf16.msra.mxu1 %v13187_v43  ;;  %v13232_v43 = vld [vmem:[#allocation7 + $0x188] ss:$16 sps:$4 sm:$0xff]  }
 0x1b4   :  { %1335 = vmatmul.mubr.f32.gmra.mrb[70].mxu0 %v14754_v50  ;;  %v13190_v50 = vld [vmem:[#allocation7 + $0xa8] ss:$16 sps:$4 sm:$0xff]  }
 0x1b5   :  { %11046 = vmatprep.mubr.msk.f32.mxu0 %vm718_vm3, %v14762_v55  ;;  %5774 = vmatpush1.bf16.msra.mxu0 %v13190_v50  ;;  %v13195_v55 = vld [vmem:[#allocation7 + $0xc4] ss:$16 sps:$4 sm:$0xff]  }
 0x1b6   :  { %5191 = vmatprep.subr.bf16.mxu1 %v13195_v55 }
 0x1b8   :  { %1341 = vmatmul.mubr.f32.gmra.mrb[72].mxu0 %v14778_v7  ;;  %v13193_v7 = vld [vmem:[#allocation7 + $0xc0] ss:$16 sps:$4 sm:$0xff]  }
 0x1b9   :  { %11047 = vmatprep.mubr.msk.f32.mxu0 %vm718_vm3, %v14774_v6  ;;  %v13198_v6 = vld [vmem:[#allocation7 + $0xcc] ss:$16 sps:$4 sm:$0xff]   ;;  %5192 = vmatpush1.bf16.msra.mxu1 %v13193_v7 }
 0x1ba   :  { %5775 = vmatprep.subr.bf16.mxu0 %v13198_v6 }
 0x1bc   :  { %1347 = vmatmul.mubr.f32.gmra.mrb[74].mxu0 %v14790_v19  ;;  %v13196_v19 = vld [vmem:[#allocation7 + $0xc8] ss:$16 sps:$4 sm:$0xff]  }
 0x1bd   :  { %11048 = vmatprep.mubr.msk.f32.mxu0 %vm718_vm3, %v14806_v36  ;;  %5776 = vmatpush1.bf16.msra.mxu0 %v13196_v19  ;;  %v13204_v36 = vld [vmem:[#allocation7 + $0xec] ss:$16 sps:$4 sm:$0xff]  }
 0x1be   :  { %5777 = vmatprep.subr.bf16.mxu0 %v13204_v36 }
 0x1c0   :  { %1353 = vmatmul.mubr.f32.gmra.mrb[76].mxu0 %v14815_v44  ;;  %v688_v44 = vlaneseq }
 0x1c1   :  { %11049 = vmatprep.mubr.msk.f32.mxu0 %vm718_vm3, %v14802_v30  ;;  %v13201_v30 = vld [vmem:[#allocation7 + $0xe4] ss:$16 sps:$4 sm:$0xff]  }
 0x1c2   :  { %5193 = vmatprep.subr.bf16.mxu1 %v13201_v30 }
 0x1c4   :  { %1359 = vmatmul.mubr.f32.gmra.mrb[78].mxu0 %v14826_v53  ;;  %v13199_v53 = vld [vmem:[#allocation7 + $0xe0] ss:$16 sps:$4 sm:$0xff]  }
 0x1c5   :  { %11050 = vmatprep.mubr.msk.f32.mxu0 %vm718_vm3, %v14834_v59  ;;  %v13202_v59 = vld [vmem:[#allocation7 + $0xe8] ss:$16 sps:$4 sm:$0xff]   ;;  %5194 = vmatpush1.bf16.msra.mxu1 %v13199_v53 }
 0x1c6   :  { %5778 = vmatpush1.bf16.msra.mxu0 %v13202_v59 }
 0x1c8   :  { %1365 = vmatmul.mubr.f32.gmra.mrb[80].mxu0 %v14850_v15  ;;  %v13210_v15 = vld [vmem:[#allocation7 + $0x10c] ss:$16 sps:$4 sm:$0xff]  }
 0x1c9   :  { %11051 = vmatprep.mubr.msk.f32.mxu0 %vm718_vm3, %v14846_v14  ;;  %v13207_v14 = vld [vmem:[#allocation7 + $0x104] ss:$16 sps:$4 sm:$0xff]   ;;  %5779 = vmatprep.subr.bf16.mxu0 %v13210_v15 }
 0x1ca   :  { %5195 = vmatprep.subr.bf16.mxu1 %v13207_v14 }
 0x1cc   :  { %1371 = vmatmul.mubr.f32.gmra.mrb[82].mxu0 %v14862_v29  ;;  %v15042_v29 = vshrl.u32 %v688_v44, 7 }
 0x1cd   :  { %11052 = vmatprep.mubr.msk.f32.mxu0 %vm718_vm3, %v14878_v56  ;;  %v13208_v56 = vld [vmem:[#allocation7 + $0x108] ss:$16 sps:$4 sm:$0xff]  }
 0x1ce   :  { %16502 = vst [vmem:[#allocation23_spill] sm:$0xff] %v15042_v29  ;;  %5780 = vmatpush1.bf16.msra.mxu0 %v13208_v56  ;;  %v15051_v45 = vsub.s32 2, %v15042_v29  ;;  %v15057_v54 = vsub.s32 1, %v15042_v29  ;;  %v15060_v57 = vsub.s32 3, %v15042_v29  ;;  %v13240_v56 = vld [vmem:[#allocation7 + $0x1ac] ss:$16 sps:$4 sm:$0xff]  }
 0x1d0   :  { %1377 = vmatmul.mubr.f32.gmra.mrb[84].mxu0 %v14887_v60  ;;  %v13213_v60 = vld [vmem:[#allocation7 + $0x124] ss:$16 sps:$4 sm:$0xff]   ;;  %16504 = vst [vmem:[#allocation25_spill] sm:$0xff] %v15051_v45  ;;  %16505 = vst [vmem:[#allocation26_spill] sm:$0xff] %v15057_v54  ;;  %v15068_v9 = vrot.slane %v15054_v51, %v15051_v45  ;;  %v15072_v25 = vrot.slane %v15054_v51, %v15057_v54  ;;  %v15076_v26 = vrot.slane %v15054_v51, %v15060_v57 }
 0x1d1   :  { %11053 = vmatprep.mubr.msk.f32.mxu0 %vm718_vm3, %v14874_v49  ;;  %v13205_v49 = vld [vmem:[#allocation7 + $0x100] ss:$16 sps:$4 sm:$0xff]   ;;  %16506 = vst [vmem:[#allocation27_spill] sm:$0xff] %v15060_v57 }
 0x1d2   :  { %5196 = vmatpush1.bf16.msra.mxu1 %v13205_v49  ;;  %v13237_v49 = vld [vmem:[#allocation7 + $0x1a4] ss:$16 sps:$4 sm:$0xff]  }
 0x1d3   :  { %5197 = vmatprep.subr.bf16.mxu1 %v13213_v60 }
 0x1d4   :  { %1383 = vmatmul.mubr.f32.gmra.mrb[86].mxu0 %v14898_v8  ;;  %v13216_v8 = vld [vmem:[#allocation7 + $0x12c] ss:$16 sps:$4 sm:$0xff]  }
 0x1d5   :  { %11054 = vmatprep.mubr.msk.f32.mxu0 %vm718_vm3, %v14906_v18  ;;  %v15048_v18 = vsub.s32 0, %v15042_v29  ;;  %5781 = vmatprep.subr.bf16.mxu0 %v13216_v8 }
 0x1d7   :  { %16503 = vst [vmem:[#allocation24_spill] sm:$0xff] %v15048_v18  ;;  %v15064_v5 = vrot.slane %v15054_v51, %v15048_v18 }
 0x1d8   :  { %1389 = vmatmul.mubr.f32.gmra.mrb[88].mxu0 %v14922_v47  ;;  %v13214_v47 = vld [vmem:[#allocation7 + $0x128] ss:$16 sps:$4 sm:$0xff]  }
 0x1d9   :  { %11055 = vmatprep.mubr.msk.f32.mxu0 %vm718_vm3, %v14918_v46  ;;  %v13211_v46 = vld [vmem:[#allocation7 + $0x120] ss:$16 sps:$4 sm:$0xff]   ;;  %5782 = vmatpush1.bf16.msra.mxu0 %v13214_v47  ;;  %v13238_v47 = vld [vmem:[#allocation7 + $0x1a8] ss:$16 sps:$4 sm:$0xff]  }
 0x1da   :  { %5198 = vmatpush1.bf16.msra.mxu1 %v13211_v46  ;;  %v13235_v46 = vld [vmem:[#allocation7 + $0x1a0] ss:$16 sps:$4 sm:$0xff]  }
 0x1db   :  { %5199 = vmatprep.subr.bf16.mxu1 %v13219_v1 }
 0x1dc   :  { %1395 = vmatmul.mubr.f32.gmra.mrb[90].mxu0 %v14938_v2  ;;  %v13222_v2 = vld [vmem:[#allocation7 + $0x14c] ss:$16 sps:$4 sm:$0xff]  }
 0x1dd   :  { %11056 = vmatprep.mubr.msk.f32.mxu0 %vm718_vm3, %v14943_v16  ;;  %5783 = vmatprep.subr.bf16.mxu0 %v13222_v2  ;;  %v13243_v2 = vld [vmem:[#allocation7 + $0x1c4] ss:$16 sps:$4 sm:$0xff]  }
 0x1de   :  { %5200 = vmatpush1.bf16.msra.mxu1 %v13217_v21 }
 0x1df   :  { %5201 = vmatprep.subr.bf16.mxu1 %v13225_v38 }
 0x1e0   :  { %1401 = vmatmul.mubr.f32.gmra.mrb[92].mxu0 %v14952_v22  ;;  %v13220_v22 = vld [vmem:[#allocation7 + $0x148] ss:$16 sps:$4 sm:$0xff]  }
 0x1e1   :  { %11057 = vmatprep.mubr.msk.f32.mxu0 %vm718_vm3, %v14960_v27  ;;  %5784 = vmatpush1.bf16.msra.mxu0 %v13220_v22  ;;  %v13241_v22 = vld [vmem:[#allocation7 + $0x1c0] ss:$16 sps:$4 sm:$0xff]  }
 0x1e2   :  { %5785 = vmatprep.subr.bf16.mxu0 %v13228_v48  ;;  %5202 = vmatpush1.bf16.msra.mxu1 %v13223_v17 }
 0x1e3   :  { %5203 = vmatprep.subr.bf16.mxu1 %v13231_v24 }
 0x1e4   :  { %1407 = vmatmul.mubr.f32.gmra.mrb[94].mxu0 %v14970_v40 }
 0x1e5   :  { %5786 = vmatpush1.bf16.msra.mxu0 %v13226_v31 }
 0x1e6   :  { %v852_v63 = vpop.f32.mrb[0].mxu0  ;;  %v1061_v0 = vpop.f32.mrb[0].mxu1  ;;  %5787 = vmatprep.subr.bf16.mxu0 %v13234_v33  ;;  %5204 = vmatpush1.bf16.msra.mxu1 %v13229_v37  ;;  %v13252_v33 = vld [vmem:[#allocation7 + $0x1ec] ss:$16 sps:$4 sm:$0xff]  }
 0x1e7   :  { %v854_v10 = vpop.f32.mrb[1].mxu0  ;;  %v1063_v16 = vpop.f32.mrb[1].mxu1  ;;  %v853_v32 = vadd.f32 %v852_v63, %v15064_v5  ;;  %v1062_v35 = vadd.f32 %v1061_v0, %v15068_v9  ;;  %5205 = vmatprep.subr.bf16.mxu1 %v13237_v49 }
 0x1e8   :  { %v855_v12 = vadd.f32 %v854_v10, %v15072_v25  ;;  %v1064_v20 = vadd.f32 %v1063_v16, %v15076_v26  ;;  %v13246_v10 = vld [vmem:[#allocation7 + $0x1cc] ss:$16 sps:$4 sm:$0xff]  }
 0x1e9   :  { %5788 = vmatpush1.bf16.msra.mxu0 %v13232_v43 }
 0x1ea   :  { %v858_v27 = vpop.f32.mrb[2].mxu0  ;;  %v1067_v41 = vpop.f32.mrb[2].mxu1  ;;  %5789 = vmatprep.subr.bf16.mxu0 %v13240_v56  ;;  %5206 = vmatpush1.bf16.msra.mxu1 %v13235_v46 }
 0x1eb   :  { %v859_v40 = vadd.f32 %v858_v27, %v15064_v5  ;;  %v1068_v39 = vadd.f32 %v1067_v41, %v15068_v9  ;;  %v860_v58 = vpop.f32.mrb[3].mxu0  ;;  %v1069_v61 = vpop.f32.mrb[3].mxu1  ;;  %v13244_v27 = vld [vmem:[#allocation7 + $0x1c8] ss:$16 sps:$4 sm:$0xff]   ;;  %5207 = vmatprep.subr.bf16.mxu1 %v13243_v2 }
 0x1ec   :  { %v861_v23 = vadd.f32 %v860_v58, %v15072_v25  ;;  %v1070_v28 = vadd.f32 %v1069_v61, %v15076_v26 }
 0x1ed   :  { %v15086_v3 = vmax.f32 %v853_v32, %v859_v40  ;;  %v15088_v4 = vmax.f32 %v1062_v35, %v1068_v39  ;;  %5790 = vmatpush1.bf16.msra.mxu0 %v13238_v47  ;;  %v13249_v40 = vld [vmem:[#allocation7 + $0x1e4] ss:$16 sps:$4 sm:$0xff]  }
 0x1ee   :  { %v15090_v34 = vmax.f32 %v855_v12, %v861_v23  ;;  %v15092_v42 = vmax.f32 %v1064_v20, %v1070_v28  ;;  %v864_v52 = vpop.f32.mrb[4].mxu0  ;;  %v1073_v62 = vpop.f32.mrb[4].mxu1  ;;  %5791 = vmatprep.subr.bf16.mxu0 %v13246_v10  ;;  %5208 = vmatpush1.bf16.msra.mxu1 %v13241_v22  ;;  %v13247_v12 = vld [vmem:[#allocation7 + $0x1e0] ss:$16 sps:$4 sm:$0xff]  }
 0x1ef   :  { %v866_v11 = vpop.f32.mrb[5].mxu0  ;;  %v1075_v13 = vpop.f32.mrb[5].mxu1  ;;  %v865_v50 = vadd.f32 %v864_v52, %v15064_v5  ;;  %v1074_v7 = vadd.f32 %v1073_v62, %v15068_v9  ;;  %5209 = vmatprep.subr.bf16.mxu1 %v13249_v40 }
 0x1f0   :  { %v867_v53 = vadd.f32 %v866_v11, %v15072_v25  ;;  %v1076_v59 = vadd.f32 %v1075_v13, %v15076_v26 }
 0x1f1   :  { %5792 = vmatpush1.bf16.msra.mxu0 %v13244_v27 }
 0x1f2   :  { %v870_v55 = vpop.f32.mrb[6].mxu0  ;;  %v1079_v6 = vpop.f32.mrb[6].mxu1  ;;  %5210 = vmatpush1.bf16.msra.mxu1 %v13247_v12  ;;  %5793 = vmatprep.subr.bf16.mxu0 %v13252_v33 }
 0x1f3   :  { %v871_v19 = vadd.f32 %v870_v55, %v15064_v5  ;;  %v1080_v30 = vadd.f32 %v1079_v6, %v15068_v9  ;;  %v872_v36 = vpop.f32.mrb[7].mxu0  ;;  %v1081_v44 = vpop.f32.mrb[7].mxu1 }
 0x1f4   :  { %v873_v14 = vadd.f32 %v872_v36, %v15072_v25  ;;  %v1082_v15 = vadd.f32 %v1081_v44, %v15076_v26 }
 0x1f5   :  { %v15102_v60 = vmax.f32 %v865_v50, %v871_v19  ;;  %v15104_v8 = vmax.f32 %v1074_v7, %v1080_v30  ;;  %v13250_v50 = vld [vmem:[#allocation7 + $0x1e8] ss:$16 sps:$4 sm:$0xff]  }
 0x1f6   :  { %v15106_v63 = vmax.f32 %v867_v53, %v873_v14  ;;  %v15108_v0 = vmax.f32 %v1076_v59, %v1082_v15  ;;  %5794 = vmatpush1.bf16.msra.mxu0 %v13250_v50 }
 0x1f7   :  { %v12772_v1 = vpack.i.bf16 %v15104_v8, %v15088_v4  ;;  %v12782_v35 = vpack.i.bf16 %v15102_v60, %v15086_v3 }
 0x1f8   :  { %v12787_v61 = vpack.i.bf16 %v15108_v0, %v15092_v42  ;;  %v12802_v30 = vpack.i.bf16 %v15106_v63, %v15090_v34 }
 0x1f9   :  { %v1085_v16 = vpop.f32.mrb[8].mxu1  ;;  %12773 = vrot.lane.b32.xlu1 %v12772_v1, %s14191_s5  ;;  %12768 = vrot.lane.b32.xlu0 %v12772_v1, %s14199_s0  ;;  %v876_v21 = vpop.f32.mrb[8].mxu0 }
 0x1fa   :  { %v878_v41 = vpop.f32.mrb[9].mxu0  ;;  %v1087_v32 = vpop.f32.mrb[9].mxu1  ;;  %v1086_v20 = vadd.f32 %v1085_v16, %v15068_v9  ;;  %v877_v23 = vadd.f32 %v876_v21, %v15064_v5 }
 0x1fb   :  { %v879_v31 = vadd.f32 %v878_v41, %v15072_v25  ;;  %v1088_v52 = vadd.f32 %v1087_v32, %v15076_v26 }
 0x1fd   :  { %v882_v39 = vpop.f32.mrb[10].mxu0  ;;  %v1091_v58 = vpop.f32.mrb[10].mxu1  ;;  %12783 = vrot.lane.b32.xlu1 %v12782_v35, %s14191_s5  ;;  %12778 = vrot.lane.b32.xlu0 %v12782_v35, %s14199_s0 }
 0x1fe   :  { %v883_v28 = vadd.f32 %v882_v39, %v15064_v5  ;;  %v1092_v38 = vadd.f32 %v1091_v58, %v15068_v9  ;;  %v884_v48 = vpop.f32.mrb[11].mxu0  ;;  %v1093_v17 = vpop.f32.mrb[11].mxu1 }
 0x1ff   :  { %v885_v62 = vadd.f32 %v884_v48, %v15072_v25  ;;  %v1094_v11 = vadd.f32 %v1093_v17, %v15076_v26 }
 0x200   :  { %v15128_v13 = vmax.f32 %v877_v23, %v883_v28  ;;  %v15130_v24 = vmax.f32 %v1086_v20, %v1092_v38 }
 0x201   :  { %v15132_v37 = vmax.f32 %v879_v31, %v885_v62  ;;  %v15134_v43 = vmax.f32 %v1088_v52, %v1094_v11  ;;  %12788 = vrot.lane.b32.xlu1 %v12787_v61, %s14191_s5  ;;  %12793 = vrot.lane.b32.xlu0 %v12787_v61, %s14189_s13 }
 0x202   :  { %v888_v55 = vpop.f32.mrb[12].mxu0  ;;  %v1097_v6 = vpop.f32.mrb[12].mxu1 }
 0x203   :  { %v890_v7 = vpop.f32.mrb[13].mxu0  ;;  %v1099_v19 = vpop.f32.mrb[13].mxu1  ;;  %v889_v53 = vadd.f32 %v888_v55, %v15064_v5  ;;  %v1098_v59 = vadd.f32 %v1097_v6, %v15068_v9 }
 0x204   :  { %v891_v46 = vadd.f32 %v890_v7, %v15072_v25  ;;  %v1100_v47 = vadd.f32 %v1099_v19, %v15076_v26 }
 0x205   :  { %12803 = vrot.lane.b32.xlu1 %v12802_v30, %s14189_s13  ;;  %12798 = vrot.lane.b32.xlu0 %v12802_v30, %s14191_s5 }
 0x206   :  { %v894_v36 = vpop.f32.mrb[14].mxu0  ;;  %v1103_v44 = vpop.f32.mrb[14].mxu1 }
 0x207   :  { %v895_v14 = vadd.f32 %v894_v36, %v15064_v5  ;;  %v1104_v15 = vadd.f32 %v1103_v44, %v15068_v9  ;;  %v896_v49 = vpop.f32.mrb[15].mxu0  ;;  %v1105_v56 = vpop.f32.mrb[15].mxu1 }
 0x208   :  { %v897_v1 = vadd.f32 %v896_v49, %v15072_v25  ;;  %v1106_v2 = vadd.f32 %v1105_v56, %v15076_v26 }
 0x209   :  { %v15150_v10 = vmax.f32 %v889_v53, %v895_v14  ;;  %v15152_v16 = vmax.f32 %v1098_v59, %v1104_v15 }
 0x20a   :  { %v15154_v21 = vmax.f32 %v891_v46, %v897_v1  ;;  %v15156_v22 = vmax.f32 %v1100_v47, %v1106_v2 }
 0x20b   :  { %v12812_v27 = vpack.i.bf16 %v15152_v16, %v15130_v24  ;;  %v12822_v39 = vpack.i.bf16 %v15150_v10, %v15128_v13 }
 0x20c   :  { %v12827_v12 = vpack.i.bf16 %v15156_v22, %v15134_v43  ;;  %v12842_v44 = vpack.i.bf16 %v15154_v21, %v15132_v37 }
 0x20d   :  { %v900_v41 = vpop.f32.mrb[16].mxu0  ;;  %v1109_v32 = vpop.f32.mrb[16].mxu1  ;;  %12813 = vrot.lane.b32.xlu1 %v12812_v27, %s14191_s5  ;;  %12808 = vrot.lane.b32.xlu0 %v12812_v27, %s14199_s0 }
 0x20e   :  { %v902_v35 = vpop.f32.mrb[17].mxu0  ;;  %v1111_v40 = vpop.f32.mrb[17].mxu1  ;;  %v901_v20 = vadd.f32 %v900_v41, %v15064_v5  ;;  %v1110_v23 = vadd.f32 %v1109_v32, %v15068_v9 }
 0x20f   :  { %v903_v31 = vadd.f32 %v902_v35, %v15072_v25  ;;  %v1112_v52 = vadd.f32 %v1111_v40, %v15076_v26 }
 0x211   :  { %v906_v58 = vpop.f32.mrb[18].mxu0  ;;  %v1115_v61 = vpop.f32.mrb[18].mxu1  ;;  %12823 = vrot.lane.b32.xlu1 %v12822_v39, %s14191_s5  ;;  %12818 = vrot.lane.b32.xlu0 %v12822_v39, %s14199_s0 }
 0x212   :  { %v907_v28 = vadd.f32 %v906_v58, %v15064_v5  ;;  %v1116_v38 = vadd.f32 %v1115_v61, %v15068_v9  ;;  %v908_v48 = vpop.f32.mrb[19].mxu0  ;;  %v1117_v17 = vpop.f32.mrb[19].mxu1 }
 0x213   :  { %v909_v62 = vadd.f32 %v908_v48, %v15072_v25  ;;  %v1118_v11 = vadd.f32 %v1117_v17, %v15076_v26 }
 0x214   :  { %v15176_v33 = vmax.f32 %v901_v20, %v907_v28  ;;  %v15178_v50 = vmax.f32 %v1110_v23, %v1116_v38 }
 0x215   :  { %v15180_v55 = vmax.f32 %v903_v31, %v909_v62  ;;  %v15182_v6 = vmax.f32 %v1112_v52, %v1118_v11  ;;  %12828 = vrot.lane.b32.xlu1 %v12827_v12, %s14191_s5  ;;  %12833 = vrot.lane.b32.xlu0 %v12827_v12, %s14189_s13 }
 0x216   :  { %v912_v7 = vpop.f32.mrb[20].mxu0  ;;  %v1121_v19 = vpop.f32.mrb[20].mxu1 }
 0x217   :  { %v914_v30 = vpop.f32.mrb[21].mxu0  ;;  %v1123_v36 = vpop.f32.mrb[21].mxu1  ;;  %v913_v14 = vadd.f32 %v912_v7, %v15064_v5  ;;  %v1122_v15 = vadd.f32 %v1121_v19, %v15068_v9 }
 0x218   :  { %v915_v1 = vadd.f32 %v914_v30, %v15072_v25  ;;  %v1124_v2 = vadd.f32 %v1123_v36, %v15076_v26 }
 0x219   :  { %12843 = vrot.lane.b32.xlu1 %v12842_v44, %s14189_s13  ;;  %12838 = vrot.lane.b32.xlu0 %v12842_v44, %s14191_s5 }
 0x21a   :  { %v918_v53 = vpop.f32.mrb[22].mxu0  ;;  %v1127_v59 = vpop.f32.mrb[22].mxu1 }
 0x21b   :  { %v919_v49 = vadd.f32 %v918_v53, %v15064_v5  ;;  %v1128_v56 = vadd.f32 %v1127_v59, %v15068_v9  ;;  %v920_v46 = vpop.f32.mrb[23].mxu0  ;;  %v1129_v47 = vpop.f32.mrb[23].mxu1 }
 0x21c   :  { %v921_v27 = vadd.f32 %v920_v46, %v15072_v25  ;;  %v1130_v41 = vadd.f32 %v1129_v47, %v15076_v26 }
 0x21d   :  { %v15198_v32 = vmax.f32 %v913_v14, %v919_v49  ;;  %v15200_v35 = vmax.f32 %v1122_v15, %v1128_v56 }
 0x21e   :  { %v15202_v40 = vmax.f32 %v915_v1, %v921_v27  ;;  %v15204_v39 = vmax.f32 %v1124_v2, %v1130_v41 }
 0x21f   :  { %v12852_v58 = vpack.i.bf16 %v15200_v35, %v15178_v50  ;;  %v12862_v28 = vpack.i.bf16 %v15198_v32, %v15176_v33 }
 0x220   :  { %v12867_v17 = vpack.i.bf16 %v15204_v39, %v15182_v6  ;;  %v12882_v2 = vpack.i.bf16 %v15202_v40, %v15180_v55 }
 0x221   :  { %v924_v61 = vpop.f32.mrb[24].mxu0  ;;  %v1133_v12 = vpop.f32.mrb[24].mxu1  ;;  %12853 = vrot.lane.b32.xlu1 %v12852_v58, %s14191_s5  ;;  %12848 = vrot.lane.b32.xlu0 %v12852_v58, %s14199_s0 }
 0x222   :  { %v926_v20 = vpop.f32.mrb[25].mxu0  ;;  %v1135_v23 = vpop.f32.mrb[25].mxu1  ;;  %v925_v31 = vadd.f32 %v924_v61, %v15064_v5  ;;  %v1134_v52 = vadd.f32 %v1133_v12, %v15068_v9 }
 0x223   :  { %v927_v30 = vadd.f32 %v926_v20, %v15072_v25  ;;  %v1136_v36 = vadd.f32 %v1135_v23, %v15076_v26 }
 0x225   :  { %v930_v38 = vpop.f32.mrb[26].mxu0  ;;  %v1139_v48 = vpop.f32.mrb[26].mxu1  ;;  %12863 = vrot.lane.b32.xlu1 %v12862_v28, %s14191_s5  ;;  %12858 = vrot.lane.b32.xlu0 %v12862_v28, %s14199_s0 }
 0x226   :  { %v931_v62 = vadd.f32 %v930_v38, %v15064_v5  ;;  %v1140_v11 = vadd.f32 %v1139_v48, %v15068_v9  ;;  %v932_v7 = vpop.f32.mrb[27].mxu0  ;;  %v1141_v19 = vpop.f32.mrb[27].mxu1  ;;  %v13255_v38 = vld [vmem:[#allocation7 + $0x204] ss:$16 sps:$4 sm:$0xff]  }
 0x227   :  { %v933_v44 = vadd.f32 %v932_v7, %v15072_v25  ;;  %v1142_v53 = vadd.f32 %v1141_v19, %v15076_v26  ;;  %5252 = vmatprep.subr.bf16.mxu1 %v13255_v38 }
 0x228   :  { %v15224_v59 = vmax.f32 %v925_v31, %v931_v62  ;;  %v15226_v14 = vmax.f32 %v1134_v52, %v1140_v11  ;;  %v13258_v62 = vld [vmem:[#allocation7 + $0x20c] ss:$16 sps:$4 sm:$0xff]  }
 0x229   :  { %v15228_v15 = vmax.f32 %v927_v30, %v933_v44  ;;  %v15230_v49 = vmax.f32 %v1136_v36, %v1142_v53  ;;  %12868 = vrot.lane.b32.xlu1 %v12867_v17, %s14191_s5  ;;  %12873 = vrot.lane.b32.xlu0 %v12867_v17, %s14189_s13 }
 0x22a   :  { %16507 = vst [vmem:[#allocation28_spill] sm:$0xff] %v15224_v59  ;;  %v936_v56 = vpop.f32.mrb[28].mxu0  ;;  %v1145_v46 = vpop.f32.mrb[28].mxu1  ;;  %5836 = vmatprep.subr.bf16.mxu0 %v13258_v62 }
 0x22b   :  { %16508 = vst [vmem:[#allocation29_spill] sm:$0xff] %v15228_v15  ;;  %16509 = vst [vmem:[#allocation30_spill] sm:$0xff] %v15230_v49  ;;  %v938_v47 = vpop.f32.mrb[29].mxu0  ;;  %v1147_v1 = vpop.f32.mrb[29].mxu1  ;;  %v937_v58 = vadd.f32 %v936_v56, %v15064_v5  ;;  %v1146_v61 = vadd.f32 %v1145_v46, %v15068_v9 }
 0x22c   :  { %v939_v48 = vadd.f32 %v938_v47, %v15072_v25  ;;  %v1148_v17 = vadd.f32 %v1147_v1, %v15076_v26 }
 0x22d   :  { %12883 = vrot.lane.b32.xlu1 %v12882_v2, %s14189_s13  ;;  %12878 = vrot.lane.b32.xlu0 %v12882_v2, %s14191_s5 }
 0x22e   :  { %v942_v27 = vpop.f32.mrb[30].mxu0  ;;  %v1151_v41 = vpop.f32.mrb[30].mxu1 }
 0x22f   :  { %v943_v12 = vadd.f32 %v942_v27, %v15064_v5  ;;  %v1152_v20 = vadd.f32 %v1151_v41, %v15068_v9  ;;  %v944_v23 = vpop.f32.mrb[31].mxu0  ;;  %v1153_v28 = vpop.f32.mrb[31].mxu1 }
 0x230   :  { %v945_v31 = vadd.f32 %v944_v23, %v15072_v25  ;;  %v1154_v52 = vadd.f32 %v1153_v28, %v15076_v26 }
 0x231   :  { %v15246_v11 = vmax.f32 %v937_v58, %v943_v12  ;;  %v15248_v7 = vmax.f32 %v1146_v61, %v1152_v20 }
 0x232   :  { %v15250_v19 = vmax.f32 %v939_v48, %v945_v31  ;;  %v15252_v30 = vmax.f32 %v1148_v17, %v1154_v52 }
 0x233   :  { %v12892_v36 = vpack.i.bf16 %v15248_v7, %v15226_v14  ;;  %v12902_v47 = vpack.i.bf16 %v15246_v11, %v15224_v59 }
 0x234   :  { %16510 = vst [vmem:[#allocation31_spill] sm:$0xff] %v15250_v19  ;;  %16511 = vst [vmem:[#allocation32_spill] sm:$0xff] %v15252_v30  ;;  %v12907_v27 = vpack.i.bf16 %v15252_v30, %v15230_v49 }
 0x235   :  { %v948_v44 = vpop.f32.mrb[32].mxu0  ;;  %v1157_v53 = vpop.f32.mrb[32].mxu1  ;;  %12893 = vrot.lane.b32.xlu1 %v12892_v36, %s14191_s5  ;;  %12888 = vrot.lane.b32.xlu0 %v12892_v36, %s14199_s0 }
 0x236   :  { %v950_v56 = vpop.f32.mrb[33].mxu0  ;;  %v1159_v46 = vpop.f32.mrb[33].mxu1  ;;  %v949_v41 = vadd.f32 %v948_v44, %v15064_v5  ;;  %v1158_v58 = vadd.f32 %v1157_v53, %v15068_v9 }
 0x237   :  { %v951_v28 = vadd.f32 %v950_v56, %v15072_v25  ;;  %v1160_v38 = vadd.f32 %v1159_v46, %v15076_v26 }
 0x239   :  { %v954_v1 = vpop.f32.mrb[34].mxu0  ;;  %v1163_v2 = vpop.f32.mrb[34].mxu1  ;;  %12903 = vrot.lane.b32.xlu1 %v12902_v47, %s14191_s5  ;;  %12898 = vrot.lane.b32.xlu0 %v12902_v47, %s14199_s0  ;;  %v12922_v47 = vpack.i.bf16 %v15250_v19, %v15228_v15 }
 0x23a   :  { %v955_v61 = vadd.f32 %v954_v1, %v15064_v5  ;;  %v1164_v12 = vadd.f32 %v1163_v2, %v15068_v9  ;;  %v956_v20 = vpop.f32.mrb[35].mxu0  ;;  %v1165_v23 = vpop.f32.mrb[35].mxu1 }
 0x23b   :  { %v957_v48 = vadd.f32 %v956_v20, %v15072_v25  ;;  %v1166_v17 = vadd.f32 %v1165_v23, %v15076_v26 }
 0x23c   :  { %v15272_v31 = vmax.f32 %v949_v41, %v955_v61  ;;  %v15274_v52 = vmax.f32 %v1158_v58, %v1164_v12 }
 0x23d   :  { %v15276_v62 = vmax.f32 %v951_v28, %v957_v48  ;;  %v15278_v36 = vmax.f32 %v1160_v38, %v1166_v17  ;;  %12908 = vrot.lane.b32.xlu1 %v12907_v27, %s14191_s5  ;;  %12913 = vrot.lane.b32.xlu0 %v12907_v27, %s14189_s13 }
 0x23e   :  { %v960_v44 = vpop.f32.mrb[36].mxu0  ;;  %v1169_v53 = vpop.f32.mrb[36].mxu1 }
 0x23f   :  { %v962_v56 = vpop.f32.mrb[37].mxu0  ;;  %v1171_v46 = vpop.f32.mrb[37].mxu1  ;;  %v961_v41 = vadd.f32 %v960_v44, %v15064_v5  ;;  %v1170_v58 = vadd.f32 %v1169_v53, %v15068_v9 }
 0x240   :  { %v963_v23 = vadd.f32 %v962_v56, %v15072_v25  ;;  %v1172_v28 = vadd.f32 %v1171_v46, %v15076_v26 }
 0x241   :  { %12923 = vrot.lane.b32.xlu1 %v12922_v47, %s14189_s13  ;;  %12918 = vrot.lane.b32.xlu0 %v12922_v47, %s14191_s5 }
 0x242   :  { %v966_v1 = vpop.f32.mrb[38].mxu0  ;;  %v1175_v2 = vpop.f32.mrb[38].mxu1 }
 0x243   :  { %v967_v61 = vadd.f32 %v966_v1, %v15064_v5  ;;  %v1176_v27 = vadd.f32 %v1175_v2, %v15068_v9  ;;  %v968_v12 = vpop.f32.mrb[39].mxu0  ;;  %v1177_v20 = vpop.f32.mrb[39].mxu1 }
 0x244   :  { %v969_v38 = vadd.f32 %v968_v12, %v15072_v25  ;;  %v1178_v48 = vadd.f32 %v1177_v20, %v15076_v26 }
 0x245   :  { %v15294_v17 = vmax.f32 %v961_v41, %v967_v61  ;;  %v15296_v47 = vmax.f32 %v1170_v58, %v1176_v27 }
 0x246   :  { %v15298_v44 = vmax.f32 %v963_v23, %v969_v38  ;;  %v15300_v53 = vmax.f32 %v1172_v28, %v1178_v48 }
 0x247   :  { %16512 = vst [vmem:[#allocation33_spill] sm:$0xff] %v15296_v47 }
 0x248   :  { %16513 = vst [vmem:[#allocation34_spill] sm:$0xff] %v15300_v53 }
 0x249   :  { %v972_v1 = vpop.f32.mrb[40].mxu0  ;;  %v1181_v2 = vpop.f32.mrb[40].mxu1 }
 0x24a   :  { %v974_v57 = vpop.f32.mrb[41].mxu0  ;;  %v1183_v54 = vpop.f32.mrb[41].mxu1  ;;  %v973_v46 = vadd.f32 %v972_v1, %v15064_v5  ;;  %v1182_v12 = vadd.f32 %v1181_v2, %v15068_v9 }
 0x24b   :  { %v975_v27 = vadd.f32 %v974_v57, %v15072_v25  ;;  %v1184_v23 = vadd.f32 %v1183_v54, %v15076_v26 }
 0x24d   :  { %v978_v45 = vpop.f32.mrb[42].mxu0  ;;  %v1187_v56 = vpop.f32.mrb[42].mxu1 }
 0x24e   :  { %v979_v20 = vadd.f32 %v978_v45, %v15064_v5  ;;  %v1188_v41 = vadd.f32 %v1187_v56, %v15068_v9  ;;  %v980_v58 = vpop.f32.mrb[43].mxu0  ;;  %v1189_v61 = vpop.f32.mrb[43].mxu1 }
 0x24f   :  { %v981_v28 = vadd.f32 %v980_v58, %v15072_v25  ;;  %v1190_v38 = vadd.f32 %v1189_v61, %v15076_v26 }
 0x250   :  { %v15310_v48 = vmax.f32 %v973_v46, %v979_v20  ;;  %v15312_v18 = vmax.f32 %v1182_v12, %v1188_v41 }
 0x251   :  { %v15314_v1 = vmax.f32 %v975_v27, %v981_v28  ;;  %v15316_v2 = vmax.f32 %v1184_v23, %v1190_v38 }
 0x252   :  { %16514 = vst [vmem:[#allocation35_spill] sm:$0xff] %v15312_v18  ;;  %v984_v45 = vpop.f32.mrb[44].mxu0  ;;  %v1193_v56 = vpop.f32.mrb[44].mxu1 }
 0x253   :  { %16515 = vst [vmem:[#allocation36_spill] sm:$0xff] %v15316_v2  ;;  %v986_v15 = vpop.f32.mrb[45].mxu0  ;;  %v1195_v19 = vpop.f32.mrb[45].mxu1  ;;  %v985_v61 = vadd.f32 %v984_v45, %v15064_v5  ;;  %v1194_v46 = vadd.f32 %v1193_v56, %v15068_v9 }
 0x254   :  { %v987_v23 = vadd.f32 %v986_v15, %v15072_v25  ;;  %v1196_v28 = vadd.f32 %v1195_v19, %v15076_v26  ;;  %v16521_v19 = vsub.s32 5, %v15042_v29 }
 0x257   :  { %v990_v59 = vpop.f32.mrb[46].mxu0  ;;  %v1199_v57 = vpop.f32.mrb[46].mxu1 }
 0x258   :  { %v991_v12 = vadd.f32 %v990_v59, %v15064_v5  ;;  %v1200_v20 = vadd.f32 %v1199_v57, %v15068_v9  ;;  %v992_v41 = vpop.f32.mrb[47].mxu0  ;;  %v1201_v27 = vpop.f32.mrb[47].mxu1  ;;  %v16520_v9 = vsub.s32 4, %v15042_v29 }
 0x259   :  { %v993_v38 = vadd.f32 %v992_v41, %v15072_v25  ;;  %v1202_v54 = vadd.f32 %v1201_v27, %v15076_v26  ;;  %v15344_v25 = vrot.slane %v15054_v51, %v16521_v19 }
 0x25a   :  { %v15328_v2 = vmax.f32 %v985_v61, %v991_v12  ;;  %v15330_v58 = vmax.f32 %v1194_v46, %v1200_v20  ;;  %v15339_v59 = vrot.slane %v15054_v51, %v16520_v9 }
 0x25b   :  { %v15332_v45 = vmax.f32 %v987_v23, %v993_v38  ;;  %v15334_v56 = vmax.f32 %v1196_v28, %v1202_v54  ;;  %v1270_v5 = vpop.f32.mrb[48].mxu0 }
 0x25c   :  { %16516 = vst [vmem:[#allocation37_spill] sm:$0xff] %v15328_v2  ;;  %16517 = vst [vmem:[#allocation38_spill] sm:$0xff] %v15330_v58  ;;  %v1272_v15 = vpop.f32.mrb[49].mxu0  ;;  %v1271_v57 = vadd.f32 %v1270_v5, %v15339_v59 }
 0x25d   :  { %16518 = vst [vmem:[#allocation39_spill] sm:$0xff] %v15332_v45  ;;  %16519 = vst [vmem:[#allocation40_spill] sm:$0xff] %v15334_v56  ;;  %v1273_v54 = vadd.f32 %v1272_v15, %v15344_v25 }
 0x25f   :  { %v1276_v26 = vpop.f32.mrb[50].mxu0 }
 0x260   :  { %v1277_v61 = vadd.f32 %v1276_v26, %v15339_v59  ;;  %v1278_v46 = vpop.f32.mrb[51].mxu0 }
 0x261   :  { %v1279_v12 = vadd.f32 %v1278_v46, %v15344_v25 }
 0x262   :  { %v15350_v20 = vmax.f32 %v1271_v57, %v1277_v61 }
 0x263   :  { %v15352_v41 = vmax.f32 %v1273_v54, %v1279_v12  ;;  %v1282_v27 = vpop.f32.mrb[52].mxu0 }
 0x264   :  { %16522 = vst [vmem:[#allocation41_spill] sm:$0xff] %v15350_v20  ;;  %v1284_v23 = vpop.f32.mrb[53].mxu0  ;;  %v1283_v51 = vadd.f32 %v1282_v27, %v15339_v59 }
 0x265   :  { %16523 = vst [vmem:[#allocation42_spill] sm:$0xff] %v15352_v41  ;;  %v1285_v5 = vadd.f32 %v1284_v23, %v15344_v25 }
 0x267   :  { %v1288_v28 = vpop.f32.mrb[54].mxu0 }
 0x268   :  { %v1289_v38 = vadd.f32 %v1288_v28, %v15339_v59  ;;  %v1290_v9 = vpop.f32.mrb[55].mxu0 }
 0x269   :  { %v1291_v19 = vadd.f32 %v1290_v9, %v15344_v25  ;;  %v12947_v9 = vpack.i.bf16 %v15276_v62, %v15272_v31 }
 0x26a   :  { %v15358_v26 = vmax.f32 %v1283_v51, %v1289_v38 }
 0x26b   :  { %v15360_v15 = vmax.f32 %v1285_v5, %v1291_v19  ;;  %v12774_v57 = vpop.permute.xlu1 %12773  ;;  %v12769_v61 = vpop.permute.xlu0 %12768 }
 0x26c   :  { %16524 = vst [vmem:[#allocation43_spill] sm:$0xff] %v15358_v26  ;;  %v1294_v46 = vpop.f32.mrb[56].mxu0  ;;  %v12932_v12 = vpack.i.bf16 %v15358_v26, %v15350_v20  ;;  %v12771_v27 = vunpack.i.h.bf16 %v12769_v61  ;;  %v12776_v28 = vunpack.i.h.bf16 %v12774_v57  ;;  %v12775_v29 = vunpack.i.l.bf16 %v12774_v57 }
 0x26d   :  { %16525 = vst [vmem:[#allocation44_spill] sm:$0xff] %v15360_v15  ;;  %v1296_v54 = vpop.f32.mrb[57].mxu0  ;;  %v12770_v23 = vunpack.i.l.bf16 %v12769_v61  ;;  %v1295_v5 = vadd.f32 %v1294_v46, %v15339_v59  ;;  %v12942_v57 = vpack.i.bf16 %v15360_v15, %v15352_v41 }
 0x26e   :  { %12933 = vrot.lane.b32.xlu1 %v12932_v12, %s14191_s5  ;;  %12928 = vrot.lane.b32.xlu0 %v12932_v12, %s14199_s0  ;;  %v1921_v58 = vsel %vm1881_vm8, %v15104_v8, %v12771_v27  ;;  %v1297_v18 = vadd.f32 %v1296_v54, %v15344_v25  ;;  %v2137_v46 = vsel %vm1881_vm8, %v12771_v27, %v12776_v28 }
 0x26f   :  { %v1300_v51 = vpop.f32.mrb[58].mxu0  ;;  %v12784_v38 = vpop.permute.xlu1 %12783  ;;  %v2136_v49 = vsel %vm1881_vm8, %v12770_v23, %v12775_v29 }
 0x270   :  { %v1301_v19 = vadd.f32 %v1300_v51, %v15339_v59  ;;  %v12786_v20 = vunpack.i.h.bf16 %v12784_v38  ;;  %v12779_v26 = vpop.permute.xlu0 %12778  ;;  %v1302_v45 = vpop.f32.mrb[59].mxu0  ;;  %v12785_v61 = vunpack.i.l.bf16 %v12784_v38  ;;  %v1920_v51 = vsel %vm1881_vm8, %v15088_v4, %v12770_v23 }
 0x271   :  { %v12781_v56 = vunpack.i.h.bf16 %v12779_v26  ;;  %v12780_v2 = vunpack.i.l.bf16 %v12779_v26  ;;  %v1303_v12 = vadd.f32 %v1302_v45, %v15344_v25 }
 0x272   :  { %v15376_v30 = vmax.f32 %v1295_v5, %v1301_v19  ;;  %12943 = vrot.lane.b32.xlu1 %v12942_v57, %s14189_s13  ;;  %12938 = vrot.lane.b32.xlu0 %v12942_v57, %s14191_s5 }
 0x273   :  { %v1883_v38 = vsel %vm1881_vm8, %v15102_v60, %v12781_v56  ;;  %v1306_v45 = vpop.f32.mrb[60].mxu0  ;;  %v12789_v26 = vpop.permute.xlu1 %12788  ;;  %v2101_v8 = vsel %vm1881_vm8, %v12781_v56, %v12786_v20  ;;  %v15386_v15 = vmax.f32 %v1297_v18, %v1303_v12  ;;  %v1882_v29 = vsel %vm1881_vm8, %v15086_v3, %v12780_v2 }
 0x274   :  { %v12791_v54 = vunpack.i.h.bf16 %v12789_v26  ;;  %v12790_v27 = vunpack.i.l.bf16 %v12789_v26  ;;  %v12794_v28 = vpop.permute.xlu0 %12793  ;;  %v1308_v5 = vpop.f32.mrb[61].mxu0  ;;  %v2100_v4 = vsel %vm1881_vm8, %v12780_v2, %v12785_v61  ;;  %v1307_v19 = vadd.f32 %v1306_v45, %v15339_v59 }
 0x275   :  { %16526 = vst [vmem:[#allocation45_spill] sm:$0xff] %v15386_v15  ;;  %v12796_v60 = vunpack.i.h.bf16 %v12794_v28  ;;  %v12795_v23 = vunpack.i.l.bf16 %v12794_v28  ;;  %v1309_v56 = vadd.f32 %v1308_v5, %v15344_v25 }
 0x276   :  { %v1933_v41 = vsel %vm1894_vm9, %v1921_v58, %v12791_v54  ;;  %v1932_v18 = vsel %vm1894_vm9, %v1920_v51, %v12790_v27  ;;  %12948 = vrot.lane.b32.xlu1 %v12947_v9, %s14191_s5 }
 0x277   :  { %v1945_v20 = vsel %vm1907_vm10, %v1933_v41, %v12796_v60  ;;  %v2149_v57 = vsel %vm1894_vm9, %v2137_v46, %v12796_v60  ;;  %v1944_v12 = vsel %vm1907_vm10, %v1932_v18, %v12795_v23  ;;  %v2148_v3 = vsel %vm1894_vm9, %v2136_v49, %v12795_v23  ;;  %v1312_v2 = vpop.f32.mrb[62].mxu0  ;;  %v12804_v61 = vpop.permute.xlu1 %12803 }
 0x278   :  { %v1313_v45 = vadd.f32 %v1312_v2, %v15339_v59  ;;  %v12806_v26 = vunpack.i.h.bf16 %v12804_v61  ;;  %v12805_v58 = vunpack.i.l.bf16 %v12804_v61  ;;  %v12799_v54 = vpop.permute.xlu0 %12798  ;;  %v1314_v51 = vpop.f32.mrb[63].mxu0  ;;  %v2160_v27 = vsel %vm1907_vm10, %v2148_v3, %v15092_v42 }
 0x279   :  { %v12801_v41 = vunpack.i.h.bf16 %v12799_v54  ;;  %v12800_v28 = vunpack.i.l.bf16 %v12799_v54  ;;  %v1315_v46 = vadd.f32 %v1314_v51, %v15344_v25  ;;  %v2161_v49 = vsel %vm1907_vm10, %v2149_v57, %v15108_v0 }
 0x27a   :  { %v15407_v5 = vmax.f32 %v1307_v19, %v1313_v45  ;;  %v2112_v9 = vsel %vm1894_vm9, %v2100_v4, %v12805_v58  ;;  %v2113_v60 = vsel %vm1894_vm9, %v2101_v8, %v12806_v26  ;;  %v2209_v23 = vmax.f32 %v1944_v12, %v2160_v27 }
 0x27b   :  { %v2124_v18 = vsel %vm1907_vm10, %v2112_v9, %v15090_v34  ;;  %v2125_v42 = vsel %vm1907_vm10, %v2113_v60, %v15106_v63  ;;  %v1895_v3 = vsel %vm1894_vm9, %v1882_v29, %v12800_v28  ;;  %v1896_v2 = vsel %vm1894_vm9, %v1883_v38, %v12801_v41  ;;  %v1318_v61 = vpop.f32.mrb[64].mxu0 }
 0x27c   :  { %v12952_v0 = vpack.i.bf16 %v15407_v5, %v15376_v30  ;;  %v1908_v19 = vsel %vm1907_vm10, %v1895_v3, %v12805_v58  ;;  %v1909_v4 = vsel %vm1907_vm10, %v1896_v2, %v12806_v26  ;;  %v15421_v8 = vmax.f32 %v1309_v56, %v1315_v46  ;;  %v1320_v57 = vpop.f32.mrb[65].mxu0  ;;  %v13253_v46 = vld [vmem:[#allocation7 + $0x200] ss:$16 sps:$4 sm:$0xff]  }
 0x27d   :  { %v2208_v12 = vmax.f32 %v1908_v19, %v2124_v18  ;;  %v15423_v34 = vmax.f32 %v1909_v4, %v2125_v42  ;;  %v15425_v45 = vmax.f32 %v1945_v20, %v2161_v49  ;;  %v1319_v54 = vadd.f32 %v1318_v61, %v15339_v59  ;;  %v13256_v18 = vld [vmem:[#allocation7 + $0x208] ss:$16 sps:$4 sm:$0xff]   ;;  %v13261_v42 = vld [vmem:[#allocation7 + $0x224] ss:$16 sps:$4 sm:$0xff]   ;;  %v13264_v61 = vld [vmem:[#allocation7 + $0x22c] ss:$16 sps:$4 sm:$0xff]  }
 0x27e   :  { %16527 = vst [vmem:[#allocation46_spill] sm:$0xff] %v15421_v8  ;;  %12953 = vrot.lane.b32.xlu0 %v12952_v0, %s14199_s0  ;;  %12958 = vrot.lane.b32.xlu1 %v12952_v0, %s14191_s5  ;;  %v1321_v27 = vadd.f32 %v1320_v57, %v15344_v25  ;;  %v12967_v28 = vpack.i.bf16 %v15421_v8, %v15386_v15 }
 0x27f   :  { %v2244_v63 = vpack.c.bf16 %v15423_v34, %v2208_v12  ;;  %v1324_v38 = vpop.f32.mrb[66].mxu0  ;;  %v12814_v29 = vpop.permute.xlu1 %12813  ;;  %v2245_v58 = vpack.c.bf16 %v15425_v45, %v2209_v23 }
 0x280   :  { %v1325_v56 = vadd.f32 %v1324_v38, %v15339_v59  ;;  %v12809_v26 = vpop.permute.xlu0 %12808  ;;  %v1326_v51 = vpop.f32.mrb[67].mxu0  ;;  %v12816_v9 = vunpack.i.h.bf16 %v12814_v29  ;;  %v12815_v60 = vunpack.i.l.bf16 %v12814_v29 }
 0x281   :  { %v12811_v20 = vunpack.i.h.bf16 %v12809_v26  ;;  %v1327_v41 = vadd.f32 %v1326_v51, %v15344_v25  ;;  %5211 = vmatprep.mubr.bf16.mxu1 %v2245_v58  ;;  %5795 = vmatprep.mubr.bf16.mxu0 %v2245_v58  ;;  %v12810_v23 = vunpack.i.l.bf16 %v12809_v26  ;;  %v13259_v58 = vld [vmem:[#allocation7 + $0x220] ss:$16 sps:$4 sm:$0xff]   ;;  %v13262_v51 = vld [vmem:[#allocation7 + $0x228] ss:$16 sps:$4 sm:$0xff]  }
 0x282   :  { %v15437_v49 = vmax.f32 %v1319_v54, %v1325_v56  ;;  %5212 = vmatmul.mubr.bf16.vlgmr.msra.gmra.mrb[48].mxu1 %v2244_v63  ;;  %5796 = vmatmul.mubr.bf16.vlgmr.msra.gmra.mrb[96].mxu0 %v2244_v63 }
 0x283   :  { %v1330_v3 = vpop.f32.mrb[68].mxu0  ;;  %v12824_v2 = vpop.permute.xlu1 %12823  ;;  %v15439_v0 = vmax.f32 %v1321_v27, %v1327_v41  ;;  %12968 = vrot.lane.b32.xlu1 %v12967_v28, %s14189_s13  ;;  %v1923_v12 = vsel %vm1881_vm8, %v15152_v16, %v12811_v20  ;;  %12963 = vrot.lane.b32.xlu0 %v12967_v28, %s14191_s5  ;;  %v2139_v56 = vsel %vm1881_vm8, %v12811_v20, %v12816_v9  ;;  %v13267_v27 = vld [vmem:[#allocation7 + $0x244] ss:$16 sps:$4 sm:$0xff]   ;;  %v13270_v9 = vld [vmem:[#allocation7 + $0x24c] ss:$16 sps:$4 sm:$0xff]  }
 0x284   :  { %v12826_v19 = vunpack.i.h.bf16 %v12824_v2  ;;  %v12819_v4 = vpop.permute.xlu0 %12818  ;;  %v1332_v57 = vpop.f32.mrb[69].mxu0  ;;  %v12825_v38 = vunpack.i.l.bf16 %v12824_v2  ;;  %5253 = vmatpush1.bf16.msra.mxu1 %v13253_v46  ;;  %v1922_v63 = vsel %vm1881_vm8, %v15130_v24, %v12810_v23  ;;  %v2138_v26 = vsel %vm1881_vm8, %v12810_v23, %v12815_v60  ;;  %5837 = vmatpush1.bf16.msra.mxu0 %v13256_v18 }
 0x285   :  { %v12821_v29 = vunpack.i.h.bf16 %v12819_v4  ;;  %v12820_v54 = vunpack.i.l.bf16 %v12819_v4  ;;  %5254 = vmatprep.subr.bf16.mxu1 %v13261_v42  ;;  %v1331_v16 = vadd.f32 %v1330_v3, %v15339_v59  ;;  %v1333_v46 = vadd.f32 %v1332_v57, %v15344_v25  ;;  %5838 = vmatprep.subr.bf16.mxu0 %v13264_v61  ;;  %v13265_v57 = vld [vmem:[#allocation7 + $0x240] ss:$16 sps:$4 sm:$0xff]  }
 0x287   :  { %v1885_v41 = vsel %vm1881_vm8, %v15150_v10, %v12821_v29  ;;  %v2103_v28 = vsel %vm1881_vm8, %v12821_v29, %v12826_v19  ;;  %v1336_v2 = vpop.f32.mrb[70].mxu0  ;;  %v12829_v20 = vpop.permute.xlu1 %12828  ;;  %v1884_v24 = vsel %vm1881_vm8, %v15128_v13, %v12820_v54  ;;  %v2102_v4 = vsel %vm1881_vm8, %v12820_v54, %v12825_v38 }
 0x288   :  { %v1337_v60 = vadd.f32 %v1336_v2, %v15339_v59  ;;  %v12831_v23 = vunpack.i.h.bf16 %v12829_v20  ;;  %v12830_v18 = vunpack.i.l.bf16 %v12829_v20  ;;  %v12834_v42 = vpop.permute.xlu0 %12833  ;;  %v1338_v3 = vpop.f32.mrb[71].mxu0  ;;  %5255 = vmatpush1.bf16.msra.mxu1 %v13259_v58  ;;  %5839 = vmatpush1.bf16.msra.mxu0 %v13262_v51  ;;  %v13268_v2 = vld [vmem:[#allocation7 + $0x248] ss:$16 sps:$4 sm:$0xff]  }
 0x289   :  { %v12836_v10 = vunpack.i.h.bf16 %v12834_v42  ;;  %v12835_v8 = vunpack.i.l.bf16 %v12834_v42  ;;  %v1339_v19 = vadd.f32 %v1338_v3, %v15344_v25  ;;  %5256 = vmatprep.subr.bf16.mxu1 %v13267_v27  ;;  %5840 = vmatprep.subr.bf16.mxu0 %v13270_v9 }
 0x28a   :  { %v15459_v29 = vmax.f32 %v1331_v16, %v1337_v60  ;;  %v1934_v61 = vsel %vm1894_vm9, %v1922_v63, %v12830_v18  ;;  %v1935_v13 = vsel %vm1894_vm9, %v1923_v12, %v12831_v23  ;;  %v13273_v16 = vld [vmem:[#allocation7 + $0x264] ss:$16 sps:$4 sm:$0xff]  }
 0x28b   :  { %v1946_v20 = vsel %vm1907_vm10, %v1934_v61, %v12835_v8  ;;  %v1947_v15 = vsel %vm1907_vm10, %v1935_v13, %v12836_v10  ;;  %v2150_v38 = vsel %vm1894_vm9, %v2138_v26, %v12835_v8  ;;  %v2151_v54 = vsel %vm1894_vm9, %v2139_v56, %v12836_v10  ;;  %v1342_v42 = vpop.f32.mrb[72].mxu0  ;;  %v12844_v58 = vpop.permute.xlu1 %12843  ;;  %v13276_v8 = vld [vmem:[#allocation7 + $0x26c] ss:$16 sps:$4 sm:$0xff]   ;;  %v13271_v13 = vld [vmem:[#allocation7 + $0x260] ss:$16 sps:$4 sm:$0xff]  }
 0x28c   :  { %v12972_v63 = vpack.i.bf16 %v15459_v29, %v15437_v49  ;;  %v2162_v12 = vsel %vm1907_vm10, %v2150_v38, %v15134_v43  ;;  %v2163_v51 = vsel %vm1907_vm10, %v2151_v54, %v15156_v22  ;;  %v15473_v27 = vmax.f32 %v1333_v46, %v1339_v19  ;;  %v12839_v60 = vpop.permute.xlu0 %12838  ;;  %v1344_v23 = vpop.f32.mrb[73].mxu0  ;;  %5257 = vmatpush1.bf16.msra.mxu1 %v13265_v57  ;;  %v13274_v57 = vld [vmem:[#allocation7 + $0x268] ss:$16 sps:$4 sm:$0xff]  }
 0x28d   :  { %v2215_v26 = vmax.f32 %v1946_v20, %v2162_v12  ;;  %v15475_v56 = vmax.f32 %v1947_v15, %v2163_v51  ;;  %v1343_v9 = vadd.f32 %v1342_v42, %v15339_v59  ;;  %v12846_v18 = vunpack.i.h.bf16 %v12844_v58  ;;  %5841 = vmatpush1.bf16.msra.mxu0 %v13268_v2  ;;  %5258 = vmatprep.subr.bf16.mxu1 %v13273_v16  ;;  %v13279_v42 = vld [vmem:[#allocation7 + $0x284] ss:$16 sps:$4 sm:$0xff]   ;;  %v13282_v12 = vld [vmem:[#allocation7 + $0x28c] ss:$16 sps:$4 sm:$0xff]  }
 0x28e   :  { %v12845_v3 = vunpack.i.l.bf16 %v12844_v58  ;;  %v12841_v10 = vunpack.i.h.bf16 %v12839_v60  ;;  %v12840_v61 = vunpack.i.l.bf16 %v12839_v60  ;;  %v1345_v43 = vadd.f32 %v1344_v23, %v15344_v25  ;;  %12973 = vrot.lane.b32.xlu0 %v12972_v63, %s14199_s0  ;;  %5842 = vmatprep.subr.bf16.mxu0 %v13276_v8 }
 0x28f   :  { %v15481_v22 = vpack.c.bf16 %v2215_v26, %v15425_v45  ;;  %v2115_v46 = vsel %vm1894_vm9, %v2103_v28, %v12846_v18  ;;  %v1348_v19 = vpop.f32.mrb[74].mxu0  ;;  %v15485_v15 = vpack.c.bf16 %v15475_v56, %v2215_v26  ;;  %12978 = vrot.lane.b32.xlu1 %v12972_v63, %s14191_s5  ;;  %v13277_v63 = vld [vmem:[#allocation7 + $0x280] ss:$16 sps:$4 sm:$0xff]  }
 0x290   :  { %v2114_v20 = vsel %vm1894_vm9, %v2102_v4, %v12845_v3  ;;  %v2127_v38 = vsel %vm1907_vm10, %v2115_v46, %v15154_v21  ;;  %v1897_v54 = vsel %vm1894_vm9, %v1884_v24, %v12840_v61  ;;  %v1898_v2 = vsel %vm1894_vm9, %v1885_v41, %v12841_v10  ;;  %v1350_v45 = vpop.f32.mrb[75].mxu0  ;;  %5259 = vmatpush1.bf16.msra.mxu1 %v13271_v13  ;;  %v13280_v10 = vld [vmem:[#allocation7 + $0x288] ss:$16 sps:$4 sm:$0xff]   ;;  %v13288_v13 = vld [vmem:[#allocation7 + $0x2ac] ss:$16 sps:$4 sm:$0xff]  }
 0x291   :  { %16528 = vst [vmem:[#allocation47_spill] sm:$0xff] %v15485_v15  ;;  %v2126_v28 = vsel %vm1907_vm10, %v2114_v20, %v15132_v37  ;;  %v1910_v58 = vsel %vm1907_vm10, %v1897_v54, %v12845_v3  ;;  %v1911_v16 = vsel %vm1907_vm10, %v1898_v2, %v12846_v18  ;;  %v1349_v4 = vadd.f32 %v1348_v19, %v15339_v59 }
 0x292   :  { %v1351_v21 = vadd.f32 %v1350_v45, %v15344_v25  ;;  %5221 = vmatprep.mubr.bf16.mxu1 %v15485_v15  ;;  %5805 = vmatprep.mubr.bf16.mxu0 %v15485_v15  ;;  %v12987_v41 = vpack.i.bf16 %v15473_v27, %v15439_v0  ;;  %v15505_v60 = vmax.f32 %v1910_v58, %v2126_v28  ;;  %v13283_v45 = vld [vmem:[#allocation7 + $0x2a0] ss:$16 sps:$4 sm:$0xff]  }
 0x293   :  { %v15503_v24 = vmax.f32 %v1343_v9, %v1349_v4  ;;  %v1354_v37 = vpop.f32.mrb[76].mxu0  ;;  %v12854_v51 = vpop.permute.xlu1 %12853  ;;  %v15507_v23 = vmax.f32 %v1911_v16, %v2127_v38  ;;  %5843 = vmatpush1.bf16.msra.mxu0 %v13274_v57  ;;  %5260 = vmatprep.subr.bf16.mxu1 %v13279_v42 }
 0x294   :  { %v15509_v8 = vmax.f32 %v1345_v43, %v1351_v21  ;;  %12983 = vrot.lane.b32.xlu0 %v12987_v41, %s14191_s5  ;;  %v12849_v26 = vpop.permute.xlu0 %12848  ;;  %v1356_v18 = vpop.f32.mrb[77].mxu0  ;;  %12988 = vrot.lane.b32.xlu1 %v12987_v41, %s14189_s13  ;;  %v12856_v61 = vunpack.i.h.bf16 %v12854_v51  ;;  %v13285_v43 = vld [vmem:[#allocation7 + $0x2a4] ss:$16 sps:$4 sm:$0xff]   ;;  %v1355_v57 = vadd.f32 %v1354_v37, %v15339_v59  ;;  %v12855_v20 = vunpack.i.l.bf16 %v12854_v51 }
 0x295   :  { %v12992_v9 = vpack.i.bf16 %v15503_v24, %v15272_v31  ;;  %v12851_v3 = vunpack.i.h.bf16 %v12849_v26  ;;  %5844 = vmatprep.subr.bf16.mxu0 %v13282_v12  ;;  %v12850_v46 = vunpack.i.l.bf16 %v12849_v26  ;;  %v15517_v19 = vpack.c.bf16 %v15507_v23, %v15505_v60  ;;  %5261 = vmatpush1.bf16.msra.mxu1 %v13277_v63  ;;  %v13291_v21 = vld [vmem:[#allocation7 + $0x2c4] ss:$16 sps:$4 sm:$0xff]   ;;  %v13286_v26 = vld [vmem:[#allocation7 + $0x2a8] ss:$16 sps:$4 sm:$0xff]  }
 0x296   :  { %v1357_v38 = vadd.f32 %v1356_v18, %v15344_v25  ;;  %v12997_v12 = vpack.i.bf16 %v15509_v8, %v15276_v62  ;;  %5262 = vmatprep.subr.bf16.mxu1 %v13285_v43 }
 0x297   :  { %16529 = vst [vmem:[#allocation48_spill] sm:$0xff] %v15517_v19  ;;  %v1360_v54 = vpop.f32.mrb[78].mxu0  ;;  %v12864_v2 = vpop.permute.xlu1 %12863  ;;  %5222 = vmatmul.mubr.bf16.gmra.mrb[52].mxu1 %v15517_v19  ;;  %5806 = vmatmul.mubr.bf16.gmra.mrb[100].mxu0 %v15517_v19  ;;  %v1925_v41 = vsel %vm1881_vm8, %v15200_v35, %v12851_v3  ;;  %v2141_v18 = vsel %vm1881_vm8, %v12851_v3, %v12856_v61  ;;  %v13294_v19 = vld [vmem:[#allocation7 + $0x2cc] ss:$16 sps:$4 sm:$0xff]  }
 0x298   :  { %v1361_v42 = vadd.f32 %v1360_v54, %v15339_v59  ;;  %v12866_v28 = vunpack.i.h.bf16 %v12864_v2  ;;  %v12865_v58 = vunpack.i.l.bf16 %v12864_v2  ;;  %v12859_v16 = vpop.permute.xlu0 %12858  ;;  %v1362_v4 = vpop.f32.mrb[79].mxu0  ;;  %12993 = vrot.lane.b32.xlu0 %v12992_v9, %s14199_s0  ;;  %5845 = vmatpush1.bf16.msra.mxu0 %v13280_v10  ;;  %v1924_v54 = vsel %vm1881_vm8, %v15178_v50, %v12850_v46  ;;  %v13289_v50 = vld [vmem:[#allocation7 + $0x2c0] ss:$16 sps:$4 sm:$0xff]  }
 0x299   :  { %v12861_v37 = vunpack.i.h.bf16 %v12859_v16  ;;  %v12860_v51 = vunpack.i.l.bf16 %v12859_v16  ;;  %v1363_v63 = vadd.f32 %v1362_v4, %v15344_v25  ;;  %5846 = vmatprep.subr.bf16.mxu0 %v13288_v13  ;;  %v2140_v35 = vsel %vm1881_vm8, %v12850_v46, %v12855_v20  ;;  %5263 = vmatpush1.bf16.msra.mxu1 %v13283_v45 }
 0x29a   :  { %v15533_v2 = vmax.f32 %v1355_v57, %v1361_v42  ;;  %5264 = vmatprep.subr.bf16.mxu1 %v13291_v21 }
 0x29b   :  { %v1887_v9 = vsel %vm1881_vm8, %v15198_v32, %v12861_v37  ;;  %v2105_v16 = vsel %vm1881_vm8, %v12861_v37, %v12866_v28  ;;  %v15541_v10 = vsel %vm1881_vm8, %v15176_v33, %v12860_v51  ;;  %v1366_v3 = vpop.f32.mrb[80].mxu0  ;;  %v12869_v61 = vpop.permute.xlu1 %12868  ;;  %v2104_v57 = vsel %vm1881_vm8, %v12860_v51, %v12865_v58  ;;  %v13297_v32 = vld [vmem:[#allocation7 + $0x2e4] ss:$16 sps:$4 sm:$0xff]  }
 0x29c   :  { %v15544_v43 = vmax.f32 %v1357_v38, %v1363_v63  ;;  %v12871_v13 = vunpack.i.h.bf16 %v12869_v61  ;;  %v12870_v42 = vunpack.i.l.bf16 %v12869_v61  ;;  %v12874_v46 = vpop.permute.xlu0 %12873  ;;  %v1368_v20 = vpop.f32.mrb[81].mxu0  ;;  %1775 = vrot.lane.b32.xlu1 %v15533_v2, %s14199_s0  ;;  %12998 = vrot.lane.b32.xlu0 %v12997_v12, %s14189_s13  ;;  %v1367_v33 = vadd.f32 %v1366_v3, %v15339_v59  ;;  %v13292_v38 = vld [vmem:[#allocation7 + $0x2c8] ss:$16 sps:$4 sm:$0xff]   ;;  %v13300_v12 = vld [vmem:[#allocation7 + $0x2ec] ss:$16 sps:$4 sm:$0xff]  }
 0x29d   :  { %v12876_v28 = vunpack.i.h.bf16 %v12874_v46  ;;  %v12875_v45 = vunpack.i.l.bf16 %v12874_v46  ;;  %v13002_v58 = vpack.i.bf16 %v15533_v2, %v15503_v24  ;;  %5847 = vmatpush1.bf16.msra.mxu0 %v13286_v26  ;;  %v1369_v51 = vadd.f32 %v1368_v20, %v15344_v25  ;;  %5265 = vmatpush1.bf16.msra.mxu1 %v13289_v50 }
 0x29e   :  { %v1936_v4 = vsel %vm1894_vm9, %v1924_v54, %v12870_v42  ;;  %v1937_v37 = vsel %vm1894_vm9, %v1925_v41, %v12871_v13  ;;  %v13007_v21 = vpack.i.bf16 %v15544_v43, %v15509_v8  ;;  %5848 = vmatprep.subr.bf16.mxu0 %v13294_v19  ;;  %v13295_v54 = vld [vmem:[#allocation7 + $0x2e0] ss:$16 sps:$4 sm:$0xff]   ;;  %5266 = vmatprep.subr.bf16.mxu1 %v13297_v32 }
 0x29f   :  { %v1948_v63 = vsel %vm1907_vm10, %v1936_v4, %v12875_v45  ;;  %v1949_v3 = vsel %vm1907_vm10, %v1937_v37, %v12876_v28  ;;  %v2152_v61 = vsel %vm1894_vm9, %v2140_v35, %v12875_v45  ;;  %v2153_v26 = vsel %vm1894_vm9, %v2141_v18, %v12876_v28  ;;  %v1372_v46 = vpop.f32.mrb[82].mxu0  ;;  %v12884_v15 = vpop.permute.xlu1 %12883  ;;  %v13303_v35 = vld [vmem:[#allocation7 + $0x304] ss:$16 sps:$4 sm:$0xff]  }
 0x2a0   :  { %v2164_v41 = vsel %vm1907_vm10, %v2152_v61, %v15182_v6  ;;  %v2165_v13 = vsel %vm1907_vm10, %v2153_v26, %v15204_v39  ;;  %v1373_v19 = vadd.f32 %v1372_v46, %v15339_v59  ;;  %v12886_v42 = vunpack.i.h.bf16 %v12884_v15  ;;  %v12879_v20 = vpop.permute.xlu0 %12878  ;;  %v1374_v4 = vpop.f32.mrb[83].mxu0  ;;  %13008 = vrot.lane.b32.xlu1 %v13007_v21, %s14191_s5  ;;  %13003 = vrot.lane.b32.xlu0 %v13002_v58, %s14191_s5  ;;  %v13301_v26 = vld [vmem:[#allocation7 + $0x300] ss:$16 sps:$4 sm:$0xff]  }
 0x2a1   :  { %v2221_v18 = vmax.f32 %v1948_v63, %v2164_v41  ;;  %v15567_v28 = vmax.f32 %v1949_v3, %v2165_v13  ;;  %v12885_v50 = vunpack.i.l.bf16 %v12884_v15  ;;  %v12881_v45 = vunpack.i.h.bf16 %v12879_v20  ;;  %5849 = vmatpush1.bf16.msra.mxu0 %v13292_v38  ;;  %v13298_v38 = vld [vmem:[#allocation7 + $0x2e8] ss:$16 sps:$4 sm:$0xff]   ;;  %5267 = vmatpush1.bf16.msra.mxu1 %v13295_v54  ;;  %v13309_v41 = vld [vmem:[#allocation7 + $0x324] ss:$16 sps:$4 sm:$0xff]  }
 0x2a2   :  { %v15570_v6 = vmax.f32 %v1367_v33, %v1373_v19  ;;  %v2117_v39 = vsel %vm1894_vm9, %v2105_v16, %v12886_v42  ;;  %v12880_v37 = vunpack.i.l.bf16 %v12879_v20  ;;  %v1375_v61 = vadd.f32 %v1374_v4, %v15344_v25  ;;  %5850 = vmatprep.subr.bf16.mxu0 %v13300_v12  ;;  %5268 = vmatprep.subr.bf16.mxu1 %v13303_v35 }
 0x2a3   :  { %v15575_v21 = vpack.c.bf16 %v15567_v28, %v2221_v18  ;;  %v2116_v32 = vsel %vm1894_vm9, %v2104_v57, %v12885_v50  ;;  %v2129_v63 = vsel %vm1907_vm10, %v2117_v39, %v15202_v40  ;;  %v1900_v15 = vsel %vm1894_vm9, %v1887_v9, %v12881_v45  ;;  %v1378_v58 = vpop.f32.mrb[84].mxu0  ;;  %v13306_v40 = vld [vmem:[#allocation7 + $0x30c] ss:$16 sps:$4 sm:$0xff]   ;;  %v13307_v45 = vld [vmem:[#allocation7 + $0x320] ss:$16 sps:$4 sm:$0xff]  }
 0x2a4   :  { %v13012_v16 = vpack.i.bf16 %v15274_v52, %v15570_v6  ;;  %v2128_v33 = vsel %vm1907_vm10, %v2116_v32, %v15180_v55  ;;  %v1899_v12 = vsel %vm1894_vm9, %v15541_v10, %v12880_v37  ;;  %v1913_v3 = vsel %vm1907_vm10, %v1900_v15, %v12886_v42  ;;  %v1380_v57 = vpop.f32.mrb[85].mxu0  ;;  %1859 = vrot.lane.b32.xlu0 %v15544_v43, %s14189_s13  ;;  %v13312_v32 = vld [vmem:[#allocation7 + $0x32c] ss:$16 sps:$4 sm:$0xff]  }
 0x2a5   :  { %v1912_v9 = vsel %vm1907_vm10, %v1899_v12, %v12885_v50  ;;  %v15589_v46 = vmax.f32 %v1913_v3, %v2129_v63  ;;  %v15591_v54 = vmax.f32 %v1369_v51, %v1375_v61  ;;  %5231 = vmatprep.mubr.bf16.mxu1 %v15575_v21  ;;  %5815 = vmatprep.mubr.bf16.mxu0 %v15575_v21 }
 0x2a6   :  { %v2220_v55 = vmax.f32 %v1912_v9, %v2128_v33  ;;  %v15598_v10 = vpack.c.bf16 %v2221_v18, %v15475_v56  ;;  %v1379_v13 = vadd.f32 %v1378_v58, %v15339_v59  ;;  %13013 = vrot.lane.b32.xlu1 %v13012_v16, %s14199_s0  ;;  %5851 = vmatpush1.bf16.msra.mxu0 %v13298_v38  ;;  %v13304_v18 = vld [vmem:[#allocation7 + $0x308] ss:$16 sps:$4 sm:$0xff]   ;;  %v13315_v33 = vld [vmem:[#allocation7 + $0x344] ss:$16 sps:$4 sm:$0xff]  }
 0x2a7   :  { %v1384_v19 = vpop.f32.mrb[86].mxu0  ;;  %v12894_v42 = vpop.permute.xlu1 %12893  ;;  %v13017_v51 = vpack.i.bf16 %v15591_v54, %v15570_v6  ;;  %v13022_v56 = vpack.i.bf16 %v15278_v36, %v15591_v54  ;;  %5852 = vmatprep.subr.bf16.mxu0 %v13306_v40  ;;  %5269 = vmatpush1.bf16.msra.mxu1 %v13301_v26  ;;  %v1381_v15 = vadd.f32 %v1380_v57, %v15344_v25 }
 0x2a8   :  { %v15605_v20 = vpack.c.bf16 %v15589_v46, %v2220_v55  ;;  %v1385_v4 = vadd.f32 %v1384_v19, %v15339_v59  ;;  %v12889_v35 = vpop.permute.xlu0 %12888  ;;  %v1386_v50 = vpop.f32.mrb[87].mxu0  ;;  %v12896_v39 = vunpack.i.h.bf16 %v12894_v42  ;;  %5270 = vmatprep.subr.bf16.mxu1 %v13309_v41  ;;  %v15613_v63 = vpack.c.bf16 %v2220_v55, %v15507_v23  ;;  %v13310_v19 = vld [vmem:[#allocation7 + $0x328] ss:$16 sps:$4 sm:$0xff]  }
 0x2a9   :  { %13018 = vrot.lane.b32.xlu0 %v13017_v51, %s14191_s5  ;;  %v12891_v37 = vunpack.i.h.bf16 %v12889_v35  ;;  %v1387_v61 = vadd.f32 %v1386_v50, %v15344_v25  ;;  %v12895_v38 = vunpack.i.l.bf16 %v12894_v42  ;;  %v12890_v16 = vunpack.i.l.bf16 %v12889_v35  ;;  %v13313_v42 = vld [vmem:[#allocation7 + $0x340] ss:$16 sps:$4 sm:$0xff]   ;;  %v13318_v50 = vld [vmem:[#allocation7 + $0x34c] ss:$16 sps:$4 sm:$0xff]  }
 0x2aa   :  { %16530 = vst [vmem:[#allocation49_spill] sm:$0xff] %v15605_v20  ;;  %v15616_v58 = vmax.f32 %v1379_v13, %v1385_v4  ;;  %5232 = vmatmul.mubr.bf16.gmra.mrb[56].mxu1 %v15605_v20  ;;  %5816 = vmatmul.mubr.bf16.gmra.mrb[104].mxu0 %v15605_v20  ;;  %v13032_v12 = vpack.i.bf16 %v15294_v17, %v15296_v47 }
 0x2ab   :  { %13023 = vrot.lane.b32.xlu1 %v13022_v56, %s14189_s13  ;;  %v1390_v3 = vpop.f32.mrb[88].mxu0  ;;  %v15623_v26 = vpop.permute.xlu1 %12903  ;;  %v13027_v23 = vpack.i.bf16 %v15278_v36, %v15274_v52  ;;  %v13037_v57 = vpack.i.bf16 %v15300_v53, %v15296_v47  ;;  %v15629_v40 = vmax.f32 %v1381_v15, %v1387_v61  ;;  %v13042_v55 = vpack.i.bf16 %v15298_v44, %v15300_v53  ;;  %v13319_v53 = vld [vmem:[#allocation7 + $0x360] ss:$16 sps:$4 sm:$0xff]  }
 0x2ac   :  { %v15631_v9 = vpop.permute.xlu0 %12898  ;;  %v1392_v41 = vpop.f32.mrb[89].mxu0  ;;  %5853 = vmatpush1.bf16.msra.mxu0 %v13304_v18  ;;  %5271 = vmatpush1.bf16.msra.mxu1 %v13307_v45  ;;  %v1927_v51 = vsel %vm1881_vm8, %v15248_v7, %v12891_v37  ;;  %v2143_v4 = vsel %vm1881_vm8, %v12891_v37, %v12896_v39  ;;  %v1926_v18 = vsel %vm1881_vm8, %v15226_v14, %v12890_v16  ;;  %v13321_v7 = vld [vmem:[#allocation7 + $0x364] ss:$16 sps:$4 sm:$0xff]   ;;  %v12906_v37 = vunpack.i.h.bf16 %v15623_v26 }
 0x2ad   :  { %13028 = vrot.lane.b32.xlu0 %v13027_v23, %s14191_s5  ;;  %5854 = vmatprep.subr.bf16.mxu0 %v13312_v32  ;;  %v2142_v45 = vsel %vm1881_vm8, %v12890_v16, %v12895_v38  ;;  %v12901_v61 = vunpack.i.h.bf16 %v15631_v9  ;;  %v1391_v39 = vadd.f32 %v1390_v3, %v15339_v59  ;;  %v12905_v15 = vunpack.i.l.bf16 %v15623_v26  ;;  %v13316_v3 = vld [vmem:[#allocation7 + $0x348] ss:$16 sps:$4 sm:$0xff]  }
 0x2ae   :  { %5272 = vmatprep.subr.bf16.mxu1 %v13315_v33  ;;  %v12900_v32 = vunpack.i.l.bf16 %v15631_v9  ;;  %v1393_v14 = vadd.f32 %v1392_v41, %v15344_v25  ;;  %v13324_v41 = vld [vmem:[#allocation7 + $0x36c] ss:$16 sps:$4 sm:$0xff]  }
 0x2af   :  { %13033 = vrot.lane.b32.xlu1 %v13032_v12, %s14199_s0  ;;  %v1396_v23 = vpop.f32.mrb[90].mxu0  ;;  %v12909_v35 = vpop.permute.xlu1 %12908  ;;  %v13062_v12 = vpack.i.bf16 %v15629_v40, %v15314_v1 }
 0x2b0   :  { %v1397_v38 = vadd.f32 %v1396_v23, %v15339_v59  ;;  %v12911_v16 = vunpack.i.h.bf16 %v12909_v35  ;;  %v12910_v56 = vunpack.i.l.bf16 %v12909_v35  ;;  %v12914_v33 = vpop.permute.xlu0 %12913  ;;  %v1398_v13 = vpop.f32.mrb[91].mxu0  ;;  %5855 = vmatpush1.bf16.msra.mxu0 %v13310_v19  ;;  %5273 = vmatpush1.bf16.msra.mxu1 %v13313_v42  ;;  %v1889_v23 = vsel %vm1881_vm8, %v15246_v11, %v12901_v61 }
 0x2b1   :  { %13038 = vrot.lane.b32.xlu0 %v13037_v57, %s14191_s5  ;;  %v12916_v26 = vunpack.i.h.bf16 %v12914_v33  ;;  %v12915_v20 = vunpack.i.l.bf16 %v12914_v33  ;;  %v1399_v9 = vadd.f32 %v1398_v13, %v15344_v25  ;;  %5856 = vmatprep.subr.bf16.mxu0 %v13318_v50 }
 0x2b2   :  { %v15662_v35 = vmax.f32 %v1391_v39, %v1397_v38  ;;  %v1938_v19 = vsel %vm1894_vm9, %v1926_v18, %v12910_v56  ;;  %v1939_v42 = vsel %vm1894_vm9, %v1927_v51, %v12911_v16  ;;  %5274 = vmatprep.subr.bf16.mxu1 %v13321_v7  ;;  %v2107_v39 = vsel %vm1881_vm8, %v12901_v61, %v12906_v37  ;;  %v16531_v38 = vld [vmem:[#allocation30_spill] sm:$0xff]  ;;  %v16532_v51 = vld [vmem:[#allocation32_spill] sm:$0xff] }
 0x2b3   :  { %v1950_v57 = vsel %vm1907_vm10, %v1938_v19, %v12915_v20  ;;  %v1951_v13 = vsel %vm1907_vm10, %v1939_v42, %v12916_v26  ;;  %v2154_v33 = vsel %vm1894_vm9, %v2142_v45, %v12915_v20  ;;  %v2155_v50 = vsel %vm1894_vm9, %v2143_v4, %v12916_v26  ;;  %13043 = vrot.lane.b32.xlu1 %v13042_v55, %s14189_s13  ;;  %v1402_v47 = vpop.f32.mrb[92].mxu0  ;;  %v12924_v11 = vpop.permute.xlu1 %12923  ;;  %v13322_v20 = vld [vmem:[#allocation7 + $0x368] ss:$16 sps:$4 sm:$0xff]   ;;  %v16533_v45 = vld [vmem:[#allocation28_spill] sm:$0xff] }
 0x2b4   :  { %v2166_v56 = vsel %vm1907_vm10, %v2154_v33, %v16531_v38  ;;  %v2167_v18 = vsel %vm1907_vm10, %v2155_v50, %v16532_v51  ;;  %v15676_v7 = vmax.f32 %v1393_v14, %v1399_v9  ;;  %v12919_v16 = vpop.permute.xlu0 %12918  ;;  %v1404_v19 = vpop.f32.mrb[93].mxu0  ;;  %5857 = vmatpush1.bf16.msra.mxu0 %v13316_v3  ;;  %v1888_v4 = vsel %vm1881_vm8, %v16533_v45, %v12900_v32 }
 0x2b5   :  { %v2227_v55 = vmax.f32 %v1950_v57, %v2166_v56  ;;  %v15680_v26 = vmax.f32 %v1951_v13, %v2167_v18  ;;  %v12926_v42 = vunpack.i.h.bf16 %v12924_v11  ;;  %v16534_v61 = vpack.i.bf16 %v15298_v44, %v15294_v17  ;;  %5858 = vmatprep.subr.bf16.mxu0 %v13324_v41  ;;  %5275 = vmatpush1.bf16.msra.mxu1 %v13319_v53  ;;  %v13330_v18 = vld [vmem:[#allocation7 + $0x38c] ss:$16 sps:$4 sm:$0xff]  }
 0x2b6   :  { %v2106_v37 = vsel %vm1881_vm8, %v12900_v32, %v12905_v15  ;;  %v12925_v14 = vunpack.i.l.bf16 %v12924_v11  ;;  %v12921_v9 = vunpack.i.h.bf16 %v12919_v16  ;;  %v12920_v33 = vunpack.i.l.bf16 %v12919_v16  ;;  %v13327_v15 = vld [vmem:[#allocation7 + $0x384] ss:$16 sps:$4 sm:$0xff]  }
 0x2b7   :  { %13048 = vrot.lane.b32.xlu0 %v16534_v61, %s14191_s5  ;;  %v15688_v3 = vpack.c.bf16 %v15680_v26, %v2227_v55  ;;  %v1403_v57 = vadd.f32 %v1402_v47, %v15339_v59  ;;  %v2119_v13 = vsel %vm1894_vm9, %v2107_v39, %v12926_v42  ;;  %v1405_v50 = vadd.f32 %v1404_v19, %v15344_v25  ;;  %v1408_v41 = vpop.f32.mrb[94].mxu0  ;;  %v16536_v11 = vld [vmem:[#allocation31_spill] sm:$0xff]  ;;  %v13325_v39 = vld [vmem:[#allocation7 + $0x380] ss:$16 sps:$4 sm:$0xff]   ;;  %v16537_v16 = vld [vmem:[#allocation29_spill] sm:$0xff] }
 0x2b8   :  { %v16535_v38 = vpack.i.bf16 %v15616_v58, %v15310_v48  ;;  %v2118_v32 = vsel %vm1894_vm9, %v2106_v37, %v12925_v14  ;;  %v2131_v53 = vsel %vm1907_vm10, %v2119_v13, %v16536_v11  ;;  %v1901_v56 = vsel %vm1894_vm9, %v1888_v4, %v12920_v33  ;;  %v1410_v51 = vpop.f32.mrb[95].mxu0  ;;  %5859 = vmatpush1.bf16.msra.mxu0 %v13322_v20  ;;  %v13328_v4 = vld [vmem:[#allocation7 + $0x388] ss:$16 sps:$4 sm:$0xff]   ;;  %v13342_v11 = vld [vmem:[#allocation7 + $0x3cc] ss:$16 sps:$4 sm:$0xff]  }
 0x2b9   :  { %v1902_v47 = vsel %vm1894_vm9, %v1889_v23, %v12921_v9  ;;  %v2130_v19 = vsel %vm1907_vm10, %v2118_v32, %v16537_v16  ;;  %v1914_v45 = vsel %vm1907_vm10, %v1901_v56, %v12925_v14  ;;  %v1409_v37 = vadd.f32 %v1408_v41, %v15339_v59  ;;  %5241 = vmatprep.mubr.bf16.mxu1 %v15688_v3  ;;  %v13336_v41 = vld [vmem:[#allocation7 + $0x3ac] ss:$16 sps:$4 sm:$0xff]   ;;  %v13339_v32 = vld [vmem:[#allocation7 + $0x3c4] ss:$16 sps:$4 sm:$0xff]   ;;  %v13340_v56 = vld [vmem:[#allocation7 + $0x3c8] ss:$16 sps:$4 sm:$0xff]  }
 0x2ba   :  { %13058 = vrot.lane.b32.xlu1 %v16535_v38, %s14199_s0  ;;  %v1915_v61 = vsel %vm1907_vm10, %v1902_v47, %v12926_v42  ;;  %v16538_v13 = vpack.i.bf16 %v15314_v1, %v15310_v48  ;;  %v2226_v23 = vmax.f32 %v1914_v45, %v2130_v19  ;;  %v1411_v20 = vadd.f32 %v1410_v51, %v15344_v25  ;;  %v13333_v25 = vld [vmem:[#allocation7 + $0x3a4] ss:$16 sps:$4 sm:$0xff]   ;;  %v13343_v45 = vld [vmem:[#allocation7 + $0x3e0] ss:$16 sps:$4 sm:$0xff]  }
 0x2bb   :  { %v15711_v9 = vmax.f32 %v1915_v61, %v2131_v53  ;;  %5825 = vmatprep.mubr.bf16.mxu0 %v15688_v3  ;;  %v15716_v14 = vmax.f32 %v1403_v57, %v1409_v37  ;;  %v13067_v59 = vpack.i.bf16 %v15629_v40, %v15616_v58  ;;  %5276 = vmatprep.subr.bf16.mxu1 %v13327_v15  ;;  %v13334_v15 = vld [vmem:[#allocation7 + $0x3a8] ss:$16 sps:$4 sm:$0xff]   ;;  %v13337_v53 = vld [vmem:[#allocation7 + $0x3c0] ss:$16 sps:$4 sm:$0xff]   ;;  %v13345_v51 = vld [vmem:[#allocation7 + $0x3e4] ss:$16 sps:$4 sm:$0xff]  }
 0x2bc   :  { %13053 = vrot.lane.b32.xlu0 %v16538_v13, %s14191_s5  ;;  %v15722_v42 = vpack.c.bf16 %v2227_v55, %v15567_v28  ;;  %v15727_v38 = vmax.f32 %v1405_v50, %v1411_v20  ;;  %5860 = vmatprep.subr.bf16.mxu0 %v13330_v18  ;;  %v15730_v57 = vpack.c.bf16 %v2226_v23, %v15589_v46  ;;  %v16541_v28 = vld [vmem:[#allocation35_spill] sm:$0xff]  ;;  %v13331_v50 = vld [vmem:[#allocation7 + $0x3a0] ss:$16 sps:$4 sm:$0xff]   ;;  %v16544_v16 = vld [vmem:[#allocation37_spill] sm:$0xff] }
 0x2bd   :  { %16539 = vst [vmem:[#allocation30_spill] sm:$0xff] %v15716_v14  ;;  %v15725_v33 = vpack.c.bf16 %v15711_v9, %v2226_v23  ;;  %5277 = vmatpush1.bf16.msra.mxu1 %v13325_v39  ;;  %5861 = vmatpush1.bf16.msra.mxu0 %v13328_v4  ;;  %v13072_v55 = vpack.i.bf16 %v16541_v28, %v15662_v35  ;;  %v13348_v39 = vld [vmem:[#allocation7 + $0x3ec] ss:$16 sps:$4 sm:$0xff]   ;;  %v13346_v61 = vld [vmem:[#allocation7 + $0x3e8] ss:$16 sps:$4 sm:$0xff]  }
 0x2be   :  { %13063 = vrot.lane.b32.xlu1 %v13062_v12, %s14189_s13  ;;  %16540 = vst [vmem:[#allocation32_spill] sm:$0xff] %v15727_v38  ;;  %v2247_v12 = vpack.c.bf16 %v15505_v60, %v15423_v34  ;;  %v13077_v46 = vpack.i.bf16 %v15676_v7, %v15662_v35  ;;  %5278 = vmatprep.subr.bf16.mxu1 %v13333_v25  ;;  %v16542_v34 = vld [vmem:[#allocation36_spill] sm:$0xff]  ;;  %v16543_v18 = vld [vmem:[#allocation38_spill] sm:$0xff]  ;;  %v16546_v20 = vld [vmem:[#allocation39_spill] sm:$0xff] }
 0x2bf   :  { %5242 = vmatmul.mubr.bf16.gmra.mrb[60].mxu1 %v15725_v33  ;;  %5826 = vmatmul.mubr.bf16.gmra.mrb[108].mxu0 %v15725_v33  ;;  %v13082_v60 = vpack.i.bf16 %v16542_v34, %v15676_v7  ;;  %v13087_v47 = vpack.i.bf16 %v16542_v34, %v16541_v28  ;;  %v13092_v19 = vpack.i.bf16 %v16544_v16, %v16543_v18  ;;  %v16545_v37 = vld [vmem:[#allocation40_spill] sm:$0xff] }
 0x2c0   :  { %13068 = vrot.lane.b32.xlu0 %v13067_v59, %s14191_s5  ;;  %5284 = vmatprep.mubr.bf16.mxu1 %v2247_v12  ;;  %v13097_v13 = vpack.i.bf16 %v16545_v37, %v16543_v18  ;;  %v13351_v4 = vld [vmem:[#allocation7 + $0x404] ss:$16 sps:$4 sm:$0xff]   ;;  %v13354_v23 = vld [vmem:[#allocation7 + $0x40c] ss:$16 sps:$4 sm:$0xff]   ;;  %v13102_v59 = vpack.i.bf16 %v16546_v20, %v16545_v37  ;;  %v13107_v25 = vpack.i.bf16 %v16546_v20, %v16544_v16 }
 0x2c1   :  { %5868 = vmatprep.mubr.bf16.mxu0 %v2247_v12  ;;  %5862 = vmatprep.subr.bf16.mxu0 %v13336_v41  ;;  %v13112_v12 = vpack.i.bf16 %v15727_v38, %v15716_v14 }
 0x2c2   :  { %13073 = vrot.lane.b32.xlu1 %v13072_v55, %s14199_s0  ;;  %5279 = vmatpush1.bf16.msra.mxu1 %v13331_v50 }
 0x2c3   :  { %5863 = vmatpush1.bf16.msra.mxu0 %v13334_v15  ;;  %5280 = vmatprep.subr.bf16.mxu1 %v13339_v32 }
 0x2c4   :  { %13078 = vrot.lane.b32.xlu0 %v13077_v46, %s14191_s5  ;;  %5864 = vmatprep.subr.bf16.mxu0 %v13342_v11 }
 0x2c6   :  { %13083 = vrot.lane.b32.xlu1 %v13082_v60, %s14189_s13  ;;  %5281 = vmatpush1.bf16.msra.mxu1 %v13337_v53 }
 0x2c7   :  { %5865 = vmatpush1.bf16.msra.mxu0 %v13340_v56  ;;  %5282 = vmatprep.subr.bf16.mxu1 %v13345_v51 }
 0x2c8   :  { %13088 = vrot.lane.b32.xlu0 %v13087_v47, %s14191_s5  ;;  %5866 = vmatprep.subr.bf16.mxu0 %v13348_v39 }
 0x2ca   :  { %13093 = vrot.lane.b32.xlu1 %v13092_v19, %s14199_s0  ;;  %5283 = vmatpush1.bf16.msra.mxu1 %v13343_v45  ;;  %v16547_v45 = vld [vmem:[#allocation43_spill] sm:$0xff] }
 0x2cb   :  { %5867 = vmatpush1.bf16.msra.mxu0 %v13346_v61  ;;  %5325 = vmatprep.subr.bf16.mxu1 %v13351_v4 }
 0x2cc   :  { %13098 = vrot.lane.b32.xlu0 %v13097_v13, %s14191_s5  ;;  %5909 = vmatprep.subr.bf16.mxu0 %v13354_v23  ;;  %v16548_v13 = vld [vmem:[#allocation41_spill] sm:$0xff] }
 0x2ce   :  { %13103 = vrot.lane.b32.xlu1 %v13102_v59, %s14189_s13 }
 0x2d0   :  { %13108 = vrot.lane.b32.xlu0 %v13107_v25, %s14191_s5  ;;  %v16549_v25 = vld [vmem:[#allocation42_spill] sm:$0xff] }
 0x2d2   :  { %1783 = vrot.lane.b32.xlu1 %v15716_v14, %s14199_s0  ;;  %v13378_v14 = vld [vmem:[#allocation7 + $0x48c] ss:$16 sps:$4 sm:$0xff]  }
 0x2d4   :  { %13113 = vrot.lane.b32.xlu0 %v13112_v12, %s14191_s5 }
 0x2d6   :  { %1867 = vrot.lane.b32.xlu1 %v15727_v38, %s14189_s13  ;;  %s14201_s13 = smov [#allocation16]  }
 0x2e0   :  { %v12934_v41 = vpop.permute.xlu1 %12933  ;;  %v12929_v55 = vpop.permute.xlu0 %12928 }
 0x2e1   :  { %v12936_v50 = vunpack.i.h.bf16 %v12934_v41  ;;  %v12935_v15 = vunpack.i.l.bf16 %v12934_v41  ;;  %v12931_v46 = vunpack.i.h.bf16 %v12929_v55  ;;  %v12930_v32 = vunpack.i.l.bf16 %v12929_v55  ;;  %v16550_v41 = vld [vmem:[#allocation44_spill] sm:$0xff] }
 0x2e3   :  { %v2173_v47 = vsel %vm1881_vm8, %v12931_v46, %v12936_v50  ;;  %v2172_v51 = vsel %vm1881_vm8, %v12930_v32, %v12935_v15  ;;  %v1957_v61 = vsel %vm1881_vm8, %v16547_v45, %v12931_v46  ;;  %v1956_v4 = vsel %vm1881_vm8, %v16548_v13, %v12930_v32  ;;  %v13352_v45 = vld [vmem:[#allocation7 + $0x408] ss:$16 sps:$4 sm:$0xff]  }
 0x2e4   :  { %v12944_v11 = vpop.permute.xlu1 %12943  ;;  %v12939_v56 = vpop.permute.xlu0 %12938 }
 0x2e5   :  { %v12946_v60 = vunpack.i.h.bf16 %v12944_v11  ;;  %v12945_v53 = vunpack.i.l.bf16 %v12944_v11  ;;  %v12941_v39 = vunpack.i.h.bf16 %v12939_v56  ;;  %v12940_v19 = vunpack.i.l.bf16 %v12939_v56 }
 0x2e7   :  { %v2184_v23 = vsel %vm1894_vm9, %v2172_v51, %v12945_v53  ;;  %v2185_v59 = vsel %vm1894_vm9, %v2173_v47, %v12946_v60  ;;  %v1968_v50 = vsel %vm1894_vm9, %v1956_v4, %v12940_v19  ;;  %v1969_v15 = vsel %vm1894_vm9, %v1957_v61, %v12941_v39  ;;  %v13349_v51 = vld [vmem:[#allocation7 + $0x400] ss:$16 sps:$4 sm:$0xff]   ;;  %v13366_v61 = vld [vmem:[#allocation7 + $0x44c] ss:$16 sps:$4 sm:$0xff]  }
 0x2e8   :  { %v2196_v12 = vsel %vm1907_vm10, %v2184_v23, %v16549_v25  ;;  %v2197_v55 = vsel %vm1907_vm10, %v2185_v59, %v16550_v41  ;;  %v1980_v11 = vsel %vm1907_vm10, %v1968_v50, %v12945_v53  ;;  %v1981_v46 = vsel %vm1907_vm10, %v1969_v15, %v12946_v60  ;;  %v15787_v13 = vpop.permute.xlu1 %12948  ;;  %v13357_v23 = vld [vmem:[#allocation7 + $0x424] ss:$16 sps:$4 sm:$0xff]   ;;  %v13360_v25 = vld [vmem:[#allocation7 + $0x42c] ss:$16 sps:$4 sm:$0xff]   ;;  %v13355_v19 = vld [vmem:[#allocation7 + $0x420] ss:$16 sps:$4 sm:$0xff]  }
 0x2e9   :  { %v2210_v56 = vmax.f32 %v1980_v11, %v2196_v12  ;;  %v15784_v32 = vmax.f32 %v1981_v46, %v2197_v55  ;;  %v13358_v53 = vld [vmem:[#allocation7 + $0x428] ss:$16 sps:$4 sm:$0xff]   ;;  %v13363_v60 = vld [vmem:[#allocation7 + $0x444] ss:$16 sps:$4 sm:$0xff]   ;;  %v13361_v50 = vld [vmem:[#allocation7 + $0x440] ss:$16 sps:$4 sm:$0xff]  }
 0x2ea   :  { %v13364_v15 = vld [vmem:[#allocation7 + $0x448] ss:$16 sps:$4 sm:$0xff]   ;;  %v13369_v11 = vld [vmem:[#allocation7 + $0x464] ss:$16 sps:$4 sm:$0xff]   ;;  %v13372_v46 = vld [vmem:[#allocation7 + $0x46c] ss:$16 sps:$4 sm:$0xff]  }
 0x2eb   :  { %v2246_v47 = vpack.c.bf16 %v15784_v32, %v2210_v56 }
 0x2ed   :  { %5285 = vmatmul.mubr.bf16.vlgmr.msra.gmra.mrb[48].mxu1 %v2246_v47  ;;  %5869 = vmatmul.mubr.bf16.vlgmr.msra.gmra.mrb[96].mxu0 %v2246_v47 }
 0x2ee   :  { %5326 = vmatpush1.bf16.msra.mxu1 %v13349_v51  ;;  %5910 = vmatpush1.bf16.msra.mxu0 %v13352_v45 }
 0x2ef   :  { %5294 = vmatprep.mubr.bf16.mxu1 %v15613_v63  ;;  %5878 = vmatprep.mubr.bf16.mxu0 %v15613_v63 }
 0x2f0   :  { %v12954_v39 = vpop.permute.xlu0 %12953  ;;  %v12959_v4 = vpop.permute.xlu1 %12958  ;;  %5327 = vmatprep.subr.bf16.mxu1 %v13357_v23  ;;  %5911 = vmatprep.subr.bf16.mxu0 %v13360_v25 }
 0x2f1   :  { %v12956_v59 = vunpack.i.h.bf16 %v12954_v39  ;;  %v12961_v12 = vunpack.i.h.bf16 %v12959_v4  ;;  %v12960_v41 = vunpack.i.l.bf16 %v12959_v4  ;;  %v12955_v55 = vunpack.i.l.bf16 %v12954_v39 }
 0x2f2   :  { %5328 = vmatpush1.bf16.msra.mxu1 %v13355_v19  ;;  %5912 = vmatpush1.bf16.msra.mxu0 %v13358_v53  ;;  %v13367_v53 = vld [vmem:[#allocation7 + $0x460] ss:$16 sps:$4 sm:$0xff]  }
 0x2f3   :  { %5329 = vmatprep.subr.bf16.mxu1 %v13363_v60  ;;  %5913 = vmatprep.subr.bf16.mxu0 %v13366_v61  ;;  %v1959_v51 = vsel %vm1881_vm8, %v15407_v5, %v12956_v59  ;;  %v2175_v25 = vsel %vm1881_vm8, %v12956_v59, %v12961_v12  ;;  %v2174_v4 = vsel %vm1881_vm8, %v12955_v55, %v12960_v41  ;;  %v13370_v60 = vld [vmem:[#allocation7 + $0x468] ss:$16 sps:$4 sm:$0xff]   ;;  %v16552_v41 = vld [vmem:[#allocation46_spill] sm:$0xff] }
 0x2f4   :  { %v1958_v61 = vsel %vm1881_vm8, %v15376_v30, %v12955_v55  ;;  %v16551_v59 = vld [vmem:[#allocation45_spill] sm:$0xff] }
 0x2f5   :  { %v12969_v56 = vpop.permute.xlu1 %12968  ;;  %v12964_v23 = vpop.permute.xlu0 %12963 }
 0x2f6   :  { %v12971_v45 = vunpack.i.h.bf16 %v12969_v56  ;;  %v12970_v47 = vunpack.i.l.bf16 %v12969_v56  ;;  %v12966_v39 = vunpack.i.h.bf16 %v12964_v23  ;;  %v12965_v19 = vunpack.i.l.bf16 %v12964_v23  ;;  %5330 = vmatpush1.bf16.msra.mxu1 %v13361_v50  ;;  %5914 = vmatpush1.bf16.msra.mxu0 %v13364_v15  ;;  %v13375_v56 = vld [vmem:[#allocation7 + $0x484] ss:$16 sps:$4 sm:$0xff]  }
 0x2f7   :  { %5331 = vmatprep.subr.bf16.mxu1 %v13369_v11  ;;  %5915 = vmatprep.subr.bf16.mxu0 %v13372_v46 }
 0x2f8   :  { %v2186_v38 = vsel %vm1894_vm9, %v2174_v4, %v12970_v47  ;;  %v2187_v5 = vsel %vm1894_vm9, %v2175_v25, %v12971_v45  ;;  %v1970_v15 = vsel %vm1894_vm9, %v1958_v61, %v12965_v19  ;;  %v1971_v23 = vsel %vm1894_vm9, %v1959_v51, %v12966_v39  ;;  %v13373_v25 = vld [vmem:[#allocation7 + $0x480] ss:$16 sps:$4 sm:$0xff]   ;;  %v13381_v19 = vld [vmem:[#allocation7 + $0x4a4] ss:$16 sps:$4 sm:$0xff]   ;;  %v13384_v51 = vld [vmem:[#allocation7 + $0x4ac] ss:$16 sps:$4 sm:$0xff]  }
 0x2f9   :  { %v2198_v12 = vsel %vm1907_vm10, %v2186_v38, %v16551_v59  ;;  %v2199_v50 = vsel %vm1907_vm10, %v2187_v5, %v16552_v41  ;;  %v1982_v30 = vsel %vm1907_vm10, %v1970_v15, %v12970_v47  ;;  %v1983_v55 = vsel %vm1907_vm10, %v1971_v23, %v12971_v45  ;;  %v13376_v38 = vld [vmem:[#allocation7 + $0x488] ss:$16 sps:$4 sm:$0xff]   ;;  %v13379_v47 = vld [vmem:[#allocation7 + $0x4a0] ss:$16 sps:$4 sm:$0xff]   ;;  %v13393_v15 = vld [vmem:[#allocation7 + $0x4e4] ss:$16 sps:$4 sm:$0xff]  }
 0x2fa   :  { %5332 = vmatpush1.bf16.msra.mxu1 %v13367_v53  ;;  %5916 = vmatpush1.bf16.msra.mxu0 %v13370_v60  ;;  %v15807_v11 = vmax.f32 %v1982_v30, %v2198_v12  ;;  %v15809_v46 = vmax.f32 %v1983_v55, %v2199_v50  ;;  %v13382_v39 = vld [vmem:[#allocation7 + $0x4a8] ss:$16 sps:$4 sm:$0xff]   ;;  %v13390_v53 = vld [vmem:[#allocation7 + $0x4cc] ss:$16 sps:$4 sm:$0xff]   ;;  %v13385_v12 = vld [vmem:[#allocation7 + $0x4c0] ss:$16 sps:$4 sm:$0xff]  }
 0x2fb   :  { %5333 = vmatprep.subr.bf16.mxu1 %v13375_v56  ;;  %5917 = vmatprep.subr.bf16.mxu0 %v13378_v14  ;;  %v13387_v14 = vld [vmem:[#allocation7 + $0x4c4] ss:$16 sps:$4 sm:$0xff]   ;;  %v13388_v41 = vld [vmem:[#allocation7 + $0x4c8] ss:$16 sps:$4 sm:$0xff]  }
 0x2fc   :  { %v15813_v4 = vpack.c.bf16 %v15809_v46, %v15807_v11 }
 0x2fe   :  { %5295 = vmatmul.mubr.bf16.gmra.mrb[52].mxu1 %v15813_v4  ;;  %5879 = vmatmul.mubr.bf16.gmra.mrb[100].mxu0 %v15813_v4 }
 0x2ff   :  { %5334 = vmatpush1.bf16.msra.mxu1 %v13373_v25  ;;  %5918 = vmatpush1.bf16.msra.mxu0 %v13376_v38  ;;  %v13396_v38 = vld [vmem:[#allocation7 + $0x4ec] ss:$16 sps:$4 sm:$0xff]  }
 0x300   :  { %v12974_v45 = vpop.permute.xlu0 %12973  ;;  %5304 = vmatprep.mubr.bf16.mxu1 %v15730_v57  ;;  %5888 = vmatprep.mubr.bf16.mxu0 %v15730_v57 }
 0x301   :  { %v12979_v60 = vpop.permute.xlu1 %12978  ;;  %v12976_v61 = vunpack.i.h.bf16 %v12974_v45  ;;  %5335 = vmatprep.subr.bf16.mxu1 %v13381_v19  ;;  %5919 = vmatprep.subr.bf16.mxu0 %v13384_v51  ;;  %v12975_v56 = vunpack.i.l.bf16 %v12974_v45 }
 0x302   :  { %v12981_v5 = vunpack.i.h.bf16 %v12979_v60  ;;  %v12980_v59 = vunpack.i.l.bf16 %v12979_v60  ;;  %v13394_v60 = vld [vmem:[#allocation7 + $0x4e8] ss:$16 sps:$4 sm:$0xff]  }
 0x303   :  { %5336 = vmatpush1.bf16.msra.mxu1 %v13379_v47  ;;  %5920 = vmatpush1.bf16.msra.mxu0 %v13382_v39  ;;  %v1961_v23 = vsel %vm1881_vm8, %v15459_v29, %v12976_v61  ;;  %v1960_v51 = vsel %vm1881_vm8, %v15437_v49, %v12975_v56  ;;  %v13391_v29 = vld [vmem:[#allocation7 + $0x4e0] ss:$16 sps:$4 sm:$0xff]  }
 0x304   :  { %5337 = vmatprep.subr.bf16.mxu1 %v13387_v14  ;;  %5921 = vmatprep.subr.bf16.mxu0 %v13390_v53  ;;  %v2177_v19 = vsel %vm1881_vm8, %v12976_v61, %v12981_v5  ;;  %v2176_v39 = vsel %vm1881_vm8, %v12975_v56, %v12980_v59  ;;  %v13399_v5 = vld [vmem:[#allocation7 + $0x504] ss:$16 sps:$4 sm:$0xff]  }
 0x306   :  { %v12984_v50 = vpop.permute.xlu0 %12983  ;;  %v12989_v30 = vpop.permute.xlu1 %12988 }
 0x307   :  { %v12986_v55 = vunpack.i.h.bf16 %v12984_v50  ;;  %v12985_v25 = vunpack.i.l.bf16 %v12984_v50  ;;  %v12991_v45 = vunpack.i.h.bf16 %v12989_v30  ;;  %v12990_v47 = vunpack.i.l.bf16 %v12989_v30  ;;  %5338 = vmatpush1.bf16.msra.mxu1 %v13385_v12  ;;  %5922 = vmatpush1.bf16.msra.mxu0 %v13388_v41  ;;  %v13402_v41 = vld [vmem:[#allocation7 + $0x50c] ss:$16 sps:$4 sm:$0xff]  }
 0x308   :  { %5339 = vmatprep.subr.bf16.mxu1 %v13393_v15  ;;  %5923 = vmatprep.subr.bf16.mxu0 %v13396_v38  ;;  %v13405_v38 = vld [vmem:[#allocation7 + $0x524] ss:$16 sps:$4 sm:$0xff]  }
 0x309   :  { %v1972_v14 = vsel %vm1894_vm9, %v1960_v51, %v12985_v25  ;;  %v1973_v53 = vsel %vm1894_vm9, %v1961_v23, %v12986_v55  ;;  %v2188_v50 = vsel %vm1894_vm9, %v2176_v39, %v12990_v47  ;;  %v2189_v20 = vsel %vm1894_vm9, %v2177_v19, %v12991_v45  ;;  %v13397_v25 = vld [vmem:[#allocation7 + $0x500] ss:$16 sps:$4 sm:$0xff]   ;;  %v13400_v19 = vld [vmem:[#allocation7 + $0x508] ss:$16 sps:$4 sm:$0xff]   ;;  %v13408_v51 = vld [vmem:[#allocation7 + $0x52c] ss:$16 sps:$4 sm:$0xff]  }
 0x30a   :  { %v1984_v61 = vsel %vm1907_vm10, %v1972_v14, %v12990_v47  ;;  %v1985_v49 = vsel %vm1907_vm10, %v1973_v53, %v12991_v45  ;;  %v2200_v56 = vsel %vm1907_vm10, %v2188_v50, %v15439_v0  ;;  %v2201_v59 = vsel %vm1907_vm10, %v2189_v20, %v15473_v27  ;;  %v12994_v12 = vpop.permute.xlu0 %12993 }
 0x30b   :  { %v15835_v23 = vmax.f32 %v1984_v61, %v2200_v56  ;;  %v15837_v30 = vmax.f32 %v1985_v49, %v2201_v59  ;;  %v12995_v55 = vunpack.i.l.bf16 %v12994_v12  ;;  %5340 = vmatpush1.bf16.msra.mxu1 %v13391_v29  ;;  %5924 = vmatpush1.bf16.msra.mxu0 %v13394_v60  ;;  %v12996_v0 = vunpack.i.h.bf16 %v12994_v12  ;;  %v13406_v60 = vld [vmem:[#allocation7 + $0x528] ss:$16 sps:$4 sm:$0xff]   ;;  %v13414_v56 = vld [vmem:[#allocation7 + $0x54c] ss:$16 sps:$4 sm:$0xff]  }
 0x30c   :  { %5341 = vmatprep.subr.bf16.mxu1 %v13399_v5  ;;  %v12951_v45 = vunpack.i.h.bf16 %v15787_v13  ;;  %v12950_v47 = vunpack.i.l.bf16 %v15787_v13  ;;  %5925 = vmatprep.subr.bf16.mxu0 %v13402_v41  ;;  %v13411_v5 = vld [vmem:[#allocation7 + $0x544] ss:$16 sps:$4 sm:$0xff]  }
 0x30d   :  { %v15841_v15 = vpack.c.bf16 %v15837_v30, %v15835_v23  ;;  %v1890_v27 = vsel %vm1881_vm8, %v15272_v31, %v12995_v55  ;;  %v13403_v31 = vld [vmem:[#allocation7 + $0x520] ss:$16 sps:$4 sm:$0xff]   ;;  %v1962_v50 = vsel %vm1881_vm8, %v15503_v24, %v12996_v0 }
 0x30e   :  { %v1776_v20 = vpop.permute.xlu1 %1775  ;;  %v12999_v39 = vpop.permute.xlu0 %12998  ;;  %v2108_v53 = vsel %vm1881_vm8, %v12995_v55, %v12950_v47  ;;  %v1903_v29 = vsel %vm1894_vm9, %v1890_v27, %v12951_v45  ;;  %v13409_v47 = vld [vmem:[#allocation7 + $0x540] ss:$16 sps:$4 sm:$0xff]  }
 0x30f   :  { %v13000_v14 = vunpack.i.l.bf16 %v12999_v39  ;;  %5305 = vmatmul.mubr.bf16.gmra.mrb[56].mxu1 %v15841_v15  ;;  %5889 = vmatmul.mubr.bf16.gmra.mrb[104].mxu0 %v15841_v15  ;;  %v1963_v12 = vsel %vm1881_vm8, %v15533_v2, %v1776_v20 }
 0x310   :  { %5342 = vmatpush1.bf16.msra.mxu1 %v13397_v25  ;;  %5926 = vmatpush1.bf16.msra.mxu0 %v13400_v19  ;;  %v13001_v19 = vunpack.i.h.bf16 %v12999_v39 }
 0x311   :  { %v1916_v13 = vsel %vm1907_vm10, %v1903_v29, %v13000_v14  ;;  %v2120_v61 = vsel %vm1894_vm9, %v2108_v53, %v13000_v14  ;;  %5343 = vmatprep.subr.bf16.mxu1 %v13405_v38  ;;  %5927 = vmatprep.subr.bf16.mxu0 %v13408_v51  ;;  %v13412_v53 = vld [vmem:[#allocation7 + $0x548] ss:$16 sps:$4 sm:$0xff]  }
 0x312   :  { %v13009_v49 = vpop.permute.xlu1 %13008  ;;  %v2132_v59 = vsel %vm1907_vm10, %v2120_v61, %v15276_v62  ;;  %v13004_v41 = vpop.permute.xlu0 %13003 }
 0x313   :  { %v13011_v55 = vunpack.i.h.bf16 %v13009_v49  ;;  %v13010_v25 = vunpack.i.l.bf16 %v13009_v49  ;;  %v15859_v24 = vmax.f32 %v1916_v13, %v2132_v59  ;;  %v13006_v27 = vunpack.i.h.bf16 %v13004_v41  ;;  %v13423_v59 = vld [vmem:[#allocation7 + $0x584] ss:$16 sps:$4 sm:$0xff]  }
 0x314   :  { %v13005_v45 = vunpack.i.l.bf16 %v13004_v41  ;;  %5344 = vmatpush1.bf16.msra.mxu1 %v13403_v31  ;;  %5928 = vmatpush1.bf16.msra.mxu0 %v13406_v60  ;;  %v13417_v60 = vld [vmem:[#allocation7 + $0x564] ss:$16 sps:$4 sm:$0xff]   ;;  %v2249_v41 = vpack.c.bf16 %v15807_v11, %v15784_v32  ;;  %v13436_v32 = vld [vmem:[#allocation7 + $0x5c8] ss:$16 sps:$4 sm:$0xff]  }
 0x315   :  { %v1974_v38 = vsel %vm1894_vm9, %v1962_v50, %v13010_v25  ;;  %v1975_v51 = vsel %vm1894_vm9, %v1963_v12, %v13011_v55  ;;  %v2179_v2 = vsel %vm1881_vm8, %v1776_v20, %v13006_v27  ;;  %5345 = vmatprep.subr.bf16.mxu1 %v13411_v5  ;;  %5929 = vmatprep.subr.bf16.mxu0 %v13414_v56  ;;  %v13420_v50 = vld [vmem:[#allocation7 + $0x56c] ss:$16 sps:$4 sm:$0xff]   ;;  %v13415_v5 = vld [vmem:[#allocation7 + $0x560] ss:$16 sps:$4 sm:$0xff]   ;;  %v13418_v56 = vld [vmem:[#allocation7 + $0x568] ss:$16 sps:$4 sm:$0xff]  }
 0x316   :  { %v2178_v62 = vsel %vm1881_vm8, %v12996_v0, %v13005_v45  ;;  %v1986_v14 = vsel %vm1907_vm10, %v1974_v38, %v13001_v19  ;;  %v1860_v29 = vpop.permute.xlu0 %1859  ;;  %v15869_v31 = vpack.c.bf16 %v15859_v24, %v15711_v9  ;;  %v13421_v12 = vld [vmem:[#allocation7 + $0x580] ss:$16 sps:$4 sm:$0xff]   ;;  %v13424_v55 = vld [vmem:[#allocation7 + $0x588] ss:$16 sps:$4 sm:$0xff]   ;;  %v13429_v25 = vld [vmem:[#allocation7 + $0x5a4] ss:$16 sps:$4 sm:$0xff]  }
 0x317   :  { %v2190_v39 = vsel %vm1894_vm9, %v2178_v62, %v13001_v19  ;;  %v1987_v13 = vsel %vm1907_vm10, %v1975_v51, %v1860_v29  ;;  %v2191_v0 = vsel %vm1894_vm9, %v2179_v2, %v1860_v29  ;;  %v13432_v19 = vld [vmem:[#allocation7 + $0x5ac] ss:$16 sps:$4 sm:$0xff]   ;;  %v13427_v27 = vld [vmem:[#allocation7 + $0x5a0] ss:$16 sps:$4 sm:$0xff]   ;;  %v13430_v45 = vld [vmem:[#allocation7 + $0x5a8] ss:$16 sps:$4 sm:$0xff]  }
 0x318   :  { %v2202_v61 = vsel %vm1907_vm10, %v2190_v39, %v15509_v8  ;;  %v2203_v20 = vsel %vm1907_vm10, %v2191_v0, %v15544_v43  ;;  %5314 = vmatprep.mubr.bf16.mxu1 %v15869_v31  ;;  %5346 = vmatpush1.bf16.msra.mxu1 %v13409_v47  ;;  %v13426_v43 = vld [vmem:[#allocation7 + $0x58c] ss:$16 sps:$4 sm:$0xff]   ;;  %v13435_v38 = vld [vmem:[#allocation7 + $0x5c4] ss:$16 sps:$4 sm:$0xff]   ;;  %v13433_v47 = vld [vmem:[#allocation7 + $0x5c0] ss:$16 sps:$4 sm:$0xff]  }
 0x319   :  { %v15877_v49 = vmax.f32 %v1986_v14, %v2202_v61  ;;  %v15880_v9 = vmax.f32 %v1987_v13, %v2203_v20  ;;  %5898 = vmatprep.mubr.bf16.mxu0 %v15869_v31  ;;  %5930 = vmatpush1.bf16.msra.mxu0 %v13412_v53  ;;  %v13438_v51 = vld [vmem:[#allocation7 + $0x5cc] ss:$16 sps:$4 sm:$0xff]   ;;  %v13441_v11 = vld [vmem:[#allocation7 + $0x5e4] ss:$16 sps:$4 sm:$0xff]   ;;  %v15891_v14 = vpop.permute.xlu1 %13013  ;;  %v13439_v2 = vld [vmem:[#allocation7 + $0x5e0] ss:$16 sps:$4 sm:$0xff]   ;;  %v15897_v61 = vpack.c.bf16 %v15835_v23, %v15809_v46 }
 0x31a   :  { %5347 = vmatprep.subr.bf16.mxu1 %v13417_v60  ;;  %5931 = vmatprep.subr.bf16.mxu0 %v13420_v50  ;;  %v13444_v62 = vld [vmem:[#allocation7 + $0x5ec] ss:$16 sps:$4 sm:$0xff]   ;;  %v13442_v53 = vld [vmem:[#allocation7 + $0x5e8] ss:$16 sps:$4 sm:$0xff]   ;;  %v13447_v39 = vld [vmem:[#allocation7 + $0x604] ss:$16 sps:$4 sm:$0xff]  }
 0x31b   :  { %v15885_v8 = vpack.c.bf16 %v15880_v9, %v15877_v49  ;;  %v13450_v29 = vld [vmem:[#allocation7 + $0x60c] ss:$16 sps:$4 sm:$0xff]   ;;  %v13019_v60 = vpop.permute.xlu0 %13018  ;;  %v13445_v13 = vld [vmem:[#allocation7 + $0x600] ss:$16 sps:$4 sm:$0xff]   ;;  %v13448_v0 = vld [vmem:[#allocation7 + $0x608] ss:$16 sps:$4 sm:$0xff]  }
 0x31c   :  { %5348 = vmatpush1.bf16.msra.mxu1 %v13415_v5  ;;  %v13453_v20 = vld [vmem:[#allocation7 + $0x624] ss:$16 sps:$4 sm:$0xff]   ;;  %v13015_v5 = vunpack.i.l.bf16 %v15891_v14  ;;  %v13021_v46 = vunpack.i.h.bf16 %v13019_v60  ;;  %v13454_v23 = vld [vmem:[#allocation7 + $0x628] ss:$16 sps:$4 sm:$0xff]  }
 0x31d   :  { %5932 = vmatpush1.bf16.msra.mxu0 %v13418_v56  ;;  %5315 = vmatmul.mubr.bf16.gmra.mrb[60].mxu1 %v15885_v8  ;;  %v15893_v50 = vpop.permute.xlu1 %13023  ;;  %v13020_v56 = vunpack.i.l.bf16 %v13019_v60  ;;  %v13466_v60 = vld [vmem:[#allocation7 + $0x668] ss:$16 sps:$4 sm:$0xff]  }
 0x31e   :  { %5899 = vmatmul.mubr.bf16.gmra.mrb[108].mxu0 %v15885_v8  ;;  %5349 = vmatprep.subr.bf16.mxu1 %v13423_v59  ;;  %v13456_v59 = vld [vmem:[#allocation7 + $0x62c] ss:$16 sps:$4 sm:$0xff]  }
 0x31f   :  { %5357 = vmatprep.mubr.bf16.mxu1 %v2249_v41  ;;  %5933 = vmatprep.subr.bf16.mxu0 %v13426_v43  ;;  %v13025_v43 = vunpack.i.l.bf16 %v15893_v50 }
 0x320   :  { %5941 = vmatprep.mubr.bf16.mxu0 %v2249_v41  ;;  %5350 = vmatpush1.bf16.msra.mxu1 %v13421_v12  ;;  %v13029_v12 = vpop.permute.xlu0 %13028  ;;  %v13451_v41 = vld [vmem:[#allocation7 + $0x620] ss:$16 sps:$4 sm:$0xff]  }
 0x321   :  { %5934 = vmatpush1.bf16.msra.mxu0 %v13424_v55  ;;  %5351 = vmatprep.subr.bf16.mxu1 %v13429_v25  ;;  %v13459_v55 = vld [vmem:[#allocation7 + $0x644] ss:$16 sps:$4 sm:$0xff]   ;;  %v1964_v25 = vsel %vm1881_vm8, %v15570_v6, %v13015_v5 }
 0x322   :  { %5935 = vmatprep.subr.bf16.mxu0 %v13432_v19  ;;  %v2180_v19 = vsel %vm1881_vm8, %v13015_v5, %v13020_v56  ;;  %v13465_v6 = vld [vmem:[#allocation7 + $0x664] ss:$16 sps:$4 sm:$0xff]   ;;  %v13474_v5 = vld [vmem:[#allocation7 + $0x68c] ss:$16 sps:$4 sm:$0xff]  }
 0x324   :  { %5352 = vmatpush1.bf16.msra.mxu1 %v13427_v27  ;;  %v13462_v27 = vld [vmem:[#allocation7 + $0x64c] ss:$16 sps:$4 sm:$0xff]  }
 0x325   :  { %5936 = vmatpush1.bf16.msra.mxu0 %v13430_v45  ;;  %5353 = vmatprep.subr.bf16.mxu1 %v13435_v38  ;;  %v13030_v45 = vunpack.i.l.bf16 %v13029_v12  ;;  %v13457_v38 = vld [vmem:[#allocation7 + $0x640] ss:$16 sps:$4 sm:$0xff]  }
 0x326   :  { %5937 = vmatprep.subr.bf16.mxu0 %v13438_v51  ;;  %v13016_v51 = vunpack.i.h.bf16 %v15891_v14  ;;  %v13468_v14 = vld [vmem:[#allocation7 + $0x66c] ss:$16 sps:$4 sm:$0xff]  }
 0x328   :  { %5354 = vmatpush1.bf16.msra.mxu1 %v13433_v47  ;;  %v1976_v47 = vsel %vm1894_vm9, %v1964_v25, %v13021_v46  ;;  %v13475_v46 = vld [vmem:[#allocation7 + $0x6a0] ss:$16 sps:$4 sm:$0xff]  }
 0x329   :  { %5938 = vmatpush1.bf16.msra.mxu0 %v13436_v32  ;;  %5355 = vmatprep.subr.bf16.mxu1 %v13441_v11  ;;  %v13460_v32 = vld [vmem:[#allocation7 + $0x648] ss:$16 sps:$4 sm:$0xff]   ;;  %v15913_v11 = vpack.c.bf16 %v15877_v49, %v15837_v30  ;;  %v13026_v30 = vunpack.i.h.bf16 %v15893_v50  ;;  %v13463_v49 = vld [vmem:[#allocation7 + $0x660] ss:$16 sps:$4 sm:$0xff]  }
 0x32a   :  { %5939 = vmatprep.subr.bf16.mxu0 %v13444_v62  ;;  %v1988_v62 = vsel %vm1907_vm10, %v1976_v47, %v13025_v43  ;;  %v13469_v50 = vld [vmem:[#allocation7 + $0x680] ss:$16 sps:$4 sm:$0xff]   ;;  %v13495_v47 = vld [vmem:[#allocation7 + $0x704] ss:$16 sps:$4 sm:$0xff]  }
 0x32c   :  { %5356 = vmatpush1.bf16.msra.mxu1 %v13439_v2 }
 0x32d   :  { %5940 = vmatpush1.bf16.msra.mxu0 %v13442_v53  ;;  %5398 = vmatprep.subr.bf16.mxu1 %v13447_v39  ;;  %v13031_v53 = vunpack.i.h.bf16 %v13029_v12  ;;  %v2144_v39 = vsel %vm1881_vm8, %v13016_v51, %v13030_v45  ;;  %v13492_v45 = vld [vmem:[#allocation7 + $0x6ec] ss:$16 sps:$4 sm:$0xff]  }
 0x32e   :  { %5982 = vmatprep.subr.bf16.mxu0 %v13450_v29 }
 0x32f   :  { %5358 = vmatmul.mubr.bf16.vlgmr.msra.gmra.mrb[48].mxu1 %v15481_v22 }
 0x330   :  { %5942 = vmatmul.mubr.bf16.vlgmr.msra.gmra.mrb[96].mxu0 %v15481_v22  ;;  %5367 = vmatprep.mubr.bf16.mxu1 %v15897_v61  ;;  %v2192_v22 = vsel %vm1894_vm9, %v2180_v19, %v13025_v43  ;;  %v13477_v43 = vld [vmem:[#allocation7 + $0x6a4] ss:$16 sps:$4 sm:$0xff]   ;;  %v13481_v19 = vld [vmem:[#allocation7 + $0x6c0] ss:$16 sps:$4 sm:$0xff]  }
 0x331   :  { %5399 = vmatpush1.bf16.msra.mxu1 %v13445_v13  ;;  %5951 = vmatprep.mubr.bf16.mxu0 %v15897_v61  ;;  %v2204_v2 = vsel %vm1907_vm10, %v2192_v22, %v15591_v54  ;;  %v1928_v54 = vsel %vm1881_vm8, %v15274_v52, %v13016_v51  ;;  %v13471_v13 = vld [vmem:[#allocation7 + $0x684] ss:$16 sps:$4 sm:$0xff]   ;;  %v13487_v51 = vld [vmem:[#allocation7 + $0x6e0] ss:$16 sps:$4 sm:$0xff]  }
 0x332   :  { %5983 = vmatpush1.bf16.msra.mxu0 %v13448_v0  ;;  %5400 = vmatprep.subr.bf16.mxu1 %v13453_v20  ;;  %v15926_v29 = vmax.f32 %v1988_v62, %v2204_v2  ;;  %v1940_v0 = vsel %vm1894_vm9, %v1928_v54, %v13031_v53  ;;  %v2156_v20 = vsel %vm1894_vm9, %v2144_v39, %v13026_v30  ;;  %v13489_v22 = vld [vmem:[#allocation7 + $0x6e4] ss:$16 sps:$4 sm:$0xff]   ;;  %v13496_v62 = vld [vmem:[#allocation7 + $0x708] ss:$16 sps:$4 sm:$0xff]   ;;  %v13504_v53 = vld [vmem:[#allocation7 + $0x72c] ss:$16 sps:$4 sm:$0xff]  }
 0x333   :  { %5984 = vmatprep.subr.bf16.mxu0 %v13456_v59  ;;  %v1952_v56 = vsel %vm1907_vm10, %v1940_v0, %v13026_v30  ;;  %v13472_v59 = vld [vmem:[#allocation7 + $0x688] ss:$16 sps:$4 sm:$0xff]   ;;  %v2168_v12 = vsel %vm1907_vm10, %v2156_v20, %v15278_v36  ;;  %v13486_v36 = vld [vmem:[#allocation7 + $0x6cc] ss:$16 sps:$4 sm:$0xff]   ;;  %v13501_v2 = vld [vmem:[#allocation7 + $0x724] ss:$16 sps:$4 sm:$0xff]  }
 0x334   :  { %v15933_v52 = vpack.c.bf16 %v15926_v29, %v15880_v9  ;;  %v13478_v9 = vld [vmem:[#allocation7 + $0x6a8] ss:$16 sps:$4 sm:$0xff]   ;;  %v13507_v30 = vld [vmem:[#allocation7 + $0x744] ss:$16 sps:$4 sm:$0xff]   ;;  %v13505_v54 = vld [vmem:[#allocation7 + $0x740] ss:$16 sps:$4 sm:$0xff]  }
 0x335   :  { %5401 = vmatpush1.bf16.msra.mxu1 %v13451_v41  ;;  %v13480_v41 = vld [vmem:[#allocation7 + $0x6ac] ss:$16 sps:$4 sm:$0xff]   ;;  %v13502_v39 = vld [vmem:[#allocation7 + $0x728] ss:$16 sps:$4 sm:$0xff]   ;;  %v13511_v20 = vld [vmem:[#allocation7 + $0x760] ss:$16 sps:$4 sm:$0xff]  }
 0x336   :  { %5985 = vmatpush1.bf16.msra.mxu0 %v13454_v23  ;;  %5402 = vmatprep.subr.bf16.mxu1 %v13459_v55  ;;  %v15941_v23 = vmax.f32 %v1952_v56, %v2168_v12  ;;  %v13483_v55 = vld [vmem:[#allocation7 + $0x6c4] ss:$16 sps:$4 sm:$0xff]   ;;  %v13516_v0 = vld [vmem:[#allocation7 + $0x76c] ss:$16 sps:$4 sm:$0xff]  }
 0x337   :  { %5368 = vmatmul.mubr.bf16.gmra.mrb[52].mxu1 %v15598_v10  ;;  %5986 = vmatprep.subr.bf16.mxu0 %v13462_v27  ;;  %v13484_v27 = vld [vmem:[#allocation7 + $0x6c8] ss:$16 sps:$4 sm:$0xff]   ;;  %v13522_v56 = vld [vmem:[#allocation7 + $0x78c] ss:$16 sps:$4 sm:$0xff]   ;;  %v13525_v12 = vld [vmem:[#allocation7 + $0x7a4] ss:$16 sps:$4 sm:$0xff]  }
 0x338   :  { %5952 = vmatmul.mubr.bf16.gmra.mrb[100].mxu0 %v15598_v10  ;;  %5377 = vmatprep.mubr.bf16.mxu1 %v15913_v11  ;;  %v15945_v25 = vpack.c.bf16 %v15941_v23, %v15680_v26  ;;  %v13490_v26 = vld [vmem:[#allocation7 + $0x6e8] ss:$16 sps:$4 sm:$0xff]  }
 0x339   :  { %5403 = vmatpush1.bf16.msra.mxu1 %v13457_v38  ;;  %5961 = vmatprep.mubr.bf16.mxu0 %v15913_v11  ;;  %v16553_v38 = vld [vmem:[#allocation47_spill] sm:$0xff] }
 0x33a   :  { %5987 = vmatpush1.bf16.msra.mxu0 %v13460_v32  ;;  %5404 = vmatprep.subr.bf16.mxu1 %v13465_v6  ;;  %v13498_v32 = vld [vmem:[#allocation7 + $0x70c] ss:$16 sps:$4 sm:$0xff]   ;;  %v13493_v6 = vld [vmem:[#allocation7 + $0x700] ss:$16 sps:$4 sm:$0xff]  }
 0x33b   :  { %5988 = vmatprep.subr.bf16.mxu0 %v13468_v14  ;;  %v13499_v14 = vld [vmem:[#allocation7 + $0x720] ss:$16 sps:$4 sm:$0xff]  }
 0x33d   :  { %5405 = vmatpush1.bf16.msra.mxu1 %v13463_v49  ;;  %v13510_v49 = vld [vmem:[#allocation7 + $0x74c] ss:$16 sps:$4 sm:$0xff]  }
 0x33e   :  { %5989 = vmatpush1.bf16.msra.mxu0 %v13466_v60  ;;  %5406 = vmatprep.subr.bf16.mxu1 %v13471_v13  ;;  %v13508_v60 = vld [vmem:[#allocation7 + $0x748] ss:$16 sps:$4 sm:$0xff]   ;;  %v13513_v13 = vld [vmem:[#allocation7 + $0x764] ss:$16 sps:$4 sm:$0xff]  }
 0x33f   :  { %5378 = vmatmul.mubr.bf16.gmra.mrb[56].mxu1 %v15722_v42  ;;  %5990 = vmatprep.subr.bf16.mxu0 %v13474_v5  ;;  %v13514_v5 = vld [vmem:[#allocation7 + $0x768] ss:$16 sps:$4 sm:$0xff]  }
 0x340   :  { %5962 = vmatmul.mubr.bf16.gmra.mrb[104].mxu0 %v15722_v42  ;;  %5387 = vmatprep.mubr.bf16.mxu1 %v15933_v52 }
 0x341   :  { %5407 = vmatpush1.bf16.msra.mxu1 %v13469_v50  ;;  %5971 = vmatprep.mubr.bf16.mxu0 %v15933_v52  ;;  %v13519_v50 = vld [vmem:[#allocation7 + $0x784] ss:$16 sps:$4 sm:$0xff]  }
 0x342   :  { %5991 = vmatpush1.bf16.msra.mxu0 %v13472_v59  ;;  %5408 = vmatprep.subr.bf16.mxu1 %v13477_v43  ;;  %v13517_v59 = vld [vmem:[#allocation7 + $0x780] ss:$16 sps:$4 sm:$0xff]   ;;  %v13520_v43 = vld [vmem:[#allocation7 + $0x788] ss:$16 sps:$4 sm:$0xff]  }
 0x343   :  { %5992 = vmatprep.subr.bf16.mxu0 %v13480_v41  ;;  %v13528_v41 = vld [vmem:[#allocation7 + $0x7ac] ss:$16 sps:$4 sm:$0xff]  }
 0x345   :  { %5409 = vmatpush1.bf16.msra.mxu1 %v13475_v46  ;;  %v13523_v46 = vld [vmem:[#allocation7 + $0x7a0] ss:$16 sps:$4 sm:$0xff]  }
 0x346   :  { %5993 = vmatpush1.bf16.msra.mxu0 %v13478_v9  ;;  %5410 = vmatprep.subr.bf16.mxu1 %v13483_v55  ;;  %v13526_v9 = vld [vmem:[#allocation7 + $0x7a8] ss:$16 sps:$4 sm:$0xff]   ;;  %v13531_v55 = vld [vmem:[#allocation7 + $0x7c4] ss:$16 sps:$4 sm:$0xff]  }
 0x347   :  { %5388 = vmatmul.mubr.bf16.gmra.mrb[60].mxu1 %v15945_v25  ;;  %5994 = vmatprep.subr.bf16.mxu0 %v13486_v36  ;;  %v13534_v36 = vld [vmem:[#allocation7 + $0x7cc] ss:$16 sps:$4 sm:$0xff]  }
 0x348   :  { %5972 = vmatmul.mubr.bf16.gmra.mrb[108].mxu0 %v15945_v25  ;;  %5430 = vmatprep.mubr.bf16.mxu1 %v16553_v38 }
 0x349   :  { %5411 = vmatpush1.bf16.msra.mxu1 %v13481_v19  ;;  %6014 = vmatprep.mubr.bf16.mxu0 %v16553_v38  ;;  %v13529_v19 = vld [vmem:[#allocation7 + $0x7c0] ss:$16 sps:$4 sm:$0xff]   ;;  %v15951_v38 = vpop.permute.xlu1 %13033 }
 0x34a   :  { %5995 = vmatpush1.bf16.msra.mxu0 %v13484_v27  ;;  %5412 = vmatprep.subr.bf16.mxu1 %v13489_v22  ;;  %v13532_v27 = vld [vmem:[#allocation7 + $0x7c8] ss:$16 sps:$4 sm:$0xff]   ;;  %v13537_v22 = vld [vmem:[#allocation7 + $0x7e4] ss:$16 sps:$4 sm:$0xff]  }
 0x34b   :  { %5996 = vmatprep.subr.bf16.mxu0 %v13492_v45  ;;  %v13540_v45 = vld [vmem:[#allocation7 + $0x7ec] ss:$16 sps:$4 sm:$0xff]  }
 0x34d   :  { %5413 = vmatpush1.bf16.msra.mxu1 %v13487_v51  ;;  %v13535_v51 = vld [vmem:[#allocation7 + $0x7e0] ss:$16 sps:$4 sm:$0xff]  }
 0x34e   :  { %5997 = vmatpush1.bf16.msra.mxu0 %v13490_v26  ;;  %5414 = vmatprep.subr.bf16.mxu1 %v13495_v47  ;;  %v13538_v26 = vld [vmem:[#allocation7 + $0x7e8] ss:$16 sps:$4 sm:$0xff]   ;;  %v13543_v47 = vld [vmem:[#allocation7 + $0x804] ss:$16 sps:$4 sm:$0xff]  }
 0x34f   :  { %5998 = vmatprep.subr.bf16.mxu0 %v13498_v32  ;;  %v13546_v32 = vld [vmem:[#allocation7 + $0x80c] ss:$16 sps:$4 sm:$0xff]  }
 0x351   :  { %5415 = vmatpush1.bf16.msra.mxu1 %v13493_v6  ;;  %v13039_v6 = vpop.permute.xlu0 %13038 }
 0x352   :  { %5999 = vmatpush1.bf16.msra.mxu0 %v13496_v62  ;;  %5416 = vmatprep.subr.bf16.mxu1 %v13501_v2  ;;  %v15953_v62 = vpop.permute.xlu1 %13043  ;;  %v13541_v2 = vld [vmem:[#allocation7 + $0x800] ss:$16 sps:$4 sm:$0xff]  }
 0x353   :  { %6000 = vmatprep.subr.bf16.mxu0 %v13504_v53  ;;  %v13544_v53 = vld [vmem:[#allocation7 + $0x808] ss:$16 sps:$4 sm:$0xff]  }
 0x355   :  { %5417 = vmatpush1.bf16.msra.mxu1 %v13499_v14  ;;  %v13549_v14 = vld [vmem:[#allocation7 + $0x824] ss:$16 sps:$4 sm:$0xff]  }
 0x356   :  { %6001 = vmatpush1.bf16.msra.mxu0 %v13502_v39  ;;  %5418 = vmatprep.subr.bf16.mxu1 %v13507_v30  ;;  %v13035_v39 = vunpack.i.l.bf16 %v15951_v38  ;;  %v13040_v30 = vunpack.i.l.bf16 %v13039_v6 }
 0x357   :  { %6002 = vmatprep.subr.bf16.mxu0 %v13510_v49  ;;  %v16554_v49 = vld [vmem:[#allocation48_spill] sm:$0xff] }
 0x359   :  { %5419 = vmatpush1.bf16.msra.mxu1 %v13505_v54  ;;  %v13552_v54 = vld [vmem:[#allocation7 + $0x82c] ss:$16 sps:$4 sm:$0xff]  }
 0x35a   :  { %6003 = vmatpush1.bf16.msra.mxu0 %v13508_v60  ;;  %5420 = vmatprep.subr.bf16.mxu1 %v13513_v13  ;;  %v13045_v60 = vunpack.i.l.bf16 %v15953_v62  ;;  %v13049_v13 = vpop.permute.xlu0 %13048 }
 0x35b   :  { %6004 = vmatprep.subr.bf16.mxu0 %v13516_v0  ;;  %v13547_v0 = vld [vmem:[#allocation7 + $0x820] ss:$16 sps:$4 sm:$0xff]  }
 0x35d   :  { %5421 = vmatpush1.bf16.msra.mxu1 %v13511_v20  ;;  %v13041_v20 = vunpack.i.h.bf16 %v13039_v6 }
 0x35e   :  { %6005 = vmatpush1.bf16.msra.mxu0 %v13514_v5  ;;  %5422 = vmatprep.subr.bf16.mxu1 %v13519_v50  ;;  %v13550_v5 = vld [vmem:[#allocation7 + $0x828] ss:$16 sps:$4 sm:$0xff]   ;;  %v13555_v50 = vld [vmem:[#allocation7 + $0x844] ss:$16 sps:$4 sm:$0xff]  }
 0x35f   :  { %6006 = vmatprep.subr.bf16.mxu0 %v13522_v56  ;;  %v16555_v56 = vld [vmem:[#allocation33_spill] sm:$0xff] }
 0x361   :  { %5423 = vmatpush1.bf16.msra.mxu1 %v13517_v59  ;;  %v1929_v59 = vsel %vm1881_vm8, %v16555_v56, %v13035_v39  ;;  %v13571_v56 = vld [vmem:[#allocation7 + $0x8a0] ss:$16 sps:$4 sm:$0xff]  }
 0x362   :  { %6007 = vmatpush1.bf16.msra.mxu0 %v13520_v43  ;;  %5424 = vmatprep.subr.bf16.mxu1 %v13525_v12  ;;  %v2145_v43 = vsel %vm1881_vm8, %v13035_v39, %v13040_v30  ;;  %v13558_v12 = vld [vmem:[#allocation7 + $0x84c] ss:$16 sps:$4 sm:$0xff]   ;;  %v13562_v39 = vld [vmem:[#allocation7 + $0x868] ss:$16 sps:$4 sm:$0xff]   ;;  %v13567_v30 = vld [vmem:[#allocation7 + $0x884] ss:$16 sps:$4 sm:$0xff]  }
 0x363   :  { %6008 = vmatprep.subr.bf16.mxu0 %v13528_v41  ;;  %v2157_v41 = vsel %vm1894_vm9, %v2145_v43, %v13045_v60  ;;  %v13579_v43 = vld [vmem:[#allocation7 + $0x8c4] ss:$16 sps:$4 sm:$0xff]  }
 0x365   :  { %5425 = vmatpush1.bf16.msra.mxu1 %v13523_v46  ;;  %v13050_v46 = vunpack.i.l.bf16 %v13049_v13 }
 0x366   :  { %6009 = vmatpush1.bf16.msra.mxu0 %v13526_v9  ;;  %5426 = vmatprep.subr.bf16.mxu1 %v13531_v55  ;;  %v13553_v9 = vld [vmem:[#allocation7 + $0x840] ss:$16 sps:$4 sm:$0xff]   ;;  %v13036_v55 = vunpack.i.h.bf16 %v15951_v38  ;;  %v13046_v38 = vunpack.i.h.bf16 %v15953_v62 }
 0x367   :  { %6010 = vmatprep.subr.bf16.mxu0 %v13534_v36  ;;  %v1941_v36 = vsel %vm1894_vm9, %v1929_v59, %v13041_v20  ;;  %v13565_v62 = vld [vmem:[#allocation7 + $0x880] ss:$16 sps:$4 sm:$0xff]   ;;  %v13573_v20 = vld [vmem:[#allocation7 + $0x8a4] ss:$16 sps:$4 sm:$0xff]  }
 0x368   :  { %v2109_v6 = vsel %vm1881_vm8, %v13036_v55, %v13050_v46  ;;  %v13580_v46 = vld [vmem:[#allocation7 + $0x8c8] ss:$16 sps:$4 sm:$0xff]  }
 0x369   :  { %5427 = vmatpush1.bf16.msra.mxu1 %v13529_v19  ;;  %v13556_v19 = vld [vmem:[#allocation7 + $0x848] ss:$16 sps:$4 sm:$0xff]  }
 0x36a   :  { %6011 = vmatpush1.bf16.msra.mxu0 %v13532_v27  ;;  %5428 = vmatprep.subr.bf16.mxu1 %v13537_v22  ;;  %v13561_v27 = vld [vmem:[#allocation7 + $0x864] ss:$16 sps:$4 sm:$0xff]   ;;  %v1953_v22 = vsel %vm1907_vm10, %v1941_v36, %v13045_v60  ;;  %v13570_v60 = vld [vmem:[#allocation7 + $0x88c] ss:$16 sps:$4 sm:$0xff]   ;;  %v13583_v36 = vld [vmem:[#allocation7 + $0x8e0] ss:$16 sps:$4 sm:$0xff]  }
 0x36b   :  { %6012 = vmatprep.subr.bf16.mxu0 %v13540_v45  ;;  %v16556_v45 = vld [vmem:[#allocation34_spill] sm:$0xff] }
 0x36d   :  { %5429 = vmatpush1.bf16.msra.mxu1 %v13535_v51  ;;  %v2169_v51 = vsel %vm1907_vm10, %v2157_v41, %v16556_v45  ;;  %v13577_v41 = vld [vmem:[#allocation7 + $0x8c0] ss:$16 sps:$4 sm:$0xff]   ;;  %v13592_v45 = vld [vmem:[#allocation7 + $0x908] ss:$16 sps:$4 sm:$0xff]  }
 0x36e   :  { %6013 = vmatpush1.bf16.msra.mxu0 %v13538_v26  ;;  %5471 = vmatprep.subr.bf16.mxu1 %v13543_v47  ;;  %v13051_v26 = vunpack.i.h.bf16 %v13049_v13  ;;  %v16557_v47 = vld [vmem:[#allocation49_spill] sm:$0xff] }
 0x36f   :  { %6055 = vmatprep.subr.bf16.mxu0 %v13546_v32  ;;  %v13564_v32 = vld [vmem:[#allocation7 + $0x86c] ss:$16 sps:$4 sm:$0xff]  }
 0x370   :  { %5431 = vmatmul.mubr.bf16.vlgmr.msra.gmra.mrb[48].mxu1 %v16554_v49 }
 0x371   :  { %6015 = vmatmul.mubr.bf16.vlgmr.msra.gmra.mrb[96].mxu0 %v16554_v49  ;;  %5440 = vmatprep.mubr.bf16.mxu1 %v15575_v21 }
 0x372   :  { %5472 = vmatpush1.bf16.msra.mxu1 %v13541_v2  ;;  %6024 = vmatprep.mubr.bf16.mxu0 %v15575_v21  ;;  %v13559_v2 = vld [vmem:[#allocation7 + $0x860] ss:$16 sps:$4 sm:$0xff]  }
 0x373   :  { %6056 = vmatpush1.bf16.msra.mxu0 %v13544_v53  ;;  %5473 = vmatprep.subr.bf16.mxu1 %v13549_v14  ;;  %v1891_v53 = vsel %vm1881_vm8, %v15294_v17, %v13036_v55  ;;  %v15978_v14 = vmax.f32 %v1953_v22, %v2169_v51  ;;  %v13588_v55 = vld [vmem:[#allocation7 + $0x8ec] ss:$16 sps:$4 sm:$0xff]   ;;  %v13589_v22 = vld [vmem:[#allocation7 + $0x900] ss:$16 sps:$4 sm:$0xff]   ;;  %v13597_v51 = vld [vmem:[#allocation7 + $0x924] ss:$16 sps:$4 sm:$0xff]  }
 0x374   :  { %6057 = vmatprep.subr.bf16.mxu0 %v13552_v54  ;;  %v1904_v49 = vsel %vm1894_vm9, %v1891_v53, %v13051_v26  ;;  %v2121_v54 = vsel %vm1894_vm9, %v2109_v6, %v13046_v38  ;;  %v13600_v26 = vld [vmem:[#allocation7 + $0x92c] ss:$16 sps:$4 sm:$0xff]   ;;  %v13603_v6 = vld [vmem:[#allocation7 + $0x944] ss:$16 sps:$4 sm:$0xff]   ;;  %v13604_v53 = vld [vmem:[#allocation7 + $0x948] ss:$16 sps:$4 sm:$0xff]  }
 0x375   :  { %v1917_v13 = vsel %vm1907_vm10, %v1904_v49, %v13046_v38  ;;  %v15985_v17 = vpack.c.bf16 %v15978_v14, %v15941_v23  ;;  %v13574_v23 = vld [vmem:[#allocation7 + $0x8a8] ss:$16 sps:$4 sm:$0xff]   ;;  %v13606_v38 = vld [vmem:[#allocation7 + $0x94c] ss:$16 sps:$4 sm:$0xff]   ;;  %v13607_v49 = vld [vmem:[#allocation7 + $0x960] ss:$16 sps:$4 sm:$0xff]  }
 0x376   :  { %5474 = vmatpush1.bf16.msra.mxu1 %v13547_v0  ;;  %v13568_v0 = vld [vmem:[#allocation7 + $0x888] ss:$16 sps:$4 sm:$0xff]  }
 0x377   :  { %6058 = vmatpush1.bf16.msra.mxu0 %v13550_v5  ;;  %5475 = vmatprep.subr.bf16.mxu1 %v13555_v50  ;;  %v2133_v5 = vsel %vm1907_vm10, %v2121_v54, %v15298_v44  ;;  %v13576_v50 = vld [vmem:[#allocation7 + $0x8ac] ss:$16 sps:$4 sm:$0xff]   ;;  %v13610_v54 = vld [vmem:[#allocation7 + $0x968] ss:$16 sps:$4 sm:$0xff]  }
 0x378   :  { %5441 = vmatmul.mubr.bf16.gmra.mrb[52].mxu1 %v16557_v47  ;;  %6059 = vmatprep.subr.bf16.mxu0 %v13558_v12  ;;  %v15993_v59 = vmax.f32 %v1917_v13, %v2133_v5  ;;  %v13582_v44 = vld [vmem:[#allocation7 + $0x8cc] ss:$16 sps:$4 sm:$0xff]   ;;  %v13613_v13 = vld [vmem:[#allocation7 + $0x980] ss:$16 sps:$4 sm:$0xff]  }
 0x379   :  { %6025 = vmatmul.mubr.bf16.gmra.mrb[100].mxu0 %v16557_v47  ;;  %5450 = vmatprep.mubr.bf16.mxu1 %v15688_v3  ;;  %v13624_v5 = vld [vmem:[#allocation7 + $0x9ac] ss:$16 sps:$4 sm:$0xff]  }
 0x37a   :  { %5476 = vmatpush1.bf16.msra.mxu1 %v13553_v9  ;;  %6034 = vmatprep.mubr.bf16.mxu0 %v15688_v3  ;;  %v15997_v12 = vpack.c.bf16 %v15993_v59, %v15859_v24  ;;  %v13585_v9 = vld [vmem:[#allocation7 + $0x8e4] ss:$16 sps:$4 sm:$0xff]   ;;  %v13586_v24 = vld [vmem:[#allocation7 + $0x8e8] ss:$16 sps:$4 sm:$0xff]  }
 0x37b   :  { %6060 = vmatpush1.bf16.msra.mxu0 %v13556_v19  ;;  %5477 = vmatprep.subr.bf16.mxu1 %v13561_v27  ;;  %v13591_v19 = vld [vmem:[#allocation7 + $0x904] ss:$16 sps:$4 sm:$0xff]   ;;  %v13594_v27 = vld [vmem:[#allocation7 + $0x90c] ss:$16 sps:$4 sm:$0xff]  }
 0x37c   :  { %6061 = vmatprep.subr.bf16.mxu0 %v13564_v32  ;;  %v13595_v32 = vld [vmem:[#allocation7 + $0x920] ss:$16 sps:$4 sm:$0xff]  }
 0x37e   :  { %5478 = vmatpush1.bf16.msra.mxu1 %v13559_v2  ;;  %v13601_v2 = vld [vmem:[#allocation7 + $0x940] ss:$16 sps:$4 sm:$0xff]  }
 0x37f   :  { %6062 = vmatpush1.bf16.msra.mxu0 %v13562_v39  ;;  %5479 = vmatprep.subr.bf16.mxu1 %v13567_v30  ;;  %v13609_v39 = vld [vmem:[#allocation7 + $0x964] ss:$16 sps:$4 sm:$0xff]   ;;  %v13612_v30 = vld [vmem:[#allocation7 + $0x96c] ss:$16 sps:$4 sm:$0xff]  }
 0x380   :  { %5451 = vmatmul.mubr.bf16.gmra.mrb[56].mxu1 %v15725_v33  ;;  %6063 = vmatprep.subr.bf16.mxu0 %v13570_v60  ;;  %v13615_v60 = vld [vmem:[#allocation7 + $0x984] ss:$16 sps:$4 sm:$0xff]  }
 0x381   :  { %6035 = vmatmul.mubr.bf16.gmra.mrb[104].mxu0 %v15725_v33  ;;  %5460 = vmatprep.mubr.bf16.mxu1 %v15985_v17 }
 0x382   :  { %5480 = vmatpush1.bf16.msra.mxu1 %v13565_v62  ;;  %6044 = vmatprep.mubr.bf16.mxu0 %v15985_v17  ;;  %v13618_v62 = vld [vmem:[#allocation7 + $0x98c] ss:$16 sps:$4 sm:$0xff]  }
 0x383   :  { %6064 = vmatpush1.bf16.msra.mxu0 %v13568_v0  ;;  %5481 = vmatprep.subr.bf16.mxu1 %v13573_v20  ;;  %v13616_v0 = vld [vmem:[#allocation7 + $0x988] ss:$16 sps:$4 sm:$0xff]   ;;  %v13621_v20 = vld [vmem:[#allocation7 + $0x9a4] ss:$16 sps:$4 sm:$0xff]  }
 0x384   :  { %6065 = vmatprep.subr.bf16.mxu0 %v13576_v50  ;;  %v13619_v50 = vld [vmem:[#allocation7 + $0x9a0] ss:$16 sps:$4 sm:$0xff]  }
 0x386   :  { %5482 = vmatpush1.bf16.msra.mxu1 %v13571_v56  ;;  %v13622_v56 = vld [vmem:[#allocation7 + $0x9a8] ss:$16 sps:$4 sm:$0xff]  }
 0x387   :  { %6066 = vmatpush1.bf16.msra.mxu0 %v13574_v23  ;;  %5483 = vmatprep.subr.bf16.mxu1 %v13579_v43  ;;  %v13627_v23 = vld [vmem:[#allocation7 + $0x9c4] ss:$16 sps:$4 sm:$0xff]   ;;  %v13630_v43 = vld [vmem:[#allocation7 + $0x9cc] ss:$16 sps:$4 sm:$0xff]  }
 0x388   :  { %5461 = vmatmul.mubr.bf16.gmra.mrb[60].mxu1 %v15997_v12  ;;  %6067 = vmatprep.subr.bf16.mxu0 %v13582_v44  ;;  %v13625_v44 = vld [vmem:[#allocation7 + $0x9c0] ss:$16 sps:$4 sm:$0xff]  }
 0x389   :  { %6045 = vmatmul.mubr.bf16.gmra.mrb[108].mxu0 %v15997_v12  ;;  %5503 = vmatprep.mubr.bf16.mxu1 %v15613_v63 }
 0x38a   :  { %5484 = vmatpush1.bf16.msra.mxu1 %v13577_v41  ;;  %6087 = vmatprep.mubr.bf16.mxu0 %v15613_v63  ;;  %v13598_v63 = vld [vmem:[#allocation7 + $0x928] ss:$16 sps:$4 sm:$0xff]  }
 0x38b   :  { %6068 = vmatpush1.bf16.msra.mxu0 %v13580_v46  ;;  %5485 = vmatprep.subr.bf16.mxu1 %v13585_v9  ;;  %v13628_v41 = vld [vmem:[#allocation7 + $0x9c8] ss:$16 sps:$4 sm:$0xff]   ;;  %v13633_v46 = vld [vmem:[#allocation7 + $0x9e4] ss:$16 sps:$4 sm:$0xff]   ;;  %v13636_v9 = vld [vmem:[#allocation7 + $0x9ec] ss:$16 sps:$4 sm:$0xff]  }
 0x38c   :  { %6069 = vmatprep.subr.bf16.mxu0 %v13588_v55  ;;  %v16003_v55 = vpop.permute.xlu1 %13058 }
 0x38e   :  { %5486 = vmatpush1.bf16.msra.mxu1 %v13583_v36  ;;  %v13631_v36 = vld [vmem:[#allocation7 + $0x9e0] ss:$16 sps:$4 sm:$0xff]  }
 0x38f   :  { %6070 = vmatpush1.bf16.msra.mxu0 %v13586_v24  ;;  %5487 = vmatprep.subr.bf16.mxu1 %v13591_v19  ;;  %v13634_v24 = vld [vmem:[#allocation7 + $0x9e8] ss:$16 sps:$4 sm:$0xff]   ;;  %v13639_v19 = vld [vmem:[#allocation7 + $0xa04] ss:$16 sps:$4 sm:$0xff]  }
 0x390   :  { %6071 = vmatprep.subr.bf16.mxu0 %v13594_v27  ;;  %v13642_v27 = vld [vmem:[#allocation7 + $0xa0c] ss:$16 sps:$4 sm:$0xff]  }
 0x392   :  { %5488 = vmatpush1.bf16.msra.mxu1 %v13589_v22  ;;  %v13054_v22 = vpop.permute.xlu0 %13053 }
 0x393   :  { %6072 = vmatpush1.bf16.msra.mxu0 %v13592_v45  ;;  %5489 = vmatprep.subr.bf16.mxu1 %v13597_v51  ;;  %v16005_v45 = vpop.permute.xlu1 %13063  ;;  %v13637_v51 = vld [vmem:[#allocation7 + $0xa00] ss:$16 sps:$4 sm:$0xff]  }
 0x394   :  { %6073 = vmatprep.subr.bf16.mxu0 %v13600_v26  ;;  %v13640_v26 = vld [vmem:[#allocation7 + $0xa08] ss:$16 sps:$4 sm:$0xff]  }
 0x396   :  { %5490 = vmatpush1.bf16.msra.mxu1 %v13595_v32  ;;  %v13645_v32 = vld [vmem:[#allocation7 + $0xa24] ss:$16 sps:$4 sm:$0xff]  }
 0x397   :  { %6074 = vmatpush1.bf16.msra.mxu0 %v13598_v63  ;;  %5491 = vmatprep.subr.bf16.mxu1 %v13603_v6  ;;  %v13060_v63 = vunpack.i.l.bf16 %v16003_v55  ;;  %v13055_v6 = vunpack.i.l.bf16 %v13054_v22 }
 0x398   :  { %6075 = vmatprep.subr.bf16.mxu0 %v13606_v38  ;;  %v13648_v38 = vld [vmem:[#allocation7 + $0xa2c] ss:$16 sps:$4 sm:$0xff]  }
 0x39a   :  { %5492 = vmatpush1.bf16.msra.mxu1 %v13601_v2  ;;  %v13065_v2 = vunpack.i.l.bf16 %v16005_v45 }
 0x39b   :  { %6076 = vmatpush1.bf16.msra.mxu0 %v13604_v53  ;;  %5493 = vmatprep.subr.bf16.mxu1 %v13609_v39  ;;  %v13069_v53 = vpop.permute.xlu0 %13068  ;;  %v13643_v39 = vld [vmem:[#allocation7 + $0xa20] ss:$16 sps:$4 sm:$0xff]  }
 0x39c   :  { %6077 = vmatprep.subr.bf16.mxu0 %v13612_v30  ;;  %v13056_v30 = vunpack.i.h.bf16 %v13054_v22  ;;  %v13666_v22 = vld [vmem:[#allocation7 + $0xa8c] ss:$16 sps:$4 sm:$0xff]  }
 0x39e   :  { %5494 = vmatpush1.bf16.msra.mxu1 %v13607_v49  ;;  %v13646_v49 = vld [vmem:[#allocation7 + $0xa28] ss:$16 sps:$4 sm:$0xff]  }
 0x39f   :  { %6078 = vmatpush1.bf16.msra.mxu0 %v13610_v54  ;;  %5495 = vmatprep.subr.bf16.mxu1 %v13615_v60  ;;  %v13651_v54 = vld [vmem:[#allocation7 + $0xa44] ss:$16 sps:$4 sm:$0xff]   ;;  %v1892_v60 = vsel %vm1881_vm8, %v15310_v48, %v13060_v63  ;;  %v13071_v48 = vunpack.i.h.bf16 %v13069_v53 }
 0x3a0   :  { %6079 = vmatprep.subr.bf16.mxu0 %v13618_v62  ;;  %v2110_v62 = vsel %vm1881_vm8, %v13060_v63, %v13055_v6  ;;  %v13672_v63 = vld [vmem:[#allocation7 + $0xaac] ss:$16 sps:$4 sm:$0xff]   ;;  %v13667_v6 = vld [vmem:[#allocation7 + $0xaa0] ss:$16 sps:$4 sm:$0xff]  }
 0x3a2   :  { %5496 = vmatpush1.bf16.msra.mxu1 %v13613_v13  ;;  %v13654_v13 = vld [vmem:[#allocation7 + $0xa4c] ss:$16 sps:$4 sm:$0xff]  }
 0x3a3   :  { %6080 = vmatpush1.bf16.msra.mxu0 %v13616_v0  ;;  %5497 = vmatprep.subr.bf16.mxu1 %v13621_v20  ;;  %v13070_v0 = vunpack.i.l.bf16 %v13069_v53  ;;  %v13649_v20 = vld [vmem:[#allocation7 + $0xa40] ss:$16 sps:$4 sm:$0xff]   ;;  %v13678_v53 = vld [vmem:[#allocation7 + $0xacc] ss:$16 sps:$4 sm:$0xff]  }
 0x3a4   :  { %6081 = vmatprep.subr.bf16.mxu0 %v13624_v5  ;;  %v1905_v5 = vsel %vm1894_vm9, %v1892_v60, %v13056_v30  ;;  %v13676_v30 = vld [vmem:[#allocation7 + $0xac8] ss:$16 sps:$4 sm:$0xff]   ;;  %v13679_v60 = vld [vmem:[#allocation7 + $0xae0] ss:$16 sps:$4 sm:$0xff]  }
 0x3a6   :  { %5498 = vmatpush1.bf16.msra.mxu1 %v13619_v50  ;;  %v13652_v50 = vld [vmem:[#allocation7 + $0xa48] ss:$16 sps:$4 sm:$0xff]  }
 0x3a7   :  { %6082 = vmatpush1.bf16.msra.mxu0 %v13622_v56  ;;  %5499 = vmatprep.subr.bf16.mxu1 %v13627_v23  ;;  %v13657_v56 = vld [vmem:[#allocation7 + $0xa64] ss:$16 sps:$4 sm:$0xff]   ;;  %v1918_v23 = vsel %vm1907_vm10, %v1905_v5, %v13065_v2  ;;  %v13691_v5 = vld [vmem:[#allocation7 + $0xb20] ss:$16 sps:$4 sm:$0xff]  }
 0x3a8   :  { %6083 = vmatprep.subr.bf16.mxu0 %v13630_v43  ;;  %v13660_v43 = vld [vmem:[#allocation7 + $0xa6c] ss:$16 sps:$4 sm:$0xff]  }
 0x3aa   :  { %5500 = vmatpush1.bf16.msra.mxu1 %v13625_v44 }
 0x3ab   :  { %6084 = vmatpush1.bf16.msra.mxu0 %v13628_v41  ;;  %5501 = vmatprep.subr.bf16.mxu1 %v13633_v46  ;;  %v13066_v46 = vunpack.i.h.bf16 %v16005_v45  ;;  %v13661_v45 = vld [vmem:[#allocation7 + $0xa80] ss:$16 sps:$4 sm:$0xff]  }
 0x3ac   :  { %6085 = vmatprep.subr.bf16.mxu0 %v13636_v9  ;;  %v13655_v9 = vld [vmem:[#allocation7 + $0xa60] ss:$16 sps:$4 sm:$0xff]  }
 0x3ae   :  { %5502 = vmatpush1.bf16.msra.mxu1 %v13631_v36  ;;  %v13658_v36 = vld [vmem:[#allocation7 + $0xa68] ss:$16 sps:$4 sm:$0xff]  }
 0x3af   :  { %6086 = vmatpush1.bf16.msra.mxu0 %v13634_v24  ;;  %5544 = vmatprep.subr.bf16.mxu1 %v13639_v19  ;;  %v13663_v24 = vld [vmem:[#allocation7 + $0xa84] ss:$16 sps:$4 sm:$0xff]  }
 0x3b0   :  { %6128 = vmatprep.subr.bf16.mxu0 %v13642_v27 }
 0x3b1   :  { %5504 = vmatmul.mubr.bf16.vlgmr.msra.gmra.mrb[48].mxu1 %v15813_v4 }
 0x3b2   :  { %6088 = vmatmul.mubr.bf16.vlgmr.msra.gmra.mrb[96].mxu0 %v15813_v4  ;;  %5513 = vmatprep.mubr.bf16.mxu1 %v15730_v57  ;;  %v2122_v4 = vsel %vm1894_vm9, %v2110_v62, %v13065_v2  ;;  %v13670_v2 = vld [vmem:[#allocation7 + $0xaa8] ss:$16 sps:$4 sm:$0xff]   ;;  %v13687_v62 = vld [vmem:[#allocation7 + $0xb04] ss:$16 sps:$4 sm:$0xff]  }
 0x3b3   :  { %5545 = vmatpush1.bf16.msra.mxu1 %v13637_v51  ;;  %6097 = vmatprep.mubr.bf16.mxu0 %v15730_v57  ;;  %v13061_v57 = vunpack.i.h.bf16 %v16003_v55  ;;  %v2134_v44 = vsel %vm1907_vm10, %v2122_v4, %v15314_v1  ;;  %v13664_v51 = vld [vmem:[#allocation7 + $0xa88] ss:$16 sps:$4 sm:$0xff]   ;;  %v13685_v4 = vld [vmem:[#allocation7 + $0xb00] ss:$16 sps:$4 sm:$0xff]  }
 0x3b4   :  { %6129 = vmatpush1.bf16.msra.mxu0 %v13640_v26  ;;  %5546 = vmatprep.subr.bf16.mxu1 %v13645_v32  ;;  %v16030_v1 = vmax.f32 %v1918_v23, %v2134_v44  ;;  %v13669_v26 = vld [vmem:[#allocation7 + $0xaa4] ss:$16 sps:$4 sm:$0xff]   ;;  %v13697_v23 = vld [vmem:[#allocation7 + $0xb40] ss:$16 sps:$4 sm:$0xff]   ;;  %v13708_v44 = vld [vmem:[#allocation7 + $0xb6c] ss:$16 sps:$4 sm:$0xff]  }
 0x3b5   :  { %6130 = vmatprep.subr.bf16.mxu0 %v13648_v38  ;;  %v2181_v41 = vsel %vm1881_vm8, %v13061_v57, %v13070_v0  ;;  %v1965_v55 = vsel %vm1881_vm8, %v15616_v58, %v13061_v57  ;;  %v13688_v0 = vld [vmem:[#allocation7 + $0xb08] ss:$16 sps:$4 sm:$0xff]   ;;  %v13696_v57 = vld [vmem:[#allocation7 + $0xb2c] ss:$16 sps:$4 sm:$0xff]  }
 0x3b6   :  { %v1977_v19 = vsel %vm1894_vm9, %v1965_v55, %v13071_v48  ;;  %v2193_v27 = vsel %vm1894_vm9, %v2181_v41, %v13066_v46  ;;  %v2271_v58 = vpack.c.bf16 %v16030_v1, %v15993_v59  ;;  %v13675_v59 = vld [vmem:[#allocation7 + $0xac4] ss:$16 sps:$4 sm:$0xff]   ;;  %v13700_v48 = vld [vmem:[#allocation7 + $0xb48] ss:$16 sps:$4 sm:$0xff]   ;;  %v13703_v41 = vld [vmem:[#allocation7 + $0xb60] ss:$16 sps:$4 sm:$0xff]  }
 0x3b7   :  { %5547 = vmatpush1.bf16.msra.mxu1 %v13643_v39  ;;  %v2205_v32 = vsel %vm1907_vm10, %v2193_v27, %v15629_v40  ;;  %v13673_v39 = vld [vmem:[#allocation7 + $0xac0] ss:$16 sps:$4 sm:$0xff]   ;;  %v13714_v55 = vld [vmem:[#allocation7 + $0xb8c] ss:$16 sps:$4 sm:$0xff]  }
 0x3b8   :  { %6131 = vmatpush1.bf16.msra.mxu0 %v13646_v49  ;;  %5548 = vmatprep.subr.bf16.mxu1 %v13651_v54  ;;  %v13681_v49 = vld [vmem:[#allocation7 + $0xae4] ss:$16 sps:$4 sm:$0xff]   ;;  %v13684_v54 = vld [vmem:[#allocation7 + $0xaec] ss:$16 sps:$4 sm:$0xff]  }
 0x3b9   :  { %5514 = vmatmul.mubr.bf16.gmra.mrb[52].mxu1 %v15841_v15  ;;  %6132 = vmatprep.subr.bf16.mxu0 %v13654_v13  ;;  %v13690_v13 = vld [vmem:[#allocation7 + $0xb0c] ss:$16 sps:$4 sm:$0xff]  }
 0x3ba   :  { %6098 = vmatmul.mubr.bf16.gmra.mrb[100].mxu0 %v15841_v15  ;;  %5523 = vmatprep.mubr.bf16.mxu1 %v15869_v31  ;;  %v13720_v27 = vld [vmem:[#allocation7 + $0xbac] ss:$16 sps:$4 sm:$0xff]  }
 0x3bb   :  { %5549 = vmatpush1.bf16.msra.mxu1 %v13649_v20  ;;  %6107 = vmatprep.mubr.bf16.mxu0 %v15869_v31  ;;  %v1989_v31 = vsel %vm1907_vm10, %v1977_v19, %v13066_v46  ;;  %v13693_v20 = vld [vmem:[#allocation7 + $0xb24] ss:$16 sps:$4 sm:$0xff]   ;;  %v13706_v46 = vld [vmem:[#allocation7 + $0xb68] ss:$16 sps:$4 sm:$0xff]  }
 0x3bc   :  { %6133 = vmatpush1.bf16.msra.mxu0 %v13652_v50  ;;  %5550 = vmatprep.subr.bf16.mxu1 %v13657_v56  ;;  %v16041_v38 = vmax.f32 %v1989_v31, %v2205_v32  ;;  %v13699_v50 = vld [vmem:[#allocation7 + $0xb44] ss:$16 sps:$4 sm:$0xff]   ;;  %v13702_v56 = vld [vmem:[#allocation7 + $0xb4c] ss:$16 sps:$4 sm:$0xff]  }
 0x3bd   :  { %6134 = vmatprep.subr.bf16.mxu0 %v13660_v43  ;;  %v13705_v43 = vld [vmem:[#allocation7 + $0xb64] ss:$16 sps:$4 sm:$0xff]  }
 0x3be   :  { %v16045_v40 = vpack.c.bf16 %v16041_v38, %v15926_v29  ;;  %v13682_v29 = vld [vmem:[#allocation7 + $0xae8] ss:$16 sps:$4 sm:$0xff]   ;;  %v13717_v19 = vld [vmem:[#allocation7 + $0xba4] ss:$16 sps:$4 sm:$0xff]  }
 0x3bf   :  { %5551 = vmatpush1.bf16.msra.mxu1 %v13655_v9  ;;  %v13711_v9 = vld [vmem:[#allocation7 + $0xb84] ss:$16 sps:$4 sm:$0xff]  }
 0x3c0   :  { %6135 = vmatpush1.bf16.msra.mxu0 %v13658_v36  ;;  %5552 = vmatprep.subr.bf16.mxu1 %v13663_v24  ;;  %v13709_v36 = vld [vmem:[#allocation7 + $0xb80] ss:$16 sps:$4 sm:$0xff]   ;;  %v13712_v24 = vld [vmem:[#allocation7 + $0xb88] ss:$16 sps:$4 sm:$0xff]   ;;  %v13723_v31 = vld [vmem:[#allocation7 + $0xbc4] ss:$16 sps:$4 sm:$0xff]  }
 0x3c1   :  { %5524 = vmatmul.mubr.bf16.gmra.mrb[56].mxu1 %v15885_v8  ;;  %6136 = vmatprep.subr.bf16.mxu0 %v13666_v22  ;;  %v13715_v22 = vld [vmem:[#allocation7 + $0xba0] ss:$16 sps:$4 sm:$0xff]   ;;  %v13729_v32 = vld [vmem:[#allocation7 + $0xbe4] ss:$16 sps:$4 sm:$0xff]  }
 0x3c2   :  { %6108 = vmatmul.mubr.bf16.gmra.mrb[104].mxu0 %v15885_v8  ;;  %5533 = vmatprep.mubr.bf16.mxu1 %v2271_v58 }
 0x3c3   :  { %5553 = vmatpush1.bf16.msra.mxu1 %v13661_v45  ;;  %6117 = vmatprep.mubr.bf16.mxu0 %v2271_v58  ;;  %v13718_v45 = vld [vmem:[#allocation7 + $0xba8] ss:$16 sps:$4 sm:$0xff]   ;;  %v13721_v58 = vld [vmem:[#allocation7 + $0xbc0] ss:$16 sps:$4 sm:$0xff]  }
 0x3c4   :  { %6137 = vmatpush1.bf16.msra.mxu0 %v13664_v51  ;;  %5554 = vmatprep.subr.bf16.mxu1 %v13669_v26  ;;  %v13726_v51 = vld [vmem:[#allocation7 + $0xbcc] ss:$16 sps:$4 sm:$0xff]   ;;  %v13724_v26 = vld [vmem:[#allocation7 + $0xbc8] ss:$16 sps:$4 sm:$0xff]  }
 0x3c5   :  { %6138 = vmatprep.subr.bf16.mxu0 %v13672_v63  ;;  %v13732_v63 = vld [vmem:[#allocation7 + $0xbec] ss:$16 sps:$4 sm:$0xff]  }
 0x3c7   :  { %5555 = vmatpush1.bf16.msra.mxu1 %v13667_v6  ;;  %v16051_v6 = vpop.permute.xlu1 %13073 }
 0x3c8   :  { %6139 = vmatpush1.bf16.msra.mxu0 %v13670_v2  ;;  %5556 = vmatprep.subr.bf16.mxu1 %v13675_v59  ;;  %v13727_v2 = vld [vmem:[#allocation7 + $0xbe0] ss:$16 sps:$4 sm:$0xff]   ;;  %v13730_v59 = vld [vmem:[#allocation7 + $0xbe8] ss:$16 sps:$4 sm:$0xff]  }
 0x3c9   :  { %5534 = vmatmul.mubr.bf16.gmra.mrb[60].mxu1 %v16045_v40  ;;  %6140 = vmatprep.subr.bf16.mxu0 %v13678_v53  ;;  %v13735_v53 = vld [vmem:[#allocation7 + $0xc04] ss:$16 sps:$4 sm:$0xff]  }
 0x3ca   :  { %6118 = vmatmul.mubr.bf16.gmra.mrb[108].mxu0 %v16045_v40  ;;  %5576 = vmatprep.mubr.bf16.mxu1 %v15897_v61 }
 0x3cb   :  { %5557 = vmatpush1.bf16.msra.mxu1 %v13673_v39  ;;  %6160 = vmatprep.mubr.bf16.mxu0 %v15897_v61  ;;  %v13694_v61 = vld [vmem:[#allocation7 + $0xb28] ss:$16 sps:$4 sm:$0xff]   ;;  %v13738_v39 = vld [vmem:[#allocation7 + $0xc0c] ss:$16 sps:$4 sm:$0xff]  }
 0x3cc   :  { %6141 = vmatpush1.bf16.msra.mxu0 %v13676_v30  ;;  %5558 = vmatprep.subr.bf16.mxu1 %v13681_v49  ;;  %v13079_v30 = vpop.permute.xlu0 %13078  ;;  %v16053_v49 = vpop.permute.xlu1 %13083 }
 0x3cd   :  { %6142 = vmatprep.subr.bf16.mxu0 %v13684_v54  ;;  %v13733_v54 = vld [vmem:[#allocation7 + $0xc00] ss:$16 sps:$4 sm:$0xff]  }
 0x3cf   :  { %5559 = vmatpush1.bf16.msra.mxu1 %v13679_v60  ;;  %v13736_v60 = vld [vmem:[#allocation7 + $0xc08] ss:$16 sps:$4 sm:$0xff]  }
 0x3d0   :  { %6143 = vmatpush1.bf16.msra.mxu0 %v13682_v29  ;;  %5560 = vmatprep.subr.bf16.mxu1 %v13687_v62  ;;  %v13741_v29 = vld [vmem:[#allocation7 + $0xc24] ss:$16 sps:$4 sm:$0xff]   ;;  %v13075_v62 = vunpack.i.l.bf16 %v16051_v6 }
 0x3d1   :  { %6144 = vmatprep.subr.bf16.mxu0 %v13690_v13  ;;  %v13080_v13 = vunpack.i.l.bf16 %v13079_v30 }
 0x3d3   :  { %5561 = vmatpush1.bf16.msra.mxu1 %v13685_v4  ;;  %v13744_v4 = vld [vmem:[#allocation7 + $0xc2c] ss:$16 sps:$4 sm:$0xff]  }
 0x3d4   :  { %6145 = vmatpush1.bf16.msra.mxu0 %v13688_v0  ;;  %5562 = vmatprep.subr.bf16.mxu1 %v13693_v20  ;;  %v13085_v0 = vunpack.i.l.bf16 %v16053_v49  ;;  %v13089_v20 = vpop.permute.xlu0 %13088 }
 0x3d5   :  { %6146 = vmatprep.subr.bf16.mxu0 %v13696_v57  ;;  %v13739_v57 = vld [vmem:[#allocation7 + $0xc20] ss:$16 sps:$4 sm:$0xff]  }
 0x3d7   :  { %5563 = vmatpush1.bf16.msra.mxu1 %v13691_v5  ;;  %v13081_v5 = vunpack.i.h.bf16 %v13079_v30  ;;  %v13771_v30 = vld [vmem:[#allocation7 + $0xcc4] ss:$16 sps:$4 sm:$0xff]  }
 0x3d8   :  { %6147 = vmatpush1.bf16.msra.mxu0 %v13694_v61  ;;  %5564 = vmatprep.subr.bf16.mxu1 %v13699_v50  ;;  %v13742_v61 = vld [vmem:[#allocation7 + $0xc28] ss:$16 sps:$4 sm:$0xff]   ;;  %v13747_v50 = vld [vmem:[#allocation7 + $0xc44] ss:$16 sps:$4 sm:$0xff]  }
 0x3d9   :  { %6148 = vmatprep.subr.bf16.mxu0 %v13702_v56  ;;  %v1966_v56 = vsel %vm1881_vm8, %v15662_v35, %v13075_v62  ;;  %v13091_v35 = vunpack.i.h.bf16 %v13089_v20 }
 0x3db   :  { %5565 = vmatpush1.bf16.msra.mxu1 %v13697_v23  ;;  %v2182_v23 = vsel %vm1881_vm8, %v13075_v62, %v13080_v13  ;;  %v13775_v62 = vld [vmem:[#allocation7 + $0xce0] ss:$16 sps:$4 sm:$0xff]   ;;  %v13778_v13 = vld [vmem:[#allocation7 + $0xce8] ss:$16 sps:$4 sm:$0xff]  }
 0x3dc   :  { %6149 = vmatpush1.bf16.msra.mxu0 %v13700_v48  ;;  %5566 = vmatprep.subr.bf16.mxu1 %v13705_v43  ;;  %v13750_v48 = vld [vmem:[#allocation7 + $0xc4c] ss:$16 sps:$4 sm:$0xff]   ;;  %v13090_v43 = vunpack.i.l.bf16 %v13089_v20  ;;  %v13784_v20 = vld [vmem:[#allocation7 + $0xd08] ss:$16 sps:$4 sm:$0xff]  }
 0x3dd   :  { %6150 = vmatprep.subr.bf16.mxu0 %v13708_v44  ;;  %v13745_v44 = vld [vmem:[#allocation7 + $0xc40] ss:$16 sps:$4 sm:$0xff]  }
 0x3df   :  { %5567 = vmatpush1.bf16.msra.mxu1 %v13703_v41  ;;  %v1978_v41 = vsel %vm1894_vm9, %v1966_v56, %v13081_v5  ;;  %v13792_v5 = vld [vmem:[#allocation7 + $0xd2c] ss:$16 sps:$4 sm:$0xff]  }
 0x3e0   :  { %6151 = vmatpush1.bf16.msra.mxu0 %v13706_v46  ;;  %5568 = vmatprep.subr.bf16.mxu1 %v13711_v9  ;;  %v13748_v46 = vld [vmem:[#allocation7 + $0xc48] ss:$16 sps:$4 sm:$0xff]   ;;  %v13753_v9 = vld [vmem:[#allocation7 + $0xc64] ss:$16 sps:$4 sm:$0xff]   ;;  %v13798_v56 = vld [vmem:[#allocation7 + $0xd4c] ss:$16 sps:$4 sm:$0xff]  }
 0x3e1   :  { %6152 = vmatprep.subr.bf16.mxu0 %v13714_v55  ;;  %v1990_v55 = vsel %vm1907_vm10, %v1978_v41, %v13085_v0  ;;  %v13807_v41 = vld [vmem:[#allocation7 + $0xd84] ss:$16 sps:$4 sm:$0xff]  }
 0x3e3   :  { %5569 = vmatpush1.bf16.msra.mxu1 %v13709_v36  ;;  %v13756_v36 = vld [vmem:[#allocation7 + $0xc6c] ss:$16 sps:$4 sm:$0xff]  }
 0x3e4   :  { %6153 = vmatpush1.bf16.msra.mxu0 %v13712_v24  ;;  %5570 = vmatprep.subr.bf16.mxu1 %v13717_v19 }
 0x3e5   :  { %6154 = vmatprep.subr.bf16.mxu0 %v13720_v27  ;;  %v13086_v27 = vunpack.i.h.bf16 %v16053_v49  ;;  %v13774_v49 = vld [vmem:[#allocation7 + $0xccc] ss:$16 sps:$4 sm:$0xff]  }
 0x3e7   :  { %5571 = vmatpush1.bf16.msra.mxu1 %v13715_v22  ;;  %v13751_v22 = vld [vmem:[#allocation7 + $0xc60] ss:$16 sps:$4 sm:$0xff]  }
 0x3e8   :  { %6155 = vmatpush1.bf16.msra.mxu0 %v13718_v45  ;;  %5572 = vmatprep.subr.bf16.mxu1 %v13723_v31  ;;  %v13754_v31 = vld [vmem:[#allocation7 + $0xc68] ss:$16 sps:$4 sm:$0xff]  }
 0x3e9   :  { %6156 = vmatprep.subr.bf16.mxu0 %v13726_v51  ;;  %v13759_v51 = vld [vmem:[#allocation7 + $0xc84] ss:$16 sps:$4 sm:$0xff]  }
 0x3eb   :  { %5573 = vmatpush1.bf16.msra.mxu1 %v13721_v58 }
 0x3ec   :  { %6157 = vmatpush1.bf16.msra.mxu0 %v13724_v26  ;;  %5574 = vmatprep.subr.bf16.mxu1 %v13729_v32  ;;  %v13762_v26 = vld [vmem:[#allocation7 + $0xc8c] ss:$16 sps:$4 sm:$0xff]   ;;  %v13757_v32 = vld [vmem:[#allocation7 + $0xc80] ss:$16 sps:$4 sm:$0xff]  }
 0x3ed   :  { %6158 = vmatprep.subr.bf16.mxu0 %v13732_v63  ;;  %v13765_v63 = vld [vmem:[#allocation7 + $0xca4] ss:$16 sps:$4 sm:$0xff]  }
 0x3ef   :  { %5575 = vmatpush1.bf16.msra.mxu1 %v13727_v2 }
 0x3f0   :  { %6159 = vmatpush1.bf16.msra.mxu0 %v13730_v59  ;;  %5617 = vmatprep.subr.bf16.mxu1 %v13735_v53  ;;  %v13768_v59 = vld [vmem:[#allocation7 + $0xcac] ss:$16 sps:$4 sm:$0xff]   ;;  %v13763_v53 = vld [vmem:[#allocation7 + $0xca0] ss:$16 sps:$4 sm:$0xff]  }
 0x3f1   :  { %6201 = vmatprep.subr.bf16.mxu0 %v13738_v39 }
 0x3f2   :  { %5577 = vmatmul.mubr.bf16.vlgmr.msra.gmra.mrb[48].mxu1 %v15598_v10 }
 0x3f3   :  { %6161 = vmatmul.mubr.bf16.vlgmr.msra.gmra.mrb[96].mxu0 %v15598_v10  ;;  %5586 = vmatprep.mubr.bf16.mxu1 %v15913_v11  ;;  %v2194_v10 = vsel %vm1894_vm9, %v2182_v23, %v13085_v0  ;;  %v13781_v0 = vld [vmem:[#allocation7 + $0xd00] ss:$16 sps:$4 sm:$0xff]  }
 0x3f4   :  { %5618 = vmatpush1.bf16.msra.mxu1 %v13733_v54  ;;  %6170 = vmatprep.mubr.bf16.mxu0 %v15913_v11  ;;  %v13076_v11 = vunpack.i.h.bf16 %v16051_v6  ;;  %v2206_v24 = vsel %vm1907_vm10, %v2194_v10, %v15676_v7  ;;  %v13769_v54 = vld [vmem:[#allocation7 + $0xcc0] ss:$16 sps:$4 sm:$0xff]   ;;  %v13801_v10 = vld [vmem:[#allocation7 + $0xd64] ss:$16 sps:$4 sm:$0xff]  }
 0x3f5   :  { %6202 = vmatpush1.bf16.msra.mxu0 %v13736_v60  ;;  %5619 = vmatprep.subr.bf16.mxu1 %v13741_v29  ;;  %v16078_v7 = vmax.f32 %v1990_v55, %v2206_v24  ;;  %v13777_v60 = vld [vmem:[#allocation7 + $0xce4] ss:$16 sps:$4 sm:$0xff]   ;;  %v13780_v29 = vld [vmem:[#allocation7 + $0xcec] ss:$16 sps:$4 sm:$0xff]   ;;  %v13793_v23 = vld [vmem:[#allocation7 + $0xd40] ss:$16 sps:$4 sm:$0xff]  }
 0x3f6   :  { %6203 = vmatprep.subr.bf16.mxu0 %v13744_v4  ;;  %v2146_v19 = vsel %vm1881_vm8, %v13076_v11, %v13090_v43  ;;  %v1930_v45 = vsel %vm1881_vm8, %v16541_v28, %v13076_v11  ;;  %v13783_v4 = vld [vmem:[#allocation7 + $0xd04] ss:$16 sps:$4 sm:$0xff]   ;;  %v13804_v43 = vld [vmem:[#allocation7 + $0xd6c] ss:$16 sps:$4 sm:$0xff]   ;;  %v13802_v11 = vld [vmem:[#allocation7 + $0xd68] ss:$16 sps:$4 sm:$0xff]  }
 0x3f7   :  { %v1942_v58 = vsel %vm1894_vm9, %v1930_v45, %v13091_v35  ;;  %v2273_v28 = vpack.c.bf16 %v16078_v7, %v16041_v38  ;;  %v13766_v38 = vld [vmem:[#allocation7 + $0xca8] ss:$16 sps:$4 sm:$0xff]   ;;  %v13813_v35 = vld [vmem:[#allocation7 + $0xda4] ss:$16 sps:$4 sm:$0xff]   ;;  %v13811_v24 = vld [vmem:[#allocation7 + $0xda0] ss:$16 sps:$4 sm:$0xff]  }
 0x3f8   :  { %5620 = vmatpush1.bf16.msra.mxu1 %v13739_v57  ;;  %v1954_v6 = vsel %vm1907_vm10, %v1942_v58, %v13086_v27  ;;  %v13789_v57 = vld [vmem:[#allocation7 + $0xd24] ss:$16 sps:$4 sm:$0xff]   ;;  %v13808_v55 = vld [vmem:[#allocation7 + $0xd88] ss:$16 sps:$4 sm:$0xff]   ;;  %v13817_v45 = vld [vmem:[#allocation7 + $0xdc0] ss:$16 sps:$4 sm:$0xff]  }
 0x3f9   :  { %6204 = vmatpush1.bf16.msra.mxu0 %v13742_v61  ;;  %5621 = vmatprep.subr.bf16.mxu1 %v13747_v50  ;;  %v13787_v61 = vld [vmem:[#allocation7 + $0xd20] ss:$16 sps:$4 sm:$0xff]   ;;  %v13795_v50 = vld [vmem:[#allocation7 + $0xd44] ss:$16 sps:$4 sm:$0xff]   ;;  %v13828_v58 = vld [vmem:[#allocation7 + $0xdec] ss:$16 sps:$4 sm:$0xff]  }
 0x3fa   :  { %5587 = vmatmul.mubr.bf16.gmra.mrb[52].mxu1 %v15722_v42  ;;  %6205 = vmatprep.subr.bf16.mxu0 %v13750_v48  ;;  %v13796_v48 = vld [vmem:[#allocation7 + $0xd48] ss:$16 sps:$4 sm:$0xff]  }
 0x3fb   :  { %6171 = vmatmul.mubr.bf16.gmra.mrb[100].mxu0 %v15722_v42  ;;  %5596 = vmatprep.mubr.bf16.mxu1 %v15933_v52  ;;  %v2158_v42 = vsel %vm1894_vm9, %v2146_v19, %v13086_v27  ;;  %v13814_v19 = vld [vmem:[#allocation7 + $0xda8] ss:$16 sps:$4 sm:$0xff]   ;;  %v13819_v27 = vld [vmem:[#allocation7 + $0xdc4] ss:$16 sps:$4 sm:$0xff]  }
 0x3fc   :  { %5622 = vmatpush1.bf16.msra.mxu1 %v13745_v44  ;;  %6180 = vmatprep.mubr.bf16.mxu0 %v15933_v52  ;;  %v13760_v52 = vld [vmem:[#allocation7 + $0xc88] ss:$16 sps:$4 sm:$0xff]   ;;  %v2170_v2 = vsel %vm1907_vm10, %v2158_v42, %v16542_v34  ;;  %v13799_v44 = vld [vmem:[#allocation7 + $0xd60] ss:$16 sps:$4 sm:$0xff]   ;;  %v16095_v42 = vpop.permute.xlu1 %13093 }
 0x3fd   :  { %6206 = vmatpush1.bf16.msra.mxu0 %v13748_v46  ;;  %5623 = vmatprep.subr.bf16.mxu1 %v13753_v9  ;;  %v16089_v39 = vmax.f32 %v1954_v6, %v2170_v2  ;;  %v13810_v46 = vld [vmem:[#allocation7 + $0xd8c] ss:$16 sps:$4 sm:$0xff]   ;;  %v13805_v9 = vld [vmem:[#allocation7 + $0xd80] ss:$16 sps:$4 sm:$0xff]  }
 0x3fe   :  { %6207 = vmatprep.subr.bf16.mxu0 %v13756_v36  ;;  %v13816_v36 = vld [vmem:[#allocation7 + $0xdac] ss:$16 sps:$4 sm:$0xff]   ;;  %v13829_v2 = vld [vmem:[#allocation7 + $0xe00] ss:$16 sps:$4 sm:$0xff]  }
 0x3ff   :  { %v2272_v34 = vpack.c.bf16 %v16089_v39, %v15978_v14  ;;  %v13786_v14 = vld [vmem:[#allocation7 + $0xd0c] ss:$16 sps:$4 sm:$0xff]  }
 0x400   :  { %5624 = vmatpush1.bf16.msra.mxu1 %v13751_v22  ;;  %v13822_v22 = vld [vmem:[#allocation7 + $0xdcc] ss:$16 sps:$4 sm:$0xff]   ;;  %v16097_v6 = vpop.permute.xlu1 %13103 }
 0x401   :  { %6208 = vmatpush1.bf16.msra.mxu0 %v13754_v31  ;;  %5625 = vmatprep.subr.bf16.mxu1 %v13759_v51  ;;  %v13820_v31 = vld [vmem:[#allocation7 + $0xdc8] ss:$16 sps:$4 sm:$0xff]   ;;  %v13825_v51 = vld [vmem:[#allocation7 + $0xde4] ss:$16 sps:$4 sm:$0xff]  }
 0x402   :  { %5597 = vmatmul.mubr.bf16.gmra.mrb[56].mxu1 %v15945_v25  ;;  %6209 = vmatprep.subr.bf16.mxu0 %v13762_v26  ;;  %v13823_v26 = vld [vmem:[#allocation7 + $0xde0] ss:$16 sps:$4 sm:$0xff]  }
 0x403   :  { %6181 = vmatmul.mubr.bf16.gmra.mrb[104].mxu0 %v15945_v25  ;;  %5606 = vmatprep.mubr.bf16.mxu1 %v2273_v28  ;;  %v13772_v25 = vld [vmem:[#allocation7 + $0xcc8] ss:$16 sps:$4 sm:$0xff]  }
 0x404   :  { %5626 = vmatpush1.bf16.msra.mxu1 %v13757_v32  ;;  %6190 = vmatprep.mubr.bf16.mxu0 %v2273_v28  ;;  %v13826_v32 = vld [vmem:[#allocation7 + $0xde8] ss:$16 sps:$4 sm:$0xff]   ;;  %v13834_v28 = vld [vmem:[#allocation7 + $0xe0c] ss:$16 sps:$4 sm:$0xff]  }
 0x405   :  { %6210 = vmatpush1.bf16.msra.mxu0 %v13760_v52  ;;  %5627 = vmatprep.subr.bf16.mxu1 %v13765_v63  ;;  %v13831_v52 = vld [vmem:[#allocation7 + $0xe04] ss:$16 sps:$4 sm:$0xff]   ;;  %v13099_v63 = vpop.permute.xlu0 %13098 }
 0x406   :  { %6211 = vmatprep.subr.bf16.mxu0 %v13768_v59  ;;  %v13832_v59 = vld [vmem:[#allocation7 + $0xe08] ss:$16 sps:$4 sm:$0xff]  }
 0x408   :  { %5628 = vmatpush1.bf16.msra.mxu1 %v13763_v53  ;;  %v13837_v53 = vld [vmem:[#allocation7 + $0xe24] ss:$16 sps:$4 sm:$0xff]  }
 0x409   :  { %6212 = vmatpush1.bf16.msra.mxu0 %v13766_v38  ;;  %5629 = vmatprep.subr.bf16.mxu1 %v13771_v30  ;;  %v13095_v38 = vunpack.i.l.bf16 %v16095_v42  ;;  %v13100_v30 = vunpack.i.l.bf16 %v13099_v63 }
 0x40a   :  { %5607 = vmatmul.mubr.bf16.gmra.mrb[60].mxu1 %v2272_v34  ;;  %6213 = vmatprep.subr.bf16.mxu0 %v13774_v49  ;;  %v13840_v49 = vld [vmem:[#allocation7 + $0xe2c] ss:$16 sps:$4 sm:$0xff]  }
 0x40b   :  { %6191 = vmatmul.mubr.bf16.gmra.mrb[108].mxu0 %v2272_v34  ;;  %5649 = vmatprep.mubr.bf16.mxu1 %v15575_v21  ;;  %v13105_v34 = vunpack.i.l.bf16 %v16097_v6 }
 0x40c   :  { %5630 = vmatpush1.bf16.msra.mxu1 %v13769_v54  ;;  %6233 = vmatprep.mubr.bf16.mxu0 %v15575_v21  ;;  %v13790_v21 = vld [vmem:[#allocation7 + $0xd28] ss:$16 sps:$4 sm:$0xff]   ;;  %v13109_v54 = vpop.permute.xlu0 %13108 }
 0x40d   :  { %6214 = vmatpush1.bf16.msra.mxu0 %v13772_v25  ;;  %5631 = vmatprep.subr.bf16.mxu1 %v13777_v60  ;;  %v13835_v25 = vld [vmem:[#allocation7 + $0xe20] ss:$16 sps:$4 sm:$0xff]   ;;  %v13101_v60 = vunpack.i.h.bf16 %v13099_v63  ;;  %v1784_v63 = vpop.permute.xlu1 %1783 }
 0x40e   :  { %6215 = vmatprep.subr.bf16.mxu0 %v13780_v29  ;;  %v13838_v29 = vld [vmem:[#allocation7 + $0xe28] ss:$16 sps:$4 sm:$0xff]  }
 0x410   :  { %5632 = vmatpush1.bf16.msra.mxu1 %v13775_v62  ;;  %v13843_v62 = vld [vmem:[#allocation7 + $0xe44] ss:$16 sps:$4 sm:$0xff]  }
 0x411   :  { %6216 = vmatpush1.bf16.msra.mxu0 %v13778_v13  ;;  %5633 = vmatprep.subr.bf16.mxu1 %v13783_v4  ;;  %v1931_v13 = vsel %vm1881_vm8, %v16543_v18, %v13095_v38  ;;  %v2147_v4 = vsel %vm1881_vm8, %v13095_v38, %v13100_v30  ;;  %v13111_v18 = vunpack.i.h.bf16 %v13109_v54  ;;  %v16559_v38 = vld [vmem:[#allocation30_spill] sm:$0xff] }
 0x412   :  { %6217 = vmatprep.subr.bf16.mxu0 %v13786_v14  ;;  %v13846_v14 = vld [vmem:[#allocation7 + $0xe4c] ss:$16 sps:$4 sm:$0xff]   ;;  %v1967_v30 = vsel %vm1881_vm8, %v16559_v38, %v1784_v63  ;;  %v6648_v38 = vld [vmem:[#allocation10 + $0x5e0] sm:$0xff] }
 0x414   :  { %5634 = vmatpush1.bf16.msra.mxu1 %v13781_v0  ;;  %v13110_v0 = vunpack.i.l.bf16 %v13109_v54  ;;  %v16560_v54 = vld [vmem:[#allocation32_spill] sm:$0xff] }
 0x415   :  { %6218 = vmatpush1.bf16.msra.mxu0 %v13784_v20  ;;  %5635 = vmatprep.subr.bf16.mxu1 %v13789_v57  ;;  %v13841_v20 = vld [vmem:[#allocation7 + $0xe40] ss:$16 sps:$4 sm:$0xff]   ;;  %v1943_v57 = vsel %vm1894_vm9, %v1931_v13, %v13101_v60  ;;  %v6590_v13 = vld [vmem:[#allocation10 + $0x410] sm:$0xff] }
 0x416   :  { %6219 = vmatprep.subr.bf16.mxu0 %v13792_v5  ;;  %v13844_v5 = vld [vmem:[#allocation7 + $0xe48] ss:$16 sps:$4 sm:$0xff]  }
 0x418   :  { %5636 = vmatpush1.bf16.msra.mxu1 %v13787_v61  ;;  %v13849_v61 = vld [vmem:[#allocation7 + $0xe64] ss:$16 sps:$4 sm:$0xff]  }
 0x419   :  { %6220 = vmatpush1.bf16.msra.mxu0 %v13790_v21  ;;  %5637 = vmatprep.subr.bf16.mxu1 %v13795_v50  ;;  %v1955_v21 = vsel %vm1907_vm10, %v1943_v57, %v13105_v34  ;;  %v13852_v50 = vld [vmem:[#allocation7 + $0xe6c] ss:$16 sps:$4 sm:$0xff]  }
 0x41a   :  { %6221 = vmatprep.subr.bf16.mxu0 %v13798_v56 }
 0x41c   :  { %5638 = vmatpush1.bf16.msra.mxu1 %v13793_v23 }
 0x41d   :  { %6222 = vmatpush1.bf16.msra.mxu0 %v13796_v48  ;;  %5639 = vmatprep.subr.bf16.mxu1 %v13801_v10  ;;  %v13106_v48 = vunpack.i.h.bf16 %v16097_v6  ;;  %v13847_v10 = vld [vmem:[#allocation7 + $0xe60] ss:$16 sps:$4 sm:$0xff]  }
 0x41e   :  { %6223 = vmatprep.subr.bf16.mxu0 %v13804_v43 }
 0x420   :  { %5640 = vmatpush1.bf16.msra.mxu1 %v13799_v44  ;;  %v13850_v44 = vld [vmem:[#allocation7 + $0xe68] ss:$16 sps:$4 sm:$0xff]  }
 0x421   :  { %6224 = vmatpush1.bf16.msra.mxu0 %v13802_v11  ;;  %5641 = vmatprep.subr.bf16.mxu1 %v13807_v41  ;;  %v13855_v11 = vld [vmem:[#allocation7 + $0xe84] ss:$16 sps:$4 sm:$0xff]  }
 0x422   :  { %6225 = vmatprep.subr.bf16.mxu0 %v13810_v46  ;;  %v13858_v46 = vld [vmem:[#allocation7 + $0xe8c] ss:$16 sps:$4 sm:$0xff]  }
 0x424   :  { %5642 = vmatpush1.bf16.msra.mxu1 %v13805_v9  ;;  %v13853_v9 = vld [vmem:[#allocation7 + $0xe80] ss:$16 sps:$4 sm:$0xff]  }
 0x425   :  { %6226 = vmatpush1.bf16.msra.mxu0 %v13808_v55  ;;  %5643 = vmatprep.subr.bf16.mxu1 %v13813_v35  ;;  %v13861_v35 = vld [vmem:[#allocation7 + $0xea4] ss:$16 sps:$4 sm:$0xff]  }
 0x426   :  { %6227 = vmatprep.subr.bf16.mxu0 %v13816_v36  ;;  %v16558_v36 = vld [vmem:[#allocation39_spill] sm:$0xff] }
 0x428   :  { %5644 = vmatpush1.bf16.msra.mxu1 %v13811_v24 }
 0x429   :  { %6228 = vmatpush1.bf16.msra.mxu0 %v13814_v19  ;;  %5645 = vmatprep.subr.bf16.mxu1 %v13819_v27  ;;  %v13864_v19 = vld [vmem:[#allocation7 + $0xeac] ss:$16 sps:$4 sm:$0xff]   ;;  %v13859_v27 = vld [vmem:[#allocation7 + $0xea0] ss:$16 sps:$4 sm:$0xff]  }
 0x42a   :  { %6229 = vmatprep.subr.bf16.mxu0 %v13822_v22 }
 0x42c   :  { %5646 = vmatpush1.bf16.msra.mxu1 %v13817_v45  ;;  %v13867_v45 = vld [vmem:[#allocation7 + $0xec4] ss:$16 sps:$4 sm:$0xff]  }
 0x42d   :  { %6230 = vmatpush1.bf16.msra.mxu0 %v13820_v31  ;;  %5647 = vmatprep.subr.bf16.mxu1 %v13825_v51  ;;  %v13870_v31 = vld [vmem:[#allocation7 + $0xecc] ss:$16 sps:$4 sm:$0xff]  }
 0x42e   :  { %6231 = vmatprep.subr.bf16.mxu0 %v13828_v58  ;;  %v13865_v58 = vld [vmem:[#allocation7 + $0xec0] ss:$16 sps:$4 sm:$0xff]  }
 0x430   :  { %5648 = vmatpush1.bf16.msra.mxu1 %v13823_v26  ;;  %v13873_v26 = vld [vmem:[#allocation7 + $0xee4] ss:$16 sps:$4 sm:$0xff]  }
 0x431   :  { %6232 = vmatpush1.bf16.msra.mxu0 %v13826_v32  ;;  %5690 = vmatprep.subr.bf16.mxu1 %v13831_v52  ;;  %v14200_v32 = vmov 0   ;;  %v13871_v52 = vld [vmem:[#allocation7 + $0xee0] ss:$16 sps:$4 sm:$0xff]  }
 0x432   :  { %6274 = vmatprep.subr.bf16.mxu0 %v13834_v28  ;;  %v13874_v28 = vld [vmem:[#allocation7 + $0xee8] ss:$16 sps:$4 sm:$0xff]  }
 0x433   :  { %5650 = vmatmul.mubr.bf16.vlgmr.msra.gmra.mrb[48].mxu1 %v16557_v47 }
 0x434   :  { %6234 = vmatmul.mubr.bf16.vlgmr.msra.gmra.mrb[96].mxu0 %v16557_v47  ;;  %5659 = vmatprep.mubr.bf16.mxu1 %v15688_v3  ;;  %v2159_v47 = vsel %vm1894_vm9, %v2147_v4, %v13105_v34 }
 0x435   :  { %5691 = vmatpush1.bf16.msra.mxu1 %v13829_v2  ;;  %6243 = vmatprep.mubr.bf16.mxu0 %v15688_v3  ;;  %v13096_v3 = vunpack.i.h.bf16 %v16095_v42  ;;  %v2171_v56 = vsel %vm1907_vm10, %v2159_v47, %v16545_v37  ;;  %v13868_v42 = vld [vmem:[#allocation7 + $0xec8] ss:$16 sps:$4 sm:$0xff]  }
 0x436   :  { %6275 = vmatpush1.bf16.msra.mxu0 %v13832_v59  ;;  %5692 = vmatprep.subr.bf16.mxu1 %v13837_v53  ;;  %v2242_v37 = vmax.f32 %v1955_v21, %v2171_v56  ;;  %v1868_v59 = vpop.permute.xlu1 %1867  ;;  %v6594_v47 = vld [vmem:[#allocation10 + $0x430] sm:$0xff]  ;;  %v6604_v21 = vld [vmem:[#allocation10 + $0x480] sm:$0xff] }
 0x437   :  { %6276 = vmatprep.subr.bf16.mxu0 %v13840_v49  ;;  %v2111_v23 = vsel %vm1881_vm8, %v13096_v3, %v13110_v0  ;;  %v1893_v43 = vsel %vm1881_vm8, %v16544_v16, %v13096_v3  ;;  %v6596_v0 = vld [vmem:[#allocation10 + $0x440] sm:$0xff]  ;;  %v11542_v3 = vcombine.low %v6590_v13, %v6594_v47  ;;  %v11543_v57 = vcombine.high %v6590_v13, %v6594_v47  ;;  %v6610_v56 = vld [vmem:[#allocation10 + $0x4b0] sm:$0xff] }
 0x438   :  { %v1906_v41 = vsel %vm1894_vm9, %v1893_v43, %v13111_v18  ;;  %v2275_v55 = vpack.c.bf16 %v2242_v37, %v16089_v39  ;;  %v13862_v39 = vld [vmem:[#allocation7 + $0xea8] ss:$16 sps:$4 sm:$0xff]  }
 0x439   :  { %5693 = vmatpush1.bf16.msra.mxu1 %v13835_v25  ;;  %v1919_v16 = vsel %vm1907_vm10, %v1906_v41, %v13106_v48  ;;  %v6614_v37 = vld [vmem:[#allocation10 + $0x4d0] sm:$0xff] }
 0x43a   :  { %6277 = vmatpush1.bf16.msra.mxu0 %v13838_v29  ;;  %5694 = vmatprep.subr.bf16.mxu1 %v13843_v62  ;;  %v6588_v29 = vld [vmem:[#allocation10 + $0x400] sm:$0xff]  ;;  %v6618_v41 = vld [vmem:[#allocation10 + $0x4f0] sm:$0xff] }
 0x43b   :  { %5660 = vmatmul.mubr.bf16.gmra.mrb[52].mxu1 %v15725_v33  ;;  %6278 = vmatprep.subr.bf16.mxu0 %v13846_v14  ;;  %v6592_v62 = vld [vmem:[#allocation10 + $0x420] sm:$0xff] }
 0x43c   :  { %6244 = vmatmul.mubr.bf16.gmra.mrb[100].mxu0 %v15725_v33  ;;  %5669 = vmatprep.mubr.bf16.mxu1 %v15985_v17  ;;  %v2123_v33 = vsel %vm1894_vm9, %v2111_v23, %v13106_v48  ;;  %v11538_v4 = vcombine.low %v6588_v29, %v6592_v62  ;;  %v11539_v14 = vcombine.high %v6588_v29, %v6592_v62  ;;  %v6654_v29 = vld [vmem:[#allocation10 + $0x610] sm:$0xff] }
 0x43d   :  { %5695 = vmatpush1.bf16.msra.mxu1 %v13841_v20  ;;  %6253 = vmatprep.mubr.bf16.mxu0 %v15985_v17  ;;  %v13856_v17 = vld [vmem:[#allocation7 + $0xe88] ss:$16 sps:$4 sm:$0xff]   ;;  %v2135_v24 = vsel %vm1907_vm10, %v2123_v33, %v16558_v36 }
 0x43e   :  { %6279 = vmatpush1.bf16.msra.mxu0 %v13844_v5  ;;  %5696 = vmatprep.subr.bf16.mxu1 %v13849_v61  ;;  %v2241_v22 = vmax.f32 %v1919_v16, %v2135_v24  ;;  %v6600_v20 = vld [vmem:[#allocation10 + $0x460] sm:$0xff]  ;;  %v6598_v61 = vld [vmem:[#allocation10 + $0x450] sm:$0xff] }
 0x43f   :  { %6280 = vmatprep.subr.bf16.mxu0 %v13852_v50  ;;  %v11547_v5 = vcombine.high %v6596_v0, %v6600_v20  ;;  %v6608_v50 = vld [vmem:[#allocation10 + $0x4a0] sm:$0xff]  ;;  %v11546_v23 = vcombine.low %v6596_v0, %v6600_v20  ;;  %v6622_v16 = vld [vmem:[#allocation10 + $0x510] sm:$0xff] }
 0x440   :  { %v2274_v51 = vpack.c.bf16 %v2241_v22, %v16030_v1  ;;  %v13114_v1 = vpop.permute.xlu0 %13113  ;;  %v11554_v33 = vcombine.low %v6604_v21, %v6608_v50  ;;  %v6626_v36 = vld [vmem:[#allocation10 + $0x530] sm:$0xff]  ;;  %v6660_v0 = vld [vmem:[#allocation10 + $0x640] sm:$0xff] }
 0x441   :  { %5697 = vmatpush1.bf16.msra.mxu1 %v13847_v10  ;;  %v13115_v6 = vunpack.i.l.bf16 %v13114_v1  ;;  %v13116_v2 = vunpack.i.h.bf16 %v13114_v1  ;;  %v11555_v10 = vcombine.high %v6604_v21, %v6608_v50  ;;  %v11575_v22 = vcombine.high %v6622_v16, %v6626_v36  ;;  %v6642_v1 = vld [vmem:[#allocation10 + $0x5b0] sm:$0xff]  ;;  %v6664_v20 = vld [vmem:[#allocation10 + $0x660] sm:$0xff] }
 0x442   :  { %6281 = vmatpush1.bf16.msra.mxu0 %v13850_v44  ;;  %5698 = vmatprep.subr.bf16.mxu1 %v13855_v11  ;;  %v6612_v44 = vld [vmem:[#allocation10 + $0x4c0] sm:$0xff]  ;;  %v6658_v62 = vld [vmem:[#allocation10 + $0x630] sm:$0xff] }
 0x443   :  { %5670 = vmatmul.mubr.bf16.gmra.mrb[56].mxu1 %v15997_v12  ;;  %6282 = vmatprep.subr.bf16.mxu0 %v13858_v46  ;;  %v2183_v53 = vsel %vm1881_vm8, %v1784_v63, %v13115_v6  ;;  %v6616_v11 = vld [vmem:[#allocation10 + $0x4e0] sm:$0xff]  ;;  %v11607_v47 = vcombine.high %v6654_v29, %v6658_v62 }
 0x444   :  { %6254 = vmatmul.mubr.bf16.gmra.mrb[104].mxu0 %v15997_v12  ;;  %5679 = vmatprep.mubr.bf16.mxu1 %v2275_v55  ;;  %v13876_v12 = vld [vmem:[#allocation7 + $0xeec] ss:$16 sps:$4 sm:$0xff]   ;;  %v2195_v49 = vsel %vm1894_vm9, %v2183_v53, %v1868_v59  ;;  %v11562_v24 = vcombine.low %v6612_v44, %v6616_v11  ;;  %v6644_v53 = vld [vmem:[#allocation10 + $0x5c0] sm:$0xff] }
 0x445   :  { %5699 = vmatpush1.bf16.msra.mxu1 %v13853_v9  ;;  %6263 = vmatprep.mubr.bf16.mxu0 %v2275_v55  ;;  %v2207_v25 = vsel %vm1907_vm10, %v2195_v49, %v16560_v54  ;;  %v11563_v9 = vcombine.high %v6612_v44, %v6616_v11  ;;  %v6620_v55 = vld [vmem:[#allocation10 + $0x500] sm:$0xff]  ;;  %v11595_v54 = vcombine.high %v6644_v53, %v6648_v38 }
 0x446   :  { %6283 = vmatpush1.bf16.msra.mxu0 %v13856_v17  ;;  %5700 = vmatprep.subr.bf16.mxu1 %v13861_v35  ;;  %v11567_v17 = vcombine.high %v6614_v37, %v6618_v41  ;;  %v6624_v35 = vld [vmem:[#allocation10 + $0x520] sm:$0xff]  ;;  %v11594_v13 = vcombine.low %v6644_v53, %v6648_v38 }
 0x447   :  { %6284 = vmatprep.subr.bf16.mxu0 %v13864_v19  ;;  %v11566_v19 = vcombine.low %v6614_v37, %v6618_v41  ;;  %v6672_v50 = vld [vmem:[#allocation10 + $0x6a0] sm:$0xff]  ;;  %v6678_v37 = vld [vmem:[#allocation10 + $0x6d0] sm:$0xff] }
 0x448   :  { %v6676_v44 = vld [vmem:[#allocation10 + $0x6c0] sm:$0xff]  ;;  %v6682_v41 = vld [vmem:[#allocation10 + $0x6f0] sm:$0xff] }
 0x449   :  { %5701 = vmatpush1.bf16.msra.mxu1 %v13859_v27  ;;  %v11571_v27 = vcombine.high %v6620_v55, %v6624_v35  ;;  %v6680_v11 = vld [vmem:[#allocation10 + $0x6e0] sm:$0xff] }
 0x44a   :  { %6285 = vmatpush1.bf16.msra.mxu0 %v13862_v39  ;;  %5702 = vmatprep.subr.bf16.mxu1 %v13867_v45  ;;  %v6628_v39 = vld [vmem:[#allocation10 + $0x540] sm:$0xff] }
 0x44b   :  { %5680 = vmatmul.mubr.bf16.gmra.mrb[60].mxu1 %v2274_v51  ;;  %6286 = vmatprep.subr.bf16.mxu0 %v13870_v31  ;;  %v6632_v45 = vld [vmem:[#allocation10 + $0x560] sm:$0xff]  ;;  %v6630_v31 = vld [vmem:[#allocation10 + $0x550] sm:$0xff] }
 0x44c   :  { %6264 = vmatmul.mubr.bf16.gmra.mrb[108].mxu0 %v2274_v51  ;;  %5722 = vmatprep.mubr.bf16.mxu1 %v14200_v32  ;;  %v6634_v51 = vld [vmem:[#allocation10 + $0x570] sm:$0xff]  ;;  %v11578_v63 = vcombine.low %v6628_v39, %v6632_v45  ;;  %v16562_v38 = vld [vmem:[#allocation25_spill] sm:$0xff] }
 0x44d   :  { %5703 = vmatpush1.bf16.msra.mxu1 %v13865_v58  ;;  %6306 = vmatprep.mubr.bf16.mxu0 %v14200_v32  ;;  %v11570_v58 = vcombine.low %v6620_v55, %v6624_v35  ;;  %v11582_v6 = vcombine.low %v6630_v31, %v6634_v51  ;;  %v6684_v55 = vld [vmem:[#allocation10 + $0x700] sm:$0xff] }
 0x44e   :  { %6287 = vmatpush1.bf16.msra.mxu0 %v13868_v42  ;;  %5704 = vmatprep.subr.bf16.mxu1 %v13873_v26  ;;  %v11574_v42 = vcombine.low %v6622_v16, %v6626_v36  ;;  %v11579_v26 = vcombine.high %v6628_v39, %v6632_v45  ;;  %v6688_v35 = vld [vmem:[#allocation10 + $0x720] sm:$0xff]  ;;  %v6686_v16 = vld [vmem:[#allocation10 + $0x710] sm:$0xff] }
 0x44f   :  { %6288 = vmatprep.subr.bf16.mxu0 %v13876_v12  ;;  %v11583_v12 = vcombine.high %v6630_v31, %v6634_v51  ;;  %v6690_v36 = vld [vmem:[#allocation10 + $0x730] sm:$0xff]  ;;  %v6692_v39 = vld [vmem:[#allocation10 + $0x740] sm:$0xff] }
 0x450   :  { %v6696_v45 = vld [vmem:[#allocation10 + $0x760] sm:$0xff]  ;;  %v6694_v31 = vld [vmem:[#allocation10 + $0x750] sm:$0xff] }
 0x451   :  { %5705 = vmatpush1.bf16.msra.mxu1 %v13871_v52  ;;  %v6640_v52 = vld [vmem:[#allocation10 + $0x5a0] sm:$0xff]  ;;  %v6698_v51 = vld [vmem:[#allocation10 + $0x770] sm:$0xff] }
 0x452   :  { %6289 = vmatpush1.bf16.msra.mxu0 %v13874_v28  ;;  %7356 = vmatprep.subr.bf16.mxu1 %v11539_v14  ;;  %v6638_v28 = vld [vmem:[#allocation10 + $0x590] sm:$0xff] }
 0x453   :  { %7438 = vmatprep.subr.bf16.mxu0 %v11543_v57  ;;  %v6666_v57 = vld [vmem:[#allocation10 + $0x670] sm:$0xff] }
 0x454   :  { %5723 = vmatmul.mubr.bf16.vlgmr.msra.gmra.mrb[48].mxu1 %v15841_v15 }
 0x455   :  { %6307 = vmatmul.mubr.bf16.vlgmr.msra.gmra.mrb[96].mxu0 %v15841_v15  ;;  %5732 = vmatprep.mubr.bf16.mxu1 %v14200_v32  ;;  %v1979_v15 = vsel %vm1894_vm9, %v1967_v30, %v13116_v2  ;;  %v6646_v30 = vld [vmem:[#allocation10 + $0x5d0] sm:$0xff] }
 0x456   :  { %6316 = vmatprep.mubr.bf16.mxu0 %v14200_v32  ;;  %v1991_v34 = vsel %vm1907_vm10, %v1979_v15, %v1868_v59  ;;  %7357 = vmatpush1.bf16.msra.mxu1 %v11538_v4  ;;  %v11591_v59 = vcombine.high %v6638_v28, %v6642_v1  ;;  %v6650_v15 = vld [vmem:[#allocation10 + $0x5f0] sm:$0xff] }
 0x457   :  { %7439 = vmatpush1.bf16.msra.mxu0 %v11542_v3  ;;  %7358 = vmatprep.subr.bf16.mxu1 %v11547_v5  ;;  %v11598_v4 = vcombine.low %v6646_v30, %v6650_v15  ;;  %v6662_v3 = vld [vmem:[#allocation10 + $0x650] sm:$0xff] }
 0x458   :  { %v11615_v21 = vcombine.high %v6662_v3, %v6666_v57 }
 0x45a   :  { %7359 = vmatpush1.bf16.msra.mxu1 %v11546_v23  ;;  %v11610_v23 = vcombine.low %v6660_v0, %v6664_v20 }
 0x45b   :  { %7360 = vmatprep.subr.bf16.mxu1 %v11555_v10 }
 0x45c   :  { %5733 = vmatmul.mubr.bf16.gmra.mrb[52].mxu1 %v15885_v8 }
 0x45d   :  { %6317 = vmatmul.mubr.bf16.gmra.mrb[100].mxu0 %v15885_v8  ;;  %5742 = vmatprep.mubr.bf16.mxu1 %v14200_v32  ;;  %v2243_v8 = vmax.f32 %v1991_v34, %v2207_v25  ;;  %v11590_v34 = vcombine.low %v6638_v28, %v6642_v1  ;;  %v11599_v25 = vcombine.high %v6646_v30, %v6650_v15 }
 0x45e   :  { %6326 = vmatprep.mubr.bf16.mxu0 %v14200_v32  ;;  %7361 = vmatpush1.bf16.msra.mxu1 %v11554_v33  ;;  %v11642_v28 = vcombine.low %v6692_v39, %v6696_v45  ;;  %v11646_v1 = vcombine.low %v6694_v31, %v6698_v51 }
 0x45f   :  { %v2276_v60 = vpack.c.bf16 %v2243_v8, %v16078_v7  ;;  %v6606_v7 = vld [vmem:[#allocation10 + $0x490] sm:$0xff]  ;;  %7362 = vmatprep.subr.bf16.mxu1 %v11563_v9  ;;  %v6652_v8 = vld [vmem:[#allocation10 + $0x600] sm:$0xff]  ;;  %v11627_v9 = vcombine.high %v6676_v44, %v6680_v11 }
 0x460   :  { %v11559_v43 = vcombine.high %v6606_v7, %v6610_v56  ;;  %v11558_v46 = vcombine.low %v6606_v7, %v6610_v56  ;;  %v6670_v7 = vld [vmem:[#allocation10 + $0x690] sm:$0xff] }
 0x461   :  { %v6674_v56 = vld [vmem:[#allocation10 + $0x6b0] sm:$0xff] }
 0x462   :  { %7363 = vmatpush1.bf16.msra.mxu1 %v11562_v24  ;;  %v11626_v24 = vcombine.low %v6676_v44, %v6680_v11  ;;  %v6708_v44 = vld [vmem:[#allocation10 + $0x7c0] sm:$0xff] }
 0x463   :  { %7364 = vmatprep.subr.bf16.mxu1 %v11571_v27  ;;  %v11635_v27 = vcombine.high %v6684_v55, %v6688_v35 }
 0x464   :  { %5743 = vmatmul.mubr.bf16.gmra.mrb[56].mxu1 %v16045_v40 }
 0x465   :  { %6327 = vmatmul.mubr.bf16.gmra.mrb[104].mxu0 %v16045_v40  ;;  %5752 = vmatprep.mubr.bf16.mxu1 %v14200_v32  ;;  %v6602_v40 = vld [vmem:[#allocation10 + $0x470] sm:$0xff] }
 0x466   :  { %6336 = vmatprep.mubr.bf16.mxu0 %v14200_v32  ;;  %v11551_v18 = vcombine.high %v6598_v61, %v6602_v40  ;;  %v11550_v48 = vcombine.low %v6598_v61, %v6602_v40  ;;  %v6636_v32 = vld [vmem:[#allocation10 + $0x580] sm:$0xff]  ;;  %7365 = vmatpush1.bf16.msra.mxu1 %v11570_v58  ;;  %v11606_v61 = vcombine.low %v6654_v29, %v6658_v62 }
 0x467   :  { %7366 = vmatprep.subr.bf16.mxu1 %v11579_v26  ;;  %v11587_v2 = vcombine.high %v6636_v32, %v6640_v52  ;;  %v11586_v49 = vcombine.low %v6636_v32, %v6640_v52  ;;  %v11611_v40 = vcombine.high %v6660_v0, %v6664_v20  ;;  %v11634_v58 = vcombine.low %v6684_v55, %v6688_v35  ;;  %v6702_v32 = vld [vmem:[#allocation10 + $0x790] sm:$0xff] }
 0x468   :  { %7440 = vmatprep.subr.bf16.mxu0 %v11551_v18  ;;  %v6668_v18 = vld [vmem:[#allocation10 + $0x680] sm:$0xff]  ;;  %v11643_v26 = vcombine.high %v6692_v39, %v6696_v45  ;;  %v6706_v52 = vld [vmem:[#allocation10 + $0x7b0] sm:$0xff] }
 0x469   :  { %7441 = vmatpush1.bf16.msra.mxu0 %v11550_v48  ;;  %v11614_v48 = vcombine.low %v6662_v3, %v6666_v57  ;;  %v11619_v10 = vcombine.high %v6668_v18, %v6672_v50  ;;  %v11618_v33 = vcombine.low %v6668_v18, %v6672_v50 }
 0x46a   :  { %7442 = vmatprep.subr.bf16.mxu0 %v11559_v43  ;;  %7367 = vmatpush1.bf16.msra.mxu1 %v11578_v63  ;;  %v11623_v43 = vcombine.high %v6670_v7, %v6674_v56  ;;  %v11655_v63 = vcombine.high %v6702_v32, %v6706_v52 }
 0x46b   :  { %7368 = vmatprep.subr.bf16.mxu1 %v11587_v2  ;;  %v2757_v2 = vld [vmem:[#allocation8] sm:$0xf] }
 0x46c   :  { %5753 = vmatmul.mubr.bf16.gmra.mrb[60].mxu1 %v2276_v60  ;;  %v16150_v30 = vrot.slane %v2757_v2, %v16562_v38 }
 0x46d   :  { %6337 = vmatmul.mubr.bf16.gmra.mrb[108].mxu0 %v2276_v60  ;;  %v6656_v60 = vld [vmem:[#allocation10 + $0x620] sm:$0xff] }
 0x46e   :  { %7443 = vmatpush1.bf16.msra.mxu0 %v11558_v46  ;;  %7369 = vmatpush1.bf16.msra.mxu1 %v11586_v49  ;;  %v11603_v14 = vcombine.high %v6652_v8, %v6656_v60  ;;  %v11602_v5 = vcombine.low %v6652_v8, %v6656_v60  ;;  %v11622_v46 = vcombine.low %v6670_v7, %v6674_v56  ;;  %v16563_v49 = vld [vmem:[#allocation26_spill] sm:$0xff]  ;;  %v16564_v8 = vld [vmem:[#allocation27_spill] sm:$0xff] }
 0x46f   :  { %7444 = vmatprep.subr.bf16.mxu0 %v11567_v17  ;;  %7370 = vmatprep.subr.bf16.mxu1 %v11595_v54  ;;  %v11631_v17 = vcombine.high %v6678_v37, %v6682_v41  ;;  %v16156_v60 = vrot.slane %v2757_v2, %v16564_v8 }
 0x472   :  { %7445 = vmatpush1.bf16.msra.mxu0 %v11566_v19  ;;  %7371 = vmatpush1.bf16.msra.mxu1 %v11594_v13  ;;  %v11630_v19 = vcombine.low %v6678_v37, %v6682_v41  ;;  %v6700_v13 = vld [vmem:[#allocation10 + $0x780] sm:$0xff] }
 0x473   :  { %7446 = vmatprep.subr.bf16.mxu0 %v11575_v22  ;;  %7372 = vmatprep.subr.bf16.mxu1 %v11603_v14  ;;  %v11639_v22 = vcombine.high %v6686_v16, %v6690_v36  ;;  %v6712_v41 = vld [vmem:[#allocation10 + $0x7e0] sm:$0xff] }
 0x476   :  { %7447 = vmatpush1.bf16.msra.mxu0 %v11574_v42  ;;  %7373 = vmatpush1.bf16.msra.mxu1 %v11602_v5  ;;  %v11638_v42 = vcombine.low %v6686_v16, %v6690_v36 }
 0x477   :  { %7448 = vmatprep.subr.bf16.mxu0 %v11583_v12  ;;  %7374 = vmatprep.subr.bf16.mxu1 %v11611_v40  ;;  %v11647_v12 = vcombine.high %v6694_v31, %v6698_v51 }
 0x47a   :  { %7449 = vmatpush1.bf16.msra.mxu0 %v11582_v6  ;;  %7375 = vmatpush1.bf16.msra.mxu1 %v11610_v23  ;;  %v11654_v6 = vcombine.low %v6702_v32, %v6706_v52 }
 0x47b   :  { %7450 = vmatprep.subr.bf16.mxu0 %v11591_v59  ;;  %7376 = vmatprep.subr.bf16.mxu1 %v11619_v10  ;;  %v16561_v59 = vld [vmem:[#allocation24_spill] sm:$0xff]  ;;  %v6710_v10 = vld [vmem:[#allocation10 + $0x7d0] sm:$0xff] }
 0x47c   :  { %v16147_v53 = vrot.slane %v2757_v2, %v16561_v59 }
 0x47e   :  { %7451 = vmatpush1.bf16.msra.mxu0 %v11590_v34  ;;  %7377 = vmatpush1.bf16.msra.mxu1 %v11618_v33  ;;  %v16153_v34 = vrot.slane %v2757_v2, %v16563_v49 }
 0x47f   :  { %7452 = vmatprep.subr.bf16.mxu0 %v11599_v25  ;;  %7378 = vmatprep.subr.bf16.mxu1 %v11627_v9  ;;  %v11658_v9 = vcombine.low %v6708_v44, %v6712_v41 }
 0x482   :  { %7453 = vmatpush1.bf16.msra.mxu0 %v11598_v4  ;;  %7379 = vmatpush1.bf16.msra.mxu1 %v11626_v24  ;;  %v6704_v4 = vld [vmem:[#allocation10 + $0x7a0] sm:$0xff] }
 0x483   :  { %7454 = vmatprep.subr.bf16.mxu0 %v11607_v47  ;;  %7380 = vmatprep.subr.bf16.mxu1 %v11635_v27  ;;  %v11651_v57 = vcombine.high %v6700_v13, %v6704_v4  ;;  %v11650_v18 = vcombine.low %v6700_v13, %v6704_v4  ;;  %v16177_v27 = vld [vmem:[#allocation10 + $0x20] sm:$0xff] }
 0x486   :  { %7455 = vmatpush1.bf16.msra.mxu0 %v11606_v61  ;;  %7381 = vmatpush1.bf16.msra.mxu1 %v11634_v58 }
 0x487   :  { %7456 = vmatprep.subr.bf16.mxu0 %v11615_v21  ;;  %7382 = vmatprep.subr.bf16.mxu1 %v11643_v26  ;;  %v16186_v26 = vld [vmem:[#allocation10 + $0x428] sm:$0xff] }
 0x48a   :  { %7457 = vmatpush1.bf16.msra.mxu0 %v11614_v48  ;;  %7383 = vmatpush1.bf16.msra.mxu1 %v11642_v28 }
 0x48b   :  { %7458 = vmatprep.subr.bf16.mxu0 %v11623_v43  ;;  %7384 = vmatprep.subr.bf16.mxu1 %v11651_v57  ;;  %v6714_v43 = vld [vmem:[#allocation10 + $0x7f0] sm:$0xff] }
 0x48c   :  { %v11663_v37 = vcombine.high %v6710_v10, %v6714_v43 }
 0x48e   :  { %7459 = vmatpush1.bf16.msra.mxu0 %v11622_v46  ;;  %7385 = vmatpush1.bf16.msra.mxu1 %v11650_v18  ;;  %v11662_v46 = vcombine.low %v6710_v10, %v6714_v43 }
 0x48f   :  { %7460 = vmatprep.subr.bf16.mxu0 %v11631_v17  ;;  %v11659_v17 = vcombine.high %v6708_v44, %v6712_v41 }
 0x491   :  { %7386 = vmatprep.subr.bf16.mxu1 %v11659_v17 }
 0x492   :  { %7461 = vmatpush1.bf16.msra.mxu0 %v11630_v19  ;;  %v16175_v19 = vld [vmem:[#allocation10] sm:$0xff]  ;;  %7387 = vmatpush1.bf16.msra.mxu1 %v11658_v9 }
 0x493   :  { %7462 = vmatprep.subr.bf16.mxu0 %v11639_v22  ;;  %v16179_v22 = vld [vmem:[#allocation10 + $0x408] sm:$0xff]  ;;  %v11666_v28 = vcombine.low %v16175_v19, %v16177_v27 }
 0x496   :  { %7463 = vmatpush1.bf16.msra.mxu0 %v11638_v42  ;;  %v11667_v42 = vcombine.high %v16175_v19, %v16177_v27 }
 0x497   :  { %7464 = vmatprep.subr.bf16.mxu0 %v11647_v12 }
 0x49a   :  { %7465 = vmatpush1.bf16.msra.mxu0 %v11646_v1  ;;  %v11540_v1 = vcombine.low %v16179_v22, %v16186_v26 }
 0x49b   :  { %7466 = vmatprep.subr.bf16.mxu0 %v11655_v63 }
 0x49e   :  { %7467 = vmatpush1.bf16.msra.mxu0 %v11654_v6 }
 0x49f   :  { %7468 = vmatprep.subr.bf16.mxu0 %v11663_v37 }
 0x4a2   :  { %7469 = vmatpush1.bf16.msra.mxu0 %v11662_v46 }
 0x4a3   :  { %8160 = vmatprep.subr.bf16.mxu0 %v11667_v42 }
 0x527   :  { %v5724_v15 = vpop.f32.mrb[48].mxu1 }
 0x528   :  { %v6308_v54 = vpop.f32.mrb[96].mxu0  ;;  %v5726_v25 = vpop.f32.mrb[49].mxu1  ;;  %v12317_v14 = vadd.f32 %v5724_v15, %v16147_v53  ;;  %v11541_v15 = vcombine.high %v16179_v22, %v16186_v26  ;;  %v6483_v22 = vld [vmem:[#allocation10 + $0xc0] sm:$0xff] }
 0x529   :  { %v6310_v29 = vpop.f32.mrb[97].mxu0  ;;  %v5728_v62 = vpop.f32.mrb[50].mxu1  ;;  %v12333_v47 = vadd.f32 %v6308_v54, %v16150_v30  ;;  %v12318_v5 = vadd.f32 %v5726_v25, %v16153_v34  ;;  %v6487_v26 = vld [vmem:[#allocation10 + $0xe0] sm:$0xff] }
 0x52a   :  { %v12319_v0 = vadd.f32 %v5728_v62, %v16147_v53  ;;  %v6312_v20 = vpop.f32.mrb[98].mxu0  ;;  %v5730_v3 = vpop.f32.mrb[51].mxu1  ;;  %v12334_v50 = vadd.f32 %v6310_v29, %v16156_v60  ;;  %7397 = vmatprep.subr.bf16.mxu1 %v11541_v15 }
 0x52b   :  { %v12335_v61 = vadd.f32 %v6312_v20, %v16150_v30  ;;  %v12320_v40 = vadd.f32 %v5730_v3, %v16153_v34  ;;  %v6314_v21 = vpop.f32.mrb[99].mxu0 }
 0x52c   :  { %v16165_v7 = vmax.f32 %v12317_v14, %v12319_v0  ;;  %v12336_v56 = vadd.f32 %v6314_v21, %v16156_v60 }
 0x52d   :  { %v16168_v23 = vmax.f32 %v12333_v47, %v12335_v61  ;;  %v16170_v48 = vmax.f32 %v12318_v5, %v12320_v40 }
 0x52e   :  { %v16172_v11 = vmax.f32 %v12334_v50, %v12336_v56 }
 0x52f   :  { %v5734_v33 = vpop.f32.mrb[52].mxu1  ;;  %v13132_v40 = vpack.i.bf16 %v16165_v7, %v16170_v48 }
 0x530   :  { %v6318_v55 = vpop.f32.mrb[100].mxu0  ;;  %v5736_v35 = vpop.f32.mrb[53].mxu1  ;;  %v12321_v16 = vadd.f32 %v5734_v33, %v16147_v53  ;;  %v13127_v41 = vpack.i.bf16 %v16168_v23, %v16172_v11 }
 0x531   :  { %v6320_v36 = vpop.f32.mrb[101].mxu0  ;;  %v5738_v24 = vpop.f32.mrb[54].mxu1  ;;  %v12337_v39 = vadd.f32 %v6318_v55, %v16150_v30  ;;  %v12322_v45 = vadd.f32 %v5736_v35, %v16153_v34 }
 0x532   :  { %v12323_v31 = vadd.f32 %v5738_v24, %v16147_v53  ;;  %v6322_v51 = vpop.f32.mrb[102].mxu0  ;;  %v5740_v58 = vpop.f32.mrb[55].mxu1  ;;  %v12338_v63 = vadd.f32 %v6320_v36, %v16156_v60 }
 0x533   :  { %v12339_v12 = vadd.f32 %v6322_v51, %v16150_v30  ;;  %v12324_v32 = vadd.f32 %v5740_v58, %v16153_v34  ;;  %v6324_v52 = vpop.f32.mrb[103].mxu0 }
 0x534   :  { %v16195_v6 = vmax.f32 %v12321_v16, %v12323_v31  ;;  %v12340_v2 = vadd.f32 %v6324_v52, %v16156_v60 }
 0x535   :  { %v16200_v54 = vmax.f32 %v12337_v39, %v12339_v12  ;;  %v16202_v25 = vmax.f32 %v12322_v45, %v12324_v32 }
 0x536   :  { %v16204_v29 = vmax.f32 %v12338_v63, %v12340_v2 }
 0x537   :  { %v5744_v62 = vpop.f32.mrb[56].mxu1  ;;  %v13122_v13 = vpack.i.bf16 %v16195_v6, %v16202_v25 }
 0x538   :  { %v6328_v4 = vpop.f32.mrb[104].mxu0  ;;  %v5746_v14 = vpop.f32.mrb[57].mxu1  ;;  %v13117_v47 = vpack.i.bf16 %v16200_v54, %v16204_v29  ;;  %v12325_v3 = vadd.f32 %v5744_v62, %v16147_v53 }
 0x539   :  { %v6330_v0 = vpop.f32.mrb[105].mxu0  ;;  %v5748_v20 = vpop.f32.mrb[58].mxu1  ;;  %13123 = vrot.lane.b32.xlu1 %v13122_v13, %s14191_s5  ;;  %v12341_v21 = vadd.f32 %v6328_v4, %v16150_v30  ;;  %v12326_v18 = vadd.f32 %v5746_v14, %v16153_v34 }
 0x53a   :  { %v6332_v57 = vpop.f32.mrb[106].mxu0  ;;  %13118 = vrot.lane.b32.xlu0 %v13117_v47, %s14191_s5  ;;  %v12327_v5 = vadd.f32 %v5748_v20, %v16147_v53  ;;  %v5750_v61 = vpop.f32.mrb[59].mxu1  ;;  %v12342_v43 = vadd.f32 %v6330_v0, %v16156_v60 }
 0x53b   :  { %v12343_v50 = vadd.f32 %v6332_v57, %v16150_v30  ;;  %v12328_v56 = vadd.f32 %v5750_v61, %v16153_v34  ;;  %v6334_v10 = vpop.f32.mrb[107].mxu0 }
 0x53c   :  { %v16221_v44 = vmax.f32 %v12325_v3, %v12327_v5  ;;  %v12344_v37 = vadd.f32 %v6334_v10, %v16156_v60  ;;  %v6601_v10 = vld [vmem:[#allocation10 + $0x468] sm:$0xff] }
 0x53d   :  { %v16226_v33 = vmax.f32 %v12341_v21, %v12343_v50  ;;  %v16228_v46 = vmax.f32 %v12326_v18, %v12328_v56  ;;  %13133 = vrot.lane.b32.xlu1 %v13132_v40, %s14191_s5  ;;  %v6597_v56 = vld [vmem:[#allocation10 + $0x448] sm:$0xff] }
 0x53e   :  { %v16231_v9 = vmax.f32 %v12342_v43, %v12344_v37  ;;  %13128 = vrot.lane.b32.xlu0 %v13127_v41, %s14191_s5 }
 0x53f   :  { %v5754_v17 = vpop.f32.mrb[60].mxu1  ;;  %v13142_v55 = vpack.i.bf16 %v16221_v44, %v16228_v46 }
 0x540   :  { %v6338_v35 = vpop.f32.mrb[108].mxu0  ;;  %v5756_v16 = vpop.f32.mrb[61].mxu1  ;;  %v13137_v36 = vpack.i.bf16 %v16226_v33, %v16231_v9  ;;  %v12329_v45 = vadd.f32 %v5754_v17, %v16147_v53  ;;  %v6467_v17 = vld [vmem:[#allocation10 + $0x40] sm:$0xff] }
 0x541   :  { %v6340_v24 = vpop.f32.mrb[109].mxu0  ;;  %v5758_v39 = vpop.f32.mrb[62].mxu1  ;;  %13143 = vrot.lane.b32.xlu1 %v13142_v55, %s14191_s5  ;;  %v12345_v42 = vadd.f32 %v6338_v35, %v16150_v30  ;;  %v12330_v12 = vadd.f32 %v5756_v16, %v16153_v34  ;;  %v6605_v35 = vld [vmem:[#allocation10 + $0x488] sm:$0xff] }
 0x542   :  { %v6342_v31 = vpop.f32.mrb[110].mxu0  ;;  %13138 = vrot.lane.b32.xlu0 %v13137_v36, %s14191_s5  ;;  %v12331_v51 = vadd.f32 %v5758_v39, %v16147_v53  ;;  %v5760_v58 = vpop.f32.mrb[63].mxu1  ;;  %v12346_v2 = vadd.f32 %v6340_v24, %v16156_v60  ;;  %v6609_v24 = vld [vmem:[#allocation10 + $0x4a8] sm:$0xff]  ;;  %v6475_v39 = vld [vmem:[#allocation10 + $0x80] sm:$0xff] }
 0x543   :  { %v12347_v32 = vadd.f32 %v6342_v31, %v16150_v30  ;;  %v12332_v52 = vadd.f32 %v5760_v58, %v16153_v34  ;;  %v6344_v63 = vpop.f32.mrb[111].mxu0  ;;  %v11556_v19 = vcombine.low %v6605_v35, %v6609_v24 }
 0x544   :  { %v16247_v15 = vmax.f32 %v12329_v45, %v12331_v51  ;;  %v12348_v62 = vadd.f32 %v6344_v63, %v16156_v60  ;;  %v6479_v45 = vld [vmem:[#allocation10 + $0xa0] sm:$0xff]  ;;  %v11557_v51 = vcombine.high %v6605_v35, %v6609_v24  ;;  %v6653_v24 = vld [vmem:[#allocation10 + $0x608] sm:$0xff] }
 0x545   :  { %v16250_v13 = vmax.f32 %v12345_v42, %v12347_v32  ;;  %v16252_v4 = vmax.f32 %v12330_v12, %v12332_v52  ;;  %v11683_v58 = vcombine.high %v6475_v39, %v6479_v45  ;;  %v6613_v42 = vld [vmem:[#allocation10 + $0x4c8] sm:$0xff]  ;;  %v11682_v27 = vcombine.low %v6475_v39, %v6479_v45  ;;  %v6491_v63 = vld [vmem:[#allocation10 + $0x100] sm:$0xff] }
 0x546   :  { %v16254_v53 = vmax.f32 %v12346_v2, %v12348_v62  ;;  %v6617_v12 = vld [vmem:[#allocation10 + $0x4e8] sm:$0xff]  ;;  %v6495_v2 = vld [vmem:[#allocation10 + $0x120] sm:$0xff] }
 0x547   :  { %v13152_v14 = vpack.i.bf16 %v16247_v15, %v16252_v4  ;;  %v6621_v32 = vld [vmem:[#allocation10 + $0x508] sm:$0xff]  ;;  %v11564_v62 = vcombine.low %v6613_v42, %v6617_v12  ;;  %v6523_v45 = vld [vmem:[#allocation10 + $0x200] sm:$0xff] }
 0x548   :  { %v13147_v30 = vpack.i.bf16 %v16250_v13, %v16254_v53  ;;  %v6625_v52 = vld [vmem:[#allocation10 + $0x528] sm:$0xff] }
 0x549   :  { %13153 = vrot.lane.b32.xlu1 %v13152_v14, %s14191_s5  ;;  %v11690_v14 = vcombine.low %v6483_v22, %v6487_v26  ;;  %v6657_v39 = vld [vmem:[#allocation10 + $0x628] sm:$0xff] }
 0x54a   :  { %13148 = vrot.lane.b32.xlu0 %v13147_v30, %s14191_s5  ;;  %v11573_v30 = vcombine.high %v6621_v32, %v6625_v52  ;;  %s10967_s5 = sshll.u32 %s14201_s13, 4  ;;  %s10968_s5 = int_to_ptr.vmem [resolvable:$true] %s10967_s5 }
 0x54b   :  { %s14144_s19 = scalar_lea.vmem %s10968_s5, 128  ;;  %p14149_p9 = scmp.lt.s32.totalorder %s10968_s5, %s10968_s5 }
 0x54c   :  { %p14145_p8 = scmp.ne.s32.totalorder %s10968_s5, %s14144_s19  ;;  %p14150_p10 = scmp.lt.s32.totalorder %s14144_s19, %s14144_s19 }
 0x54e   :  { %p14151_p11 = por %p14150_p10, %p14149_p9 }
 0x550   :  { %p14152_p12 = pnand %p14151_p11, %p14145_p8 }
 0x5ab   :  { %v13124_v34 = vpop.permute.xlu1 %13123 }
 0x5ac   :  { %v13119_v47 = vpop.permute.xlu0 %13118  ;;  %v13126_v0 = vunpack.i.h.bf16 %v13124_v34  ;;  %v13125_v60 = vunpack.i.l.bf16 %v13124_v34  ;;  %v11699_v34 = vcombine.high %v6491_v63, %v6495_v2 }
 0x5ad   :  { %v13121_v20 = vunpack.i.h.bf16 %v13119_v47  ;;  %v13120_v3 = vunpack.i.l.bf16 %v13119_v47  ;;  %v6629_v47 = vld [vmem:[#allocation10 + $0x548] sm:$0xff] }
 0x5ae   :  { %v6436_v57 = vsel %vm1894_vm9, %v13126_v0, %v16202_v25  ;;  %v6396_v5 = vsel %vm1894_vm9, %v16195_v6, %v13125_v60  ;;  %v6471_v25 = vld [vmem:[#allocation10 + $0x60] sm:$0xff]  ;;  %v6633_v0 = vld [vmem:[#allocation10 + $0x568] sm:$0xff] }
 0x5af   :  { %v6440_v61 = vsel %vm1894_vm9, %v13121_v20, %v16204_v29  ;;  %v6400_v40 = vsel %vm1894_vm9, %v16200_v54, %v13120_v3  ;;  %v6445_v21 = vmax.f32 %v6396_v5, %v6436_v57  ;;  %v11549_v54 = vcombine.high %v6597_v56, %v6601_v10  ;;  %v6499_v60 = vld [vmem:[#allocation10 + $0x140] sm:$0xff] }
 0x5b0   :  { %v6446_v18 = vmax.f32 %v6400_v40, %v6440_v61  ;;  %v13129_v50 = vpop.permute.xlu0 %13128  ;;  %v11675_v36 = vcombine.high %v6467_v17, %v6471_v25  ;;  %v6503_v20 = vld [vmem:[#allocation10 + $0x160] sm:$0xff]  ;;  %v11572_v3 = vcombine.low %v6621_v32, %v6625_v52  ;;  %v11698_v57 = vcombine.low %v6491_v63, %v6495_v2  ;;  %v6637_v40 = vld [vmem:[#allocation10 + $0x588] sm:$0xff] }
 0x5b1   :  { %v16270_v43 = vpack.c.bf16 %v6445_v21, %v6445_v21  ;;  %v13131_v37 = vunpack.i.h.bf16 %v13129_v50  ;;  %v13130_v41 = vunpack.i.l.bf16 %v13129_v50  ;;  %v11581_v5 = vcombine.high %v6629_v47, %v6633_v0  ;;  %v6641_v21 = vld [vmem:[#allocation10 + $0x5a8] sm:$0xff]  ;;  %v6511_v50 = vld [vmem:[#allocation10 + $0x1a0] sm:$0xff] }
 0x5b2   :  { %v16272_v55 = vpack.c.bf16 %v6446_v18, %v6446_v18  ;;  %v11707_v61 = vcombine.high %v6499_v60, %v6503_v20  ;;  %v6507_v18 = vld [vmem:[#allocation10 + $0x180] sm:$0xff]  ;;  %v6669_v52 = vld [vmem:[#allocation10 + $0x688] sm:$0xff] }
 0x5b3   :  { %v6439_v6 = vsel %vm1894_vm9, %v13131_v37, %v16172_v11  ;;  %v6399_v29 = vsel %vm1894_vm9, %v16168_v23, %v13130_v41  ;;  %v11548_v23 = vcombine.low %v6597_v56, %v6601_v10  ;;  %v11674_v11 = vcombine.low %v6467_v17, %v6471_v25  ;;  %v6645_v17 = vld [vmem:[#allocation10 + $0x5c8] sm:$0xff]  ;;  %v6539_v2 = vld [vmem:[#allocation10 + $0x280] sm:$0xff] }
 0x5b4   :  { %v6444_v16 = vmax.f32 %v6399_v29, %v6439_v6  ;;  %7470 = vmatprep.mubr.bf16.mxu0 %v16272_v55  ;;  %7388 = vmatprep.mubr.bf16.mxu1 %v16272_v55  ;;  %v11580_v56 = vcombine.low %v6629_v47, %v6633_v0  ;;  %v11706_v10 = vcombine.low %v6499_v60, %v6503_v20  ;;  %v6649_v25 = vld [vmem:[#allocation10 + $0x5e8] sm:$0xff]  ;;  %v6515_v6 = vld [vmem:[#allocation10 + $0x1c0] sm:$0xff] }
 0x5b5   :  { %7389 = vmatmul.mubr.bf16.vlgmr.msra.gmra.mrb[64].mxu1 %v16270_v43  ;;  %7471 = vmatmul.mubr.bf16.vlgmr.msra.gmra.mrb[112].mxu0 %v16270_v43  ;;  %v11589_v37 = vcombine.high %v6637_v40, %v6641_v21  ;;  %v11715_v41 = vcombine.high %v6507_v18, %v6511_v50  ;;  %v6519_v29 = vld [vmem:[#allocation10 + $0x1e0] sm:$0xff]  ;;  %v11714_v35 = vcombine.low %v6507_v18, %v6511_v50  ;;  %v6673_v63 = vld [vmem:[#allocation10 + $0x6a8] sm:$0xff] }
 0x5b6   :  { %7398 = vmatpush1.bf16.msra.mxu1 %v11540_v1  ;;  %8161 = vmatpush1.bf16.msra.mxu0 %v11666_v28  ;;  %v16288_v31 = vpack.c.bf16 %v6444_v16, %v6444_v16  ;;  %v11565_v28 = vcombine.high %v6613_v42, %v6617_v12  ;;  %v11691_v1 = vcombine.high %v6483_v22, %v6487_v26  ;;  %v6661_v12 = vld [vmem:[#allocation10 + $0x648] sm:$0xff]  ;;  %v6531_v26 = vld [vmem:[#allocation10 + $0x240] sm:$0xff] }
 0x5b7   :  { %7429 = vmatprep.mubr.bf16.mxu1 %v16272_v55  ;;  %7399 = vmatprep.subr.bf16.mxu1 %v11549_v54  ;;  %v11588_v54 = vcombine.low %v6637_v40, %v6641_v21  ;;  %v11597_v16 = vcombine.high %v6645_v17, %v6649_v25  ;;  %v6665_v22 = vld [vmem:[#allocation10 + $0x668] sm:$0xff]  ;;  %v6547_v20 = vld [vmem:[#allocation10 + $0x2c0] sm:$0xff] }
 0x5b8   :  { %8162 = vmatprep.subr.bf16.mxu0 %v11675_v36  ;;  %8192 = vmatprep.mubr.bf16.mxu0 %v16288_v31  ;;  %v11723_v36 = vcombine.high %v6515_v6, %v6519_v29  ;;  %v6677_v0 = vld [vmem:[#allocation10 + $0x6c8] sm:$0xff]  ;;  %v6555_v50 = vld [vmem:[#allocation10 + $0x300] sm:$0xff] }
 0x5b9   :  { %v6681_v60 = vld [vmem:[#allocation10 + $0x6e8] sm:$0xff] }
 0x5ba   :  { %7400 = vmatpush1.bf16.msra.mxu1 %v11548_v23  ;;  %8163 = vmatpush1.bf16.msra.mxu0 %v11674_v11  ;;  %v6527_v23 = vld [vmem:[#allocation10 + $0x220] sm:$0xff]  ;;  %v11596_v11 = vcombine.low %v6645_v17, %v6649_v25  ;;  %v6685_v21 = vld [vmem:[#allocation10 + $0x708] sm:$0xff] }
 0x5bb   :  { %7401 = vmatprep.subr.bf16.mxu1 %v11557_v51  ;;  %8164 = vmatprep.subr.bf16.mxu0 %v11683_v58  ;;  %v11722_v51 = vcombine.low %v6515_v6, %v6519_v29  ;;  %v11605_v58 = vcombine.high %v6653_v24, %v6657_v39  ;;  %v11731_v42 = vcombine.high %v6523_v45, %v6527_v23  ;;  %v6689_v18 = vld [vmem:[#allocation10 + $0x728] sm:$0xff]  ;;  %v6563_v29 = vld [vmem:[#allocation10 + $0x340] sm:$0xff] }
 0x5bc   :  { %v6693_v25 = vld [vmem:[#allocation10 + $0x748] sm:$0xff] }
 0x5bd   :  { %v6697_v6 = vld [vmem:[#allocation10 + $0x768] sm:$0xff] }
 0x5be   :  { %7402 = vmatpush1.bf16.msra.mxu1 %v11556_v19  ;;  %8165 = vmatpush1.bf16.msra.mxu0 %v11682_v27  ;;  %v6535_v19 = vld [vmem:[#allocation10 + $0x260] sm:$0xff]  ;;  %v11604_v27 = vcombine.low %v6653_v24, %v6657_v39  ;;  %v6701_v39 = vld [vmem:[#allocation10 + $0x788] sm:$0xff] }
 0x5bf   :  { %7403 = vmatprep.subr.bf16.mxu1 %v11565_v28  ;;  %8166 = vmatprep.subr.bf16.mxu0 %v11691_v1  ;;  %v11730_v28 = vcombine.low %v6523_v45, %v6527_v23  ;;  %v11613_v1 = vcombine.high %v6661_v12, %v6665_v22  ;;  %v11739_v32 = vcombine.high %v6531_v26, %v6535_v19  ;;  %v6705_v45 = vld [vmem:[#allocation10 + $0x7a8] sm:$0xff]  ;;  %v6571_v23 = vld [vmem:[#allocation10 + $0x380] sm:$0xff] }
 0x5c2   :  { %7404 = vmatpush1.bf16.msra.mxu1 %v11564_v62  ;;  %8167 = vmatpush1.bf16.msra.mxu0 %v11690_v14  ;;  %v6543_v62 = vld [vmem:[#allocation10 + $0x2a0] sm:$0xff]  ;;  %v11612_v14 = vcombine.low %v6661_v12, %v6665_v22  ;;  %v11653_v12 = vcombine.high %v6701_v39, %v6705_v45 }
 0x5c3   :  { %7405 = vmatprep.subr.bf16.mxu1 %v11573_v30  ;;  %8168 = vmatprep.subr.bf16.mxu0 %v11699_v34  ;;  %v11738_v30 = vcombine.low %v6531_v26, %v6535_v19  ;;  %v11621_v34 = vcombine.high %v6669_v52, %v6673_v63  ;;  %v11747_v47 = vcombine.high %v6539_v2, %v6543_v62  ;;  %v6709_v26 = vld [vmem:[#allocation10 + $0x7c8] sm:$0xff] }
 0x5c6   :  { %7406 = vmatpush1.bf16.msra.mxu1 %v11572_v3  ;;  %8169 = vmatpush1.bf16.msra.mxu0 %v11698_v57  ;;  %v6551_v3 = vld [vmem:[#allocation10 + $0x2e0] sm:$0xff]  ;;  %v11620_v57 = vcombine.low %v6669_v52, %v6673_v63  ;;  %v11652_v52 = vcombine.low %v6701_v39, %v6705_v45  ;;  %v6485_v39 = vld [vmem:[#allocation10 + $0xd0] sm:$0xff] }
 0x5c7   :  { %7407 = vmatprep.subr.bf16.mxu1 %v11581_v5  ;;  %8170 = vmatprep.subr.bf16.mxu0 %v11707_v61  ;;  %v11746_v5 = vcombine.low %v6539_v2, %v6543_v62  ;;  %v11629_v61 = vcombine.high %v6677_v0, %v6681_v60  ;;  %v11755_v40 = vcombine.high %v6547_v20, %v6551_v3  ;;  %v6489_v45 = vld [vmem:[#allocation10 + $0xf0] sm:$0xff] }
 0x5ca   :  { %7408 = vmatpush1.bf16.msra.mxu1 %v11580_v56  ;;  %8171 = vmatpush1.bf16.msra.mxu0 %v11706_v10  ;;  %v6559_v56 = vld [vmem:[#allocation10 + $0x320] sm:$0xff]  ;;  %v11628_v10 = vcombine.low %v6677_v0, %v6681_v60  ;;  %v6461_v0 = vld [vmem:[#allocation10 + $0x10] sm:$0xff] }
 0x5cb   :  { %7409 = vmatprep.subr.bf16.mxu1 %v11589_v37  ;;  %8172 = vmatprep.subr.bf16.mxu0 %v11715_v41  ;;  %v11754_v37 = vcombine.low %v6547_v20, %v6551_v3  ;;  %v11637_v41 = vcombine.high %v6685_v21, %v6689_v18  ;;  %v11763_v17 = vcombine.high %v6555_v50, %v6559_v56  ;;  %v6465_v60 = vld [vmem:[#allocation10 + $0x30] sm:$0xff] }
 0x5ce   :  { %7410 = vmatpush1.bf16.msra.mxu1 %v11588_v54  ;;  %8173 = vmatpush1.bf16.msra.mxu0 %v11714_v35  ;;  %v6567_v54 = vld [vmem:[#allocation10 + $0x360] sm:$0xff]  ;;  %v11636_v35 = vcombine.low %v6685_v21, %v6689_v18  ;;  %v6603_v21 = vld [vmem:[#allocation10 + $0x478] sm:$0xff]  ;;  %v6469_v18 = vld [vmem:[#allocation10 + $0x50] sm:$0xff] }
 0x5cf   :  { %7411 = vmatprep.subr.bf16.mxu1 %v11597_v16  ;;  %8174 = vmatprep.subr.bf16.mxu0 %v11723_v36  ;;  %v11762_v16 = vcombine.low %v6555_v50, %v6559_v56  ;;  %v11645_v36 = vcombine.high %v6693_v25, %v6697_v6  ;;  %v11771_v24 = vcombine.high %v6563_v29, %v6567_v54  ;;  %v6473_v50 = vld [vmem:[#allocation10 + $0x70] sm:$0xff] }
 0x5d0   :  { %v11670_v56 = vcombine.low %v6461_v0, %v6465_v60 }
 0x5d2   :  { %7412 = vmatpush1.bf16.msra.mxu1 %v11596_v11  ;;  %8175 = vmatpush1.bf16.msra.mxu0 %v11722_v51  ;;  %v6575_v11 = vld [vmem:[#allocation10 + $0x3a0] sm:$0xff]  ;;  %v13134_v51 = vpop.permute.xlu1 %13133 }
 0x5d3   :  { %7413 = vmatprep.subr.bf16.mxu1 %v11605_v58  ;;  %8176 = vmatprep.subr.bf16.mxu0 %v11731_v42  ;;  %v11644_v58 = vcombine.low %v6693_v25, %v6697_v6  ;;  %v11770_v42 = vcombine.low %v6563_v29, %v6567_v54  ;;  %v11779_v22 = vcombine.high %v6571_v23, %v6575_v11  ;;  %v13136_v19 = vunpack.i.h.bf16 %v13134_v51  ;;  %v6477_v25 = vld [vmem:[#allocation10 + $0x90] sm:$0xff] }
 0x5d4   :  { %v11778_v63 = vcombine.low %v6571_v23, %v6575_v11  ;;  %v6481_v6 = vld [vmem:[#allocation10 + $0xb0] sm:$0xff]  ;;  %v11678_v54 = vcombine.low %v6469_v18, %v6473_v50 }
 0x5d5   :  { %v11686_v11 = vcombine.low %v6477_v25, %v6481_v6 }
 0x5d6   :  { %7414 = vmatpush1.bf16.msra.mxu1 %v11604_v27  ;;  %8177 = vmatpush1.bf16.msra.mxu0 %v11730_v28  ;;  %v13135_v27 = vunpack.i.l.bf16 %v13134_v51  ;;  %v6713_v28 = vld [vmem:[#allocation10 + $0x7e8] sm:$0xff] }
 0x5d7   :  { %7415 = vmatprep.subr.bf16.mxu1 %v11613_v1  ;;  %8178 = vmatprep.subr.bf16.mxu0 %v11739_v32  ;;  %v6579_v1 = vld [vmem:[#allocation10 + $0x3c0] sm:$0xff]  ;;  %v11661_v2 = vcombine.high %v6709_v26, %v6713_v28  ;;  %v11660_v20 = vcombine.low %v6709_v26, %v6713_v28 }
 0x5d8   :  { %v6583_v32 = vld [vmem:[#allocation10 + $0x3e0] sm:$0xff] }
 0x5d9   :  { %v11787_v62 = vcombine.high %v6579_v1, %v6583_v32  ;;  %v11786_v3 = vcombine.low %v6579_v1, %v6583_v32  ;;  %v6631_v1 = vld [vmem:[#allocation10 + $0x558] sm:$0xff] }
 0x5da   :  { %7416 = vmatpush1.bf16.msra.mxu1 %v11612_v14  ;;  %8179 = vmatpush1.bf16.msra.mxu0 %v11738_v30  ;;  %v6591_v14 = vld [vmem:[#allocation10 + $0x418] sm:$0xff]  ;;  %v6435_v30 = vsel %vm1894_vm9, %v13136_v19, %v16170_v48  ;;  %v11694_v19 = vcombine.low %v6485_v39, %v6489_v45 }
 0x5db   :  { %7417 = vmatprep.subr.bf16.mxu1 %v11621_v34  ;;  %8180 = vmatprep.subr.bf16.mxu0 %v11747_v47  ;;  %v6395_v34 = vsel %vm1894_vm9, %v16165_v7, %v13135_v27  ;;  %v6595_v47 = vld [vmem:[#allocation10 + $0x438] sm:$0xff] }
 0x5dc   :  { %v11544_v48 = vcombine.low %v6591_v14, %v6595_v47  ;;  %v6635_v32 = vld [vmem:[#allocation10 + $0x578] sm:$0xff] }
 0x5de   :  { %7418 = vmatpush1.bf16.msra.mxu1 %v11620_v57  ;;  %8181 = vmatpush1.bf16.msra.mxu0 %v11746_v5  ;;  %v6443_v57 = vmax.f32 %v6395_v34, %v6435_v30  ;;  %v11545_v5 = vcombine.high %v6591_v14, %v6595_v47  ;;  %v11585_v14 = vcombine.high %v6631_v1, %v6635_v32  ;;  %v6639_v34 = vld [vmem:[#allocation10 + $0x598] sm:$0xff] }
 0x5df   :  { %7419 = vmatprep.subr.bf16.mxu1 %v11629_v61  ;;  %8182 = vmatprep.subr.bf16.mxu0 %v11755_v40  ;;  %v11671_v61 = vcombine.high %v6461_v0, %v6465_v60  ;;  %v6599_v40 = vld [vmem:[#allocation10 + $0x458] sm:$0xff]  ;;  %v6509_v0 = vld [vmem:[#allocation10 + $0x190] sm:$0xff] }
 0x5e0   :  { %v16296_v7 = vpack.c.bf16 %v6443_v57, %v6443_v57  ;;  %v11552_v29 = vcombine.low %v6599_v40, %v6603_v21  ;;  %v6643_v47 = vld [vmem:[#allocation10 + $0x5b8] sm:$0xff]  ;;  %v6513_v60 = vld [vmem:[#allocation10 + $0x1b0] sm:$0xff] }
 0x5e1   :  { %v11593_v57 = vcombine.high %v6639_v34, %v6643_v47 }
 0x5e2   :  { %7420 = vmatpush1.bf16.msra.mxu1 %v11628_v10  ;;  %8183 = vmatpush1.bf16.msra.mxu0 %v11754_v37  ;;  %v11553_v10 = vcombine.high %v6599_v40, %v6603_v21  ;;  %v11679_v37 = vcombine.high %v6469_v18, %v6473_v50  ;;  %v6651_v40 = vld [vmem:[#allocation10 + $0x5f8] sm:$0xff]  ;;  %v6517_v21 = vld [vmem:[#allocation10 + $0x1d0] sm:$0xff]  ;;  %v11592_v50 = vcombine.low %v6639_v34, %v6643_v47 }
 0x5e3   :  { %7421 = vmatprep.subr.bf16.mxu1 %v11637_v41  ;;  %8184 = vmatprep.subr.bf16.mxu0 %v11763_v17  ;;  %v6607_v41 = vld [vmem:[#allocation10 + $0x498] sm:$0xff]  ;;  %v6521_v18 = vld [vmem:[#allocation10 + $0x1f0] sm:$0xff] }
 0x5e4   :  { %v6611_v17 = vld [vmem:[#allocation10 + $0x4b8] sm:$0xff]  ;;  %v6557_v47 = vld [vmem:[#allocation10 + $0x310] sm:$0xff] }
 0x5e5   :  { %v11560_v23 = vcombine.low %v6607_v41, %v6611_v17  ;;  %v6691_v34 = vld [vmem:[#allocation10 + $0x738] sm:$0xff] }
 0x5e6   :  { %7422 = vmatpush1.bf16.msra.mxu1 %v11636_v35  ;;  %8185 = vmatpush1.bf16.msra.mxu0 %v11762_v16  ;;  %v11561_v35 = vcombine.high %v6607_v41, %v6611_v17  ;;  %v11687_v16 = vcombine.high %v6477_v25, %v6481_v6  ;;  %v6659_v41 = vld [vmem:[#allocation10 + $0x638] sm:$0xff]  ;;  %v6525_v17 = vld [vmem:[#allocation10 + $0x210] sm:$0xff] }
 0x5e7   :  { %7423 = vmatprep.subr.bf16.mxu1 %v11645_v36  ;;  %8186 = vmatprep.subr.bf16.mxu0 %v11771_v24  ;;  %v6615_v36 = vld [vmem:[#allocation10 + $0x4d8] sm:$0xff]  ;;  %v6529_v25 = vld [vmem:[#allocation10 + $0x230] sm:$0xff] }
 0x5e8   :  { %v6619_v24 = vld [vmem:[#allocation10 + $0x4f8] sm:$0xff] }
 0x5e9   :  { %v11569_v51 = vcombine.high %v6615_v36, %v6619_v24  ;;  %v11568_v26 = vcombine.low %v6615_v36, %v6619_v24  ;;  %v6667_v36 = vld [vmem:[#allocation10 + $0x678] sm:$0xff]  ;;  %v6533_v24 = vld [vmem:[#allocation10 + $0x250] sm:$0xff] }
 0x5ea   :  { %7424 = vmatpush1.bf16.msra.mxu1 %v11644_v58  ;;  %8187 = vmatpush1.bf16.msra.mxu0 %v11770_v42  ;;  %v6623_v58 = vld [vmem:[#allocation10 + $0x518] sm:$0xff] }
 0x5eb   :  { %7425 = vmatprep.subr.bf16.mxu1 %v11653_v12  ;;  %8188 = vmatprep.subr.bf16.mxu0 %v11779_v22  ;;  %v6627_v42 = vld [vmem:[#allocation10 + $0x538] sm:$0xff]  ;;  %v6493_v12 = vld [vmem:[#allocation10 + $0x110] sm:$0xff] }
 0x5ec   :  { %v6497_v22 = vld [vmem:[#allocation10 + $0x130] sm:$0xff]  ;;  %v11577_v27 = vcombine.high %v6623_v58, %v6627_v42 }
 0x5ed   :  { %v11703_v28 = vcombine.high %v6493_v12, %v6497_v22 }
 0x5ee   :  { %7426 = vmatpush1.bf16.msra.mxu1 %v11652_v52  ;;  %8189 = vmatpush1.bf16.msra.mxu0 %v11778_v63  ;;  %v6501_v52 = vld [vmem:[#allocation10 + $0x150] sm:$0xff] }
 0x5ef   :  { %7427 = vmatprep.subr.bf16.mxu1 %v11661_v2  ;;  %8190 = vmatprep.subr.bf16.mxu0 %v11787_v62  ;;  %v6505_v63 = vld [vmem:[#allocation10 + $0x170] sm:$0xff]  ;;  %v11576_v2 = vcombine.low %v6623_v58, %v6627_v42  ;;  %v11702_v62 = vcombine.low %v6493_v12, %v6497_v22  ;;  %v6675_v58 = vld [vmem:[#allocation10 + $0x6b8] sm:$0xff] }
 0x5f0   :  { %v11711_v30 = vcombine.high %v6501_v52, %v6505_v63  ;;  %v6541_v42 = vld [vmem:[#allocation10 + $0x290] sm:$0xff] }
 0x5f1   :  { %v6545_v12 = vld [vmem:[#allocation10 + $0x2b0] sm:$0xff] }
 0x5f2   :  { %7428 = vmatpush1.bf16.msra.mxu1 %v11660_v20  ;;  %8191 = vmatpush1.bf16.msra.mxu0 %v11786_v3  ;;  %v11584_v20 = vcombine.low %v6631_v1, %v6635_v32  ;;  %v11710_v3 = vcombine.low %v6501_v52, %v6505_v63  ;;  %v6683_v1 = vld [vmem:[#allocation10 + $0x6f8] sm:$0xff]  ;;  %v6549_v32 = vld [vmem:[#allocation10 + $0x2d0] sm:$0xff] }
 0x5f3   :  { %7479 = vmatprep.subr.bf16.mxu1 %v11545_v5  ;;  %8242 = vmatprep.subr.bf16.mxu0 %v11671_v61  ;;  %v11719_v5 = vcombine.high %v6509_v0, %v6513_v60  ;;  %v6647_v61 = vld [vmem:[#allocation10 + $0x5d8] sm:$0xff]  ;;  %v6553_v52 = vld [vmem:[#allocation10 + $0x2f0] sm:$0xff] }
 0x5f4   :  { %v11600_v6 = vcombine.low %v6647_v61, %v6651_v40 }
 0x5f5   :  { %7430 = vmatmul.mubr.bf16.vlgmr.msra.gmra.mrb[68].mxu1 %v16270_v43  ;;  %8193 = vmatmul.mubr.bf16.vlgmr.msra.gmra.mrb[116].mxu0 %v16296_v7 }
 0x5f6   :  { %7480 = vmatpush1.bf16.msra.mxu1 %v11544_v48  ;;  %7511 = vmatprep.mubr.bf16.mxu1 %v16272_v55  ;;  %v11695_v55 = vcombine.high %v6485_v39, %v6489_v45  ;;  %v11718_v48 = vcombine.low %v6509_v0, %v6513_v60  ;;  %v6537_v39 = vld [vmem:[#allocation10 + $0x270] sm:$0xff] }
 0x5f7   :  { %8243 = vmatpush1.bf16.msra.mxu0 %v11670_v56  ;;  %8274 = vmatprep.mubr.bf16.mxu0 %v16288_v31  ;;  %v11601_v56 = vcombine.high %v6647_v61, %v6651_v40  ;;  %v6561_v0 = vld [vmem:[#allocation10 + $0x330] sm:$0xff]  ;;  %v6699_v61 = vld [vmem:[#allocation10 + $0x778] sm:$0xff] }
 0x5f8   :  { %7481 = vmatprep.subr.bf16.mxu1 %v11553_v10  ;;  %8244 = vmatprep.subr.bf16.mxu0 %v11679_v37  ;;  %v11727_v10 = vcombine.high %v6517_v21, %v6521_v18  ;;  %v6655_v37 = vld [vmem:[#allocation10 + $0x618] sm:$0xff]  ;;  %v6565_v40 = vld [vmem:[#allocation10 + $0x350] sm:$0xff] }
 0x5f9   :  { %v11608_v45 = vcombine.low %v6655_v37, %v6659_v41 }
 0x5fa   :  { %7482 = vmatpush1.bf16.msra.mxu1 %v11552_v29  ;;  %v11726_v29 = vcombine.low %v6517_v21, %v6521_v18  ;;  %v6569_v21 = vld [vmem:[#allocation10 + $0x370] sm:$0xff] }
 0x5fb   :  { %8245 = vmatpush1.bf16.msra.mxu0 %v11678_v54  ;;  %7483 = vmatprep.subr.bf16.mxu1 %v11561_v35  ;;  %v11609_v54 = vcombine.high %v6655_v37, %v6659_v41  ;;  %v11735_v35 = vcombine.high %v6525_v17, %v6529_v25  ;;  %v6707_v37 = vld [vmem:[#allocation10 + $0x7b8] sm:$0xff]  ;;  %v6573_v41 = vld [vmem:[#allocation10 + $0x390] sm:$0xff] }
 0x5fc   :  { %8246 = vmatprep.subr.bf16.mxu0 %v11687_v16  ;;  %v6663_v16 = vld [vmem:[#allocation10 + $0x658] sm:$0xff] }
 0x5fd   :  { %v11616_v22 = vcombine.low %v6663_v16, %v6667_v36 }
 0x5fe   :  { %7484 = vmatpush1.bf16.msra.mxu1 %v11560_v23  ;;  %v11734_v23 = vcombine.low %v6525_v17, %v6529_v25  ;;  %v6577_v17 = vld [vmem:[#allocation10 + $0x3b0] sm:$0xff] }
 0x5ff   :  { %8247 = vmatpush1.bf16.msra.mxu0 %v11686_v11  ;;  %7485 = vmatprep.subr.bf16.mxu1 %v11569_v51  ;;  %v11617_v11 = vcombine.high %v6663_v16, %v6667_v36  ;;  %v11743_v51 = vcombine.high %v6533_v24, %v6537_v39  ;;  %v6711_v16 = vld [vmem:[#allocation10 + $0x7d8] sm:$0xff] }
 0x600   :  { %8248 = vmatprep.subr.bf16.mxu0 %v11695_v55  ;;  %v6671_v55 = vld [vmem:[#allocation10 + $0x698] sm:$0xff] }
 0x601   :  { %v11624_v63 = vcombine.low %v6671_v55, %v6675_v58  ;;  %v6715_v36 = vld [vmem:[#allocation10 + $0x7f8] sm:$0xff] }
 0x602   :  { %7486 = vmatpush1.bf16.msra.mxu1 %v11568_v26  ;;  %v11742_v26 = vcombine.low %v6533_v24, %v6537_v39  ;;  %v6581_v24 = vld [vmem:[#allocation10 + $0x3d0] sm:$0xff] }
 0x603   :  { %8249 = vmatpush1.bf16.msra.mxu0 %v11694_v19  ;;  %7487 = vmatprep.subr.bf16.mxu1 %v11577_v27  ;;  %v11625_v19 = vcombine.high %v6671_v55, %v6675_v58  ;;  %v11751_v27 = vcombine.high %v6541_v42, %v6545_v12  ;;  %v6585_v39 = vld [vmem:[#allocation10 + $0x3f0] sm:$0xff]  ;;  %v11665_v55 = vcombine.high %v6711_v16, %v6715_v36 }
 0x604   :  { %8250 = vmatprep.subr.bf16.mxu0 %v11703_v28  ;;  %v6679_v28 = vld [vmem:[#allocation10 + $0x6d8] sm:$0xff]  ;;  %v11791_v58 = vcombine.high %v6581_v24, %v6585_v39 }
 0x605   :  { %v11632_v60 = vcombine.low %v6679_v28, %v6683_v1 }
 0x606   :  { %7488 = vmatpush1.bf16.msra.mxu1 %v11576_v2  ;;  %v11750_v2 = vcombine.low %v6541_v42, %v6545_v12  ;;  %v6460_v42 = vld [vmem:[#allocation10 + $0x8] sm:$0xff] }
 0x607   :  { %8251 = vmatpush1.bf16.msra.mxu0 %v11702_v62  ;;  %7489 = vmatprep.subr.bf16.mxu1 %v11585_v14  ;;  %v11633_v62 = vcombine.high %v6679_v28, %v6683_v1  ;;  %v11759_v14 = vcombine.high %v6549_v32, %v6553_v52  ;;  %v6464_v12 = vld [vmem:[#allocation10 + $0x28] sm:$0xff] }
 0x608   :  { %8252 = vmatprep.subr.bf16.mxu0 %v11711_v30  ;;  %v6687_v30 = vld [vmem:[#allocation10 + $0x718] sm:$0xff] }
 0x609   :  { %v11640_v18 = vcombine.low %v6687_v30, %v6691_v34 }
 0x60a   :  { %7490 = vmatpush1.bf16.msra.mxu1 %v11584_v20  ;;  %v11758_v20 = vcombine.low %v6549_v32, %v6553_v52  ;;  %v11669_v32 = vcombine.high %v6460_v42, %v6464_v12 }
 0x60b   :  { %8253 = vmatpush1.bf16.msra.mxu0 %v11710_v3  ;;  %7491 = vmatprep.subr.bf16.mxu1 %v11593_v57  ;;  %v11641_v3 = vcombine.high %v6687_v30, %v6691_v34  ;;  %v11767_v57 = vcombine.high %v6557_v47, %v6561_v0  ;;  %v8333_v30 = vld [vmem:[#allocation10 + $0x840] sm:$0xff] }
 0x60c   :  { %8254 = vmatprep.subr.bf16.mxu0 %v11719_v5  ;;  %v6695_v5 = vld [vmem:[#allocation10 + $0x758] sm:$0xff]  ;;  %v8337_v34 = vld [vmem:[#allocation10 + $0x860] sm:$0xff] }
 0x60d   :  { %v11648_v25 = vcombine.low %v6695_v5, %v6699_v61 }
 0x60e   :  { %7492 = vmatpush1.bf16.msra.mxu1 %v11592_v50  ;;  %v11766_v50 = vcombine.low %v6557_v47, %v6561_v0  ;;  %v6476_v0 = vld [vmem:[#allocation10 + $0x88] sm:$0xff] }
 0x60f   :  { %8255 = vmatpush1.bf16.msra.mxu0 %v11718_v48  ;;  %7493 = vmatprep.subr.bf16.mxu1 %v11601_v56  ;;  %v11649_v48 = vcombine.high %v6695_v5, %v6699_v61  ;;  %v11775_v56 = vcombine.high %v6565_v40, %v6569_v21  ;;  %v11802_v61 = vcombine.low %v8333_v30, %v8337_v34 }
 0x610   :  { %8256 = vmatprep.subr.bf16.mxu0 %v11727_v10  ;;  %v6703_v10 = vld [vmem:[#allocation10 + $0x798] sm:$0xff] }
 0x612   :  { %7494 = vmatpush1.bf16.msra.mxu1 %v11600_v6  ;;  %v11774_v6 = vcombine.low %v6565_v40, %v6569_v21 }
 0x613   :  { %8257 = vmatpush1.bf16.msra.mxu0 %v11726_v29  ;;  %7495 = vmatprep.subr.bf16.mxu1 %v11609_v54  ;;  %v11657_v29 = vcombine.high %v6703_v10, %v6707_v37  ;;  %v13139_v54 = vpop.permute.xlu0 %13138 }
 0x614   :  { %8258 = vmatprep.subr.bf16.mxu0 %v11735_v35  ;;  %v11783_v35 = vcombine.high %v6573_v41, %v6577_v17 }
 0x616   :  { %7496 = vmatpush1.bf16.msra.mxu1 %v11608_v45  ;;  %v11656_v45 = vcombine.low %v6703_v10, %v6707_v37 }
 0x617   :  { %8259 = vmatpush1.bf16.msra.mxu0 %v11734_v23  ;;  %7497 = vmatprep.subr.bf16.mxu1 %v11617_v11  ;;  %v13141_v23 = vunpack.i.h.bf16 %v13139_v54  ;;  %v13140_v11 = vunpack.i.l.bf16 %v13139_v54 }
 0x618   :  { %8260 = vmatprep.subr.bf16.mxu0 %v11743_v51  ;;  %v11782_v51 = vcombine.low %v6573_v41, %v6577_v17  ;;  %v6492_v17 = vld [vmem:[#allocation10 + $0x108] sm:$0xff] }
 0x619   :  { %v6441_v28 = vsel %vm1894_vm9, %v13141_v23, %v16231_v9  ;;  %v6401_v1 = vsel %vm1894_vm9, %v16226_v33, %v13140_v11  ;;  %v11803_v33 = vcombine.high %v8333_v30, %v8337_v34  ;;  %v8369_v23 = vld [vmem:[#allocation10 + $0x960] sm:$0xff] }
 0x61a   :  { %7498 = vmatpush1.bf16.msra.mxu1 %v11616_v22  ;;  %v8325_v22 = vld [vmem:[#allocation10 + $0x800] sm:$0xff] }
 0x61b   :  { %8261 = vmatpush1.bf16.msra.mxu0 %v11742_v26  ;;  %7499 = vmatprep.subr.bf16.mxu1 %v11625_v19  ;;  %v8329_v26 = vld [vmem:[#allocation10 + $0x820] sm:$0xff]  ;;  %v11664_v19 = vcombine.low %v6711_v16, %v6715_v36 }
 0x61c   :  { %8262 = vmatprep.subr.bf16.mxu0 %v11751_v27  ;;  %v11790_v27 = vcombine.low %v6581_v24, %v6585_v39  ;;  %v11795_v52 = vcombine.high %v8325_v22, %v8329_v26  ;;  %v11794_v47 = vcombine.low %v8325_v22, %v8329_v26  ;;  %v6500_v24 = vld [vmem:[#allocation10 + $0x148] sm:$0xff]  ;;  %v8373_v22 = vld [vmem:[#allocation10 + $0x980] sm:$0xff] }
 0x61d   :  { %v6504_v39 = vld [vmem:[#allocation10 + $0x168] sm:$0xff]  ;;  %v8377_v26 = vld [vmem:[#allocation10 + $0x9a0] sm:$0xff] }
 0x61e   :  { %7500 = vmatpush1.bf16.msra.mxu1 %v11624_v63  ;;  %v6468_v63 = vld [vmem:[#allocation10 + $0x48] sm:$0xff] }
 0x61f   :  { %8263 = vmatpush1.bf16.msra.mxu0 %v11750_v2  ;;  %7501 = vmatprep.subr.bf16.mxu1 %v11633_v62  ;;  %v6472_v2 = vld [vmem:[#allocation10 + $0x68] sm:$0xff]  ;;  %v6448_v62 = vmax.f32 %v6401_v1, %v6441_v28  ;;  %v11843_v1 = vcombine.high %v8373_v22, %v8377_v26 }
 0x620   :  { %8264 = vmatprep.subr.bf16.mxu0 %v11759_v14  ;;  %v11668_v14 = vcombine.low %v6460_v42, %v6464_v12  ;;  %v11677_v9 = vcombine.high %v6468_v63, %v6472_v2  ;;  %v11676_v5 = vcombine.low %v6468_v63, %v6472_v2  ;;  %v6508_v42 = vld [vmem:[#allocation10 + $0x188] sm:$0xff]  ;;  %v8381_v63 = vld [vmem:[#allocation10 + $0x9c0] sm:$0xff] }
 0x621   :  { %v6512_v12 = vld [vmem:[#allocation10 + $0x1a8] sm:$0xff]  ;;  %v8385_v2 = vld [vmem:[#allocation10 + $0x9e0] sm:$0xff] }
 0x622   :  { %7502 = vmatpush1.bf16.msra.mxu1 %v11632_v60  ;;  %v6480_v60 = vld [vmem:[#allocation10 + $0xa8] sm:$0xff]  ;;  %v11717_v28 = vcombine.high %v6508_v42, %v6512_v12  ;;  %v11851_v34 = vcombine.high %v8381_v63, %v8385_v2 }
 0x623   :  { %8265 = vmatpush1.bf16.msra.mxu0 %v11758_v20  ;;  %7503 = vmatprep.subr.bf16.mxu1 %v11641_v3  ;;  %v8341_v20 = vld [vmem:[#allocation10 + $0x880] sm:$0xff]  ;;  %v11685_v40 = vcombine.high %v6476_v0, %v6480_v60 }
 0x624   :  { %8266 = vmatprep.subr.bf16.mxu0 %v11767_v57  ;;  %v8345_v3 = vld [vmem:[#allocation10 + $0x8a0] sm:$0xff]  ;;  %v16308_v57 = vpack.c.bf16 %v6448_v62, %v6448_v62  ;;  %v11716_v62 = vcombine.low %v6508_v42, %v6512_v12 }
 0x625   :  { %v11811_v21 = vcombine.high %v8341_v20, %v8345_v3  ;;  %v11810_v10 = vcombine.low %v8341_v20, %v8345_v3  ;;  %v11850_v20 = vcombine.low %v8381_v63, %v8385_v2  ;;  %v8425_v42 = vld [vmem:[#allocation10 + $0xb20] sm:$0xff] }
 0x626   :  { %7504 = vmatpush1.bf16.msra.mxu1 %v11640_v18  ;;  %v6484_v18 = vld [vmem:[#allocation10 + $0xc8] sm:$0xff] }
 0x627   :  { %8267 = vmatpush1.bf16.msra.mxu0 %v11766_v50  ;;  %7505 = vmatprep.subr.bf16.mxu1 %v11649_v48  ;;  %v8349_v50 = vld [vmem:[#allocation10 + $0x8c0] sm:$0xff] }
 0x628   :  { %8268 = vmatprep.subr.bf16.mxu0 %v11775_v56  ;;  %v8353_v48 = vld [vmem:[#allocation10 + $0x8e0] sm:$0xff]  ;;  %v11684_v56 = vcombine.low %v6476_v0, %v6480_v60 }
 0x629   :  { %v11819_v41 = vcombine.high %v8349_v50, %v8353_v48  ;;  %v8389_v0 = vld [vmem:[#allocation10 + $0xa00] sm:$0xff] }
 0x62a   :  { %7506 = vmatpush1.bf16.msra.mxu1 %v11648_v25  ;;  %v6496_v25 = vld [vmem:[#allocation10 + $0x128] sm:$0xff]  ;;  %v8393_v60 = vld [vmem:[#allocation10 + $0xa20] sm:$0xff] }
 0x62b   :  { %8269 = vmatpush1.bf16.msra.mxu0 %v11774_v6  ;;  %7507 = vmatprep.subr.bf16.mxu1 %v11657_v29  ;;  %v8357_v6 = vld [vmem:[#allocation10 + $0x900] sm:$0xff]  ;;  %v11701_v16 = vcombine.high %v6492_v17, %v6496_v25  ;;  %v11700_v11 = vcombine.low %v6492_v17, %v6496_v25 }
 0x62c   :  { %8270 = vmatprep.subr.bf16.mxu0 %v11783_v35  ;;  %v8361_v29 = vld [vmem:[#allocation10 + $0x920] sm:$0xff]  ;;  %v11818_v35 = vcombine.low %v8349_v50, %v8353_v48  ;;  %v11858_v50 = vcombine.low %v8389_v0, %v8393_v60 }
 0x62d   :  { %v11827_v36 = vcombine.high %v8357_v6, %v8361_v29  ;;  %v8409_v17 = vld [vmem:[#allocation10 + $0xaa0] sm:$0xff] }
 0x62e   :  { %7508 = vmatpush1.bf16.msra.mxu1 %v11656_v45  ;;  %v8365_v45 = vld [vmem:[#allocation10 + $0x940] sm:$0xff] }
 0x62f   :  { %8271 = vmatpush1.bf16.msra.mxu0 %v11782_v51  ;;  %7509 = vmatprep.subr.bf16.mxu1 %v11665_v55  ;;  %v11826_v51 = vcombine.low %v8357_v6, %v8361_v29  ;;  %v11709_v55 = vcombine.high %v6500_v24, %v6504_v39 }
 0x630   :  { %8272 = vmatprep.subr.bf16.mxu0 %v11791_v58  ;;  %v11835_v58 = vcombine.high %v8365_v45, %v8369_v23 }
 0x632   :  { %7510 = vmatpush1.bf16.msra.mxu1 %v11664_v19  ;;  %v11708_v19 = vcombine.low %v6500_v24, %v6504_v39  ;;  %v8417_v24 = vld [vmem:[#allocation10 + $0xae0] sm:$0xff] }
 0x633   :  { %8273 = vmatpush1.bf16.msra.mxu0 %v11790_v27  ;;  %8201 = vmatprep.subr.bf16.mxu1 %v11669_v32  ;;  %v11834_v27 = vcombine.low %v8365_v45, %v8369_v23  ;;  %v6516_v32 = vld [vmem:[#allocation10 + $0x1c8] sm:$0xff] }
 0x634   :  { %9093 = vmatprep.subr.bf16.mxu0 %v11795_v52  ;;  %v6520_v52 = vld [vmem:[#allocation10 + $0x1e8] sm:$0xff] }
 0x635   :  { %7512 = vmatmul.mubr.bf16.vlgmr.msra.gmra.mrb[72].mxu1 %v16270_v43  ;;  %v6488_v43 = vld [vmem:[#allocation10 + $0xe8] sm:$0xff]  ;;  %v11725_v30 = vcombine.high %v6516_v32, %v6520_v52 }
 0x636   :  { %8275 = vmatmul.mubr.bf16.vlgmr.msra.gmra.mrb[120].mxu0 %v16296_v7  ;;  %8202 = vmatpush1.bf16.msra.mxu1 %v11668_v14  ;;  %v11693_v37 = vcombine.high %v6484_v18, %v6488_v43  ;;  %v11692_v54 = vcombine.low %v6484_v18, %v6488_v43  ;;  %v11842_v14 = vcombine.low %v8373_v22, %v8377_v26  ;;  %v8401_v18 = vld [vmem:[#allocation10 + $0xa60] sm:$0xff] }
 0x637   :  { %8233 = vmatprep.mubr.bf16.mxu1 %v16288_v31  ;;  %9094 = vmatpush1.bf16.msra.mxu0 %v11794_v47  ;;  %v6524_v47 = vld [vmem:[#allocation10 + $0x208] sm:$0xff] }
 0x638   :  { %9125 = vmatprep.mubr.bf16.mxu0 %v16308_v57  ;;  %8203 = vmatprep.subr.bf16.mxu1 %v11677_v9  ;;  %v6528_v9 = vld [vmem:[#allocation10 + $0x228] sm:$0xff] }
 0x639   :  { %9095 = vmatprep.subr.bf16.mxu0 %v11803_v33  ;;  %v11724_v33 = vcombine.low %v6516_v32, %v6520_v52  ;;  %v11733_v3 = vcombine.high %v6524_v47, %v6528_v9  ;;  %v11732_v43 = vcombine.low %v6524_v47, %v6528_v9  ;;  %v8433_v32 = vld [vmem:[#allocation10 + $0xb60] sm:$0xff]  ;;  %v13144_v9 = vpop.permute.xlu1 %13143 }
 0x63a   :  { %8204 = vmatpush1.bf16.msra.mxu1 %v11676_v5  ;;  %v11859_v5 = vcombine.high %v8389_v0, %v8393_v60  ;;  %v8441_v47 = vld [vmem:[#allocation10 + $0xba0] sm:$0xff] }
 0x63b   :  { %9096 = vmatpush1.bf16.msra.mxu0 %v11802_v61  ;;  %8205 = vmatprep.subr.bf16.mxu1 %v11685_v40  ;;  %v6532_v61 = vld [vmem:[#allocation10 + $0x248] sm:$0xff] }
 0x63c   :  { %9097 = vmatprep.subr.bf16.mxu0 %v11811_v21  ;;  %v6536_v40 = vld [vmem:[#allocation10 + $0x268] sm:$0xff]  ;;  %v8397_v21 = vld [vmem:[#allocation10 + $0xa40] sm:$0xff] }
 0x63d   :  { %v11741_v48 = vcombine.high %v6532_v61, %v6536_v40  ;;  %v11740_v25 = vcombine.low %v6532_v61, %v6536_v40  ;;  %v11866_v6 = vcombine.low %v8397_v21, %v8401_v18  ;;  %v13146_v61 = vunpack.i.h.bf16 %v13144_v9 }
 0x63e   :  { %8206 = vmatpush1.bf16.msra.mxu1 %v11684_v56  ;;  %v11867_v56 = vcombine.high %v8397_v21, %v8401_v18  ;;  %v13145_v40 = vunpack.i.l.bf16 %v13144_v9  ;;  %v8445_v21 = vld [vmem:[#allocation10 + $0xbc0] sm:$0xff]  ;;  %v8363_v9 = vld [vmem:[#allocation10 + $0x930] sm:$0xff] }
 0x63f   :  { %9098 = vmatpush1.bf16.msra.mxu0 %v11810_v10  ;;  %8207 = vmatprep.subr.bf16.mxu1 %v11693_v37  ;;  %v6540_v10 = vld [vmem:[#allocation10 + $0x288] sm:$0xff]  ;;  %v8449_v18 = vld [vmem:[#allocation10 + $0xbe0] sm:$0xff] }
 0x640   :  { %9099 = vmatprep.subr.bf16.mxu0 %v11819_v41  ;;  %v6544_v37 = vld [vmem:[#allocation10 + $0x2a8] sm:$0xff]  ;;  %v8405_v41 = vld [vmem:[#allocation10 + $0xa80] sm:$0xff] }
 0x641   :  { %v11749_v29 = vcombine.high %v6540_v10, %v6544_v37  ;;  %v11748_v39 = vcombine.low %v6540_v10, %v6544_v37  ;;  %v11874_v45 = vcombine.low %v8405_v41, %v8409_v17  ;;  %v6462_v10 = vld [vmem:[#allocation10 + $0x18] sm:$0xff] }
 0x642   :  { %8208 = vmatpush1.bf16.msra.mxu1 %v11692_v54  ;;  %v11875_v54 = vcombine.high %v8405_v41, %v8409_v17  ;;  %v6466_v37 = vld [vmem:[#allocation10 + $0x38] sm:$0xff]  ;;  %v6437_v41 = vsel %vm1894_vm9, %v13146_v61, %v16228_v46  ;;  %v6397_v17 = vsel %vm1894_vm9, %v16221_v44, %v13145_v40  ;;  %v8339_v46 = vld [vmem:[#allocation10 + $0x870] sm:$0xff] }
 0x643   :  { %9100 = vmatpush1.bf16.msra.mxu0 %v11818_v35  ;;  %8209 = vmatprep.subr.bf16.mxu1 %v11701_v16  ;;  %v6548_v35 = vld [vmem:[#allocation10 + $0x2c8] sm:$0xff]  ;;  %v8367_v61 = vld [vmem:[#allocation10 + $0x950] sm:$0xff] }
 0x644   :  { %9101 = vmatprep.subr.bf16.mxu0 %v11827_v36  ;;  %v6552_v16 = vld [vmem:[#allocation10 + $0x2e8] sm:$0xff]  ;;  %v8413_v36 = vld [vmem:[#allocation10 + $0xac0] sm:$0xff]  ;;  %v8371_v40 = vld [vmem:[#allocation10 + $0x970] sm:$0xff] }
 0x645   :  { %v11757_v23 = vcombine.high %v6548_v35, %v6552_v16  ;;  %v11756_v12 = vcombine.low %v6548_v35, %v6552_v16  ;;  %v11882_v22 = vcombine.low %v8413_v36, %v8417_v24  ;;  %v11673_v35 = vcombine.high %v6462_v10, %v6466_v37 }
 0x646   :  { %8210 = vmatpush1.bf16.msra.mxu1 %v11700_v11  ;;  %v11883_v11 = vcombine.high %v8413_v36, %v8417_v24  ;;  %v6447_v16 = vmax.f32 %v6397_v17, %v6437_v41  ;;  %v6470_v24 = vld [vmem:[#allocation10 + $0x58] sm:$0xff]  ;;  %v11838_v17 = vcombine.low %v8367_v61, %v8371_v40 }
 0x647   :  { %9102 = vmatpush1.bf16.msra.mxu0 %v11826_v51  ;;  %8211 = vmatprep.subr.bf16.mxu1 %v11709_v55  ;;  %v6556_v51 = vld [vmem:[#allocation10 + $0x308] sm:$0xff] }
 0x648   :  { %9103 = vmatprep.subr.bf16.mxu0 %v11835_v58  ;;  %v6560_v55 = vld [vmem:[#allocation10 + $0x328] sm:$0xff]  ;;  %v8421_v58 = vld [vmem:[#allocation10 + $0xb00] sm:$0xff] }
 0x649   :  { %v11765_v26 = vcombine.high %v6556_v51, %v6560_v55  ;;  %v11764_v52 = vcombine.low %v6556_v51, %v6560_v55  ;;  %v11890_v63 = vcombine.low %v8421_v58, %v8425_v42  ;;  %v6478_v55 = vld [vmem:[#allocation10 + $0x98] sm:$0xff] }
 0x64a   :  { %8212 = vmatpush1.bf16.msra.mxu1 %v11708_v19  ;;  %v11891_v19 = vcombine.high %v8421_v58, %v8425_v42  ;;  %v6482_v58 = vld [vmem:[#allocation10 + $0xb8] sm:$0xff] }
 0x64b   :  { %9104 = vmatpush1.bf16.msra.mxu0 %v11834_v27  ;;  %8213 = vmatprep.subr.bf16.mxu1 %v11717_v28  ;;  %v6564_v27 = vld [vmem:[#allocation10 + $0x348] sm:$0xff] }
 0x64c   :  { %9105 = vmatprep.subr.bf16.mxu0 %v11843_v1  ;;  %v6568_v28 = vld [vmem:[#allocation10 + $0x368] sm:$0xff]  ;;  %v8429_v1 = vld [vmem:[#allocation10 + $0xb40] sm:$0xff] }
 0x64d   :  { %v11773_v2 = vcombine.high %v6564_v27, %v6568_v28  ;;  %v11772_v0 = vcombine.low %v6564_v27, %v6568_v28  ;;  %v11898_v60 = vcombine.low %v8429_v1, %v8433_v32  ;;  %v11689_v27 = vcombine.high %v6478_v55, %v6482_v58 }
 0x64e   :  { %8214 = vmatpush1.bf16.msra.mxu1 %v11716_v62  ;;  %v11899_v62 = vcombine.high %v8429_v1, %v8433_v32  ;;  %v6486_v1 = vld [vmem:[#allocation10 + $0xd8] sm:$0xff] }
 0x64f   :  { %9106 = vmatpush1.bf16.msra.mxu0 %v11842_v14  ;;  %8215 = vmatprep.subr.bf16.mxu1 %v11725_v30  ;;  %v6572_v14 = vld [vmem:[#allocation10 + $0x388] sm:$0xff]  ;;  %v6490_v32 = vld [vmem:[#allocation10 + $0xf8] sm:$0xff] }
 0x650   :  { %9107 = vmatprep.subr.bf16.mxu0 %v11851_v34  ;;  %v6576_v30 = vld [vmem:[#allocation10 + $0x3a8] sm:$0xff]  ;;  %v8437_v34 = vld [vmem:[#allocation10 + $0xb80] sm:$0xff] }
 0x652   :  { %8216 = vmatpush1.bf16.msra.mxu1 %v11724_v33  ;;  %v11781_v33 = vcombine.high %v6572_v14, %v6576_v30 }
 0x653   :  { %9108 = vmatpush1.bf16.msra.mxu0 %v11850_v20  ;;  %8217 = vmatprep.subr.bf16.mxu1 %v11733_v3  ;;  %v11907_v20 = vcombine.high %v8437_v34, %v8441_v47  ;;  %v6580_v3 = vld [vmem:[#allocation10 + $0x3c8] sm:$0xff] }
 0x654   :  { %9109 = vmatprep.subr.bf16.mxu0 %v11859_v5  ;;  %v6584_v5 = vld [vmem:[#allocation10 + $0x3e8] sm:$0xff] }
 0x656   :  { %8218 = vmatpush1.bf16.msra.mxu1 %v11732_v43  ;;  %v11780_v43 = vcombine.low %v6572_v14, %v6576_v30  ;;  %v11697_v14 = vcombine.high %v6486_v1, %v6490_v32  ;;  %v6494_v30 = vld [vmem:[#allocation10 + $0x118] sm:$0xff] }
 0x657   :  { %9110 = vmatpush1.bf16.msra.mxu0 %v11858_v50  ;;  %8219 = vmatprep.subr.bf16.mxu1 %v11741_v48  ;;  %v11906_v50 = vcombine.low %v8437_v34, %v8441_v47  ;;  %v11789_v48 = vcombine.high %v6580_v3, %v6584_v5  ;;  %v6498_v34 = vld [vmem:[#allocation10 + $0x138] sm:$0xff]  ;;  %v8359_v47 = vld [vmem:[#allocation10 + $0x910] sm:$0xff] }
 0x658   :  { %9111 = vmatprep.subr.bf16.mxu0 %v11867_v56  ;;  %v11915_v56 = vcombine.high %v8445_v21, %v8449_v18 }
 0x65a   :  { %8220 = vmatpush1.bf16.msra.mxu1 %v11740_v25  ;;  %v8327_v25 = vld [vmem:[#allocation10 + $0x810] sm:$0xff] }
 0x65b   :  { %9112 = vmatpush1.bf16.msra.mxu0 %v11866_v6  ;;  %8221 = vmatprep.subr.bf16.mxu1 %v11749_v29  ;;  %v8331_v6 = vld [vmem:[#allocation10 + $0x830] sm:$0xff]  ;;  %v11788_v29 = vcombine.low %v6580_v3, %v6584_v5  ;;  %v6502_v3 = vld [vmem:[#allocation10 + $0x158] sm:$0xff] }
 0x65c   :  { %9113 = vmatprep.subr.bf16.mxu0 %v11875_v54  ;;  %v11914_v54 = vcombine.low %v8445_v21, %v8449_v18  ;;  %v11799_v36 = vcombine.high %v8327_v25, %v8331_v6  ;;  %v11798_v44 = vcombine.low %v8327_v25, %v8331_v6  ;;  %v6506_v5 = vld [vmem:[#allocation10 + $0x178] sm:$0xff]  ;;  %v11704_v21 = vcombine.low %v6494_v30, %v6498_v34 }
 0x65d   :  { %v11830_v18 = vcombine.low %v8359_v47, %v8363_v9  ;;  %v11712_v41 = vcombine.low %v6502_v3, %v6506_v5 }
 0x65e   :  { %8222 = vmatpush1.bf16.msra.mxu1 %v11748_v39  ;;  %v6474_v39 = vld [vmem:[#allocation10 + $0x78] sm:$0xff] }
 0x65f   :  { %9114 = vmatpush1.bf16.msra.mxu0 %v11874_v45  ;;  %8223 = vmatprep.subr.bf16.mxu1 %v11757_v23  ;;  %v11672_v45 = vcombine.low %v6462_v10, %v6466_v37  ;;  %v8335_v23 = vld [vmem:[#allocation10 + $0x850] sm:$0xff]  ;;  %v11681_v51 = vcombine.high %v6470_v24, %v6474_v39 }
 0x660   :  { %9115 = vmatprep.subr.bf16.mxu0 %v11883_v11  ;;  %v16316_v11 = vpack.c.bf16 %v6447_v16, %v6447_v16  ;;  %v11807_v42 = vcombine.high %v8335_v23, %v8339_v46  ;;  %v8375_v10 = vld [vmem:[#allocation10 + $0x990] sm:$0xff]  ;;  %v6522_v16 = vld [vmem:[#allocation10 + $0x1f8] sm:$0xff] }
 0x661   :  { %v8379_v37 = vld [vmem:[#allocation10 + $0x9b0] sm:$0xff] }
 0x662   :  { %8224 = vmatpush1.bf16.msra.mxu1 %v11756_v12  ;;  %v8343_v12 = vld [vmem:[#allocation10 + $0x890] sm:$0xff] }
 0x663   :  { %9116 = vmatpush1.bf16.msra.mxu0 %v11882_v22  ;;  %8225 = vmatprep.subr.bf16.mxu1 %v11765_v26  ;;  %v8347_v22 = vld [vmem:[#allocation10 + $0x8b0] sm:$0xff]  ;;  %v11680_v26 = vcombine.low %v6470_v24, %v6474_v39 }
 0x664   :  { %9117 = vmatprep.subr.bf16.mxu0 %v11891_v19  ;;  %v11806_v19 = vcombine.low %v8335_v23, %v8339_v46  ;;  %v11815_v28 = vcombine.high %v8343_v12, %v8347_v22  ;;  %v8383_v39 = vld [vmem:[#allocation10 + $0x9d0] sm:$0xff] }
 0x666   :  { %8226 = vmatpush1.bf16.msra.mxu1 %v11764_v52  ;;  %v8351_v52 = vld [vmem:[#allocation10 + $0x8d0] sm:$0xff] }
 0x667   :  { %9118 = vmatpush1.bf16.msra.mxu0 %v11890_v63  ;;  %8227 = vmatprep.subr.bf16.mxu1 %v11773_v2  ;;  %v8355_v63 = vld [vmem:[#allocation10 + $0x8f0] sm:$0xff]  ;;  %v11688_v2 = vcombine.low %v6478_v55, %v6482_v58  ;;  %v11846_v58 = vcombine.low %v8375_v10, %v8379_v37 }
 0x668   :  { %9119 = vmatprep.subr.bf16.mxu0 %v11899_v62  ;;  %v11814_v62 = vcombine.low %v8343_v12, %v8347_v22  ;;  %v6526_v22 = vld [vmem:[#allocation10 + $0x218] sm:$0xff] }
 0x66a   :  { %8228 = vmatpush1.bf16.msra.mxu1 %v11772_v0  ;;  %v11696_v0 = vcombine.low %v6486_v1, %v6490_v32 }
 0x66b   :  { %9120 = vmatpush1.bf16.msra.mxu0 %v11898_v60  ;;  %8229 = vmatprep.subr.bf16.mxu1 %v11781_v33  ;;  %v11822_v60 = vcombine.low %v8351_v52, %v8355_v63  ;;  %v11705_v33 = vcombine.high %v6494_v30, %v6498_v34 }
 0x66c   :  { %9121 = vmatprep.subr.bf16.mxu0 %v11907_v20  ;;  %v11831_v20 = vcombine.high %v8359_v47, %v8363_v9  ;;  %v6542_v9 = vld [vmem:[#allocation10 + $0x298] sm:$0xff] }
 0x66e   :  { %8230 = vmatpush1.bf16.msra.mxu1 %v11780_v43  ;;  %v11713_v43 = vcombine.high %v6502_v3, %v6506_v5 }
 0x66f   :  { %9122 = vmatpush1.bf16.msra.mxu0 %v11906_v50  ;;  %8231 = vmatprep.subr.bf16.mxu1 %v11789_v48  ;;  %v11839_v50 = vcombine.high %v8367_v61, %v8371_v40  ;;  %v6510_v48 = vld [vmem:[#allocation10 + $0x198] sm:$0xff] }
 0x670   :  { %9123 = vmatprep.subr.bf16.mxu0 %v11915_v56  ;;  %v6514_v56 = vld [vmem:[#allocation10 + $0x1b8] sm:$0xff] }
 0x671   :  { %v11721_v25 = vcombine.high %v6510_v48, %v6514_v56  ;;  %v6550_v40 = vld [vmem:[#allocation10 + $0x2d8] sm:$0xff] }
 0x672   :  { %8232 = vmatpush1.bf16.msra.mxu1 %v11788_v29 }
 0x673   :  { %9124 = vmatpush1.bf16.msra.mxu0 %v11914_v54  ;;  %8283 = vmatprep.subr.bf16.mxu1 %v11673_v35  ;;  %v11847_v54 = vcombine.high %v8375_v10, %v8379_v37  ;;  %v6518_v35 = vld [vmem:[#allocation10 + $0x1d8] sm:$0xff] }
 0x674   :  { %9175 = vmatprep.subr.bf16.mxu0 %v11799_v36  ;;  %v6558_v37 = vld [vmem:[#allocation10 + $0x318] sm:$0xff] }
 0x675   :  { %8234 = vmatmul.mubr.bf16.vlgmr.msra.gmra.mrb[76].mxu1 %v16296_v7 }
 0x676   :  { %9126 = vmatmul.mubr.bf16.vlgmr.msra.gmra.mrb[124].mxu0 %v16316_v11  ;;  %8284 = vmatpush1.bf16.msra.mxu1 %v11672_v45  ;;  %v8387_v45 = vld [vmem:[#allocation10 + $0x9f0] sm:$0xff] }
 0x677   :  { %8315 = vmatprep.mubr.bf16.mxu1 %v16288_v31  ;;  %9176 = vmatpush1.bf16.msra.mxu0 %v11798_v44  ;;  %v11823_v31 = vcombine.high %v8351_v52, %v8355_v63  ;;  %v11720_v44 = vcombine.low %v6510_v48, %v6514_v56  ;;  %v11855_v12 = vcombine.high %v8383_v39, %v8387_v45  ;;  %v6534_v63 = vld [vmem:[#allocation10 + $0x258] sm:$0xff] }
 0x678   :  { %9207 = vmatprep.mubr.bf16.mxu0 %v16308_v57  ;;  %8285 = vmatprep.subr.bf16.mxu1 %v11681_v51  ;;  %v11854_v1 = vcombine.low %v8383_v39, %v8387_v45  ;;  %v6566_v45 = vld [vmem:[#allocation10 + $0x358] sm:$0xff] }
 0x679   :  { %9177 = vmatprep.subr.bf16.mxu0 %v11807_v42  ;;  %v11729_v42 = vcombine.high %v6518_v35, %v6522_v16 }
 0x67a   :  { %8286 = vmatpush1.bf16.msra.mxu1 %v11680_v26  ;;  %v6530_v26 = vld [vmem:[#allocation10 + $0x238] sm:$0xff] }
 0x67b   :  { %9178 = vmatpush1.bf16.msra.mxu0 %v11806_v19  ;;  %8287 = vmatprep.subr.bf16.mxu1 %v11689_v27  ;;  %v8391_v19 = vld [vmem:[#allocation10 + $0xa10] sm:$0xff]  ;;  %v11737_v32 = vcombine.high %v6526_v22, %v6530_v26 }
 0x67c   :  { %9179 = vmatprep.subr.bf16.mxu0 %v11815_v28  ;;  %v8395_v27 = vld [vmem:[#allocation10 + $0xa30] sm:$0xff]  ;;  %v11728_v28 = vcombine.low %v6518_v35, %v6522_v16 }
 0x67d   :  { %v11863_v52 = vcombine.high %v8391_v19, %v8395_v27  ;;  %v11862_v30 = vcombine.low %v8391_v19, %v8395_v27  ;;  %v8443_v19 = vld [vmem:[#allocation10 + $0xbb0] sm:$0xff] }
 0x67e   :  { %8288 = vmatpush1.bf16.msra.mxu1 %v11688_v2  ;;  %v6538_v2 = vld [vmem:[#allocation10 + $0x278] sm:$0xff] }
 0x67f   :  { %9180 = vmatpush1.bf16.msra.mxu0 %v11814_v62  ;;  %8289 = vmatprep.subr.bf16.mxu1 %v11697_v14  ;;  %v8399_v62 = vld [vmem:[#allocation10 + $0xa50] sm:$0xff]  ;;  %v11745_v34 = vcombine.high %v6534_v63, %v6538_v2 }
 0x680   :  { %9181 = vmatprep.subr.bf16.mxu0 %v11823_v31  ;;  %v8403_v14 = vld [vmem:[#allocation10 + $0xa70] sm:$0xff]  ;;  %v11736_v31 = vcombine.low %v6526_v22, %v6530_v26  ;;  %v6578_v22 = vld [vmem:[#allocation10 + $0x3b8] sm:$0xff] }
 0x681   :  { %v11871_v47 = vcombine.high %v8399_v62, %v8403_v14  ;;  %v11870_v3 = vcombine.low %v8399_v62, %v8403_v14  ;;  %v8439_v26 = vld [vmem:[#allocation10 + $0xb90] sm:$0xff] }
 0x682   :  { %8290 = vmatpush1.bf16.msra.mxu1 %v11696_v0  ;;  %v6546_v0 = vld [vmem:[#allocation10 + $0x2b8] sm:$0xff]  ;;  %v8447_v62 = vld [vmem:[#allocation10 + $0xbd0] sm:$0xff] }
 0x683   :  { %9182 = vmatpush1.bf16.msra.mxu0 %v11822_v60  ;;  %8291 = vmatprep.subr.bf16.mxu1 %v11705_v33  ;;  %v8407_v60 = vld [vmem:[#allocation10 + $0xa90] sm:$0xff]  ;;  %v11753_v5 = vcombine.high %v6542_v9, %v6546_v0 }
 0x684   :  { %9183 = vmatprep.subr.bf16.mxu0 %v11831_v20  ;;  %v8411_v33 = vld [vmem:[#allocation10 + $0xab0] sm:$0xff]  ;;  %v11744_v20 = vcombine.low %v6534_v63, %v6538_v2  ;;  %v6582_v63 = vld [vmem:[#allocation10 + $0x3d8] sm:$0xff] }
 0x685   :  { %v11879_v61 = vcombine.high %v8407_v60, %v8411_v33  ;;  %v11878_v48 = vcombine.low %v8407_v60, %v8411_v33  ;;  %v6586_v2 = vld [vmem:[#allocation10 + $0x3f8] sm:$0xff]  ;;  %v8451_v14 = vld [vmem:[#allocation10 + $0xbf0] sm:$0xff]  ;;  %v8326_v60 = vld [vmem:[#allocation10 + $0x808] sm:$0xff] }
 0x686   :  { %8292 = vmatpush1.bf16.msra.mxu1 %v11704_v21  ;;  %v6554_v21 = vld [vmem:[#allocation10 + $0x2f8] sm:$0xff]  ;;  %v8330_v33 = vld [vmem:[#allocation10 + $0x828] sm:$0xff] }
 0x687   :  { %9184 = vmatpush1.bf16.msra.mxu0 %v11830_v18  ;;  %8293 = vmatprep.subr.bf16.mxu1 %v11713_v43  ;;  %v8415_v18 = vld [vmem:[#allocation10 + $0xad0] sm:$0xff]  ;;  %v11761_v56 = vcombine.high %v6550_v40, %v6554_v21 }
 0x688   :  { %v16322_v6 = vpop.f32.mrb[64].mxu1  ;;  %v16324_v29 = vpop.f32.mrb[112].mxu0  ;;  %9185 = vmatprep.subr.bf16.mxu0 %v11839_v50  ;;  %v8419_v43 = vld [vmem:[#allocation10 + $0xaf0] sm:$0xff]  ;;  %v11752_v50 = vcombine.low %v6542_v9, %v6546_v0  ;;  %v11793_v9 = vcombine.high %v6582_v63, %v6586_v2  ;;  %v11919_v0 = vcombine.high %v8447_v62, %v8451_v14 }
 0x689   :  { %v16326_v36 = vpop.f32.mrb[65].mxu1  ;;  %v16328_v24 = vpop.f32.mrb[113].mxu0  ;;  %v11887_v10 = vcombine.high %v8415_v18, %v8419_v43  ;;  %v11886_v35 = vcombine.low %v8415_v18, %v8419_v43  ;;  %v11797_v18 = vcombine.high %v8326_v60, %v8330_v33 }
 0x68a   :  { %8294 = vmatpush1.bf16.msra.mxu1 %v11712_v41  ;;  %v7394_v23 = vpop.f32.mrb[66].mxu1  ;;  %v7476_v46 = vpop.f32.mrb[114].mxu0  ;;  %v6562_v41 = vld [vmem:[#allocation10 + $0x338] sm:$0xff] }
 0x68b   :  { %9186 = vmatpush1.bf16.msra.mxu0 %v11838_v17  ;;  %v7395_v51 = vpop.f32.mrb[67].mxu1  ;;  %v7477_v55 = vpop.f32.mrb[115].mxu0  ;;  %8295 = vmatprep.subr.bf16.mxu1 %v11721_v25  ;;  %v8423_v17 = vld [vmem:[#allocation10 + $0xb10] sm:$0xff]  ;;  %v11769_v16 = vcombine.high %v6558_v37, %v6562_v41  ;;  %v6570_v23 = vld [vmem:[#allocation10 + $0x378] sm:$0xff] }
 0x68c   :  { %9187 = vmatprep.subr.bf16.mxu0 %v11847_v54  ;;  %v8427_v25 = vld [vmem:[#allocation10 + $0xb30] sm:$0xff]  ;;  %v11760_v54 = vcombine.low %v6550_v40, %v6554_v21  ;;  %v11768_v51 = vcombine.low %v6558_v37, %v6562_v41  ;;  %v11776_v27 = vcombine.low %v6566_v45, %v6570_v23  ;;  %v11918_v21 = vcombine.low %v8447_v62, %v8451_v14  ;;  %v9274_v37 = vld [vmem:[#allocation10 + $0xc40] sm:$0xff]  ;;  %v8366_v62 = vld [vmem:[#allocation10 + $0x948] sm:$0xff] }
 0x68d   :  { %v11895_v39 = vcombine.high %v8423_v17, %v8427_v25  ;;  %v8431_v46 = vld [vmem:[#allocation10 + $0xb50] sm:$0xff]  ;;  %v11894_v55 = vcombine.low %v8423_v17, %v8427_v25  ;;  %v9278_v41 = vld [vmem:[#allocation10 + $0xc60] sm:$0xff]  ;;  %v8342_v25 = vld [vmem:[#allocation10 + $0x888] sm:$0xff] }
 0x68e   :  { %8296 = vmatpush1.bf16.msra.mxu1 %v11720_v44  ;;  %v8435_v44 = vld [vmem:[#allocation10 + $0xb70] sm:$0xff]  ;;  %v8370_v14 = vld [vmem:[#allocation10 + $0x968] sm:$0xff] }
 0x68f   :  { %9188 = vmatpush1.bf16.msra.mxu0 %v11846_v58  ;;  %8297 = vmatprep.subr.bf16.mxu1 %v11729_v42  ;;  %v11777_v58 = vcombine.high %v6566_v45, %v6570_v23  ;;  %v11903_v42 = vcombine.high %v8431_v46, %v8435_v44  ;;  %v11930_v23 = vcombine.low %v9274_v37, %v9278_v41 }
 0x690   :  { %9189 = vmatprep.subr.bf16.mxu0 %v11855_v12  ;;  %v6574_v12 = vld [vmem:[#allocation10 + $0x398] sm:$0xff] }
 0x692   :  { %8298 = vmatpush1.bf16.msra.mxu1 %v11728_v28  ;;  %v13149_v28 = vpop.permute.xlu0 %13148 }
 0x693   :  { %9190 = vmatpush1.bf16.msra.mxu0 %v11854_v1  ;;  %8299 = vmatprep.subr.bf16.mxu1 %v11737_v32  ;;  %v11902_v1 = vcombine.low %v8431_v46, %v8435_v44  ;;  %v11785_v32 = vcombine.high %v6574_v12, %v6578_v22 }
 0x694   :  { %9191 = vmatprep.subr.bf16.mxu0 %v11863_v52  ;;  %v11911_v52 = vcombine.high %v8439_v26, %v8443_v19 }
 0x696   :  { %8300 = vmatpush1.bf16.msra.mxu1 %v11736_v31  ;;  %v13151_v31 = vunpack.i.h.bf16 %v13149_v28 }
 0x697   :  { %9192 = vmatpush1.bf16.msra.mxu0 %v11862_v30  ;;  %8301 = vmatprep.subr.bf16.mxu1 %v11745_v34  ;;  %v11784_v30 = vcombine.low %v6574_v12, %v6578_v22  ;;  %v13150_v34 = vunpack.i.l.bf16 %v13149_v28  ;;  %v9298_v28 = vld [vmem:[#allocation10 + $0xd00] sm:$0xff] }
 0x698   :  { %9193 = vmatprep.subr.bf16.mxu0 %v11871_v47  ;;  %v11910_v47 = vcombine.low %v8439_v26, %v8443_v19  ;;  %v8358_v19 = vld [vmem:[#allocation10 + $0x908] sm:$0xff] }
 0x699   :  { %v6402_v40 = vsel %vm1894_vm9, %v16250_v13, %v13150_v34  ;;  %v8346_v13 = vld [vmem:[#allocation10 + $0x8a8] sm:$0xff] }
 0x69a   :  { %8302 = vmatpush1.bf16.msra.mxu1 %v11744_v20  ;;  %v9266_v20 = vld [vmem:[#allocation10 + $0xc00] sm:$0xff]  ;;  %v11813_v46 = vcombine.high %v8342_v25, %v8346_v13 }
 0x69b   :  { %9194 = vmatpush1.bf16.msra.mxu0 %v11870_v3  ;;  %8303 = vmatprep.subr.bf16.mxu1 %v11753_v5  ;;  %v9270_v3 = vld [vmem:[#allocation10 + $0xc20] sm:$0xff]  ;;  %v6442_v5 = vsel %vm1894_vm9, %v13151_v31, %v16254_v53 }
 0x69c   :  { %9195 = vmatprep.subr.bf16.mxu0 %v11879_v61  ;;  %v11792_v61 = vcombine.low %v6582_v63, %v6586_v2  ;;  %v11923_v43 = vcombine.high %v9266_v20, %v9270_v3  ;;  %v11922_v53 = vcombine.low %v9266_v20, %v9270_v3  ;;  %v9306_v31 = vld [vmem:[#allocation10 + $0xd40] sm:$0xff] }
 0x69d   :  { %v9314_v20 = vld [vmem:[#allocation10 + $0xd80] sm:$0xff] }
 0x69e   :  { %8304 = vmatpush1.bf16.msra.mxu1 %v11752_v50  ;;  %v8334_v50 = vld [vmem:[#allocation10 + $0x848] sm:$0xff]  ;;  %v9318_v3 = vld [vmem:[#allocation10 + $0xda0] sm:$0xff] }
 0x69f   :  { %9196 = vmatpush1.bf16.msra.mxu0 %v11878_v48  ;;  %8305 = vmatprep.subr.bf16.mxu1 %v11761_v56  ;;  %v8338_v48 = vld [vmem:[#allocation10 + $0x868] sm:$0xff]  ;;  %v6450_v56 = vmax.f32 %v6402_v40, %v6442_v5  ;;  %v11836_v5 = vcombine.low %v8366_v62, %v8370_v14 }
 0x6a0   :  { %9197 = vmatprep.subr.bf16.mxu0 %v11887_v10  ;;  %v11796_v10 = vcombine.low %v8326_v60, %v8330_v33  ;;  %v11805_v17 = vcombine.high %v8334_v50, %v8338_v48  ;;  %v11804_v45 = vcombine.low %v8334_v50, %v8338_v48  ;;  %v8374_v60 = vld [vmem:[#allocation10 + $0x988] sm:$0xff] }
 0x6a1   :  { %v8378_v33 = vld [vmem:[#allocation10 + $0x9a8] sm:$0xff] }
 0x6a2   :  { %8306 = vmatpush1.bf16.msra.mxu1 %v11760_v54  ;;  %v11931_v54 = vcombine.high %v9274_v37, %v9278_v41  ;;  %v11845_v40 = vcombine.high %v8374_v60, %v8378_v33  ;;  %v8382_v50 = vld [vmem:[#allocation10 + $0x9c8] sm:$0xff]  ;;  %v9322_v41 = vld [vmem:[#allocation10 + $0xdc0] sm:$0xff] }
 0x6a3   :  { %9198 = vmatpush1.bf16.msra.mxu0 %v11886_v35  ;;  %8307 = vmatprep.subr.bf16.mxu1 %v11769_v16  ;;  %v9282_v35 = vld [vmem:[#allocation10 + $0xc80] sm:$0xff]  ;;  %v8386_v48 = vld [vmem:[#allocation10 + $0x9e8] sm:$0xff] }
 0x6a4   :  { %9199 = vmatprep.subr.bf16.mxu0 %v11895_v39  ;;  %v9286_v16 = vld [vmem:[#allocation10 + $0xca0] sm:$0xff]  ;;  %v16336_v39 = vpack.c.bf16 %v6450_v56, %v6450_v56 }
 0x6a5   :  { %v11939_v44 = vcombine.high %v9282_v35, %v9286_v16  ;;  %v11938_v12 = vcombine.low %v9282_v35, %v9286_v16 }
 0x6a6   :  { %8308 = vmatpush1.bf16.msra.mxu1 %v11768_v51  ;;  %v8350_v51 = vld [vmem:[#allocation10 + $0x8c8] sm:$0xff] }
 0x6a7   :  { %9200 = vmatpush1.bf16.msra.mxu0 %v11894_v55  ;;  %8309 = vmatprep.subr.bf16.mxu1 %v11777_v58  ;;  %v9290_v55 = vld [vmem:[#allocation10 + $0xcc0] sm:$0xff] }
 0x6a8   :  { %9201 = vmatprep.subr.bf16.mxu0 %v11903_v42  ;;  %v9294_v58 = vld [vmem:[#allocation10 + $0xce0] sm:$0xff]  ;;  %v11812_v42 = vcombine.low %v8342_v25, %v8346_v13 }
 0x6a9   :  { %v11947_v26 = vcombine.high %v9290_v55, %v9294_v58 }
 0x6aa   :  { %8310 = vmatpush1.bf16.msra.mxu1 %v11776_v27  ;;  %v8362_v27 = vld [vmem:[#allocation10 + $0x928] sm:$0xff] }
 0x6ab   :  { %9202 = vmatpush1.bf16.msra.mxu0 %v11902_v1  ;;  %8311 = vmatprep.subr.bf16.mxu1 %v11785_v32  ;;  %v9302_v1 = vld [vmem:[#allocation10 + $0xd20] sm:$0xff]  ;;  %v11829_v63 = vcombine.high %v8358_v19, %v8362_v27  ;;  %v11828_v34 = vcombine.low %v8358_v19, %v8362_v27 }
 0x6ac   :  { %9203 = vmatprep.subr.bf16.mxu0 %v11911_v52  ;;  %v11946_v52 = vcombine.low %v9290_v55, %v9294_v58  ;;  %v11955_v2 = vcombine.high %v9298_v28, %v9302_v1  ;;  %v11852_v55 = vcombine.low %v8382_v50, %v8386_v48  ;;  %v9342_v19 = vld [vmem:[#allocation10 + $0xe60] sm:$0xff] }
 0x6ae   :  { %8312 = vmatpush1.bf16.msra.mxu1 %v11784_v30  ;;  %v9310_v30 = vld [vmem:[#allocation10 + $0xd60] sm:$0xff] }
 0x6af   :  { %9204 = vmatpush1.bf16.msra.mxu0 %v11910_v47  ;;  %8313 = vmatprep.subr.bf16.mxu1 %v11793_v9  ;;  %v11954_v47 = vcombine.low %v9298_v28, %v9302_v1  ;;  %v11837_v9 = vcombine.high %v8366_v62, %v8370_v14  ;;  %v9350_v62 = vld [vmem:[#allocation10 + $0xea0] sm:$0xff] }
 0x6b0   :  { %9205 = vmatprep.subr.bf16.mxu0 %v11919_v0  ;;  %v11963_v0 = vcombine.high %v9306_v31, %v9310_v30 }
 0x6b2   :  { %8314 = vmatpush1.bf16.msra.mxu1 %v11792_v61  ;;  %v11962_v61 = vcombine.low %v9306_v31, %v9310_v30 }
 0x6b3   :  { %9206 = vmatpush1.bf16.msra.mxu0 %v11918_v21  ;;  %9134 = vmatprep.subr.bf16.mxu1 %v11797_v18 }
 0x6b4   :  { %10034 = vmatprep.subr.bf16.mxu0 %v11923_v43  ;;  %v11971_v43 = vcombine.high %v9314_v20, %v9318_v3 }
 0x6b5   :  { %8316 = vmatmul.mubr.bf16.vlgmr.msra.gmra.mrb[80].mxu1 %v16296_v7  ;;  %v8354_v7 = vld [vmem:[#allocation10 + $0x8e8] sm:$0xff] }
 0x6b6   :  { %9208 = vmatmul.mubr.bf16.vlgmr.msra.gmra.mrb[128].mxu0 %v16316_v11  ;;  %9135 = vmatpush1.bf16.msra.mxu1 %v11796_v10  ;;  %v11821_v22 = vcombine.high %v8350_v51, %v8354_v7  ;;  %v11820_v32 = vcombine.low %v8350_v51, %v8354_v7  ;;  %v9330_v51 = vld [vmem:[#allocation10 + $0xe00] sm:$0xff] }
 0x6b7   :  { %9166 = vmatprep.mubr.bf16.mxu1 %v16308_v57  ;;  %10035 = vmatpush1.bf16.msra.mxu0 %v11922_v53  ;;  %v9326_v53 = vld [vmem:[#allocation10 + $0xde0] sm:$0xff] }
 0x6b8   :  { %10066 = vmatprep.mubr.bf16.mxu0 %v16336_v39  ;;  %9136 = vmatprep.subr.bf16.mxu1 %v11805_v17  ;;  %v9334_v7 = vld [vmem:[#allocation10 + $0xe20] sm:$0xff] }
 0x6b9   :  { %10036 = vmatprep.subr.bf16.mxu0 %v11931_v54  ;;  %v11844_v54 = vcombine.low %v8374_v60, %v8378_v33  ;;  %v11986_v28 = vcombine.low %v9330_v51, %v9334_v7  ;;  %v9358_v60 = vld [vmem:[#allocation10 + $0xee0] sm:$0xff] }
 0x6ba   :  { %9137 = vmatpush1.bf16.msra.mxu1 %v11804_v45  ;;  %v11970_v45 = vcombine.low %v9314_v20, %v9318_v3 }
 0x6bb   :  { %10037 = vmatpush1.bf16.msra.mxu0 %v11930_v23  ;;  %9138 = vmatprep.subr.bf16.mxu1 %v11813_v46  ;;  %v11853_v23 = vcombine.high %v8382_v50, %v8386_v48  ;;  %v8390_v46 = vld [vmem:[#allocation10 + $0xa08] sm:$0xff] }
 0x6bc   :  { %10038 = vmatprep.subr.bf16.mxu0 %v11939_v44  ;;  %v8394_v44 = vld [vmem:[#allocation10 + $0xa28] sm:$0xff] }
 0x6bd   :  { %v11861_v58 = vcombine.high %v8390_v46, %v8394_v44  ;;  %v11860_v27 = vcombine.low %v8390_v46, %v8394_v44  ;;  %v8442_v46 = vld [vmem:[#allocation10 + $0xba8] sm:$0xff]  ;;  %v9378_v44 = vld [vmem:[#allocation10 + $0xf80] sm:$0xff] }
 0x6be   :  { %9139 = vmatpush1.bf16.msra.mxu1 %v11812_v42  ;;  %v11987_v42 = vcombine.high %v9330_v51, %v9334_v7  ;;  %v9382_v51 = vld [vmem:[#allocation10 + $0xfa0] sm:$0xff]  ;;  %v13154_v7 = vpop.permute.xlu1 %13153 }
 0x6bf   :  { %10039 = vmatpush1.bf16.msra.mxu0 %v11938_v12  ;;  %9140 = vmatprep.subr.bf16.mxu1 %v11821_v22  ;;  %v8398_v12 = vld [vmem:[#allocation10 + $0xa48] sm:$0xff] }
 0x6c0   :  { %10040 = vmatprep.subr.bf16.mxu0 %v11947_v26  ;;  %v8402_v22 = vld [vmem:[#allocation10 + $0xa68] sm:$0xff]  ;;  %v9338_v26 = vld [vmem:[#allocation10 + $0xe40] sm:$0xff] }
 0x6c1   :  { %v11869_v1 = vcombine.high %v8398_v12, %v8402_v22  ;;  %v11868_v14 = vcombine.low %v8398_v12, %v8402_v22  ;;  %v11994_v31 = vcombine.low %v9338_v26, %v9342_v19  ;;  %v8446_v12 = vld [vmem:[#allocation10 + $0xbc8] sm:$0xff] }
 0x6c2   :  { %9141 = vmatpush1.bf16.msra.mxu1 %v11820_v32  ;;  %v11995_v32 = vcombine.high %v9338_v26, %v9342_v19  ;;  %v8450_v22 = vld [vmem:[#allocation10 + $0xbe8] sm:$0xff]  ;;  %v13156_v26 = vunpack.i.h.bf16 %v13154_v7  ;;  %v13155_v19 = vunpack.i.l.bf16 %v13154_v7  ;;  %v8364_v7 = vld [vmem:[#allocation10 + $0x938] sm:$0xff] }
 0x6c3   :  { %10041 = vmatpush1.bf16.msra.mxu0 %v11946_v52  ;;  %9142 = vmatprep.subr.bf16.mxu1 %v11829_v63  ;;  %v8406_v52 = vld [vmem:[#allocation10 + $0xa88] sm:$0xff] }
 0x6c4   :  { %10042 = vmatprep.subr.bf16.mxu0 %v11955_v2  ;;  %v8410_v63 = vld [vmem:[#allocation10 + $0xaa8] sm:$0xff]  ;;  %v9346_v2 = vld [vmem:[#allocation10 + $0xe80] sm:$0xff] }
 0x6c5   :  { %v11877_v30 = vcombine.high %v8406_v52, %v8410_v63  ;;  %v11876_v33 = vcombine.low %v8406_v52, %v8410_v63  ;;  %v12002_v20 = vcombine.low %v9346_v2, %v9350_v62  ;;  %v11917_v52 = vcombine.high %v8446_v12, %v8450_v22 }
 0x6c6   :  { %9143 = vmatpush1.bf16.msra.mxu1 %v11828_v34  ;;  %v12003_v34 = vcombine.high %v9346_v2, %v9350_v62  ;;  %v8328_v2 = vld [vmem:[#allocation10 + $0x818] sm:$0xff] }
 0x6c7   :  { %10043 = vmatpush1.bf16.msra.mxu0 %v11954_v47  ;;  %9144 = vmatprep.subr.bf16.mxu1 %v11837_v9  ;;  %v8414_v47 = vld [vmem:[#allocation10 + $0xac8] sm:$0xff]  ;;  %v8332_v62 = vld [vmem:[#allocation10 + $0x838] sm:$0xff] }
 0x6c8   :  { %v16340_v21 = vpop.f32.mrb[68].mxu1  ;;  %v8194_v18 = vpop.f32.mrb[116].mxu0  ;;  %10044 = vmatprep.subr.bf16.mxu0 %v11963_v0  ;;  %v8418_v9 = vld [vmem:[#allocation10 + $0xae8] sm:$0xff]  ;;  %v9354_v0 = vld [vmem:[#allocation10 + $0xec0] sm:$0xff] }
 0x6c9   :  { %v16343_v56 = vadd.f32 %v8194_v18, %v16322_v6  ;;  %v16345_v10 = vpop.f32.mrb[69].mxu1  ;;  %v8196_v37 = vpop.f32.mrb[117].mxu0  ;;  %v11979_v6 = vcombine.high %v9322_v41, %v9326_v53  ;;  %v11885_v3 = vcombine.high %v8414_v47, %v8418_v9  ;;  %v9362_v18 = vld [vmem:[#allocation10 + $0xf00] sm:$0xff]  ;;  %v11884_v50 = vcombine.low %v8414_v47, %v8418_v9 }
 0x6ca   :  { %v16348_v17 = vadd.f32 %v8196_v37, %v16326_v36  ;;  %v7435_v25 = vpop.f32.mrb[70].mxu1  ;;  %v8198_v13 = vpop.f32.mrb[118].mxu0  ;;  %9145 = vmatpush1.bf16.msra.mxu1 %v11836_v5  ;;  %v11978_v36 = vcombine.low %v9322_v41, %v9326_v53  ;;  %v12011_v5 = vcombine.high %v9354_v0, %v9358_v60  ;;  %v12010_v48 = vcombine.low %v9354_v0, %v9358_v60  ;;  %v8430_v53 = vld [vmem:[#allocation10 + $0xb48] sm:$0xff] }
 0x6cb   :  { %10045 = vmatpush1.bf16.msra.mxu0 %v11962_v61  ;;  %v7436_v35 = vpop.f32.mrb[71].mxu1  ;;  %v8199_v16 = vpop.f32.mrb[119].mxu0  ;;  %9146 = vmatprep.subr.bf16.mxu1 %v11845_v40  ;;  %v8422_v61 = vld [vmem:[#allocation10 + $0xb08] sm:$0xff]  ;;  %v9370_v13 = vld [vmem:[#allocation10 + $0xf40] sm:$0xff]  ;;  %v11916_v47 = vcombine.low %v8446_v12, %v8450_v22  ;;  %v11801_v0 = vcombine.high %v8328_v2, %v8332_v62 }
 0x6cc   :  { %10046 = vmatprep.subr.bf16.mxu0 %v11971_v43  ;;  %v8426_v40 = vld [vmem:[#allocation10 + $0xb28] sm:$0xff]  ;;  %v9366_v43 = vld [vmem:[#allocation10 + $0xf20] sm:$0xff] }
 0x6cd   :  { %v11893_v37 = vcombine.high %v8422_v61, %v8426_v40  ;;  %v12019_v41 = vcombine.high %v9362_v18, %v9366_v43  ;;  %v8434_v25 = vld [vmem:[#allocation10 + $0xb68] sm:$0xff]  ;;  %v11892_v35 = vcombine.low %v8422_v61, %v8426_v40  ;;  %v12018_v16 = vcombine.low %v9362_v18, %v9366_v43  ;;  %v9276_v61 = vld [vmem:[#allocation10 + $0xc50] sm:$0xff]  ;;  %v8344_v43 = vld [vmem:[#allocation10 + $0x898] sm:$0xff] }
 0x6ce   :  { %9147 = vmatpush1.bf16.msra.mxu1 %v11844_v54  ;;  %v9374_v54 = vld [vmem:[#allocation10 + $0xf60] sm:$0xff] }
 0x6cf   :  { %10047 = vmatpush1.bf16.msra.mxu0 %v11970_v45  ;;  %9148 = vmatprep.subr.bf16.mxu1 %v11853_v23  ;;  %v11901_v45 = vcombine.high %v8430_v53, %v8434_v25  ;;  %v12027_v23 = vcombine.high %v9370_v13, %v9374_v54 }
 0x6d0   :  { %10048 = vmatprep.subr.bf16.mxu0 %v11979_v6  ;;  %v8438_v6 = vld [vmem:[#allocation10 + $0xb88] sm:$0xff] }
 0x6d2   :  { %9149 = vmatpush1.bf16.msra.mxu1 %v11852_v55  ;;  %v11900_v55 = vcombine.low %v8430_v53, %v8434_v25 }
 0x6d3   :  { %10049 = vmatpush1.bf16.msra.mxu0 %v11978_v36  ;;  %9150 = vmatprep.subr.bf16.mxu1 %v11861_v58  ;;  %v12026_v36 = vcombine.low %v9370_v13, %v9374_v54  ;;  %v11909_v58 = vcombine.high %v8438_v6, %v8442_v46 }
 0x6d4   :  { %10050 = vmatprep.subr.bf16.mxu0 %v11987_v42  ;;  %v12035_v42 = vcombine.high %v9378_v44, %v9382_v51 }
 0x6d6   :  { %9151 = vmatpush1.bf16.msra.mxu1 %v11860_v27  ;;  %v9386_v27 = vld [vmem:[#allocation10 + $0xfc0] sm:$0xff] }
 0x6d7   :  { %10051 = vmatpush1.bf16.msra.mxu0 %v11986_v28  ;;  %9152 = vmatprep.subr.bf16.mxu1 %v11869_v1  ;;  %v9390_v28 = vld [vmem:[#allocation10 + $0xfe0] sm:$0xff]  ;;  %v11908_v1 = vcombine.low %v8438_v6, %v8442_v46 }
 0x6d8   :  { %10052 = vmatprep.subr.bf16.mxu0 %v11995_v32  ;;  %v12034_v32 = vcombine.low %v9378_v44, %v9382_v51  ;;  %v12043_v63 = vcombine.high %v9386_v27, %v9390_v28  ;;  %v12042_v9 = vcombine.low %v9386_v27, %v9390_v28  ;;  %v8360_v51 = vld [vmem:[#allocation10 + $0x918] sm:$0xff]  ;;  %v9308_v27 = vld [vmem:[#allocation10 + $0xd50] sm:$0xff] }
 0x6d9   :  { %v11833_v12 = vcombine.high %v8360_v51, %v8364_v7  ;;  %v9312_v28 = vld [vmem:[#allocation10 + $0xd70] sm:$0xff] }
 0x6da   :  { %9153 = vmatpush1.bf16.msra.mxu1 %v11868_v14  ;;  %v6438_v14 = vsel %vm1894_vm9, %v13156_v26, %v16252_v4  ;;  %v9280_v4 = vld [vmem:[#allocation10 + $0xc70] sm:$0xff]  ;;  %v8368_v26 = vld [vmem:[#allocation10 + $0x958] sm:$0xff] }
 0x6db   :  { %10053 = vmatpush1.bf16.msra.mxu0 %v11994_v31  ;;  %9154 = vmatprep.subr.bf16.mxu1 %v11877_v30  ;;  %v6398_v31 = vsel %vm1894_vm9, %v16247_v15, %v13155_v19  ;;  %v9268_v30 = vld [vmem:[#allocation10 + $0xc10] sm:$0xff]  ;;  %v11934_v25 = vcombine.low %v9276_v61, %v9280_v4  ;;  %v8372_v19 = vld [vmem:[#allocation10 + $0x978] sm:$0xff] }
 0x6dc   :  { %10054 = vmatprep.subr.bf16.mxu0 %v12003_v34  ;;  %v9272_v34 = vld [vmem:[#allocation10 + $0xc30] sm:$0xff]  ;;  %v6449_v60 = vmax.f32 %v6398_v31, %v6438_v14 }
 0x6dd   :  { %v11926_v15 = vcombine.low %v9268_v30, %v9272_v34  ;;  %v9316_v14 = vld [vmem:[#allocation10 + $0xd90] sm:$0xff] }
 0x6de   :  { %9155 = vmatpush1.bf16.msra.mxu1 %v11876_v33  ;;  %v11927_v33 = vcombine.high %v9268_v30, %v9272_v34  ;;  %v16354_v40 = vpack.c.bf16 %v6449_v60, %v6449_v60  ;;  %v9320_v31 = vld [vmem:[#allocation10 + $0xdb0] sm:$0xff]  ;;  %v11840_v30 = vcombine.low %v8368_v26, %v8372_v19  ;;  %v11966_v34 = vcombine.low %v9308_v27, %v9312_v28  ;;  %v8384_v60 = vld [vmem:[#allocation10 + $0x9d8] sm:$0xff] }
 0x6df   :  { %10055 = vmatpush1.bf16.msra.mxu0 %v12002_v20  ;;  %9156 = vmatprep.subr.bf16.mxu1 %v11885_v3  ;;  %v8336_v20 = vld [vmem:[#allocation10 + $0x858] sm:$0xff] }
 0x6e0   :  { %10056 = vmatprep.subr.bf16.mxu0 %v12011_v5  ;;  %v8340_v3 = vld [vmem:[#allocation10 + $0x878] sm:$0xff]  ;;  %v11800_v5 = vcombine.low %v8328_v2, %v8332_v62 }
 0x6e1   :  { %v11809_v18 = vcombine.high %v8336_v20, %v8340_v3  ;;  %v11808_v53 = vcombine.low %v8336_v20, %v8340_v3  ;;  %v8376_v2 = vld [vmem:[#allocation10 + $0x998] sm:$0xff] }
 0x6e2   :  { %9157 = vmatpush1.bf16.msra.mxu1 %v11884_v50  ;;  %v8348_v50 = vld [vmem:[#allocation10 + $0x8b8] sm:$0xff] }
 0x6e3   :  { %10057 = vmatpush1.bf16.msra.mxu0 %v12010_v48  ;;  %9158 = vmatprep.subr.bf16.mxu1 %v11893_v37  ;;  %v11935_v48 = vcombine.high %v9276_v61, %v9280_v4  ;;  %v9284_v37 = vld [vmem:[#allocation10 + $0xc90] sm:$0xff]  ;;  %v11817_v13 = vcombine.high %v8344_v43, %v8348_v50  ;;  %v11816_v6 = vcombine.low %v8344_v43, %v8348_v50  ;;  %v8380_v62 = vld [vmem:[#allocation10 + $0x9b8] sm:$0xff] }
 0x6e4   :  { %10058 = vmatprep.subr.bf16.mxu0 %v12019_v41  ;;  %v9288_v41 = vld [vmem:[#allocation10 + $0xcb0] sm:$0xff]  ;;  %v11848_v43 = vcombine.low %v8376_v2, %v8380_v62 }
 0x6e5   :  { %v11943_v54 = vcombine.high %v9284_v37, %v9288_v41  ;;  %v11942_v46 = vcombine.low %v9284_v37, %v9288_v41  ;;  %v9328_v61 = vld [vmem:[#allocation10 + $0xdf0] sm:$0xff]  ;;  %v11974_v41 = vcombine.low %v9316_v14, %v9320_v31 }
 0x6e6   :  { %9159 = vmatpush1.bf16.msra.mxu1 %v11892_v35  ;;  %v8352_v35 = vld [vmem:[#allocation10 + $0x8d8] sm:$0xff] }
 0x6e7   :  { %10059 = vmatpush1.bf16.msra.mxu0 %v12018_v16  ;;  %9160 = vmatprep.subr.bf16.mxu1 %v11901_v45  ;;  %v8356_v16 = vld [vmem:[#allocation10 + $0x8f8] sm:$0xff]  ;;  %v9292_v45 = vld [vmem:[#allocation10 + $0xcd0] sm:$0xff] }
 0x6e8   :  { %10060 = vmatprep.subr.bf16.mxu0 %v12027_v23  ;;  %v9296_v23 = vld [vmem:[#allocation10 + $0xcf0] sm:$0xff]  ;;  %v11825_v44 = vcombine.high %v8352_v35, %v8356_v16 }
 0x6ea   :  { %9161 = vmatpush1.bf16.msra.mxu1 %v11900_v55  ;;  %v9300_v55 = vld [vmem:[#allocation10 + $0xd10] sm:$0xff] }
 0x6eb   :  { %10061 = vmatpush1.bf16.msra.mxu0 %v12026_v36  ;;  %9162 = vmatprep.subr.bf16.mxu1 %v11909_v58  ;;  %v9304_v36 = vld [vmem:[#allocation10 + $0xd30] sm:$0xff]  ;;  %v11824_v58 = vcombine.low %v8352_v35, %v8356_v16  ;;  %v8396_v35 = vld [vmem:[#allocation10 + $0xa38] sm:$0xff] }
 0x6ec   :  { %10062 = vmatprep.subr.bf16.mxu0 %v12035_v42  ;;  %v11950_v42 = vcombine.low %v9292_v45, %v9296_v23  ;;  %v11959_v22 = vcombine.high %v9300_v55, %v9304_v36  ;;  %v9336_v16 = vld [vmem:[#allocation10 + $0xe30] sm:$0xff] }
 0x6ee   :  { %9163 = vmatpush1.bf16.msra.mxu1 %v11908_v1  ;;  %v11832_v1 = vcombine.low %v8360_v51, %v8364_v7  ;;  %v9344_v51 = vld [vmem:[#allocation10 + $0xe70] sm:$0xff] }
 0x6ef   :  { %10063 = vmatpush1.bf16.msra.mxu0 %v12034_v32  ;;  %9164 = vmatprep.subr.bf16.mxu1 %v11917_v52  ;;  %v11958_v32 = vcombine.low %v9300_v55, %v9304_v36  ;;  %v11841_v52 = vcombine.high %v8368_v26, %v8372_v19  ;;  %v9352_v26 = vld [vmem:[#allocation10 + $0xeb0] sm:$0xff] }
 0x6f0   :  { %10064 = vmatprep.subr.bf16.mxu0 %v12043_v63  ;;  %v11967_v63 = vcombine.high %v9308_v27, %v9312_v28 }
 0x6f2   :  { %9165 = vmatpush1.bf16.msra.mxu1 %v11916_v47  ;;  %v11849_v47 = vcombine.high %v8376_v2, %v8380_v62  ;;  %v9360_v2 = vld [vmem:[#allocation10 + $0xef0] sm:$0xff] }
 0x6f3   :  { %10065 = vmatpush1.bf16.msra.mxu0 %v12042_v9  ;;  %9216 = vmatprep.subr.bf16.mxu1 %v11801_v0  ;;  %v11975_v0 = vcombine.high %v9316_v14, %v9320_v31 }
 0x6f4   :  { %10116 = vmatprep.subr.bf16.mxu0 %v11927_v33  ;;  %v8388_v33 = vld [vmem:[#allocation10 + $0x9f8] sm:$0xff] }
 0x6f5   :  { %9167 = vmatmul.mubr.bf16.vlgmr.msra.gmra.mrb[84].mxu1 %v16316_v11 }
 0x6f6   :  { %10067 = vmatmul.mubr.bf16.vlgmr.msra.gmra.mrb[132].mxu0 %v16354_v40  ;;  %9217 = vmatpush1.bf16.msra.mxu1 %v11800_v5  ;;  %v9324_v5 = vld [vmem:[#allocation10 + $0xdd0] sm:$0xff] }
 0x6f7   :  { %9248 = vmatprep.mubr.bf16.mxu1 %v16308_v57  ;;  %10117 = vmatpush1.bf16.msra.mxu0 %v11926_v15  ;;  %v11951_v57 = vcombine.high %v9292_v45, %v9296_v23  ;;  %v11856_v45 = vcombine.low %v8384_v60, %v8388_v33  ;;  %v11982_v23 = vcombine.low %v9324_v5, %v9328_v61 }
 0x6f8   :  { %10148 = vmatprep.mubr.bf16.mxu0 %v16336_v39  ;;  %9218 = vmatprep.subr.bf16.mxu1 %v11809_v18 }
 0x6f9   :  { %10118 = vmatprep.subr.bf16.mxu0 %v11935_v48 }
 0x6fa   :  { %9219 = vmatpush1.bf16.msra.mxu1 %v11808_v53  ;;  %v11857_v53 = vcombine.high %v8384_v60, %v8388_v33  ;;  %v9368_v60 = vld [vmem:[#allocation10 + $0xf30] sm:$0xff] }
 0x6fb   :  { %10119 = vmatpush1.bf16.msra.mxu0 %v11934_v25  ;;  %9220 = vmatprep.subr.bf16.mxu1 %v11817_v13  ;;  %v11983_v13 = vcombine.high %v9324_v5, %v9328_v61 }
 0x6fc   :  { %10120 = vmatprep.subr.bf16.mxu0 %v11943_v54  ;;  %v8392_v54 = vld [vmem:[#allocation10 + $0xa18] sm:$0xff] }
 0x6fd   :  { %v11864_v7 = vcombine.low %v8392_v54, %v8396_v35 }
 0x6fe   :  { %9221 = vmatpush1.bf16.msra.mxu1 %v11816_v6 }
 0x6ff   :  { %10121 = vmatpush1.bf16.msra.mxu0 %v11942_v46  ;;  %9222 = vmatprep.subr.bf16.mxu1 %v11825_v44  ;;  %v8400_v46 = vld [vmem:[#allocation10 + $0xa58] sm:$0xff] }
 0x700   :  { %10122 = vmatprep.subr.bf16.mxu0 %v11951_v57  ;;  %v8404_v44 = vld [vmem:[#allocation10 + $0xa78] sm:$0xff]  ;;  %v9340_v57 = vld [vmem:[#allocation10 + $0xe50] sm:$0xff] }
 0x701   :  { %v11873_v36 = vcombine.high %v8400_v46, %v8404_v44  ;;  %v11872_v19 = vcombine.low %v8400_v46, %v8404_v44  ;;  %v11998_v27 = vcombine.low %v9340_v57, %v9344_v51  ;;  %v8452_v46 = vld [vmem:[#allocation10 + $0xbf8] sm:$0xff]  ;;  %v9388_v44 = vld [vmem:[#allocation10 + $0xfd0] sm:$0xff] }
 0x702   :  { %9223 = vmatpush1.bf16.msra.mxu1 %v11824_v58  ;;  %v11999_v58 = vcombine.high %v9340_v57, %v9344_v51  ;;  %v9392_v57 = vld [vmem:[#allocation10 + $0xff0] sm:$0xff] }
 0x703   :  { %10123 = vmatpush1.bf16.msra.mxu0 %v11950_v42  ;;  %9224 = vmatprep.subr.bf16.mxu1 %v11833_v12  ;;  %v8408_v42 = vld [vmem:[#allocation10 + $0xa98] sm:$0xff] }
 0x704   :  { %10124 = vmatprep.subr.bf16.mxu0 %v11959_v22  ;;  %v8412_v12 = vld [vmem:[#allocation10 + $0xab8] sm:$0xff]  ;;  %v9348_v22 = vld [vmem:[#allocation10 + $0xe90] sm:$0xff] }
 0x705   :  { %v11881_v28 = vcombine.high %v8408_v42, %v8412_v12  ;;  %v11880_v62 = vcombine.low %v8408_v42, %v8412_v12  ;;  %v12006_v14 = vcombine.low %v9348_v22, %v9352_v26  ;;  %v9271_v42 = vld [vmem:[#allocation10 + $0xc28] sm:$0xff] }
 0x706   :  { %9225 = vmatpush1.bf16.msra.mxu1 %v11832_v1  ;;  %v12007_v1 = vcombine.high %v9348_v22, %v9352_v26  ;;  %v12046_v22 = vcombine.low %v9388_v44, %v9392_v57 }
 0x707   :  { %10125 = vmatpush1.bf16.msra.mxu0 %v11958_v32  ;;  %9226 = vmatprep.subr.bf16.mxu1 %v11841_v52  ;;  %v8416_v32 = vld [vmem:[#allocation10 + $0xad8] sm:$0xff] }
 0x708   :  { %v16360_v9 = vpop.f32.mrb[72].mxu1  ;;  %10126 = vmatprep.subr.bf16.mxu0 %v11967_v63  ;;  %v8420_v52 = vld [vmem:[#allocation10 + $0xaf8] sm:$0xff]  ;;  %v9356_v63 = vld [vmem:[#allocation10 + $0xed0] sm:$0xff] }
 0x709   :  { %v8276_v20 = vpop.f32.mrb[120].mxu0  ;;  %v16362_v3 = vpop.f32.mrb[73].mxu1  ;;  %v11889_v31 = vcombine.high %v8416_v32, %v8420_v52  ;;  %v11888_v33 = vcombine.low %v8416_v32, %v8420_v52  ;;  %v9283_v52 = vld [vmem:[#allocation10 + $0xc88] sm:$0xff] }
 0x70a   :  { %v16365_v4 = vadd.f32 %v8276_v20, %v16324_v29  ;;  %v8278_v15 = vpop.f32.mrb[121].mxu0  ;;  %v7517_v18 = vpop.f32.mrb[74].mxu1  ;;  %9227 = vmatpush1.bf16.msra.mxu1 %v11840_v30  ;;  %v9332_v29 = vld [vmem:[#allocation10 + $0xe10] sm:$0xff]  ;;  %v12015_v30 = vcombine.high %v9356_v63, %v9360_v2  ;;  %v12014_v20 = vcombine.low %v9356_v63, %v9360_v2  ;;  %v9287_v63 = vld [vmem:[#allocation10 + $0xca8] sm:$0xff] }
 0x70b   :  { %v16368_v50 = vadd.f32 %v8278_v15, %v16328_v24  ;;  %v8280_v48 = vpop.f32.mrb[122].mxu0  ;;  %10127 = vmatpush1.bf16.msra.mxu0 %v11966_v34  ;;  %v7518_v37 = vpop.f32.mrb[75].mxu1  ;;  %9228 = vmatprep.subr.bf16.mxu1 %v11849_v47  ;;  %v11865_v24 = vcombine.high %v8392_v54, %v8396_v35  ;;  %v11991_v6 = vcombine.high %v9332_v29, %v9336_v16  ;;  %v8424_v34 = vld [vmem:[#allocation10 + $0xb18] sm:$0xff]  ;;  %v9380_v35 = vld [vmem:[#allocation10 + $0xf90] sm:$0xff]  ;;  %v13878_v2 = vld [vmem:[#allocation13] sm:$0xff]  }
 0x70c   :  { %v8281_v25 = vpop.f32.mrb[123].mxu0  ;;  %10128 = vmatprep.subr.bf16.mxu0 %v11975_v0  ;;  %v11990_v55 = vcombine.low %v9332_v29, %v9336_v16  ;;  %v8428_v47 = vld [vmem:[#allocation10 + $0xb38] sm:$0xff]  ;;  %v9364_v0 = vld [vmem:[#allocation10 + $0xf10] sm:$0xff] }
 0x70d   :  { %v11897_v5 = vcombine.high %v8424_v34, %v8428_v47  ;;  %v12023_v61 = vcombine.high %v9364_v0, %v9368_v60  ;;  %v8432_v15 = vld [vmem:[#allocation10 + $0xb58] sm:$0xff]  ;;  %v9376_v48 = vld [vmem:[#allocation10 + $0xf70] sm:$0xff]  ;;  %v11896_v37 = vcombine.low %v8424_v34, %v8428_v47  ;;  %v9295_v34 = vld [vmem:[#allocation10 + $0xce8] sm:$0xff] }
 0x70e   :  { %9229 = vmatpush1.bf16.msra.mxu1 %v11848_v43  ;;  %v8436_v18 = vld [vmem:[#allocation10 + $0xb78] sm:$0xff]  ;;  %v9372_v43 = vld [vmem:[#allocation10 + $0xf50] sm:$0xff] }
 0x70f   :  { %10129 = vmatpush1.bf16.msra.mxu0 %v11974_v41  ;;  %9230 = vmatprep.subr.bf16.mxu1 %v11857_v53  ;;  %v12022_v41 = vcombine.low %v9364_v0, %v9368_v60  ;;  %v11905_v53 = vcombine.high %v8432_v15, %v8436_v18  ;;  %v12031_v25 = vcombine.high %v9372_v43, %v9376_v48  ;;  %v8444_v54 = vld [vmem:[#allocation10 + $0xbb8] sm:$0xff]  ;;  %v9384_v29 = vld [vmem:[#allocation10 + $0xfb0] sm:$0xff] }
 0x710   :  { %10130 = vmatprep.subr.bf16.mxu0 %v11983_v13  ;;  %v8440_v13 = vld [vmem:[#allocation10 + $0xb98] sm:$0xff]  ;;  %v11904_v16 = vcombine.low %v8432_v15, %v8436_v18  ;;  %v13880_v47 = vld [vmem:[#allocation13 + $0x8] sm:$0xff]   ;;  %v11940_v60 = vcombine.low %v9283_v52, %v9287_v63 }
 0x711   :  { %v11912_v51 = vcombine.low %v8440_v13, %v8444_v54  ;;  %v13881_v0 = vld [vmem:[#allocation13 + $0x50] sm:$0xff]  }
 0x712   :  { %9231 = vmatpush1.bf16.msra.mxu1 %v11856_v45  ;;  %v12030_v45 = vcombine.low %v9372_v43, %v9376_v48  ;;  %v9307_v43 = vld [vmem:[#allocation10 + $0xd48] sm:$0xff] }
 0x713   :  { %10131 = vmatpush1.bf16.msra.mxu0 %v11982_v23  ;;  %9232 = vmatprep.subr.bf16.mxu1 %v11865_v24  ;;  %v11913_v23 = vcombine.high %v8440_v13, %v8444_v54  ;;  %v12039_v24 = vcombine.high %v9380_v35, %v9384_v29  ;;  %v9311_v48 = vld [vmem:[#allocation10 + $0xd68] sm:$0xff] }
 0x714   :  { %10132 = vmatprep.subr.bf16.mxu0 %v11991_v6  ;;  %v8448_v6 = vld [vmem:[#allocation10 + $0xbd8] sm:$0xff]  ;;  %v9315_v13 = vld [vmem:[#allocation10 + $0xd88] sm:$0xff] }
 0x715   :  { %v11920_v12 = vcombine.low %v8448_v6, %v8452_v46  ;;  %v9319_v54 = vld [vmem:[#allocation10 + $0xda8] sm:$0xff] }
 0x716   :  { %9233 = vmatpush1.bf16.msra.mxu1 %v11864_v7  ;;  %v12038_v7 = vcombine.low %v9380_v35, %v9384_v29  ;;  %v13886_v35 = vld [vmem:[#allocation13 + $0x20] sm:$0xff]   ;;  %v13887_v29 = vld [vmem:[#allocation13 + $0x68] sm:$0xff]  }
 0x717   :  { %10133 = vmatpush1.bf16.msra.mxu0 %v11990_v55  ;;  %9234 = vmatprep.subr.bf16.mxu1 %v11873_v36  ;;  %v11921_v55 = vcombine.high %v8448_v6, %v8452_v46  ;;  %v12047_v36 = vcombine.high %v9388_v44, %v9392_v57  ;;  %v9327_v6 = vld [vmem:[#allocation10 + $0xde8] sm:$0xff]  ;;  %v13888_v46 = vld [vmem:[#allocation13 + $0x28] sm:$0xff]  }
 0x718   :  { %10134 = vmatprep.subr.bf16.mxu0 %v11999_v58  ;;  %v9267_v58 = vld [vmem:[#allocation10 + $0xc08] sm:$0xff] }
 0x719   :  { %v11925_v26 = vcombine.high %v9267_v58, %v9271_v42 }
 0x71a   :  { %9235 = vmatpush1.bf16.msra.mxu1 %v11872_v19  ;;  %v9275_v19 = vld [vmem:[#allocation10 + $0xc48] sm:$0xff] }
 0x71b   :  { %10135 = vmatpush1.bf16.msra.mxu0 %v11998_v27  ;;  %9236 = vmatprep.subr.bf16.mxu1 %v11881_v28  ;;  %v9279_v27 = vld [vmem:[#allocation10 + $0xc68] sm:$0xff]  ;;  %v11924_v28 = vcombine.low %v9267_v58, %v9271_v42  ;;  %v11972_v42 = vcombine.low %v9315_v13, %v9319_v54 }
 0x71c   :  { %10136 = vmatprep.subr.bf16.mxu0 %v12007_v1  ;;  %v13877_v1 = vld [vmem:[#allocation13 + $0x40] sm:$0xff]   ;;  %v11933_v32 = vcombine.high %v9275_v19, %v9279_v27 }
 0x71e   :  { %9237 = vmatpush1.bf16.msra.mxu1 %v11880_v62  ;;  %v13879_v62 = vld [vmem:[#allocation13 + $0x48] sm:$0xff]  }
 0x71f   :  { %10137 = vmatpush1.bf16.msra.mxu0 %v12006_v14  ;;  %9238 = vmatprep.subr.bf16.mxu1 %v11889_v31  ;;  %v11932_v14 = vcombine.low %v9275_v19, %v9279_v27  ;;  %v11941_v31 = vcombine.high %v9283_v52, %v9287_v63  ;;  %v13889_v19 = vld [vmem:[#allocation13 + $0x70] sm:$0xff]   ;;  %v13891_v52 = vld [vmem:[#allocation13 + $0x78] sm:$0xff]   ;;  %v9339_v63 = vld [vmem:[#allocation10 + $0xe48] sm:$0xff] }
 0x720   :  { %10138 = vmatprep.subr.bf16.mxu0 %v12015_v30  ;;  %v9291_v30 = vld [vmem:[#allocation10 + $0xcc8] sm:$0xff] }
 0x721   :  { %v11948_v15 = vcombine.low %v9291_v30, %v9295_v34 }
 0x722   :  { %9239 = vmatpush1.bf16.msra.mxu1 %v11888_v33  ;;  %v11949_v33 = vcombine.high %v9291_v30, %v9295_v34  ;;  %v9351_v30 = vld [vmem:[#allocation10 + $0xea8] sm:$0xff] }
 0x723   :  { %10139 = vmatpush1.bf16.msra.mxu0 %v12014_v20  ;;  %9240 = vmatprep.subr.bf16.mxu1 %v11897_v5  ;;  %v9303_v20 = vld [vmem:[#allocation10 + $0xd28] sm:$0xff]  ;;  %v13882_v5 = vld [vmem:[#allocation13 + $0x10] sm:$0xff]  }
 0x724   :  { %10140 = vmatprep.subr.bf16.mxu0 %v12023_v61  ;;  %v13883_v61 = vld [vmem:[#allocation13 + $0x58] sm:$0xff]  }
 0x726   :  { %9241 = vmatpush1.bf16.msra.mxu1 %v11896_v37  ;;  %v13884_v37 = vld [vmem:[#allocation13 + $0x18] sm:$0xff]  }
 0x727   :  { %10141 = vmatpush1.bf16.msra.mxu0 %v12022_v41  ;;  %9242 = vmatprep.subr.bf16.mxu1 %v11905_v53  ;;  %v13885_v41 = vld [vmem:[#allocation13 + $0x60] sm:$0xff]  }
 0x728   :  { %10142 = vmatprep.subr.bf16.mxu0 %v12031_v25  ;;  %v11965_v25 = vcombine.high %v9307_v43, %v9311_v48 }
 0x72a   :  { %9243 = vmatpush1.bf16.msra.mxu1 %v11904_v16  ;;  %v11964_v16 = vcombine.low %v9307_v43, %v9311_v48  ;;  %v9375_v43 = vld [vmem:[#allocation10 + $0xf68] sm:$0xff] }
 0x72b   :  { %10143 = vmatpush1.bf16.msra.mxu0 %v12030_v45  ;;  %9244 = vmatprep.subr.bf16.mxu1 %v11913_v23  ;;  %v11973_v45 = vcombine.high %v9315_v13, %v9319_v54  ;;  %v9387_v54 = vld [vmem:[#allocation10 + $0xfc8] sm:$0xff] }
 0x72c   :  { %10144 = vmatprep.subr.bf16.mxu0 %v12039_v24  ;;  %v9323_v24 = vld [vmem:[#allocation10 + $0xdc8] sm:$0xff] }
 0x72e   :  { %9245 = vmatpush1.bf16.msra.mxu1 %v11912_v51 }
 0x72f   :  { %10145 = vmatpush1.bf16.msra.mxu0 %v12038_v7  ;;  %9246 = vmatprep.subr.bf16.mxu1 %v11921_v55 }
 0x730   :  { %10146 = vmatprep.subr.bf16.mxu0 %v12047_v36 }
 0x732   :  { %9247 = vmatpush1.bf16.msra.mxu1 %v11920_v12 }
 0x733   :  { %10147 = vmatpush1.bf16.msra.mxu0 %v12046_v22  ;;  %10075 = vmatprep.subr.bf16.mxu1 %v11925_v26 }
 0x734   :  { %12115 = vmatprep.subr.bf16.mxu0 %v13877_v1  ;;  %v9335_v1 = vld [vmem:[#allocation10 + $0xe28] sm:$0xff] }
 0x735   :  { %9249 = vmatmul.mubr.bf16.vlgmr.msra.gmra.mrb[88].mxu1 %v16316_v11  ;;  %v9299_v11 = vld [vmem:[#allocation10 + $0xd08] sm:$0xff] }
 0x736   :  { %10149 = vmatmul.mubr.bf16.vlgmr.msra.gmra.mrb[136].mxu0 %v16354_v40  ;;  %10076 = vmatpush1.bf16.msra.mxu1 %v11924_v28  ;;  %v11957_v18 = vcombine.high %v9299_v11, %v9303_v20  ;;  %v11956_v53 = vcombine.low %v9299_v11, %v9303_v20  ;;  %v9331_v28 = vld [vmem:[#allocation10 + $0xe08] sm:$0xff] }
 0x737   :  { %10107 = vmatprep.mubr.bf16.mxu1 %v16336_v39  ;;  %10077 = vmatprep.subr.bf16.mxu1 %v11933_v32  ;;  %v11989_v32 = vcombine.high %v9331_v28, %v9335_v1  ;;  %v9363_v20 = vld [vmem:[#allocation10 + $0xf08] sm:$0xff] }
 0x738   :  { %12116 = vmatpush3.bf16.msra.mxu0 %v13878_v2  ;;  %v9343_v2 = vld [vmem:[#allocation10 + $0xe68] sm:$0xff] }
 0x739   :  { %12117 = vmatprep.subr.bf16.mxu0 %v13879_v62  ;;  %v11988_v62 = vcombine.low %v9331_v28, %v9335_v1  ;;  %v11996_v34 = vcombine.low %v9339_v63, %v9343_v2  ;;  %v9301_v1 = vld [vmem:[#allocation10 + $0xd18] sm:$0xff] }
 0x73a   :  { %10078 = vmatpush1.bf16.msra.mxu1 %v11932_v14  ;;  %v11997_v14 = vcombine.high %v9339_v63, %v9343_v2  ;;  %v9313_v63 = vld [vmem:[#allocation10 + $0xd78] sm:$0xff] }
 0x73b   :  { %10079 = vmatprep.subr.bf16.mxu1 %v11941_v31  ;;  %v9347_v31 = vld [vmem:[#allocation10 + $0xe88] sm:$0xff] }
 0x73c   :  { %12118 = vmatpush3.bf16.msra.mxu0 %v13880_v47  ;;  %v12005_v47 = vcombine.high %v9347_v31, %v9351_v30 }
 0x73d   :  { %12119 = vmatprep.subr.bf16.mxu0 %v13881_v0  ;;  %v9355_v0 = vld [vmem:[#allocation10 + $0xec8] sm:$0xff] }
 0x73e   :  { %10080 = vmatpush1.bf16.msra.mxu1 %v11940_v60  ;;  %v9359_v60 = vld [vmem:[#allocation10 + $0xee8] sm:$0xff] }
 0x73f   :  { %10081 = vmatprep.subr.bf16.mxu1 %v11949_v33  ;;  %v12004_v33 = vcombine.low %v9347_v31, %v9351_v30  ;;  %v12013_v11 = vcombine.high %v9355_v0, %v9359_v60 }
 0x740   :  { %12120 = vmatpush3.bf16.msra.mxu0 %v13882_v5  ;;  %v9367_v5 = vld [vmem:[#allocation10 + $0xf28] sm:$0xff] }
 0x741   :  { %12121 = vmatprep.subr.bf16.mxu0 %v13883_v61  ;;  %v12012_v61 = vcombine.low %v9355_v0, %v9359_v60  ;;  %v12020_v48 = vcombine.low %v9363_v20, %v9367_v5 }
 0x742   :  { %10082 = vmatpush1.bf16.msra.mxu1 %v11948_v15  ;;  %v12021_v15 = vcombine.high %v9363_v20, %v9367_v5 }
 0x743   :  { %10083 = vmatprep.subr.bf16.mxu1 %v11957_v18  ;;  %v9371_v18 = vld [vmem:[#allocation10 + $0xf48] sm:$0xff] }
 0x744   :  { %12122 = vmatpush3.bf16.msra.mxu0 %v13884_v37  ;;  %v12029_v37 = vcombine.high %v9371_v18, %v9375_v43 }
 0x745   :  { %12123 = vmatprep.subr.bf16.mxu0 %v13885_v41  ;;  %v9379_v41 = vld [vmem:[#allocation10 + $0xf88] sm:$0xff] }
 0x746   :  { %10084 = vmatpush1.bf16.msra.mxu1 %v11956_v53  ;;  %v9383_v53 = vld [vmem:[#allocation10 + $0xfa8] sm:$0xff] }
 0x747   :  { %10085 = vmatprep.subr.bf16.mxu1 %v11965_v25  ;;  %v12028_v25 = vcombine.low %v9371_v18, %v9375_v43  ;;  %v12037_v13 = vcombine.high %v9379_v41, %v9383_v53 }
 0x748   :  { %v8235_v23 = vpop.f32.mrb[76].mxu1  ;;  %12124 = vmatpush3.bf16.msra.mxu0 %v13886_v35  ;;  %v9391_v35 = vld [vmem:[#allocation10 + $0xfe8] sm:$0xff] }
 0x749   :  { %v16374_v44 = vadd.f32 %v8235_v23, %v16340_v21  ;;  %v9127_v57 = vpop.f32.mrb[124].mxu0  ;;  %v8237_v51 = vpop.f32.mrb[77].mxu1  ;;  %12125 = vmatprep.subr.bf16.mxu0 %v13887_v29  ;;  %v11981_v21 = vcombine.high %v9323_v24, %v9327_v6  ;;  %v12036_v29 = vcombine.low %v9379_v41, %v9383_v53  ;;  %v9273_v23 = vld [vmem:[#allocation10 + $0xc38] sm:$0xff] }
 0x74a   :  { %v16377_v7 = vadd.f32 %v9127_v57, %v16343_v56  ;;  %v16380_v55 = vadd.f32 %v8237_v51, %v16345_v10  ;;  %v9129_v36 = vpop.f32.mrb[125].mxu0  ;;  %v8239_v58 = vpop.f32.mrb[78].mxu1  ;;  %10086 = vmatpush1.bf16.msra.mxu1 %v11964_v16  ;;  %v13890_v56 = vld [vmem:[#allocation13 + $0x30] sm:$0xff]   ;;  %v11980_v10 = vcombine.low %v9323_v24, %v9327_v6  ;;  %v12045_v16 = vcombine.high %v9387_v54, %v9391_v35 }
 0x74b   :  { %v16383_v12 = vadd.f32 %v9129_v36, %v16348_v17  ;;  %v9131_v22 = vpop.f32.mrb[126].mxu0  ;;  %v8240_v26 = vpop.f32.mrb[79].mxu1  ;;  %10087 = vmatprep.subr.bf16.mxu1 %v11973_v45  ;;  %v13892_v17 = vld [vmem:[#allocation13 + $0x38] sm:$0xff]   ;;  %v9269_v45 = vld [vmem:[#allocation10 + $0xc18] sm:$0xff]  ;;  %v12044_v24 = vcombine.low %v9387_v54, %v9391_v35 }
 0x74c   :  { %v9132_v27 = vpop.f32.mrb[127].mxu0  ;;  %12126 = vmatpush3.bf16.msra.mxu0 %v13888_v46  ;;  %v11929_v6 = vcombine.high %v9269_v45, %v9273_v23  ;;  %v9277_v46 = vld [vmem:[#allocation10 + $0xc58] sm:$0xff]  ;;  %v11928_v51 = vcombine.low %v9269_v45, %v9273_v23 }
 0x74d   :  { %12127 = vmatprep.subr.bf16.mxu0 %v13889_v19  ;;  %v9281_v57 = vld [vmem:[#allocation10 + $0xc78] sm:$0xff] }
 0x74e   :  { %10088 = vmatpush1.bf16.msra.mxu1 %v11972_v42  ;;  %v11937_v36 = vcombine.high %v9277_v46, %v9281_v57  ;;  %v9285_v58 = vld [vmem:[#allocation10 + $0xc98] sm:$0xff]  ;;  %v11936_v22 = vcombine.low %v9277_v46, %v9281_v57 }
 0x74f   :  { %10089 = vmatprep.subr.bf16.mxu1 %v11981_v21  ;;  %v9289_v42 = vld [vmem:[#allocation10 + $0xcb8] sm:$0xff] }
 0x750   :  { %12128 = vmatpush3.bf16.msra.mxu0 %v13890_v56  ;;  %v11945_v26 = vcombine.high %v9285_v58, %v9289_v42  ;;  %v9293_v21 = vld [vmem:[#allocation10 + $0xcd8] sm:$0xff]  ;;  %v11944_v27 = vcombine.low %v9285_v58, %v9289_v42 }
 0x751   :  { %12129 = vmatprep.subr.bf16.mxu0 %v13891_v52  ;;  %v9297_v19 = vld [vmem:[#allocation10 + $0xcf8] sm:$0xff] }
 0x752   :  { %10090 = vmatpush1.bf16.msra.mxu1 %v11980_v10  ;;  %v11953_v28 = vcombine.high %v9293_v21, %v9297_v19  ;;  %v9305_v56 = vld [vmem:[#allocation10 + $0xd38] sm:$0xff]  ;;  %v11952_v10 = vcombine.low %v9293_v21, %v9297_v19 }
 0x753   :  { %10091 = vmatprep.subr.bf16.mxu1 %v11989_v32  ;;  %v11961_v32 = vcombine.high %v9301_v1, %v9305_v56  ;;  %v9309_v52 = vld [vmem:[#allocation10 + $0xd58] sm:$0xff]  ;;  %v11960_v2 = vcombine.low %v9301_v1, %v9305_v56 }
 0x754   :  { %12130 = vmatpush3.bf16.msra.mxu0 %v13892_v17  ;;  %v9317_v17 = vld [vmem:[#allocation10 + $0xd98] sm:$0xff] }
 0x755   :  { %v9333_v41 = vld [vmem:[#allocation10 + $0xe18] sm:$0xff] }
 0x756   :  { %10092 = vmatpush1.bf16.msra.mxu1 %v11988_v62  ;;  %v9321_v62 = vld [vmem:[#allocation10 + $0xdb8] sm:$0xff] }
 0x757   :  { %10093 = vmatprep.subr.bf16.mxu1 %v11997_v14  ;;  %v11968_v14 = vcombine.low %v9309_v52, %v9313_v63  ;;  %v11977_v31 = vcombine.high %v9317_v17, %v9321_v62  ;;  %v9337_v53 = vld [vmem:[#allocation10 + $0xe38] sm:$0xff] }
 0x758   :  { %v11992_v54 = vcombine.low %v9333_v41, %v9337_v53 }
 0x75a   :  { %10094 = vmatpush1.bf16.msra.mxu1 %v11996_v34  ;;  %v9325_v34 = vld [vmem:[#allocation10 + $0xdd8] sm:$0xff] }
 0x75b   :  { %10095 = vmatprep.subr.bf16.mxu1 %v12005_v47  ;;  %v9329_v47 = vld [vmem:[#allocation10 + $0xdf8] sm:$0xff] }
 0x75e   :  { %10096 = vmatpush1.bf16.msra.mxu1 %v12004_v33 }
 0x75f   :  { %10097 = vmatprep.subr.bf16.mxu1 %v12013_v11 }
 0x762   :  { %10098 = vmatpush1.bf16.msra.mxu1 %v12012_v61 }
 0x763   :  { %10099 = vmatprep.subr.bf16.mxu1 %v12021_v15  ;;  %v11976_v15 = vcombine.low %v9317_v17, %v9321_v62  ;;  %v13894_v17 = vld [vmem:[#allocation13 + $0x100] sm:$0xff]   ;;  %v13895_v62 = vld [vmem:[#allocation13 + $0x148] sm:$0xff]  }
 0x766   :  { %10100 = vmatpush1.bf16.msra.mxu1 %v12020_v48 }
 0x767   :  { %10101 = vmatprep.subr.bf16.mxu1 %v12029_v37 }
 0x76a   :  { %10102 = vmatpush1.bf16.msra.mxu1 %v12028_v25  ;;  %v11993_v25 = vcombine.high %v9333_v41, %v9337_v53 }
 0x76b   :  { %10103 = vmatprep.subr.bf16.mxu1 %v12037_v13  ;;  %v9345_v13 = vld [vmem:[#allocation10 + $0xe78] sm:$0xff] }
 0x76e   :  { %10104 = vmatpush1.bf16.msra.mxu1 %v12036_v29  ;;  %v9349_v29 = vld [vmem:[#allocation10 + $0xe98] sm:$0xff] }
 0x76f   :  { %10105 = vmatprep.subr.bf16.mxu1 %v12045_v16  ;;  %v13909_v16 = vld [vmem:[#allocation13 + $0xc0] sm:$0xff]  }
 0x770   :  { %12137 = vmatprep.subr.bf16.mxu0 %v13909_v16 }
 0x772   :  { %10106 = vmatpush1.bf16.msra.mxu1 %v12044_v24  ;;  %v9357_v24 = vld [vmem:[#allocation10 + $0xed8] sm:$0xff] }
 0x773   :  { %10157 = vmatprep.subr.bf16.mxu1 %v11929_v6  ;;  %v9361_v6 = vld [vmem:[#allocation10 + $0xef8] sm:$0xff] }
 0x774   :  { %v12017_v57 = vcombine.high %v9357_v24, %v9361_v6  ;;  %v12016_v58 = vcombine.low %v9357_v24, %v9361_v6  ;;  %v13910_v24 = vld [vmem:[#allocation13 + $0x80] sm:$0xff]  }
 0x775   :  { %10108 = vmatmul.mubr.bf16.vlgmr.msra.gmra.mrb[92].mxu1 %v16354_v40 }
 0x776   :  { %10158 = vmatpush1.bf16.msra.mxu1 %v11928_v51  ;;  %10189 = vmatprep.mubr.bf16.mxu1 %v16336_v39  ;;  %v11969_v39 = vcombine.high %v9309_v52, %v9313_v63  ;;  %v9365_v51 = vld [vmem:[#allocation10 + $0xf18] sm:$0xff] }
 0x777   :  { %10159 = vmatprep.subr.bf16.mxu1 %v11937_v36  ;;  %v9369_v36 = vld [vmem:[#allocation10 + $0xf38] sm:$0xff] }
 0x778   :  { %v12025_v42 = vcombine.high %v9365_v51, %v9369_v36  ;;  %v12024_v21 = vcombine.low %v9365_v51, %v9369_v36  ;;  %v13914_v51 = vld [vmem:[#allocation13 + $0x90] sm:$0xff]   ;;  %v13915_v36 = vld [vmem:[#allocation13 + $0xd8] sm:$0xff]  }
 0x77a   :  { %10160 = vmatpush1.bf16.msra.mxu1 %v11936_v22  ;;  %v9373_v22 = vld [vmem:[#allocation10 + $0xf58] sm:$0xff] }
 0x77b   :  { %10161 = vmatprep.subr.bf16.mxu1 %v11945_v26  ;;  %v9377_v26 = vld [vmem:[#allocation10 + $0xf78] sm:$0xff] }
 0x77c   :  { %v12033_v19 = vcombine.high %v9373_v22, %v9377_v26  ;;  %v12032_v1 = vcombine.low %v9373_v22, %v9377_v26  ;;  %v13918_v22 = vld [vmem:[#allocation13 + $0xa0] sm:$0xff]   ;;  %v13919_v26 = vld [vmem:[#allocation13 + $0xe8] sm:$0xff]  }
 0x77e   :  { %10162 = vmatpush1.bf16.msra.mxu1 %v11944_v27  ;;  %v9381_v27 = vld [vmem:[#allocation10 + $0xf98] sm:$0xff] }
 0x77f   :  { %10163 = vmatprep.subr.bf16.mxu1 %v11953_v28  ;;  %v9385_v28 = vld [vmem:[#allocation10 + $0xfb8] sm:$0xff] }
 0x780   :  { %v12041_v56 = vcombine.high %v9381_v27, %v9385_v28  ;;  %v12040_v52 = vcombine.low %v9381_v27, %v9385_v28  ;;  %v13922_v27 = vld [vmem:[#allocation13 + $0xb0] sm:$0xff]   ;;  %v13923_v28 = vld [vmem:[#allocation13 + $0xf8] sm:$0xff]  }
 0x782   :  { %10164 = vmatpush1.bf16.msra.mxu1 %v11952_v10  ;;  %v9389_v10 = vld [vmem:[#allocation10 + $0xfd8] sm:$0xff] }
 0x783   :  { %10165 = vmatprep.subr.bf16.mxu1 %v11961_v32  ;;  %v9393_v32 = vld [vmem:[#allocation10 + $0xff8] sm:$0xff] }
 0x784   :  { %v12049_v63 = vcombine.high %v9389_v10, %v9393_v32 }
 0x786   :  { %10166 = vmatpush1.bf16.msra.mxu1 %v11960_v2  ;;  %v12048_v2 = vcombine.low %v9389_v10, %v9393_v32  ;;  %v16565_v32 = vld [vmem:[#allocation23_spill] sm:$0xff] }
 0x787   :  { %10167 = vmatprep.subr.bf16.mxu1 %v11969_v39  ;;  %v13893_v39 = vld [vmem:[#allocation13 + $0x140] sm:$0xff]  }
 0x788   :  { %v8317_v30 = vpop.f32.mrb[80].mxu1 }
 0x789   :  { %v16388_v0 = vadd.f32 %v8317_v30, %v16360_v9  ;;  %v9209_v60 = vpop.f32.mrb[128].mxu0  ;;  %v8319_v33 = vpop.f32.mrb[81].mxu1  ;;  %v11985_v9 = vcombine.high %v9325_v34, %v9329_v47  ;;  %v13898_v30 = vld [vmem:[#allocation13 + $0x110] sm:$0xff]  }
 0x78a   :  { %v16391_v11 = vadd.f32 %v9209_v60, %v16365_v4  ;;  %v16394_v20 = vadd.f32 %v8319_v33, %v16362_v3  ;;  %v9211_v5 = vpop.f32.mrb[129].mxu0  ;;  %v8321_v61 = vpop.f32.mrb[82].mxu1  ;;  %10168 = vmatpush1.bf16.msra.mxu1 %v11968_v14  ;;  %v11984_v4 = vcombine.low %v9325_v34, %v9329_v47  ;;  %v9341_v3 = vld [vmem:[#allocation10 + $0xe58] sm:$0xff]  ;;  %v13896_v14 = vld [vmem:[#allocation13 + $0x108] sm:$0xff]   ;;  %v13899_v34 = vld [vmem:[#allocation13 + $0x158] sm:$0xff]  }
 0x78b   :  { %v16397_v18 = vadd.f32 %v9211_v5, %v16368_v50  ;;  %v9213_v43 = vpop.f32.mrb[130].mxu0  ;;  %v8322_v48 = vpop.f32.mrb[83].mxu1  ;;  %10169 = vmatprep.subr.bf16.mxu1 %v11977_v31  ;;  %v12001_v35 = vcombine.high %v9341_v3, %v9345_v13  ;;  %v9353_v50 = vld [vmem:[#allocation10 + $0xeb8] sm:$0xff]  ;;  %v12000_v45 = vcombine.low %v9341_v3, %v9345_v13  ;;  %v13900_v47 = vld [vmem:[#allocation13 + $0x118] sm:$0xff]   ;;  %v13901_v60 = vld [vmem:[#allocation13 + $0x160] sm:$0xff]  }
 0x78c   :  { %v9214_v37 = vpop.f32.mrb[131].mxu0  ;;  %v12009_v23 = vcombine.high %v9349_v29, %v9353_v50  ;;  %v12008_v46 = vcombine.low %v9349_v29, %v9353_v50  ;;  %v13897_v31 = vld [vmem:[#allocation13 + $0x150] sm:$0xff]   ;;  %v13902_v33 = vld [vmem:[#allocation13 + $0x120] sm:$0xff]   ;;  %v13903_v5 = vld [vmem:[#allocation13 + $0x168] sm:$0xff]  }
 0x78d   :  { %v16400_v61 = vld [vmem:[#allocation11] sm:$0xff] }
 0x78e   :  { %10170 = vmatpush1.bf16.msra.mxu1 %v11976_v15  ;;  %v13905_v15 = vld [vmem:[#allocation13 + $0x170] sm:$0xff]   ;;  %v10211_v48 = vrot.slane %v16400_v61, %v16561_v59  ;;  %v10215_v53 = vrot.slane %v16400_v61, %v16563_v49  ;;  %v13908_v49 = vld [vmem:[#allocation13 + $0x138] sm:$0xff]  }
 0x78f   :  { %10171 = vmatprep.subr.bf16.mxu1 %v11985_v9 }
 0x792   :  { %10172 = vmatpush1.bf16.msra.mxu1 %v11984_v4 }
 0x793   :  { %10173 = vmatprep.subr.bf16.mxu1 %v11993_v25 }
 0x796   :  { %10174 = vmatpush1.bf16.msra.mxu1 %v11992_v54  ;;  %v13906_v54 = vld [vmem:[#allocation13 + $0x130] sm:$0xff]  }
 0x797   :  { %10175 = vmatprep.subr.bf16.mxu1 %v12001_v35 }
 0x79a   :  { %10176 = vmatpush1.bf16.msra.mxu1 %v12000_v45 }
 0x79b   :  { %10177 = vmatprep.subr.bf16.mxu1 %v12009_v23 }
 0x79e   :  { %10178 = vmatpush1.bf16.msra.mxu1 %v12008_v46  ;;  %v13911_v46 = vld [vmem:[#allocation13 + $0xc8] sm:$0xff]  }
 0x79f   :  { %10179 = vmatprep.subr.bf16.mxu1 %v12017_v57  ;;  %v13913_v57 = vld [vmem:[#allocation13 + $0xd0] sm:$0xff]  }
 0x7a2   :  { %10180 = vmatpush1.bf16.msra.mxu1 %v12016_v58  ;;  %v13916_v58 = vld [vmem:[#allocation13 + $0x98] sm:$0xff]  }
 0x7a3   :  { %10181 = vmatprep.subr.bf16.mxu1 %v12025_v42  ;;  %v13917_v42 = vld [vmem:[#allocation13 + $0xe0] sm:$0xff]  }
 0x7a6   :  { %10182 = vmatpush1.bf16.msra.mxu1 %v12024_v21  ;;  %v13920_v21 = vld [vmem:[#allocation13 + $0xa8] sm:$0xff]  }
 0x7a7   :  { %10183 = vmatprep.subr.bf16.mxu1 %v12033_v19  ;;  %v13921_v19 = vld [vmem:[#allocation13 + $0xf0] sm:$0xff]  }
 0x7aa   :  { %10184 = vmatpush1.bf16.msra.mxu1 %v12032_v1  ;;  %v13924_v1 = vld [vmem:[#allocation13 + $0xb8] sm:$0xff]  }
 0x7ab   :  { %10185 = vmatprep.subr.bf16.mxu1 %v12041_v56  ;;  %v13925_v56 = vld [vmem:[#allocation13 + $0x1c0] sm:$0xff]  }
 0x7ae   :  { %10186 = vmatpush1.bf16.msra.mxu1 %v12040_v52  ;;  %v16566_v52 = vsub.s32 4, %v16565_v32 }
 0x7af   :  { %10187 = vmatprep.subr.bf16.mxu1 %v12049_v63 }
 0x7b0   :  { %v10227_v63 = vrot.slane %v16400_v61, %v16566_v52 }
 0x7b2   :  { %10188 = vmatpush1.bf16.msra.mxu1 %v12048_v2 }
 0x7b3   :  { %12159 = vmatprep.subr.bf16.mxu1 %v13893_v39 }
 0x7b5   :  { %10190 = vmatmul.mubr.bf16.vlgmr.msra.gmra.mrb[96].mxu1 %v16354_v40  ;;  %v13904_v40 = vld [vmem:[#allocation13 + $0x128] sm:$0xff]  }
 0x7b6   :  { %12160 = vmatpush3.bf16.msra.mxu1 %v13894_v17 }
 0x7b7   :  { %12161 = vmatprep.subr.bf16.mxu1 %v13895_v62  ;;  %v16567_v62 = vsub.s32 5, %v16565_v32 }
 0x7ba   :  { %12162 = vmatpush3.bf16.msra.mxu1 %v13896_v14  ;;  %v10231_v14 = vrot.slane %v16400_v61, %v16567_v62 }
 0x7bb   :  { %12163 = vmatprep.subr.bf16.mxu1 %v13897_v31 }
 0x7be   :  { %12164 = vmatpush3.bf16.msra.mxu1 %v13898_v30 }
 0x7bf   :  { %12165 = vmatprep.subr.bf16.mxu1 %v13899_v34 }
 0x7c2   :  { %12166 = vmatpush3.bf16.msra.mxu1 %v13900_v47 }
 0x7c3   :  { %12167 = vmatprep.subr.bf16.mxu1 %v13901_v60 }
 0x7c6   :  { %12168 = vmatpush3.bf16.msra.mxu1 %v13902_v33 }
 0x7c7   :  { %12169 = vmatprep.subr.bf16.mxu1 %v13903_v5 }
 0x7c8   :  { %v9168_v43 = vpop.f32.mrb[84].mxu1 }
 0x7c9   :  { %v16405_v9 = vadd.f32 %v9168_v43, %v16374_v44  ;;  %v10068_v37 = vpop.f32.mrb[132].mxu0  ;;  %v9170_v41 = vpop.f32.mrb[85].mxu1  ;;  %v13907_v44 = vld [vmem:[#allocation13 + $0x178] sm:$0xff]  }
 0x7ca   :  { %v10198_v4 = vadd.f32 %v10068_v37, %v16377_v7  ;;  %v16411_v25 = vadd.f32 %v9170_v41, %v16380_v55  ;;  %v10070_v3 = vpop.f32.mrb[133].mxu0  ;;  %v9172_v13 = vpop.f32.mrb[86].mxu1  ;;  %12170 = vmatpush3.bf16.msra.mxu1 %v13904_v40 }
 0x7cb   :  { %v10199_v35 = vadd.f32 %v10070_v3, %v16383_v12  ;;  %v10072_v59 = vpop.f32.mrb[134].mxu0  ;;  %v9173_v29 = vpop.f32.mrb[87].mxu1  ;;  %12171 = vmatprep.subr.bf16.mxu1 %v13905_v15  ;;  %v13912_v12 = vld [vmem:[#allocation13 + $0x88] sm:$0xff]  }
 0x7cc   :  { %v10248_v50 = vadd.f32 %v10211_v48, %v10198_v4  ;;  %v10073_v16 = vpop.f32.mrb[135].mxu0 }
 0x7cd   :  { %v10249_v45 = vadd.f32 %v10215_v53, %v10199_v35  ;;  %v10223_v53 = vrot.slane %v16400_v61, %v16564_v8  ;;  %v13926_v16 = vld [vmem:[#allocation13 + $0x180] sm:$0xff]   ;;  %v13929_v8 = vld [vmem:[#allocation13 + $0x1d0] sm:$0xff]  }
 0x7ce   :  { %v10256_v23 = vmax.f32 %v10248_v50, 0.0  ;;  %12172 = vmatpush3.bf16.msra.mxu1 %v13906_v54 }
 0x7cf   :  { %v10257_v7 = vmax.f32 %v10249_v45, 0.0  ;;  %12173 = vmatprep.subr.bf16.mxu1 %v13907_v44 }
 0x7d0   :  { %v10264_v6 = vpack.c.bf16 %v10256_v23, %v10256_v23  ;;  %v13927_v23 = vld [vmem:[#allocation13 + $0x1c8] sm:$0xff]  }
 0x7d1   :  { %v10265_v55 = vpack.c.bf16 %v10257_v7, %v10257_v7  ;;  %v13933_v7 = vld [vmem:[#allocation13 + $0x1e0] sm:$0xff]  }
 0x7d2   :  { %12174 = vmatpush3.bf16.msra.mxu1 %v13908_v49  ;;  %v13932_v49 = vld [vmem:[#allocation13 + $0x198] sm:$0xff]  }
 0x7d3   :  { %10823 = vmatprep.mubr.bf16.mxu0 %v10265_v55  ;;  %v13934_v55 = vld [vmem:[#allocation13 + $0x1a0] sm:$0xff]  }
 0x7d4   :  { %10824 = vmatmul.mubr.bf16.vlgmr.msra.gmra.mrb[140].mxu0 %v10264_v6  ;;  %v13936_v6 = vld [vmem:[#allocation13 + $0x1a8] sm:$0xff]  }
 0x7d5   :  { %12138 = vmatpush3.bf16.msra.mxu0 %v13910_v24  ;;  %v13935_v24 = vld [vmem:[#allocation13 + $0x1e8] sm:$0xff]  }
 0x7d6   :  { %12139 = vmatprep.subr.bf16.mxu0 %v13911_v46  ;;  %v13937_v46 = vld [vmem:[#allocation13 + $0x1f0] sm:$0xff]  }
 0x7d9   :  { %12140 = vmatpush3.bf16.msra.mxu0 %v13912_v12  ;;  %v13938_v12 = vld [vmem:[#allocation13 + $0x1b0] sm:$0xff]  }
 0x7da   :  { %12141 = vmatprep.subr.bf16.mxu0 %v13913_v57  ;;  %v13939_v57 = vld [vmem:[#allocation13 + $0x1f8] sm:$0xff]  }
 0x7dd   :  { %12142 = vmatpush3.bf16.msra.mxu0 %v13914_v51  ;;  %v13940_v51 = vld [vmem:[#allocation13 + $0x1b8] sm:$0xff]  }
 0x7de   :  { %12143 = vmatprep.subr.bf16.mxu0 %v13915_v36  ;;  %v10234_v36 = vsub.s32 6, %v16565_v32 }
 0x7e1   :  { %12144 = vmatpush3.bf16.msra.mxu0 %v13916_v58  ;;  %v10238_v58 = vsub.s32 7, %v16565_v32 }
 0x7e2   :  { %12145 = vmatprep.subr.bf16.mxu0 %v13917_v42  ;;  %v10235_v42 = vrot.slane %v16400_v61, %v10234_v36 }
 0x7e5   :  { %12146 = vmatpush3.bf16.msra.mxu0 %v13918_v22 }
 0x7e6   :  { %12147 = vmatprep.subr.bf16.mxu0 %v13919_v26  ;;  %v10239_v26 = vrot.slane %v16400_v61, %v10238_v58 }
 0x7e9   :  { %12148 = vmatpush3.bf16.msra.mxu0 %v13920_v21 }
 0x7ea   :  { %12149 = vmatprep.subr.bf16.mxu0 %v13921_v19 }
 0x7ed   :  { %12150 = vmatpush3.bf16.msra.mxu0 %v13922_v27 }
 0x7ee   :  { %12151 = vmatprep.subr.bf16.mxu0 %v13923_v28 }
 0x7f1   :  { %12152 = vmatpush3.bf16.msra.mxu0 %v13924_v1 }
 0x7f2   :  { %12181 = vmatprep.subr.bf16.mxu0 %v13925_v56 }
 0x808   :  { %v9250_v10 = vpop.f32.mrb[88].mxu1 }
 0x809   :  { %v16418_v2 = vadd.f32 %v9250_v10, %v16388_v0  ;;  %v10150_v39 = vpop.f32.mrb[136].mxu0  ;;  %v9252_v17 = vpop.f32.mrb[89].mxu1 }
 0x80a   :  { %v10202_v31 = vadd.f32 %v10150_v39, %v16391_v11  ;;  %v16425_v30 = vadd.f32 %v9252_v17, %v16394_v20  ;;  %v10152_v34 = vpop.f32.mrb[137].mxu0  ;;  %v9254_v47 = vpop.f32.mrb[90].mxu1  ;;  %v10219_v11 = vrot.slane %v16400_v61, %v16562_v38  ;;  %v13928_v38 = vld [vmem:[#allocation13 + $0x188] sm:$0xff]  }
 0x80b   :  { %v10203_v60 = vadd.f32 %v10152_v34, %v16397_v18  ;;  %v10154_v33 = vpop.f32.mrb[138].mxu0  ;;  %v9255_v5 = vpop.f32.mrb[91].mxu1 }
 0x80c   :  { %v10252_v40 = vadd.f32 %v10227_v63, %v10202_v31  ;;  %v10155_v0 = vpop.f32.mrb[139].mxu0  ;;  %v12050_v33 = vld [vmem:[#allocation14] ss:$0 sm:$0xff] }
 0x80d   :  { %v10253_v15 = vadd.f32 %v10231_v14, %v10203_v60 }
 0x80e   :  { %v10260_v43 = vmax.f32 %v10252_v40, 0.0 }
 0x80f   :  { %v10261_v48 = vmax.f32 %v10253_v15, 0.0 }
 0x810   :  { %v10268_v41 = vpack.c.bf16 %v10260_v43, %v10260_v43 }
 0x811   :  { %v10269_v37 = vpack.c.bf16 %v10261_v48, %v10261_v48 }
 0x813   :  { %10903 = vmatprep.mubr.bf16.mxu1 %v10269_v37 }
 0x814   :  { %10904 = vmatmul.mubr.bf16.vlgmr.msra.gmra.mrb[100].mxu1 %v10268_v41 }
 0x848   :  { %v10109_v20 = vpop.f32.mrb[92].mxu1 }
 0x849   :  { %v10200_v18 = vadd.f32 %v10109_v20, %v16405_v9  ;;  %v10111_v4 = vpop.f32.mrb[93].mxu1  ;;  %v13930_v9 = vld [vmem:[#allocation13 + $0x190] sm:$0xff]  }
 0x84a   :  { %v10201_v3 = vadd.f32 %v10111_v4, %v16411_v25  ;;  %v10113_v13 = vpop.f32.mrb[94].mxu1  ;;  %v13931_v25 = vld [vmem:[#allocation13 + $0x1d8] sm:$0xff]  }
 0x84b   :  { %v10250_v54 = vadd.f32 %v10219_v11, %v10200_v18  ;;  %v10114_v35 = vpop.f32.mrb[95].mxu1 }
 0x84c   :  { %v10251_v59 = vadd.f32 %v10223_v53, %v10201_v3 }
 0x84d   :  { %v10258_v29 = vmax.f32 %v10250_v54, 0.0 }
 0x84e   :  { %v10259_v44 = vmax.f32 %v10251_v59, 0.0 }
 0x84f   :  { %v10266_v45 = vpack.c.bf16 %v10258_v29, %v10258_v29 }
 0x850   :  { %v10267_v50 = vpack.c.bf16 %v10259_v44, %v10259_v44 }
 0x852   :  { %10863 = vmatprep.mubr.bf16.mxu0 %v10267_v50 }
 0x853   :  { %10864 = vmatmul.mubr.bf16.vlgmr.msra.gmra.mrb[144].mxu0 %v10266_v45 }
 0x854   :  { %12182 = vmatpush3.bf16.msra.mxu0 %v13926_v16 }
 0x855   :  { %12183 = vmatprep.subr.bf16.mxu0 %v13927_v23 }
 0x858   :  { %12184 = vmatpush3.bf16.msra.mxu0 %v13928_v38 }
 0x859   :  { %12185 = vmatprep.subr.bf16.mxu0 %v13929_v8 }
 0x85c   :  { %12186 = vmatpush3.bf16.msra.mxu0 %v13930_v9 }
 0x85d   :  { %12187 = vmatprep.subr.bf16.mxu0 %v13931_v25 }
 0x860   :  { %12188 = vmatpush3.bf16.msra.mxu0 %v13932_v49 }
 0x861   :  { %12189 = vmatprep.subr.bf16.mxu0 %v13933_v7 }
 0x864   :  { %12190 = vmatpush3.bf16.msra.mxu0 %v13934_v55 }
 0x865   :  { %12191 = vmatprep.subr.bf16.mxu0 %v13935_v24 }
 0x868   :  { %12192 = vmatpush3.bf16.msra.mxu0 %v13936_v6 }
 0x869   :  { %12193 = vmatprep.subr.bf16.mxu0 %v13937_v46 }
 0x86c   :  { %12194 = vmatpush3.bf16.msra.mxu0 %v13938_v12 }
 0x86d   :  { %12195 = vmatprep.subr.bf16.mxu0 %v13939_v57 }
 0x870   :  { %12196 = vmatpush3.bf16.msra.mxu0 %v13940_v51 }
 0x888   :  { %v10191_v22 = vpop.f32.mrb[96].mxu1 }
 0x889   :  { %v10204_v21 = vadd.f32 %v10191_v22, %v16418_v2  ;;  %v10193_v19 = vpop.f32.mrb[97].mxu1 }
 0x88a   :  { %v10205_v27 = vadd.f32 %v10193_v19, %v16425_v30  ;;  %v10195_v28 = vpop.f32.mrb[98].mxu1 }
 0x88b   :  { %v10254_v1 = vadd.f32 %v10235_v42, %v10204_v21  ;;  %v10196_v56 = vpop.f32.mrb[99].mxu1 }
 0x88c   :  { %v10255_v10 = vadd.f32 %v10239_v26, %v10205_v27 }
 0x88d   :  { %v10262_v52 = vmax.f32 %v10254_v1, 0.0 }
 0x88e   :  { %v10263_v63 = vmax.f32 %v10255_v10, 0.0 }
 0x88f   :  { %v10270_v17 = vpack.c.bf16 %v10262_v52, %v10262_v52 }
 0x890   :  { %v10271_v39 = vpack.c.bf16 %v10263_v63, %v10263_v63 }
 0x892   :  { %10943 = vmatprep.mubr.bf16.mxu0 %v10271_v39 }
 0x893   :  { %10944 = vmatmul.mubr.bf16.vlgmr.msra.gmra.mrb[148].mxu0 %v10270_v17 }
 0x8a7   :  { %v12131_v32 = vpop.f32.mrb[140].mxu0 }
 0x8a8   :  { %v12132_v62 = vpop.f32.mrb[141].mxu0 }
 0x8a9   :  { %v12133_v14 = vadd.f32 %v12132_v62, %v12131_v32  ;;  %v12134_v31 = vpop.f32.mrb[142].mxu0 }
 0x8aa   :  { %v12135_v61 = vpop.f32.mrb[143].mxu0 }
 0x8ab   :  { %v10826_v0 = vadd.f32 %v12133_v14, %v12050_v33 }
 0x8e7   :  { %v12175_v34 = vpop.f32.mrb[100].mxu1 }
 0x8e8   :  { %v12176_v2 = vpop.f32.mrb[101].mxu1 }
 0x8e9   :  { %v12177_v47 = vadd.f32 %v12176_v2, %v12175_v34  ;;  %v12178_v60 = vpop.f32.mrb[102].mxu1 }
 0x8ea   :  { %v12179_v30 = vpop.f32.mrb[103].mxu1 }
 0x926   :  { %v12153_v5 = vpop.f32.mrb[144].mxu0 }
 0x927   :  { %v12154_v40 = vpop.f32.mrb[145].mxu0 }
 0x928   :  { %v12155_v15 = vadd.f32 %v12154_v40, %v12153_v5  ;;  %v12156_v43 = vpop.f32.mrb[146].mxu0 }
 0x929   :  { %v12157_v48 = vpop.f32.mrb[147].mxu0 }
 0x92a   :  { %v10866_v37 = vadd.f32 %v12155_v15, %v10826_v0 }
 0x92c   :  { %v10906_v41 = vadd.f32 %v12177_v47, %v10866_v37 }
 0x966   :  { %v12197_v11 = vpop.f32.mrb[148].mxu0 }
 0x967   :  { %v12198_v20 = vpop.f32.mrb[149].mxu0 }
 0x968   :  { %v12199_v53 = vadd.f32 %v12198_v20, %v12197_v11  ;;  %v12200_v18 = vpop.f32.mrb[150].mxu0 }
 0x969   :  { %v12201_v4 = vpop.f32.mrb[151].mxu0 }
 0x96a   :  { %v10946_v3 = vadd.f32 %v12199_v53, %v10906_v41 }
 0x96c   :  { %10951 = vmax.xlane.f32.xlu0 %v10946_v3 }
 0x9f9   :  { %v10952_v13 = vpop.xlane.xlu0 %10951 }
 0x9fa   :  { %v10953_v54 = vsub.f32 %v10946_v3, %v10952_v13 }
 0x9fc   :  { %v10954_v35 = vmul.f32 1.442695, %v10953_v54 }
 0x9fe   :  { %13941 = vpow2.f32 %v10954_v35 }
 0xa08   :  { %v13942_v59 = vpop.eup %13941 }
 0xa09   :  { %10956 = vadd.xlane.f32.xlu1 %v13942_v59 }
 0xa96   :  { %v10957_v29 = vpop.xlane.xlu1 %10956 }
 0xa97   :  { %13943 = vrcp.f32 %v10957_v29 }
 0xaa1   :  { %v13944_v44 = vpop.eup %13943 }
 0xaa2   :  { %v10959_v50 = vmul.f32 %v13944_v44, %v13942_v59 }
 0xaa4   :  { %10960 = vst [vmem:[#allocation16] sm:$0xff] %v10959_v50 }
 0xaa5   :  { %14155 = shalt.err (!%p14152_p12)
}
 0xaa6   :  { %s14156_s21 = scalar_lea.hbm %s16461_s9, 128 }
 0xaa7   :  { %p14157_p13 = scmp.ne.s32.totalorder %s16461_s9, %s14156_s21  ;;  %p14160_p0 = scmp.lt.u32.totalorder %s14156_s21, %s16461_s9 }
 0xaa9   :  { %p14162_p1 = pnand %p14160_p0, %p14157_p13 }
 0xaab   :  { %14165 = shalt.err (!%p14162_p1)
}
 0xaac   :  { %10970 = dma.vmem_to_hbm [thread:$0]  %s10968_s5, 128, %s16461_s9, [#allocation4]  }
 0xaad   :  { %14176 = dma.done.wait [#allocation4], 128  }
 0xaae   :  { %14177 = vsyncadd [#allocation4], 4294967168 }
 0xaaf   :  { %10974 = vsyncpa [#allocation3], 1 }
 0xab0   :  { %10975 = vsyncpa [#allocation6], 1 }
 0xab1   :  { %10976 = vsyncpa [#allocation9], 1 }
 0xab2   :  { %10977 = vsyncpa [#allocation12], 1 }
 0xab3   :  { %10978 = vsyncpa [#allocation15], 1 }
 0xab4   :  { %10979 = vsyncpa [#allocation4], 1 }

</bundles_post_ra>
